<compile_context>
chip_gen: v7x
topology: tpu7x:2x2x1
jax: 0.10.0
libtpu: 0.0.40
codegen_flags: <defaults>
</compile_context>

<pallas_src>
import math

import numpy as np

import jax
import jax.numpy as jnp
from jax.experimental import pallas as pl
from jax.experimental.pallas import tpu as pltpu

E_LAMBDA = 1e-4          # SimAM e_lambda
BN_EPS = 1e-5            # nn.BatchNorm1d default eps
CH = (16, 32, 64, 128, 256)
FC_OUT = 256
K1, S1, P1 = 64, 15, 1   # conv1: kernel / stride / padding


# --------------------------------- kernel ------------------------------------

def _make_kernel(BB, Ls):
    """Build the fused kernel for a batch-block of BB samples and lengths Ls."""
    Ms = tuple(BB * l for l in Ls)                       # rows per layer
    slots = tuple(((m + 127) // 128) * 128 for m in Ms)  # 128-aligned seg slots

    wrows = [K1] + [3 * c for c in CH[:-1]] + [2 * CH[-1]]
    woff = [0]
    for r in wrows:
        woff.append(woff[-1] + r)
    soff = [0]
    for s in slots:
        soff.append(soff[-1] + s)
    poff = [0]
    for m in Ms[1:5]:
        poff.append(poff[-1] + m)

    L5 = Ls[4]
    e0 = -(-L5 // 2)      # ceil(L5/2)  (first adaptive-max bin end)
    s1 = L5 // 2          # floor(L5/2) (second adaptive-max bin start)

    def kernel(patches_ref, w_ref, ss_ref, seg_ref, segb_ref, pool_ref,
               sel_ref, out_ref):

        def simam(v, idx):
            # SimAM over the length axis of each sample (segments of L rows).
            L = Ls[idx]
            M = Ms[idx]
            seg = seg_ref[:, soff[idx]:soff[idx] + M]     # (BB, M) segment sum
            segb = segb_ref[soff[idx]:soff[idx] + M, :]   # (M, BB) broadcast
            mu = jnp.dot(
                segb,
                jnp.dot(seg, v, preferred_element_type=jnp.float32) * (1.0 / L),
                preferred_element_type=jnp.float32)
            d = (v - mu) ** 2
            sd = jnp.dot(segb,
                         jnp.dot(seg, d, preferred_element_type=jnp.float32),
                         preferred_element_type=jnp.float32)
            y = d / (4.0 * (sd * (1.0 / (L - 1)) + E_LAMBDA)) + 0.5
            return v * jax.nn.sigmoid(y)

        # ---- conv1 (im2col patches @ W1) + BN + SimAM + ReLU ----------------
        c1 = CH[0]
        x = jnp.dot(patches_ref[...], w_ref[0:woff[1], 0:c1],
                    preferred_element_type=jnp.float32)
        x = x * ss_ref[0:1, 0:c1] + ss_ref[1:2, 0:c1]
        x = jnp.maximum(simam(x, 0), 0.0)

        # ---- 4 x [avg-pool fused with k=3 shifts -> matmul -> BN -> SimAM -> ReLU]
        for idx in range(1, 5):
            cout = CH[idx]
            Min, Mout = Ms[idx - 1], Ms[idx]
            base = 3 * poff[idx - 1]
            # prev / centre / next taps of the pooled sequence (f32 pooling)
            taps = [
                jnp.dot(pool_ref[base + t * Mout:base + (t + 1) * Mout, 0:Min], x,
                        preferred_element_type=jnp.float32)
                for t in range(3)
            ]
            xc = jnp.concatenate(taps, axis=1).astype(jnp.bfloat16)  # (Mout, 3*Cin)
            y = jnp.dot(xc, w_ref[woff[idx]:woff[idx + 1], 0:cout],
                        preferred_element_type=jnp.float32)
            y = (y * ss_ref[2 * idx:2 * idx + 1, 0:cout]
                 + ss_ref[2 * idx + 1:2 * idx + 2, 0:cout])
            x = jnp.maximum(simam(y, idx), 0.0)

        # ---- AdaptiveMaxPool1d(2) per sample, then fc -----------------------
        def bin_max(lo, hi):
            g = jnp.dot(sel_ref[lo], x, preferred_element_type=jnp.float32)
            for j in range(lo + 1, hi):
                g = jnp.maximum(
                    g, jnp.dot(sel_ref[j], x, preferred_element_type=jnp.float32))
            return g

        g = jnp.concatenate([bin_max(0, e0), bin_max(s1, L5)],
                            axis=1).astype(jnp.bfloat16)             # (BB, 512)
        out = (jnp.dot(g, w_ref[woff[5]:woff[6], 0:FC_OUT],
                       preferred_element_type=jnp.float32)
               + ss_ref[10:11, 0:FC_OUT])
        out_ref[...] = out.astype(out_ref.dtype)

    return kernel


# ----------------------------- parameter setup --------------------------------

def init_params(key):
    ks = iter(jax.random.split(key, 16))

    def u(k, shape, fan_in):
        bound = 1.0 / math.sqrt(fan_in)
        return jax.random.uniform(k, shape, jnp.float32, -bound, bound)

    p = {}
    p["w1"] = u(next(ks), (16, 1, 64), 1 * 64)
    p["b1"] = u(next(ks), (16,), 1 * 64)
    for i, (cin, cout) in enumerate(((16, 32), (32, 64), (64, 128), (128, 256)),
                                    start=2):
        p[f"w{i}"] = u(next(ks), (cout, cin, 3), cin * 3)
        p[f"b{i}"] = u(next(ks), (cout,), cin * 3)
    for i, c in zip(range(1, 6), CH):
        p[f"bn{i}_gamma"] = jnp.ones((c,), jnp.float32)
        p[f"bn{i}_beta"] = jnp.zeros((c,), jnp.float32)
        p[f"bn{i}_mean"] = jnp.zeros((c,), jnp.float32)
        p[f"bn{i}_var"] = jnp.ones((c,), jnp.float32)
    p["wfc"] = u(next(ks), (256, 512), 512)
    p["bfc"] = u(next(ks), (256,), 512)
    return p


def _pack_operands(params, BB, Ls):
    """Pack all weights / structure matrices into a few kernel-input slabs."""
    Ms = [BB * l for l in Ls]
    f32 = jnp.float32

    # --- conv / fc weights -> one lane-padded bf16 slab ---
    mats = [params["w1"][:, 0, :].T]                                  # (64, 16)
    for i in range(2, 6):
        w = params[f"w{i}"]                                           # (cout, cin, 3)
        cout, cin, _ = w.shape
        mats.append(jnp.transpose(w, (2, 1, 0)).reshape(3 * cin, cout))
    wfc = params["wfc"]                                               # (256, 512)
    mats.append(jnp.concatenate([wfc[:, 0::2].T, wfc[:, 1::2].T], axis=0))
    tot_rows = sum(int(m.shape[0]) for m in mats)
    w_slab = jnp.zeros((tot_rows, FC_OUT), jnp.bfloat16)
    r = 0
    for m in mats:
        w_slab = w_slab.at[r:r + m.shape[0], :m.shape[1]].set(m.astype(jnp.bfloat16))
        r += int(m.shape[0])

    # --- folded conv-bias + BatchNorm scale/shift rows, fc bias row (f32) ---
    ss = jnp.zeros((11, FC_OUT), f32)
    for i in range(1, 6):
        c = CH[i - 1]
        s = params[f"bn{i}_gamma"] / jnp.sqrt(params[f"bn{i}_var"] + BN_EPS)
        t = (params[f"b{i}"] - params[f"bn{i}_mean"]) * s + params[f"bn{i}_beta"]
        ss = ss.at[2 * (i - 1), :c].set(s)
        ss = ss.at[2 * (i - 1) + 1, :c].set(t)
    ss = ss.at[10, :].set(params["bfc"])

    # --- SimAM segment-sum / segment-broadcast matrices (f32) ---
    slots = [((m + 127) // 128) * 128 for m in Ms]
    seg_np = np.zeros((BB, sum(slots)), np.float32)
    off = 0
    for L, M, S in zip(Ls, Ms, slots):
        seg_np[np.arange(M) // L, off + np.arange(M)] = 1.0
        off += S
    seg = jnp.asarray(seg_np)
    segb = jnp.asarray(seg_np.T)

    # --- fused [AvgPool1d(2,2) + k=3 shift-with-zero-pad] tap matrices (f32) ---
    pool_np = np.zeros((3 * sum(Ms[1:5]), Ms[0]), np.float32)
    r = 0
    for idx in range(1, 5):
        Lin, Lout, Mout = Ls[idx - 1], Ls[idx], Ms[idx]
        o = np.arange(Mout)
        b, lp = o // Lout, o % Lout
        for block, shift in ((0, -1), (1, 0), (2, 1)):    # prev / centre / next
            lq = lp + shift
            valid = (lq >= 0) & (lq < Lout)
            i0 = b * Lin + 2 * lq
            rows = r + block * Mout + o[valid]
            pool_np[rows, i0[valid]] = 0.5
            pool_np[rows, i0[valid] + 1] = 0.5
        r += 3 * Mout
    pool = jnp.asarray(pool_np)

    # --- AdaptiveMaxPool1d(2) row selectors: sel[j] picks position j per sample ---
    L5, M5 = Ls[4], Ms[4]
    sel_np = np.zeros((L5, BB, M5), np.float32)
    for j in range(L5):
        sel_np[j, np.arange(BB), np.arange(BB) * L5 + j] = 1.0
    sel = jnp.asarray(sel_np)

    return w_slab, ss, seg, segb, pool, sel


# --------------------------------- wrapper ------------------------------------

def simcnn_forward(x, params, *, block_batch=16):
    """x: (B, 1, L0) NCL float32 -> (B, 256) float32."""
    B, cin, L0 = x.shape
    assert cin == 1
    L1 = (L0 + 2 * P1 - K1) // S1 + 1
    Ls = [L1]
    for _ in range(4):
        Ls.append(Ls[-1] // 2)
    Ls = tuple(Ls)
    assert Ls[4] >= 2, "input too short for SimCNN"

    BB = min(block_batch, B)
    Bp = -(-B // BB) * BB

    # im2col glue for the stride-15 / k=64 conv1 (matmul happens in-kernel)
    x_pad = jnp.pad(x, ((0, 0), (0, 0), (P1, P1)))
    idx = S1 * jnp.arange(L1)[:, None] + jnp.arange(K1)[None, :]
    patches = x_pad[:, 0, :][:, idx].reshape(B * L1, K1)
    if Bp > B:
        patches = jnp.pad(patches, ((0, (Bp - B) * L1), (0, 0)))
    patches = patches.astype(jnp.bfloat16)

    slabs = _pack_operands(params, BB, Ls)

    in_specs = [pl.BlockSpec((BB * L1, K1), lambda i: (i, 0))]
    for a in slabs:
        in_specs.append(pl.BlockSpec(a.shape, lambda i, _nd=a.ndim: (0,) * _nd))

    out = pl.pallas_call(
        _make_kernel(BB, Ls),
        out_shape=jax.ShapeDtypeStruct((Bp, FC_OUT), jnp.float32),
        grid_spec=pltpu.PrefetchScalarGridSpec(
            num_scalar_prefetch=0,
            grid=(Bp // BB,),
            in_specs=in_specs,
            out_specs=pl.BlockSpec((BB, FC_OUT), lambda i: (i, 0)),
        ),
        compiler_params=pltpu.CompilerParams(
            dimension_semantics=("parallel",)),
    )(patches, *slabs)
    return out[:B]


if __name__ == "__main__":
    key = jax.random.PRNGKey(0)
    kx, kp = jax.random.split(key)

    # conv1 (k=64, s=15, p=1) needs L0 >= 527 so that the final length is >= 2.
    B, C_IN, L0 = 24, 1, 527
    x = jax.random.normal(kx, (B, C_IN, L0), jnp.float32)
    params = init_params(kp)

    y = simcnn_forward(x, params, block_batch=16)
    y = jax.block_until_ready(y)
    assert y.shape == (B, 256) and y.dtype == jnp.float32
    assert bool(jnp.all(jnp.isfinite(y)))
    print("KERNEL_OK")
</pallas_src>

<mosaic_0001>
module attributes {stable_mosaic.version = 11 : i64} {
  func.func @kernel(%arg0: i32, %arg1: memref<512x64xbf16, #tpu.memory_space<vmem>>, %arg2: memref<1296x256xbf16, #tpu.memory_space<vmem>>, %arg3: memref<11x256xf32, #tpu.memory_space<vmem>>, %arg4: memref<16x1152xf32, #tpu.memory_space<vmem>>, %arg5: memref<1152x16xf32, #tpu.memory_space<vmem>>, %arg6: memref<1440x512xf32, #tpu.memory_space<vmem>>, %arg7: memref<2x16x32xf32, #tpu.memory_space<vmem>>, %arg8: memref<16x256xf32, #tpu.memory_space<vmem>>) attributes {dimension_semantics = [#tpu.dimension_semantics<parallel>], iteration_bounds = array<i64: 2>, scalar_prefetch = 0 : i64, scratch_operands = 0 : i64, tpu.core_type = #tpu.core_type<tc>, window_params = [{transform_indices = @transform_0, window_bounds = array<i64: 512, 64>}, {pipeline_mode = #tpu.pipeline_mode<synchronous>, transform_indices = @transform_1, window_bounds = array<i64: 1296, 256>}, {pipeline_mode = #tpu.pipeline_mode<synchronous>, transform_indices = @transform_2, window_bounds = array<i64: 11, 256>}, {pipeline_mode = #tpu.pipeline_mode<synchronous>, transform_indices = @transform_3, window_bounds = array<i64: 16, 1152>}, {pipeline_mode = #tpu.pipeline_mode<synchronous>, transform_indices = @transform_4, window_bounds = array<i64: 1152, 16>}, {pipeline_mode = #tpu.pipeline_mode<synchronous>, transform_indices = @transform_5, window_bounds = array<i64: 1440, 512>}, {pipeline_mode = #tpu.pipeline_mode<synchronous>, transform_indices = @transform_6, window_bounds = array<i64: 2, 16, 32>}, {transform_indices = @transform_7, window_bounds = array<i64: 16, 256>}]} {
    %c0 = arith.constant 0 : index
    %c0_0 = arith.constant 0 : index
    %0 = vector.load %arg1[%c0, %c0_0] : memref<512x64xbf16, #tpu.memory_space<vmem>>, vector<512x64xbf16>
    %c0_1 = arith.constant 0 : index
    %c0_2 = arith.constant 0 : index
    %1 = vector.load %arg2[%c0_1, %c0_2] : memref<1296x256xbf16, #tpu.memory_space<vmem>>, vector<64x16xbf16>
    %cst = arith.constant dense<0.000000e+00> : vector<512x16xf32>
    %2 = tpu.matmul %0, %1, %cst {dimension_numbers = #tpu.dot_dimension_numbers<[1], [0], [0], [1], [0, 0, 1, 1], [], []>} : vector<512x64xbf16>, vector<64x16xbf16>, vector<512x16xf32> -> vector<512x16xf32>
    %c0_3 = arith.constant 0 : index
    %c0_4 = arith.constant 0 : index
    %3 = vector.load %arg3[%c0_3, %c0_4] : memref<11x256xf32, #tpu.memory_space<vmem>>, vector<1x16xf32>
    %4 = vector.broadcast %3 : vector<1x16xf32> to vector<512x16xf32>
    %5 = arith.mulf %2, %4 : vector<512x16xf32>
    %c1 = arith.constant 1 : index
    %c0_5 = arith.constant 0 : index
    %6 = vector.load %arg3[%c1, %c0_5] : memref<11x256xf32, #tpu.memory_space<vmem>>, vector<1x16xf32>
    %7 = vector.broadcast %6 : vector<1x16xf32> to vector<512x16xf32>
    %8 = arith.addf %5, %7 : vector<512x16xf32>
    %c0_6 = arith.constant 0 : index
    %c0_7 = arith.constant 0 : index
    %9 = vector.load %arg4[%c0_6, %c0_7] : memref<16x1152xf32, #tpu.memory_space<vmem>>, vector<16x512xf32>
    %c0_8 = arith.constant 0 : index
    %c0_9 = arith.constant 0 : index
    %10 = vector.load %arg5[%c0_8, %c0_9] : memref<1152x16xf32, #tpu.memory_space<vmem>>, vector<512x16xf32>
    %cst_10 = arith.constant dense<0.000000e+00> : vector<16x16xf32>
    %11 = tpu.matmul %9, %8, %cst_10 {dimension_numbers = #tpu.dot_dimension_numbers<[1], [0], [0], [1], [0, 0, 1, 1], [], []>} : vector<16x512xf32>, vector<512x16xf32>, vector<16x16xf32> -> vector<16x16xf32>
    %cst_11 = arith.constant 3.125000e-02 : f32
    %12 = vector.broadcast %cst_11 : f32 to vector<16x16xf32>
    %13 = arith.mulf %11, %12 : vector<16x16xf32>
    %cst_12 = arith.constant dense<0.000000e+00> : vector<512x16xf32>
    %14 = tpu.matmul %10, %13, %cst_12 {dimension_numbers = #tpu.dot_dimension_numbers<[1], [0], [0], [1], [0, 0, 1, 1], [], []>} : vector<512x16xf32>, vector<16x16xf32>, vector<512x16xf32> -> vector<512x16xf32>
    %15 = arith.subf %8, %14 : vector<512x16xf32>
    %16 = arith.mulf %15, %15 : vector<512x16xf32>
    %cst_13 = arith.constant dense<0.000000e+00> : vector<16x16xf32>
    %17 = tpu.matmul %9, %16, %cst_13 {dimension_numbers = #tpu.dot_dimension_numbers<[1], [0], [0], [1], [0, 0, 1, 1], [], []>} : vector<16x512xf32>, vector<512x16xf32>, vector<16x16xf32> -> vector<16x16xf32>
    %cst_14 = arith.constant dense<0.000000e+00> : vector<512x16xf32>
    %18 = tpu.matmul %10, %17, %cst_14 {dimension_numbers = #tpu.dot_dimension_numbers<[1], [0], [0], [1], [0, 0, 1, 1], [], []>} : vector<512x16xf32>, vector<16x16xf32>, vector<512x16xf32> -> vector<512x16xf32>
    %cst_15 = arith.constant 0.0322580636 : f32
    %19 = vector.broadcast %cst_15 : f32 to vector<512x16xf32>
    %20 = arith.mulf %18, %19 : vector<512x16xf32>
    %cst_16 = arith.constant 9.99999974E-5 : f32
    %21 = vector.broadcast %cst_16 : f32 to vector<512x16xf32>
    %22 = arith.addf %20, %21 : vector<512x16xf32>
    %cst_17 = arith.constant 4.000000e+00 : f32
    %23 = vector.broadcast %cst_17 : f32 to vector<512x16xf32>
    %24 = arith.mulf %23, %22 : vector<512x16xf32>
    %25 = arith.divf %16, %24 : vector<512x16xf32>
    %cst_18 = arith.constant 5.000000e-01 : f32
    %26 = vector.broadcast %cst_18 : f32 to vector<512x16xf32>
    %27 = arith.addf %25, %26 : vector<512x16xf32>
    %28 = arith.negf %27 : vector<512x16xf32>
    %29 = math.exp %28 : vector<512x16xf32>
    %cst_19 = arith.constant 1.000000e+00 : f32
    %30 = vector.broadcast %cst_19 : f32 to vector<512x16xf32>
    %31 = arith.addf %30, %29 : vector<512x16xf32>
    %32 = arith.divf %30, %31 : vector<512x16xf32>
    %33 = arith.mulf %8, %32 : vector<512x16xf32>
    %cst_20 = arith.constant 0.000000e+00 : f32
    %34 = vector.broadcast %cst_20 : f32 to vector<512x16xf32>
    %35 = arith.maximumf %33, %34 : vector<512x16xf32>
    %c0_21 = arith.constant 0 : index
    %c0_22 = arith.constant 0 : index
    %36 = vector.load %arg6[%c0_21, %c0_22] : memref<1440x512xf32, #tpu.memory_space<vmem>>, vector<256x512xf32>
    %cst_23 = arith.constant dense<0.000000e+00> : vector<256x16xf32>
    %37 = tpu.matmul %36, %35, %cst_23 {dimension_numbers = #tpu.dot_dimension_numbers<[1], [0], [0], [1], [0, 0, 1, 1], [], []>} : vector<256x512xf32>, vector<512x16xf32>, vector<256x16xf32> -> vector<256x16xf32>
    %c256 = arith.constant 256 : index
    %c0_24 = arith.constant 0 : index
    %38 = vector.load %arg6[%c256, %c0_24] : memref<1440x512xf32, #tpu.memory_space<vmem>>, vector<256x512xf32>
    %cst_25 = arith.constant dense<0.000000e+00> : vector<256x16xf32>
    %39 = tpu.matmul %38, %35, %cst_25 {dimension_numbers = #tpu.dot_dimension_numbers<[1], [0], [0], [1], [0, 0, 1, 1], [], []>} : vector<256x512xf32>, vector<512x16xf32>, vector<256x16xf32> -> vector<256x16xf32>
    %c512 = arith.constant 512 : index
    %c0_26 = arith.constant 0 : index
    %40 = vector.load %arg6[%c512, %c0_26] : memref<1440x512xf32, #tpu.memory_space<vmem>>, vector<256x512xf32>
    %cst_27 = arith.constant dense<0.000000e+00> : vector<256x16xf32>
    %41 = tpu.matmul %40, %35, %cst_27 {dimension_numbers = #tpu.dot_dimension_numbers<[1], [0], [0], [1], [0, 0, 1, 1], [], []>} : vector<256x512xf32>, vector<512x16xf32>, vector<256x16xf32> -> vector<256x16xf32>
    %42 = tpu.concatenate %37, %39, %41 in 1 : vector<256x16xf32>, vector<256x16xf32>, vector<256x16xf32> -> vector<256x48xf32>
    %43 = arith.truncf %42 : vector<256x48xf32> to vector<256x48xbf16>
    %c64 = arith.constant 64 : index
    %c0_28 = arith.constant 0 : index
    %44 = vector.load %arg2[%c64, %c0_28] : memref<1296x256xbf16, #tpu.memory_space<vmem>>, vector<48x32xbf16>
    %cst_29 = arith.constant dense<0.000000e+00> : vector<256x32xf32>
    %45 = tpu.matmul %43, %44, %cst_29 {dimension_numbers = #tpu.dot_dimension_numbers<[1], [0], [0], [1], [0, 0, 1, 1], [], []>} : vector<256x48xbf16>, vector<48x32xbf16>, vector<256x32xf32> -> vector<256x32xf32>
    %c2 = arith.constant 2 : index
    %c0_30 = arith.constant 0 : index
    %46 = vector.load %arg3[%c2, %c0_30] : memref<11x256xf32, #tpu.memory_space<vmem>>, vector<1x32xf32>
    %47 = vector.broadcast %46 : vector<1x32xf32> to vector<256x32xf32>
    %48 = arith.mulf %45, %47 : vector<256x32xf32>
    %c3 = arith.constant 3 : index
    %c0_31 = arith.constant 0 : index
    %49 = vector.load %arg3[%c3, %c0_31] : memref<11x256xf32, #tpu.memory_space<vmem>>, vector<1x32xf32>
    %50 = vector.broadcast %49 : vector<1x32xf32> to vector<256x32xf32>
    %51 = arith.addf %48, %50 : vector<256x32xf32>
    %c0_32 = arith.constant 0 : index
    %c512_33 = arith.constant 512 : index
    %52 = vector.load %arg4[%c0_32, %c512_33] : memref<16x1152xf32, #tpu.memory_space<vmem>>, vector<16x256xf32>
    %c512_34 = arith.constant 512 : index
    %c0_35 = arith.constant 0 : index
    %53 = vector.load %arg5[%c512_34, %c0_35] : memref<1152x16xf32, #tpu.memory_space<vmem>>, vector<256x16xf32>
    %cst_36 = arith.constant dense<0.000000e+00> : vector<16x32xf32>
    %54 = tpu.matmul %52, %51, %cst_36 {dimension_numbers = #tpu.dot_dimension_numbers<[1], [0], [0], [1], [0, 0, 1, 1], [], []>} : vector<16x256xf32>, vector<256x32xf32>, vector<16x32xf32> -> vector<16x32xf32>
    %cst_37 = arith.constant 6.250000e-02 : f32
    %55 = vector.broadcast %cst_37 : f32 to vector<16x32xf32>
    %56 = arith.mulf %54, %55 : vector<16x32xf32>
    %cst_38 = arith.constant dense<0.000000e+00> : vector<256x32xf32>
    %57 = tpu.matmul %53, %56, %cst_38 {dimension_numbers = #tpu.dot_dimension_numbers<[1], [0], [0], [1], [0, 0, 1, 1], [], []>} : vector<256x16xf32>, vector<16x32xf32>, vector<256x32xf32> -> vector<256x32xf32>
    %58 = arith.subf %51, %57 : vector<256x32xf32>
    %59 = arith.mulf %58, %58 : vector<256x32xf32>
    %cst_39 = arith.constant dense<0.000000e+00> : vector<16x32xf32>
    %60 = tpu.matmul %52, %59, %cst_39 {dimension_numbers = #tpu.dot_dimension_numbers<[1], [0], [0], [1], [0, 0, 1, 1], [], []>} : vector<16x256xf32>, vector<256x32xf32>, vector<16x32xf32> -> vector<16x32xf32>
    %cst_40 = arith.constant dense<0.000000e+00> : vector<256x32xf32>
    %61 = tpu.matmul %53, %60, %cst_40 {dimension_numbers = #tpu.dot_dimension_numbers<[1], [0], [0], [1], [0, 0, 1, 1], [], []>} : vector<256x16xf32>, vector<16x32xf32>, vector<256x32xf32> -> vector<256x32xf32>
    %cst_41 = arith.constant 0.0666666701 : f32
    %62 = vector.broadcast %cst_41 : f32 to vector<256x32xf32>
    %63 = arith.mulf %61, %62 : vector<256x32xf32>
    %cst_42 = arith.constant 9.99999974E-5 : f32
    %64 = vector.broadcast %cst_42 : f32 to vector<256x32xf32>
    %65 = arith.addf %63, %64 : vector<256x32xf32>
    %cst_43 = arith.constant 4.000000e+00 : f32
    %66 = vector.broadcast %cst_43 : f32 to vector<256x32xf32>
    %67 = arith.mulf %66, %65 : vector<256x32xf32>
    %68 = arith.divf %59, %67 : vector<256x32xf32>
    %cst_44 = arith.constant 5.000000e-01 : f32
    %69 = vector.broadcast %cst_44 : f32 to vector<256x32xf32>
    %70 = arith.addf %68, %69 : vector<256x32xf32>
    %71 = arith.negf %70 : vector<256x32xf32>
    %72 = math.exp %71 : vector<256x32xf32>
    %cst_45 = arith.constant 1.000000e+00 : f32
    %73 = vector.broadcast %cst_45 : f32 to vector<256x32xf32>
    %74 = arith.addf %73, %72 : vector<256x32xf32>
    %75 = arith.divf %73, %74 : vector<256x32xf32>
    %76 = arith.mulf %51, %75 : vector<256x32xf32>
    %cst_46 = arith.constant 0.000000e+00 : f32
    %77 = vector.broadcast %cst_46 : f32 to vector<256x32xf32>
    %78 = arith.maximumf %76, %77 : vector<256x32xf32>
    %c768 = arith.constant 768 : index
    %c0_47 = arith.constant 0 : index
    %79 = vector.load %arg6[%c768, %c0_47] : memref<1440x512xf32, #tpu.memory_space<vmem>>, vector<128x256xf32>
    %cst_48 = arith.constant dense<0.000000e+00> : vector<128x32xf32>
    %80 = tpu.matmul %79, %78, %cst_48 {dimension_numbers = #tpu.dot_dimension_numbers<[1], [0], [0], [1], [0, 0, 1, 1], [], []>} : vector<128x256xf32>, vector<256x32xf32>, vector<128x32xf32> -> vector<128x32xf32>
    %c896 = arith.constant 896 : index
    %c0_49 = arith.constant 0 : index
    %81 = vector.load %arg6[%c896, %c0_49] : memref<1440x512xf32, #tpu.memory_space<vmem>>, vector<128x256xf32>
    %cst_50 = arith.constant dense<0.000000e+00> : vector<128x32xf32>
    %82 = tpu.matmul %81, %78, %cst_50 {dimension_numbers = #tpu.dot_dimension_numbers<[1], [0], [0], [1], [0, 0, 1, 1], [], []>} : vector<128x256xf32>, vector<256x32xf32>, vector<128x32xf32> -> vector<128x32xf32>
    %c1024 = arith.constant 1024 : index
    %c0_51 = arith.constant 0 : index
    %83 = vector.load %arg6[%c1024, %c0_51] : memref<1440x512xf32, #tpu.memory_space<vmem>>, vector<128x256xf32>
    %cst_52 = arith.constant dense<0.000000e+00> : vector<128x32xf32>
    %84 = tpu.matmul %83, %78, %cst_52 {dimension_numbers = #tpu.dot_dimension_numbers<[1], [0], [0], [1], [0, 0, 1, 1], [], []>} : vector<128x256xf32>, vector<256x32xf32>, vector<128x32xf32> -> vector<128x32xf32>
    %85 = tpu.concatenate %80, %82, %84 in 1 : vector<128x32xf32>, vector<128x32xf32>, vector<128x32xf32> -> vector<128x96xf32>
    %86 = arith.truncf %85 : vector<128x96xf32> to vector<128x96xbf16>
    %c112 = arith.constant 112 : index
    %c0_53 = arith.constant 0 : index
    %87 = vector.load %arg2[%c112, %c0_53] : memref<1296x256xbf16, #tpu.memory_space<vmem>>, vector<96x64xbf16>
    %cst_54 = arith.constant dense<0.000000e+00> : vector<128x64xf32>
    %88 = tpu.matmul %86, %87, %cst_54 {dimension_numbers = #tpu.dot_dimension_numbers<[1], [0], [0], [1], [0, 0, 1, 1], [], []>} : vector<128x96xbf16>, vector<96x64xbf16>, vector<128x64xf32> -> vector<128x64xf32>
    %c4 = arith.constant 4 : index
    %c0_55 = arith.constant 0 : index
    %89 = vector.load %arg3[%c4, %c0_55] : memref<11x256xf32, #tpu.memory_space<vmem>>, vector<1x64xf32>
    %90 = vector.broadcast %89 : vector<1x64xf32> to vector<128x64xf32>
    %91 = arith.mulf %88, %90 : vector<128x64xf32>
    %c5 = arith.constant 5 : index
    %c0_56 = arith.constant 0 : index
    %92 = vector.load %arg3[%c5, %c0_56] : memref<11x256xf32, #tpu.memory_space<vmem>>, vector<1x64xf32>
    %93 = vector.broadcast %92 : vector<1x64xf32> to vector<128x64xf32>
    %94 = arith.addf %91, %93 : vector<128x64xf32>
    %c0_57 = arith.constant 0 : index
    %c768_58 = arith.constant 768 : index
    %95 = vector.load %arg4[%c0_57, %c768_58] : memref<16x1152xf32, #tpu.memory_space<vmem>>, vector<16x128xf32>
    %c768_59 = arith.constant 768 : index
    %c0_60 = arith.constant 0 : index
    %96 = vector.load %arg5[%c768_59, %c0_60] : memref<1152x16xf32, #tpu.memory_space<vmem>>, vector<128x16xf32>
    %cst_61 = arith.constant dense<0.000000e+00> : vector<16x64xf32>
    %97 = tpu.matmul %95, %94, %cst_61 {dimension_numbers = #tpu.dot_dimension_numbers<[1], [0], [0], [1], [0, 0, 1, 1], [], []>} : vector<16x128xf32>, vector<128x64xf32>, vector<16x64xf32> -> vector<16x64xf32>
    %cst_62 = arith.constant 1.250000e-01 : f32
    %98 = vector.broadcast %cst_62 : f32 to vector<16x64xf32>
    %99 = arith.mulf %97, %98 : vector<16x64xf32>
    %cst_63 = arith.constant dense<0.000000e+00> : vector<128x64xf32>
    %100 = tpu.matmul %96, %99, %cst_63 {dimension_numbers = #tpu.dot_dimension_numbers<[1], [0], [0], [1], [0, 0, 1, 1], [], []>} : vector<128x16xf32>, vector<16x64xf32>, vector<128x64xf32> -> vector<128x64xf32>
    %101 = arith.subf %94, %100 : vector<128x64xf32>
    %102 = arith.mulf %101, %101 : vector<128x64xf32>
    %cst_64 = arith.constant dense<0.000000e+00> : vector<16x64xf32>
    %103 = tpu.matmul %95, %102, %cst_64 {dimension_numbers = #tpu.dot_dimension_numbers<[1], [0], [0], [1], [0, 0, 1, 1], [], []>} : vector<16x128xf32>, vector<128x64xf32>, vector<16x64xf32> -> vector<16x64xf32>
    %cst_65 = arith.constant dense<0.000000e+00> : vector<128x64xf32>
    %104 = tpu.matmul %96, %103, %cst_65 {dimension_numbers = #tpu.dot_dimension_numbers<[1], [0], [0], [1], [0, 0, 1, 1], [], []>} : vector<128x16xf32>, vector<16x64xf32>, vector<128x64xf32> -> vector<128x64xf32>
    %cst_66 = arith.constant 0.142857149 : f32
    %105 = vector.broadcast %cst_66 : f32 to vector<128x64xf32>
    %106 = arith.mulf %104, %105 : vector<128x64xf32>
    %cst_67 = arith.constant 9.99999974E-5 : f32
    %107 = vector.broadcast %cst_67 : f32 to vector<128x64xf32>
    %108 = arith.addf %106, %107 : vector<128x64xf32>
    %cst_68 = arith.constant 4.000000e+00 : f32
    %109 = vector.broadcast %cst_68 : f32 to vector<128x64xf32>
    %110 = arith.mulf %109, %108 : vector<128x64xf32>
    %111 = arith.divf %102, %110 : vector<128x64xf32>
    %cst_69 = arith.constant 5.000000e-01 : f32
    %112 = vector.broadcast %cst_69 : f32 to vector<128x64xf32>
    %113 = arith.addf %111, %112 : vector<128x64xf32>
    %114 = arith.negf %113 : vector<128x64xf32>
    %115 = math.exp %114 : vector<128x64xf32>
    %cst_70 = arith.constant 1.000000e+00 : f32
    %116 = vector.broadcast %cst_70 : f32 to vector<128x64xf32>
    %117 = arith.addf %116, %115 : vector<128x64xf32>
    %118 = arith.divf %116, %117 : vector<128x64xf32>
    %119 = arith.mulf %94, %118 : vector<128x64xf32>
    %cst_71 = arith.constant 0.000000e+00 : f32
    %120 = vector.broadcast %cst_71 : f32 to vector<128x64xf32>
    %121 = arith.maximumf %119, %120 : vector<128x64xf32>
    %c1152 = arith.constant 1152 : index
    %c0_72 = arith.constant 0 : index
    %122 = vector.load %arg6[%c1152, %c0_72] : memref<1440x512xf32, #tpu.memory_space<vmem>>, vector<64x128xf32>
    %cst_73 = arith.constant dense<0.000000e+00> : vector<64x64xf32>
    %123 = tpu.matmul %122, %121, %cst_73 {dimension_numbers = #tpu.dot_dimension_numbers<[1], [0], [0], [1], [0, 0, 1, 1], [], []>} : vector<64x128xf32>, vector<128x64xf32>, vector<64x64xf32> -> vector<64x64xf32>
    %c1216 = arith.constant 1216 : index
    %c0_74 = arith.constant 0 : index
    %124 = vector.load %arg6[%c1216, %c0_74] : memref<1440x512xf32, #tpu.memory_space<vmem>>, vector<64x128xf32>
    %cst_75 = arith.constant dense<0.000000e+00> : vector<64x64xf32>
    %125 = tpu.matmul %124, %121, %cst_75 {dimension_numbers = #tpu.dot_dimension_numbers<[1], [0], [0], [1], [0, 0, 1, 1], [], []>} : vector<64x128xf32>, vector<128x64xf32>, vector<64x64xf32> -> vector<64x64xf32>
    %c1280 = arith.constant 1280 : index
    %c0_76 = arith.constant 0 : index
    %126 = vector.load %arg6[%c1280, %c0_76] : memref<1440x512xf32, #tpu.memory_space<vmem>>, vector<64x128xf32>
    %cst_77 = arith.constant dense<0.000000e+00> : vector<64x64xf32>
    %127 = tpu.matmul %126, %121, %cst_77 {dimension_numbers = #tpu.dot_dimension_numbers<[1], [0], [0], [1], [0, 0, 1, 1], [], []>} : vector<64x128xf32>, vector<128x64xf32>, vector<64x64xf32> -> vector<64x64xf32>
    %128 = tpu.concatenate %123, %125, %127 in 1 : vector<64x64xf32>, vector<64x64xf32>, vector<64x64xf32> -> vector<64x192xf32>
    %129 = arith.truncf %128 : vector<64x192xf32> to vector<64x192xbf16>
    %c208 = arith.constant 208 : index
    %c0_78 = arith.constant 0 : index
    %130 = vector.load %arg2[%c208, %c0_78] : memref<1296x256xbf16, #tpu.memory_space<vmem>>, vector<192x128xbf16>
    %cst_79 = arith.constant dense<0.000000e+00> : vector<64x128xf32>
    %131 = tpu.matmul %129, %130, %cst_79 {dimension_numbers = #tpu.dot_dimension_numbers<[1], [0], [0], [1], [0, 0, 1, 1], [], []>} : vector<64x192xbf16>, vector<192x128xbf16>, vector<64x128xf32> -> vector<64x128xf32>
    %c6 = arith.constant 6 : index
    %c0_80 = arith.constant 0 : index
    %132 = vector.load %arg3[%c6, %c0_80] : memref<11x256xf32, #tpu.memory_space<vmem>>, vector<1x128xf32>
    %133 = vector.broadcast %132 : vector<1x128xf32> to vector<64x128xf32>
    %134 = arith.mulf %131, %133 : vector<64x128xf32>
    %c7 = arith.constant 7 : index
    %c0_81 = arith.constant 0 : index
    %135 = vector.load %arg3[%c7, %c0_81] : memref<11x256xf32, #tpu.memory_space<vmem>>, vector<1x128xf32>
    %136 = vector.broadcast %135 : vector<1x128xf32> to vector<64x128xf32>
    %137 = arith.addf %134, %136 : vector<64x128xf32>
    %c0_82 = arith.constant 0 : index
    %c896_83 = arith.constant 896 : index
    %138 = vector.load %arg4[%c0_82, %c896_83] : memref<16x1152xf32, #tpu.memory_space<vmem>>, vector<16x64xf32>
    %c896_84 = arith.constant 896 : index
    %c0_85 = arith.constant 0 : index
    %139 = vector.load %arg5[%c896_84, %c0_85] : memref<1152x16xf32, #tpu.memory_space<vmem>>, vector<64x16xf32>
    %cst_86 = arith.constant dense<0.000000e+00> : vector<16x128xf32>
    %140 = tpu.matmul %138, %137, %cst_86 {dimension_numbers = #tpu.dot_dimension_numbers<[1], [0], [0], [1], [0, 0, 1, 1], [], []>} : vector<16x64xf32>, vector<64x128xf32>, vector<16x128xf32> -> vector<16x128xf32>
    %cst_87 = arith.constant 2.500000e-01 : f32
    %141 = vector.broadcast %cst_87 : f32 to vector<16x128xf32>
    %142 = arith.mulf %140, %141 : vector<16x128xf32>
    %cst_88 = arith.constant dense<0.000000e+00> : vector<64x128xf32>
    %143 = tpu.matmul %139, %142, %cst_88 {dimension_numbers = #tpu.dot_dimension_numbers<[1], [0], [0], [1], [0, 0, 1, 1], [], []>} : vector<64x16xf32>, vector<16x128xf32>, vector<64x128xf32> -> vector<64x128xf32>
    %144 = arith.subf %137, %143 : vector<64x128xf32>
    %145 = arith.mulf %144, %144 : vector<64x128xf32>
    %cst_89 = arith.constant dense<0.000000e+00> : vector<16x128xf32>
    %146 = tpu.matmul %138, %145, %cst_89 {dimension_numbers = #tpu.dot_dimension_numbers<[1], [0], [0], [1], [0, 0, 1, 1], [], []>} : vector<16x64xf32>, vector<64x128xf32>, vector<16x128xf32> -> vector<16x128xf32>
    %cst_90 = arith.constant dense<0.000000e+00> : vector<64x128xf32>
    %147 = tpu.matmul %139, %146, %cst_90 {dimension_numbers = #tpu.dot_dimension_numbers<[1], [0], [0], [1], [0, 0, 1, 1], [], []>} : vector<64x16xf32>, vector<16x128xf32>, vector<64x128xf32> -> vector<64x128xf32>
    %cst_91 = arith.constant 0.333333343 : f32
    %148 = vector.broadcast %cst_91 : f32 to vector<64x128xf32>
    %149 = arith.mulf %147, %148 : vector<64x128xf32>
    %cst_92 = arith.constant 9.99999974E-5 : f32
    %150 = vector.broadcast %cst_92 : f32 to vector<64x128xf32>
    %151 = arith.addf %149, %150 : vector<64x128xf32>
    %cst_93 = arith.constant 4.000000e+00 : f32
    %152 = vector.broadcast %cst_93 : f32 to vector<64x128xf32>
    %153 = arith.mulf %152, %151 : vector<64x128xf32>
    %154 = arith.divf %145, %153 : vector<64x128xf32>
    %cst_94 = arith.constant 5.000000e-01 : f32
    %155 = vector.broadcast %cst_94 : f32 to vector<64x128xf32>
    %156 = arith.addf %154, %155 : vector<64x128xf32>
    %157 = arith.negf %156 : vector<64x128xf32>
    %158 = math.exp %157 : vector<64x128xf32>
    %cst_95 = arith.constant 1.000000e+00 : f32
    %159 = vector.broadcast %cst_95 : f32 to vector<64x128xf32>
    %160 = arith.addf %159, %158 : vector<64x128xf32>
    %161 = arith.divf %159, %160 : vector<64x128xf32>
    %162 = arith.mulf %137, %161 : vector<64x128xf32>
    %cst_96 = arith.constant 0.000000e+00 : f32
    %163 = vector.broadcast %cst_96 : f32 to vector<64x128xf32>
    %164 = arith.maximumf %162, %163 : vector<64x128xf32>
    %c1344 = arith.constant 1344 : index
    %c0_97 = arith.constant 0 : index
    %165 = vector.load %arg6[%c1344, %c0_97] : memref<1440x512xf32, #tpu.memory_space<vmem>>, vector<32x64xf32>
    %cst_98 = arith.constant dense<0.000000e+00> : vector<32x128xf32>
    %166 = tpu.matmul %165, %164, %cst_98 {dimension_numbers = #tpu.dot_dimension_numbers<[1], [0], [0], [1], [0, 0, 1, 1], [], []>} : vector<32x64xf32>, vector<64x128xf32>, vector<32x128xf32> -> vector<32x128xf32>
    %c1376 = arith.constant 1376 : index
    %c0_99 = arith.constant 0 : index
    %167 = vector.load %arg6[%c1376, %c0_99] : memref<1440x512xf32, #tpu.memory_space<vmem>>, vector<32x64xf32>
    %cst_100 = arith.constant dense<0.000000e+00> : vector<32x128xf32>
    %168 = tpu.matmul %167, %164, %cst_100 {dimension_numbers = #tpu.dot_dimension_numbers<[1], [0], [0], [1], [0, 0, 1, 1], [], []>} : vector<32x64xf32>, vector<64x128xf32>, vector<32x128xf32> -> vector<32x128xf32>
    %c1408 = arith.constant 1408 : index
    %c0_101 = arith.constant 0 : index
    %169 = vector.load %arg6[%c1408, %c0_101] : memref<1440x512xf32, #tpu.memory_space<vmem>>, vector<32x64xf32>
    %cst_102 = arith.constant dense<0.000000e+00> : vector<32x128xf32>
    %170 = tpu.matmul %169, %164, %cst_102 {dimension_numbers = #tpu.dot_dimension_numbers<[1], [0], [0], [1], [0, 0, 1, 1], [], []>} : vector<32x64xf32>, vector<64x128xf32>, vector<32x128xf32> -> vector<32x128xf32>
    %171 = tpu.concatenate %166, %168, %170 in 1 : vector<32x128xf32>, vector<32x128xf32>, vector<32x128xf32> -> vector<32x384xf32>
    %172 = arith.truncf %171 : vector<32x384xf32> to vector<32x384xbf16>
    %c400 = arith.constant 400 : index
    %c0_103 = arith.constant 0 : index
    %173 = vector.load %arg2[%c400, %c0_103] : memref<1296x256xbf16, #tpu.memory_space<vmem>>, vector<384x256xbf16>
    %cst_104 = arith.constant dense<0.000000e+00> : vector<32x256xf32>
    %174 = tpu.matmul %172, %173, %cst_104 {dimension_numbers = #tpu.dot_dimension_numbers<[1], [0], [0], [1], [0, 0, 1, 1], [], []>} : vector<32x384xbf16>, vector<384x256xbf16>, vector<32x256xf32> -> vector<32x256xf32>
    %c8 = arith.constant 8 : index
    %c0_105 = arith.constant 0 : index
    %175 = vector.load %arg3[%c8, %c0_105] : memref<11x256xf32, #tpu.memory_space<vmem>>, vector<1x256xf32>
    %176 = vector.broadcast %175 : vector<1x256xf32> to vector<32x256xf32>
    %177 = arith.mulf %174, %176 : vector<32x256xf32>
    %c9 = arith.constant 9 : index
    %c0_106 = arith.constant 0 : index
    %178 = vector.load %arg3[%c9, %c0_106] : memref<11x256xf32, #tpu.memory_space<vmem>>, vector<1x256xf32>
    %179 = vector.broadcast %178 : vector<1x256xf32> to vector<32x256xf32>
    %180 = arith.addf %177, %179 : vector<32x256xf32>
    %c0_107 = arith.constant 0 : index
    %c1024_108 = arith.constant 1024 : index
    %181 = vector.load %arg4[%c0_107, %c1024_108] : memref<16x1152xf32, #tpu.memory_space<vmem>>, vector<16x32xf32>
    %c1024_109 = arith.constant 1024 : index
    %c0_110 = arith.constant 0 : index
    %182 = vector.load %arg5[%c1024_109, %c0_110] : memref<1152x16xf32, #tpu.memory_space<vmem>>, vector<32x16xf32>
    %cst_111 = arith.constant dense<0.000000e+00> : vector<16x256xf32>
    %183 = tpu.matmul %181, %180, %cst_111 {dimension_numbers = #tpu.dot_dimension_numbers<[1], [0], [0], [1], [0, 0, 1, 1], [], []>} : vector<16x32xf32>, vector<32x256xf32>, vector<16x256xf32> -> vector<16x256xf32>
    %cst_112 = arith.constant 5.000000e-01 : f32
    %184 = vector.broadcast %cst_112 : f32 to vector<16x256xf32>
    %185 = arith.mulf %183, %184 : vector<16x256xf32>
    %cst_113 = arith.constant dense<0.000000e+00> : vector<32x256xf32>
    %186 = tpu.matmul %182, %185, %cst_113 {dimension_numbers = #tpu.dot_dimension_numbers<[1], [0], [0], [1], [0, 0, 1, 1], [], []>} : vector<32x16xf32>, vector<16x256xf32>, vector<32x256xf32> -> vector<32x256xf32>
    %187 = arith.subf %180, %186 : vector<32x256xf32>
    %188 = arith.mulf %187, %187 : vector<32x256xf32>
    %cst_114 = arith.constant dense<0.000000e+00> : vector<16x256xf32>
    %189 = tpu.matmul %181, %188, %cst_114 {dimension_numbers = #tpu.dot_dimension_numbers<[1], [0], [0], [1], [0, 0, 1, 1], [], []>} : vector<16x32xf32>, vector<32x256xf32>, vector<16x256xf32> -> vector<16x256xf32>
    %cst_115 = arith.constant dense<0.000000e+00> : vector<32x256xf32>
    %190 = tpu.matmul %182, %189, %cst_115 {dimension_numbers = #tpu.dot_dimension_numbers<[1], [0], [0], [1], [0, 0, 1, 1], [], []>} : vector<32x16xf32>, vector<16x256xf32>, vector<32x256xf32> -> vector<32x256xf32>
    %cst_116 = arith.constant 1.000000e+00 : f32
    %191 = vector.broadcast %cst_116 : f32 to vector<32x256xf32>
    %192 = arith.mulf %190, %191 : vector<32x256xf32>
    %cst_117 = arith.constant 9.99999974E-5 : f32
    %193 = vector.broadcast %cst_117 : f32 to vector<32x256xf32>
    %194 = arith.addf %192, %193 : vector<32x256xf32>
    %cst_118 = arith.constant 4.000000e+00 : f32
    %195 = vector.broadcast %cst_118 : f32 to vector<32x256xf32>
    %196 = arith.mulf %195, %194 : vector<32x256xf32>
    %197 = arith.divf %188, %196 : vector<32x256xf32>
    %cst_119 = arith.constant 5.000000e-01 : f32
    %198 = vector.broadcast %cst_119 : f32 to vector<32x256xf32>
    %199 = arith.addf %197, %198 : vector<32x256xf32>
    %200 = arith.negf %199 : vector<32x256xf32>
    %201 = math.exp %200 : vector<32x256xf32>
    %cst_120 = arith.constant 1.000000e+00 : f32
    %202 = vector.broadcast %cst_120 : f32 to vector<32x256xf32>
    %203 = arith.addf %202, %201 : vector<32x256xf32>
    %204 = arith.divf %202, %203 : vector<32x256xf32>
    %205 = arith.mulf %180, %204 : vector<32x256xf32>
    %cst_121 = arith.constant 0.000000e+00 : f32
    %206 = vector.broadcast %cst_121 : f32 to vector<32x256xf32>
    %207 = arith.maximumf %205, %206 : vector<32x256xf32>
    %c0_122 = arith.constant 0 : index
    %c0_123 = arith.constant 0 : index
    %c0_124 = arith.constant 0 : index
    %208 = vector.load %arg7[%c0_122, %c0_123, %c0_124] : memref<2x16x32xf32, #tpu.memory_space<vmem>>, vector<1x16x32xf32>
    %209 = vector.shape_cast %208 : vector<1x16x32xf32> to vector<16x32xf32>
    %cst_125 = arith.constant dense<0.000000e+00> : vector<16x256xf32>
    %210 = tpu.matmul %209, %207, %cst_125 {dimension_numbers = #tpu.dot_dimension_numbers<[1], [0], [0], [1], [0, 0, 1, 1], [], []>} : vector<16x32xf32>, vector<32x256xf32>, vector<16x256xf32> -> vector<16x256xf32>
    %c1_126 = arith.constant 1 : index
    %c0_127 = arith.constant 0 : index
    %c0_128 = arith.constant 0 : index
    %211 = vector.load %arg7[%c1_126, %c0_127, %c0_128] : memref<2x16x32xf32, #tpu.memory_space<vmem>>, vector<1x16x32xf32>
    %212 = vector.shape_cast %211 : vector<1x16x32xf32> to vector<16x32xf32>
    %cst_129 = arith.constant dense<0.000000e+00> : vector<16x256xf32>
    %213 = tpu.matmul %212, %207, %cst_129 {dimension_numbers = #tpu.dot_dimension_numbers<[1], [0], [0], [1], [0, 0, 1, 1], [], []>} : vector<16x32xf32>, vector<32x256xf32>, vector<16x256xf32> -> vector<16x256xf32>
    %214 = tpu.concatenate %210, %213 in 1 : vector<16x256xf32>, vector<16x256xf32> -> vector<16x512xf32>
    %215 = arith.truncf %214 : vector<16x512xf32> to vector<16x512xbf16>
    %c784 = arith.constant 784 : index
    %c0_130 = arith.constant 0 : index
    %216 = vector.load %arg2[%c784, %c0_130] : memref<1296x256xbf16, #tpu.memory_space<vmem>>, vector<512x256xbf16>
    %cst_131 = arith.constant dense<0.000000e+00> : vector<16x256xf32>
    %217 = tpu.matmul %215, %216, %cst_131 {dimension_numbers = #tpu.dot_dimension_numbers<[1], [0], [0], [1], [0, 0, 1, 1], [], []>} : vector<16x512xbf16>, vector<512x256xbf16>, vector<16x256xf32> -> vector<16x256xf32>
    %c10 = arith.constant 10 : index
    %c0_132 = arith.constant 0 : index
    %218 = vector.load %arg3[%c10, %c0_132] : memref<11x256xf32, #tpu.memory_space<vmem>>, vector<1x256xf32>
    %219 = vector.broadcast %218 : vector<1x256xf32> to vector<16x256xf32>
    %220 = arith.addf %217, %219 : vector<16x256xf32>
    %c0_133 = arith.constant 0 : index
    %c0_134 = arith.constant 0 : index
    %221 = vector.load %arg8[%c0_133, %c0_134] : memref<16x256xf32, #tpu.memory_space<vmem>>, vector<16x256xf32>
    tpu.vector_store %arg8[%c0_133, %c0_134], %220 {strides = array<i32>} : memref<16x256xf32, #tpu.memory_space<vmem>>, vector<16x256xf32>,
    return
  }
  func.func @transform_0(%arg0: i32) -> (i32, i32) {
    %c0_i32 = arith.constant 0 : i32
    %c0_i32_0 = arith.constant 0 : i32
    return %arg0, %c0_i32 : i32, i32
  }
  func.func @transform_1(%arg0: i32) -> (i32, i32) {
    %c0_i32 = arith.constant 0 : i32
    %c0_i32_0 = arith.constant 0 : i32
    %c0_i32_1 = arith.constant 0 : i32
    return %c0_i32, %c0_i32_0 : i32, i32
  }
  func.func @transform_2(%arg0: i32) -> (i32, i32) {
    %c0_i32 = arith.constant 0 : i32
    %c0_i32_0 = arith.constant 0 : i32
    %c0_i32_1 = arith.constant 0 : i32
    return %c0_i32, %c0_i32_0 : i32, i32
  }
  func.func @transform_3(%arg0: i32) -> (i32, i32) {
    %c0_i32 = arith.constant 0 : i32
    %c0_i32_0 = arith.constant 0 : i32
    %c0_i32_1 = arith.constant 0 : i32
    return %c0_i32, %c0_i32_0 : i32, i32
  }
  func.func @transform_4(%arg0: i32) -> (i32, i32) {
    %c0_i32 = arith.constant 0 : i32
    %c0_i32_0 = arith.constant 0 : i32
    %c0_i32_1 = arith.constant 0 : i32
    return %c0_i32, %c0_i32_0 : i32, i32
  }
  func.func @transform_5(%arg0: i32) -> (i32, i32) {
    %c0_i32 = arith.constant 0 : i32
    %c0_i32_0 = arith.constant 0 : i32
    %c0_i32_1 = arith.constant 0 : i32
    return %c0_i32, %c0_i32_0 : i32, i32
  }
  func.func @transform_6(%arg0: i32) -> (i32, i32, i32) {
    %c0_i32 = arith.constant 0 : i32
    %c0_i32_0 = arith.constant 0 : i32
    %c0_i32_1 = arith.constant 0 : i32
    %c0_i32_2 = arith.constant 0 : i32
    return %c0_i32, %c0_i32_0, %c0_i32_1 : i32, i32, i32
  }
  func.func @transform_7(%arg0: i32) -> (i32, i32) {
    %c0_i32 = arith.constant 0 : i32
    %c0_i32_0 = arith.constant 0 : i32
    return %arg0, %c0_i32 : i32, i32
  }
}

</mosaic_0001>

<bundles_post_ra>
// kernel: tpu_custom_call.1
= control target key start
LH: loop header
LB: loop body
LE: loop exit
PB: predicated region body
PF: predicated region fallthrough
CT: control target
= control target key end

     0   :  { %s21407_s0 = inlined_call_operand.vmem [shape: bf16[1024,64], index: 0, kind: input, shape index: {}]   ;;  %s21408_s1 = inlined_call_operand.hbm [shape: bf16[1296,256], index: 1, kind: input, shape index: {}]   ;;  %s21409_s2 = inlined_call_operand.hbm [shape: f32[11,256], index: 2, kind: input, shape index: {}]   ;;  %s21410_s3 = inlined_call_operand.hbm [shape: f32[16,1152], index: 3, kind: input, shape index: {}]   ;;  %s21411_s4 = inlined_call_operand.vmem [shape: f32[1152,16], index: 4, kind: input, shape index: {}]   ;;  %s21412_s5 = inlined_call_operand.hbm [shape: f32[1440,512], index: 5, kind: input, shape index: {}]   ;;  %s21413_s6 = inlined_call_operand.hbm [shape: f32[2,16,32], index: 6, kind: input, shape index: {}]   ;;  %s21414_s7 = inlined_call_operand.hbm [shape: f32[32,256], index: 7, kind: output, shape index: {}]  }
   0x1   :  { %21667 = sst [smem:[#allocation171_spill]] %s21409_s2 }
   0x2   :  { %12 = vsyncpa [#allocation3], 0 }
   0x3   :  { %13 = vsyncpa [#allocation6], 0 }
   0x4   :  { %14 = vsyncpa [#allocation9], 0 }
   0x5   :  { %15 = vsyncpa [#allocation4], 0 }
   0x6   :  { %17 = vsyncpa [#allocation4 + $0x1], 0  ;;  %s17071_s24 = smov 0   ;;  %s17073_s25 = smov 0  }
   0x7   :  { %s17075_s26 = smov 0   ;;  %s17077_s27 = smov 0  }
   0x8 LB: > { %21668 = sst [smem:[#allocation16_spill]] %s17004_s26  ;;  %s17092_s28 = sadd.s32 4294967295, %s17008_s27   ;;  %s17008_s27 = sphi %s17077_s27, %s22175_s27   ;;  %s17004_s26 = sphi %s17075_s26, %s22172_s26   ;;  %s17000_s25 = sphi %s17073_s25, %s22174_s25   ;;  %s16996_s24 = sphi %s17071_s24, %s22173_s24  }
   0x9   : > { %s11885_s29 = sadd.s32 4294967294, %s17008_s27   ;;  %s17096_s30 = sadd.s32 1, %s17008_s27  }
   0xa   : > { %s182_s8 = sadd.s32 1, %s17004_s26  ;;  %s179_s9 = ssub.s32 %s17008_s27, %s17096_s30 }
   0xb   : > { %p192_p0 = scmp.ne.s32.totalorder %s17004_s26, %s17000_s25  ;;  %p180_p1 = scmp.eq.s32.totalorder %s179_s9, 0 }
   0xc   : > { %p193_p2 = scmp.eq.s32.totalorder %s17092_s28, 1  ;;  %p198_p3 = scmp.ne.s32.totalorder %s17000_s25, %s16996_s24 }
   0xd   : > { %p199_p4 = scmp.eq.s32.totalorder %s11885_s29, 1  ;;  %p11886_p7 = scmp.ge.s32.totalorder %s17008_s27, 1 }
   0xe   : > { %s17107_s10 = scalar_select %p180_p1, %s17004_s26, %s182_s8  }
   0xf   : > { %p17109_p5 = por %p193_p2, %p192_p0  ;;  %p17113_p6 = por %p199_p4, %p198_p3 }
  0x10   : > { %21669 = sst [smem:[#allocation17_spill]] %s17107_s10  ;;  %p206_p8 = scmp.lt.s32.totalorder %s17008_s27, 3 }
  0x11   : > { %s21670_s11 = scalar_select %p17109_p5, 1, 0 }
  0x12   : > { %s21671_s12 = scalar_select %p17113_p6, 1, 0 }
  0x13   : > { %p21415_p9 = scmp.eq.s32.totalorder %s17092_s28, 0  ;;  %p17120_p10 = pnand %p11886_p7, %p206_p8 }
  0x14   : > { %s17010_s14 = smov [#allocation5]   ;;  %s17011_s17 = smov [#allocation8]  }
  0x15   : > { %s21672_s13 = scalar_select %p17120_p10, 1, 0 }
  0x16   : > { %s231_s15 = sshll.u32 %s17010_s14, 4  ;;  %p15458_p11 = pneg %p17120_p10  ;;  %s232_s15 = int_to_ptr.vmem [resolvable:$true] %s231_s15 }
  0x17   : > { %s260_s18 = sshll.u32 %s17011_s17, 4  ;;  %s21674_s2 = sld [smem:[#allocation171_spill]]  ;;  %s17132_s18 = int_to_ptr.vmem [resolvable:$true] %s260_s18 }
  0x18   : > { %p17128_p12 = pnand %p21415_p9, %p15458_p11 }
  0x1a   : > { %p17142_p0 = pneg %p17128_p12 }
  0x1d   : > { %s16794_s21 = scalar_lea.hbm %s21674_s2, 512 }
  0x1e   : > { %p16795_p13 = scmp.ne.s32.totalorder %s21674_s2, %s16794_s21  ;;  %p16801_p3 = scmp.lt.u32.totalorder %s16794_s21, %s21674_s2 }
  0x20   : > { %p16797_p1 = pnand %p17142_p0, %p16795_p13 }
  0x22   : > { %p16798_p2 = pneg %p16797_p1 }
  0x24   : > { %p16803_p4 = pnand %p16801_p3, %p16798_p2 }
  0x26   : > { %16806 = shalt.err (!%p16803_p4)
}
  0x27   : > { %s16807_s14 = scalar_lea.vmem %s232_s15, 512  ;;  %p16815_p9 = scmp.lt.s32.totalorder %s232_s15, %s232_s15 }
  0x28   : > { %p16808_p7 = scmp.ne.s32.totalorder %s232_s15, %s16807_s14  ;;  %p16816_p6 = scmp.lt.s32.totalorder %s16807_s14, %s16807_s14 }
  0x2a   : > { %p16810_p8 = pnand %p16808_p7, %p17142_p0  ;;  %p16817_p5 = por %p16816_p6, %p16815_p9 }
  0x2c   : > { %p16811_p11 = pneg %p16810_p8 }
  0x2e   : > { %p16818_p10 = pnand %p16817_p5, %p16811_p11 }
  0x30   : > { %16821 = shalt.err (!%p16818_p10)
}
  0x31   : > { %s17012_s17 = smov 256   ;;  %s17013_s19 = smov 16  }
  0x32   : > { %15464 = dma.hbm_to_vmem [thread:$0]  (!%p17128_p12), %s21674_s2, 512, %s232_s15, [#allocation6], %s17012_s17, %s17012_s17, %s17013_s19  }
  0x33   : > { %s16822_s8 = scalar_lea.hbm %s21412_s5, 92160 }
  0x34   : > { %p16823_p13 = scmp.ne.s32.totalorder %s21412_s5, %s16822_s8  ;;  %p16829_p9 = scmp.lt.u32.totalorder %s16822_s8, %s21412_s5 }
  0x36   : > { %p16825_p5 = pnand %p16823_p13, %p17142_p0 }
  0x38   : > { %p16826_p6 = pneg %p16825_p5 }
  0x3a   : > { %p16831_p10 = pnand %p16829_p9, %p16826_p6 }
  0x3c   : > { %16834 = shalt.err (!%p16831_p10)
}
  0x3d   : > { %s16835_s15 = scalar_lea.vmem %s17132_s18, 92160  ;;  %p16843_p4 = scmp.lt.s32.totalorder %s17132_s18, %s17132_s18 }
  0x3e   : > { %p16836_p1 = scmp.ne.s32.totalorder %s17132_s18, %s16835_s15  ;;  %p16844_p7 = scmp.lt.s32.totalorder %s16835_s15, %s16835_s15 }
  0x40   : > { %p16838_p2 = pnand %p16836_p1, %p17142_p0  ;;  %p16845_p8 = por %p16844_p7, %p16843_p4 }
  0x42   : > { %p16839_p3 = pneg %p16838_p2 }
  0x44   : > { %p16846_p11 = pnand %p16845_p8, %p16839_p3 }
  0x46   : > { %16849 = shalt.err (!%p16846_p11)
}
  0x47   : > { %s17014_s10 = smov 512   ;;  %s17015_s26 = smov 32  }
  0x48   : > { %15470 = dma.hbm_to_vmem [thread:$0]  (!%p17128_p12), %s21412_s5, 92160, %s17132_s18, [#allocation9], %s17014_s10, %s17014_s10, %s17015_s26  }
  0x49   : > { %s17016_s20 = smov [#allocation2]   ;;  %s16850_s8 = scalar_lea.hbm %s21408_s1, 20736 }
  0x4a   : > { %s218_s21 = sshll.u32 %s17016_s20, 4  ;;  %p16851_p13 = scmp.ne.s32.totalorder %s21408_s1, %s16850_s8  ;;  %s219_s21 = int_to_ptr.vmem [resolvable:$true] %s218_s21 }
  0x4b   : > { %p16857_p9 = scmp.lt.u32.totalorder %s16850_s8, %s21408_s1 }
  0x4c   : > { %p16853_p5 = pnand %p16851_p13, %p17142_p0 }
  0x4e   : > { %p16854_p6 = pneg %p16853_p5 }
  0x50   : > { %p16859_p10 = pnand %p16857_p9, %p16854_p6 }
  0x52   : > { %16862 = shalt.err (!%p16859_p10)
}
  0x53   : > { %s16863_s18 = scalar_lea.vmem %s219_s21, 20736  ;;  %p16871_p4 = scmp.lt.s32.totalorder %s219_s21, %s219_s21 }
  0x54   : > { %p16864_p1 = scmp.ne.s32.totalorder %s219_s21, %s16863_s18  ;;  %p16872_p7 = scmp.lt.s32.totalorder %s16863_s18, %s16863_s18 }
  0x56   : > { %p16866_p2 = pnand %p16864_p1, %p17142_p0  ;;  %p16873_p8 = por %p16872_p7, %p16871_p4 }
  0x58   : > { %p16867_p3 = pneg %p16866_p2 }
  0x5a   : > { %p16874_p11 = pnand %p16873_p8, %p16867_p3 }
  0x5c   : > { %16877 = shalt.err (!%p16874_p11)
}
  0x5d   : > { %s21419_s10 = smov 128   ;;  %s21420_s26 = smov 8  }
  0x5e   : > { %15461 = dma.hbm_to_vmem [thread:$0]  (!%p17128_p12), %s21408_s1, 20736, %s219_s21, [#allocation3], %s21419_s10, %s21419_s10, %s21420_s26  }
  0x5f   : > { %s17019_s19 = smov [#allocation7]   ;;  %s16878_s8 = scalar_lea.hbm %s21410_s3, 2304 }
  0x60   : > { %s244_s20 = sshll.u32 %s17019_s19, 4  ;;  %p16879_p13 = scmp.ne.s32.totalorder %s21410_s3, %s16878_s8  ;;  %s245_s20 = int_to_ptr.vmem [resolvable:$true] %s244_s20 }
  0x61   : > { %p16885_p9 = scmp.lt.u32.totalorder %s16878_s8, %s21410_s3 }
  0x62   : > { %p16881_p5 = pnand %p16879_p13, %p17142_p0 }
  0x64   : > { %p16882_p6 = pneg %p16881_p5 }
  0x66   : > { %p16887_p10 = pnand %p16885_p9, %p16882_p6 }
  0x68   : > { %16890 = shalt.err (!%p16887_p10)
}
  0x69   : > { %s16891_s21 = scalar_lea.vmem %s245_s20, 2304  ;;  %p16899_p4 = scmp.lt.s32.totalorder %s245_s20, %s245_s20 }
  0x6a   : > { %p16892_p1 = scmp.ne.s32.totalorder %s245_s20, %s16891_s21  ;;  %p16900_p7 = scmp.lt.s32.totalorder %s16891_s21, %s16891_s21 }
  0x6c   : > { %p16894_p2 = pnand %p16892_p1, %p17142_p0  ;;  %p16901_p8 = por %p16900_p7, %p16899_p4 }
  0x6e   : > { %p16895_p3 = pneg %p16894_p2 }
  0x70   : > { %p16902_p11 = pnand %p16901_p8, %p16895_p3 }
  0x72   : > { %16905 = shalt.err (!%p16902_p11)
}
  0x73   : > { %s17020_s2 = smov 1152   ;;  %s17021_s17 = smov 72  }
  0x74   : > { %15467 = dma.hbm_to_vmem [thread:$0]  (!%p17128_p12), %s21410_s3, 2304, %s245_s20, [#allocation6], %s17020_s2, %s17020_s2, %s17021_s17  }
  0x75   : > { %s17022_s23 = smov [#allocation10]   ;;  %s16906_s15 = scalar_lea.hbm %s21413_s6, 512 }
  0x76   : > { %s273_s8 = sshll.u32 %s17022_s23, 4  ;;  %p16907_p13 = scmp.ne.s32.totalorder %s21413_s6, %s16906_s15  ;;  %s274_s8 = int_to_ptr.vmem [resolvable:$true] %s273_s8 }
  0x77   : > { %p16913_p9 = scmp.lt.u32.totalorder %s16906_s15, %s21413_s6 }
  0x78   : > { %p16909_p5 = pnand %p16907_p13, %p17142_p0 }
  0x7a   : > { %p16910_p6 = pneg %p16909_p5 }
  0x7c   : > { %p16915_p10 = pnand %p16913_p9, %p16910_p6 }
  0x7e   : > { %16918 = shalt.err (!%p16915_p10)
}
  0x7f   : > { %s16919_s20 = scalar_lea.vmem %s274_s8, 512  ;;  %p16927_p4 = scmp.lt.s32.totalorder %s274_s8, %s274_s8 }
  0x80   : > { %p16920_p1 = scmp.ne.s32.totalorder %s274_s8, %s16919_s20  ;;  %p16928_p7 = scmp.lt.s32.totalorder %s16919_s20, %s16919_s20 }
  0x82   : > { %p16922_p2 = pnand %p16920_p1, %p17142_p0  ;;  %p16929_p8 = por %p16928_p7, %p16927_p4 }
  0x84   : > { %p16923_p3 = pneg %p16922_p2 }
  0x86   : > { %p16930_p11 = pnand %p16929_p8, %p16923_p3 }
  0x88   : > { %16933 = shalt.err (!%p16930_p11)
}
  0x89   : > { %s21676_s2 = smov 8   ;;  %s21677_s17 = smov 128  }
  0x8a   : > { %15473 = dma.hbm_to_vmem [thread:$0]  (!%p17128_p12), %s21413_s6, 512, %s274_s8, [#allocation9], %s21677_s17, %s21677_s17, %s21676_s2  }
  0x8b   : > { %p21678_p13 = scmp.ne.s32.totalorder %s21672_s13, 0 }
  0x8d   : > { %298 = sbr.rel (%p21678_p13) target bundleno = 9042 (0x2352), region = 48 }
  0x94   : > { %p21679_p0 = scmp.eq.s32.totalorder %s17092_s28, 0 }
  0x96   : > { %16979 = dma.done.wait (%p21679_p0), [#allocation3], 20736   ;;  %p21680_p5 = pmov %p21679_p0 }
  0x97   : > { %p21681_p6 = pmov %p21679_p0 }
  0x98   : > { %16981 = vsyncadd (%p21680_p5), [#allocation3], 4294946560 }
  0x99   : > { %16983 = dma.done.wait (%p21681_p6), [#allocation6], 2816   ;;  %p21682_p9 = pmov %p21679_p0 }
  0x9a   : > { %p21683_p10 = pmov %p21679_p0 }
  0x9b   : > { %16985 = vsyncadd (%p21682_p9), [#allocation6], 4294964480 }
  0x9c   : > { %16987 = dma.done.wait (%p21683_p10), [#allocation9], 92672   ;;  %p21684_p12 = pmov %p21679_p0 }
  0x9d   : > { %s11900_s13 = sshll.u32 %s17092_s28, 6  ;;  %v15801_v0 = vld [vmem:[#allocation2] ss:$8 sps:$4 sm:$0xff]   ;;  %v15802_v1 = vld [vmem:[#allocation2 + $0x10] ss:$8 sps:$4 sm:$0xff]   ;;  %vm610_vm0 = vcmask 523264  }
  0x9e   : > { %16989 = vsyncadd (%p21684_p12), [#allocation9], 4294874624  ;;  %p347_p1 = scmp.lt.s32.totalorder %s11900_s13, 127  ;;  %13496 = vmatprep.subr.bf16.mxu0 %v15801_v0  ;;  %15220 = vmatprep.subr.bf16.mxu1 %v15801_v0  ;;  %v15803_v2 = vld [vmem:[#allocation2 + $0x20] ss:$8 sps:$4 sm:$0xff]   ;;  %v1127_v36 = vld [vmem:[#allocation7 + $0x8] sm:$0xff] }
  0x9f   : > { %13497 = vmatpush3.bf16.msra.mxu0 %v15801_v0  ;;  %15224 = vmatpush3.bf16.msra.mxu1 %v15801_v0  ;;  %v15804_v4 = vld [vmem:[#allocation2 + $0x30] ss:$8 sps:$4 sm:$0xff]   ;;  %vm1350_vm1 = vcmask 130048   ;;  %s17024_s17 = smov 16   ;;  %s17025_s10 = smov 32   ;;  %vm5509_vm2 = vcmask 261120  }
  0xa0   : > { %s22177_s13 = smov (!%p347_p1, %s11900_s13), 127  ;;  %13498 = vmatprep.subr.bf16.mxu0 %v15802_v1  ;;  %15221 = vmatprep.subr.bf16.mxu1 %v15802_v1  ;;  %vm5582_vm3 = vcmask 392192   ;;  %s17026_s19 = smov 64   ;;  %vm7851_vm4 = vcmask 785408  }
  0xa1   : > { %s11901_s16 = sshll.u32 %s22177_s13, 2  ;;  %s343_s20 = sand.u32 1, %s17000_s25  }
  0xa2   : > { %s17259_s22 = scalar_lea.vmem %s21407_s0, %s11901_s16  ;;  %s11899_s2 = sshll.u32 %s343_s20, 5 }
  0xa3   : > { %v15805_v3 = vld [vmem:[%s17259_s22] sm:$0xff]   ;;  %13499 = vmatpush3.bf16.msra.mxu0 %v15802_v1  ;;  %15225 = vmatpush3.bf16.msra.mxu1 %v15802_v1  ;;  %v15806_v5 = vld [vmem:[%s17259_s22 + $0x8] sm:$0xff]   ;;  %v15807_v6 = vld [vmem:[%s17259_s22 + $0x10] sm:$0xff]   ;;  %s345_s26 = scalar_lea.vmem [#allocation11], %s11899_s2  ;;  %s12538_s16 = sshll.u32 %s17092_s28, 9 }
  0xa4   : > { %13504 = vmatprep.mubr.msk.bf16.mxu0 %vm610_vm0, %v15805_v3  ;;  %13500 = vmatprep.subr.bf16.mxu0 %v15803_v2  ;;  %v15815_v7 = vld [vmem:[%s17259_s22 + $0x90] sm:$0xff]   ;;  %v15816_v8 = vld [vmem:[%s17259_s22 + $0x98] sm:$0xff]   ;;  %v15819_v9 = vld [vmem:[%s17259_s22 + $0xa0] sm:$0xff]   ;;  %s11773_s13 = sshll.u32 %s345_s26, 4  ;;  %s21365_s28 = scalar_lea.sflag [#allocation4], %s343_s20  ;;  %s21358_s13 = int_to_ptr.vmem [resolvable:$true] %s11773_s13 }
  0xa5   : > { %15222 = vmatprep.subr.bf16.mxu1 %v15803_v2  ;;  %13540 = vmatprep.mubr.msk.bf16.mxu1 %vm610_vm0, %v15815_v7  ;;  %v15808_v10 = vld [vmem:[%s17259_s22 + $0x18] sm:$0xff]   ;;  %v15809_v11 = vld [vmem:[%s17259_s22 + $0x20] sm:$0xff]   ;;  %v15820_v12 = vld [vmem:[%s17259_s22 + $0xa8] sm:$0xff]   ;;  %p22169_p3 = scmp.ne.s32.totalorder %s21670_s11, 0  ;;  %s17029_s23 = smov [#allocation11]  }
  0xa6   : > { %v15823_v13 = vld [vmem:[%s17259_s22 + $0xb0] sm:$0xff]   ;;  %v15810_v14 = vld [vmem:[%s17259_s22 + $0x28] sm:$0xff]   ;;  %v15824_v16 = vld [vmem:[%s17259_s22 + $0xb8] sm:$0xff]   ;;  %s16938_s8 = sshll.u32 %s17029_s23, 4  ;;  %s16939_s8 = int_to_ptr.vmem [resolvable:$false] %s16938_s8 }
  0xa7   : > { %13501 = vmatpush3.bf16.msra.mxu0 %v15803_v2  ;;  %15226 = vmatpush3.bf16.msra.mxu1 %v15803_v2  ;;  %v15811_v15 = vld [vmem:[%s17259_s22 + $0x30] sm:$0xff]   ;;  %v15827_v17 = vld [vmem:[%s17259_s22 + $0xc0] sm:$0xff]   ;;  %v15812_v18 = vld [vmem:[%s17259_s22 + $0x38] sm:$0xff]   ;;  %s16940_s9 = scalar_lea.vmem %s16939_s8, 1024  ;;  %p16941_p8 = scmp.lt.s32.totalorder %s21358_s13, %s16939_s8 }
  0xa8   : > { %13502 = vmatprep.subr.bf16.mxu0 %v15804_v4  ;;  %15223 = vmatprep.subr.bf16.mxu1 %v15804_v4  ;;  %v15828_v19 = vld [vmem:[%s17259_s22 + $0xc8] sm:$0xff]   ;;  %v15813_v20 = vld [vmem:[%s17259_s22 + $0x40] sm:$0xff]   ;;  %v15831_v21 = vld [vmem:[%s17259_s22 + $0xd0] sm:$0xff]  }
  0xa9   : > { %v15814_v22 = vld [vmem:[%s17259_s22 + $0x48] sm:$0xff]   ;;  %v15832_v23 = vld [vmem:[%s17259_s22 + $0xd8] sm:$0xff]   ;;  %v15817_v24 = vld [vmem:[%s17259_s22 + $0x50] sm:$0xff]  }
  0xaa   : > { %v15833_v25 = vld [vmem:[%s17259_s22 + $0xe0] sm:$0xff]   ;;  %v15818_v26 = vld [vmem:[%s17259_s22 + $0x58] sm:$0xff]   ;;  %v15834_v27 = vld [vmem:[%s17259_s22 + $0xe8] sm:$0xff]  }
  0xab   : > { %13503 = vmatpush3.bf16.msra.mxu0 %v15804_v4  ;;  %15227 = vmatpush3.bf16.msra.mxu1 %v15804_v4  ;;  %v15821_v28 = vld [vmem:[%s17259_s22 + $0x60] sm:$0xff]   ;;  %v15835_v29 = vld [vmem:[%s17259_s22 + $0xf0] sm:$0xff]   ;;  %v15822_v30 = vld [vmem:[%s17259_s22 + $0x68] sm:$0xff]  }
  0xac   : > { %v15836_v31 = vld [vmem:[%s17259_s22 + $0xf8] sm:$0xff]   ;;  %v15825_v32 = vld [vmem:[%s17259_s22 + $0x70] sm:$0xff]   ;;  %v15829_v34 = vld [vmem:[%s17259_s22 + $0x80] sm:$0xff]  }
  0xad   : > { %v15826_v33 = vld [vmem:[%s17259_s22 + $0x78] sm:$0xff]   ;;  %v15830_v35 = vld [vmem:[%s17259_s22 + $0x88] sm:$0xff]   ;;  %s21363_s22 = scalar_lea.hbm %s21414_s7, %s12538_s16 }
  0xae   : > { %13505 = vmatmul.mubr.msk.bf16.vlgmr.msra.gmra.mrb[0].mxu0 %vm610_vm0, %v15806_v5  ;;  %13541 = vmatmul.mubr.msk.bf16.vlgmr.msra.gmra.mrb[0].mxu1 %vm610_vm0, %v15816_v8  ;;  %v17377_v5 = vld [vmem:[#allocation5] ss:$0 sm:$0xff] }
  0xaf   : > { %13508 = vmatprep.mubr.msk.bf16.mxu0 %vm610_vm0, %v15807_v6  ;;  %13544 = vmatprep.mubr.msk.bf16.mxu1 %vm610_vm0, %v15819_v9 }
  0xb6   : > { %13509 = vmatmul.mubr.msk.bf16.gmra.mrb[4].mxu0 %vm610_vm0, %v15808_v10  ;;  %13545 = vmatmul.mubr.msk.bf16.gmra.mrb[4].mxu1 %vm610_vm0, %v15820_v12 }
  0xb7   : > { %13512 = vmatprep.mubr.msk.bf16.mxu0 %vm610_vm0, %v15809_v11  ;;  %13548 = vmatprep.mubr.msk.bf16.mxu1 %vm610_vm0, %v15823_v13 }
  0xbe   : > { %13513 = vmatmul.mubr.msk.bf16.gmra.mrb[8].mxu0 %vm610_vm0, %v15810_v14  ;;  %13549 = vmatmul.mubr.msk.bf16.gmra.mrb[8].mxu1 %vm610_vm0, %v15824_v16 }
  0xbf   : > { %13516 = vmatprep.mubr.msk.bf16.mxu0 %vm610_vm0, %v15811_v15  ;;  %13552 = vmatprep.mubr.msk.bf16.mxu1 %vm610_vm0, %v15827_v17 }
  0xc6   : > { %13517 = vmatmul.mubr.msk.bf16.gmra.mrb[12].mxu0 %vm610_vm0, %v15812_v18  ;;  %13553 = vmatmul.mubr.msk.bf16.gmra.mrb[12].mxu1 %vm610_vm0, %v15828_v19  ;;  %v17391_v18 = vld [vmem:[#allocation5 + $0x1] ss:$0 sm:$0xff] }
  0xc7   : > { %13520 = vmatprep.mubr.msk.bf16.mxu0 %vm610_vm0, %v15813_v20  ;;  %13556 = vmatprep.mubr.msk.bf16.mxu1 %vm610_vm0, %v15831_v21 }
  0xce   : > { %13521 = vmatmul.mubr.msk.bf16.gmra.mrb[16].mxu0 %vm610_vm0, %v15814_v22  ;;  %13557 = vmatmul.mubr.msk.bf16.gmra.mrb[16].mxu1 %vm610_vm0, %v15832_v23 }
  0xcf   : > { %13524 = vmatprep.mubr.msk.bf16.mxu0 %vm610_vm0, %v15817_v24  ;;  %13560 = vmatprep.mubr.msk.bf16.mxu1 %vm610_vm0, %v15833_v25 }
  0xd6   : > { %13525 = vmatmul.mubr.msk.bf16.gmra.mrb[20].mxu0 %vm610_vm0, %v15818_v26  ;;  %13561 = vmatmul.mubr.msk.bf16.gmra.mrb[20].mxu1 %vm610_vm0, %v15834_v27 }
  0xd7   : > { %13528 = vmatprep.mubr.msk.bf16.mxu0 %vm610_vm0, %v15821_v28  ;;  %13564 = vmatprep.mubr.msk.bf16.mxu1 %vm610_vm0, %v15835_v29 }
  0xde   : > { %13529 = vmatmul.mubr.msk.bf16.gmra.mrb[24].mxu0 %vm610_vm0, %v15822_v30  ;;  %13565 = vmatmul.mubr.msk.bf16.gmra.mrb[24].mxu1 %vm610_vm0, %v15836_v31 }
  0xdf   : > { %13532 = vmatprep.mubr.msk.bf16.mxu0 %vm610_vm0, %v15825_v32  ;;  %1262 = vmatprep.mubr.f32.mxu1 %v1127_v36 }
  0xe6   : > { %13533 = vmatmul.mubr.msk.bf16.gmra.mrb[28].mxu0 %vm610_vm0, %v15826_v33 }
  0xe7   : > { %13536 = vmatprep.mubr.msk.bf16.mxu0 %vm610_vm0, %v15829_v34 }
  0xee   : > { %13537 = vmatmul.mubr.msk.bf16.gmra.mrb[32].mxu0 %vm610_vm0, %v15830_v35 }
  0xef   : > { %2120 = vmatprep.mubr.f32.mxu0 %v1127_v36 }
 0x181   : > { %v13506_v37 = vpop.f32.mrb[0].mxu0  ;;  %v17325_v38 = vpop.f32.mrb[0].mxu1 }
 0x182   : > { %v741_v39 = vpop.f32.mrb[1].mxu0  ;;  %v17327_v40 = vpop.f32.mrb[1].mxu1  ;;  %v999_v26 = vmul.f32 %v13506_v37, %v17377_v5 }
 0x183   : > { %v13507_v41 = vpop.f32.mrb[2].mxu0  ;;  %v17329_v42 = vpop.f32.mrb[2].mxu1  ;;  %v997_v14 = vmul.f32 %v17377_v5, %v741_v39 }
 0x184   : > { %v744_v43 = vpop.f32.mrb[3].mxu0  ;;  %v17331_v44 = vpop.f32.mrb[3].mxu1  ;;  %v1000_v21 = vmul.f32 %v13507_v41, %v17377_v5 }
 0x185   : > { %v998_v8 = vmul.f32 %v17377_v5, %v744_v43  ;;  %v17410_v27 = vadd.f32 %v17391_v18, %v997_v14 }
 0x186   : > { %v17420_v32 = vadd.f32 %v17391_v18, %v1000_v21 }
 0x187   : > { %v17397_v22 = vadd.f32 %v17391_v18, %v998_v8 }
 0x189   : > { %v17333_v45 = vpop.f32.mrb[4].mxu0  ;;  %v17335_v46 = vpop.f32.mrb[4].mxu1  ;;  %v14334_v35 = vpack.c.bf16 %v17397_v22, %v17410_v27 }
 0x18a   : > { %v757_v47 = vpop.f32.mrb[5].mxu0  ;;  %v17337_v48 = vpop.f32.mrb[5].mxu1 }
 0x18b   : > { %v17339_v49 = vpop.f32.mrb[6].mxu0  ;;  %v17341_v50 = vpop.f32.mrb[6].mxu1 }
 0x18c   : > { %v760_v51 = vpop.f32.mrb[7].mxu0  ;;  %v17343_v52 = vpop.f32.mrb[7].mxu1 }
 0x18d   : > { %v1002_v33 = vmul.f32 %v17377_v5, %v760_v51  ;;  %v1001_v51 = vmul.f32 %v17377_v5, %v757_v47 }
 0x191   : > { %v17345_v53 = vpop.f32.mrb[8].mxu0  ;;  %v17347_v54 = vpop.f32.mrb[8].mxu1 }
 0x192   : > { %v17349_v55 = vpop.f32.mrb[9].mxu0  ;;  %v17351_v56 = vpop.f32.mrb[9].mxu1 }
 0x193   : > { %v17353_v57 = vpop.f32.mrb[10].mxu0  ;;  %v17355_v58 = vpop.f32.mrb[10].mxu1 }
 0x194   : > { %v17357_v59 = vpop.f32.mrb[11].mxu0  ;;  %v17359_v60 = vpop.f32.mrb[11].mxu1 }
 0x199   : > { %v17361_v61 = vpop.f32.mrb[12].mxu0  ;;  %v17363_v62 = vpop.f32.mrb[12].mxu1 }
 0x19a   : > { %v17365_v63 = vpop.f32.mrb[13].mxu0  ;;  %v17367_v0 = vpop.f32.mrb[13].mxu1 }
 0x19b   : > { %v17369_v1 = vpop.f32.mrb[14].mxu0  ;;  %v17371_v2 = vpop.f32.mrb[14].mxu1 }
 0x19c   : > { %v17373_v3 = vpop.f32.mrb[15].mxu0  ;;  %v17375_v4 = vpop.f32.mrb[15].mxu1 }
 0x1a1   : > { %v13522_v6 = vpop.f32.mrb[16].mxu0  ;;  %v17379_v7 = vpop.f32.mrb[16].mxu1 }
 0x1a2   : > { %v805_v9 = vpop.f32.mrb[17].mxu0  ;;  %v17382_v10 = vpop.f32.mrb[17].mxu1  ;;  %v1015_v19 = vmul.f32 %v13522_v6, %v17377_v5  ;;  %v17433_v6 = vadd.f32 %v17391_v18, %v999_v26  ;;  %v1003_v26 = vmul.f32 %v17333_v45, %v17377_v5 }
 0x1a3   : > { %v1013_v11 = vmul.f32 %v17377_v5, %v805_v9  ;;  %v13523_v12 = vpop.f32.mrb[18].mxu0  ;;  %v17385_v13 = vpop.f32.mrb[18].mxu1 }
 0x1a4   : > { %v1016_v15 = vmul.f32 %v13523_v12, %v17377_v5  ;;  %v808_v16 = vpop.f32.mrb[19].mxu0  ;;  %v17389_v17 = vpop.f32.mrb[19].mxu1  ;;  %v17413_v28 = vadd.f32 %v17391_v18, %v1015_v19  ;;  %v14338_v47 = vpack.c.bf16 %v17420_v32, %v17433_v6 }
 0x1a5   : > { %v1014_v20 = vmul.f32 %v17377_v5, %v808_v16  ;;  %v17400_v23 = vadd.f32 %v17391_v18, %v1013_v11  ;;  %v17444_v16 = vadd.f32 %v17391_v18, %v1002_v33 }
 0x1a6   : > { %v17403_v24 = vadd.f32 %v17391_v18, %v1016_v15  ;;  %21688 = vst [vmem:[#allocation21_spill] sm:$0xff] %v17413_v28  ;;  %v1004_v15 = vmul.f32 %v17339_v49, %v17377_v5  ;;  %v17460_v49 = vadd.f32 %v17391_v18, %v1001_v51 }
 0x1a7   : > { %21685 = vst [vmem:[#allocation18_spill] sm:$0xff] %v17400_v23  ;;  %v17406_v25 = vadd.f32 %v17391_v18, %v1014_v20  ;;  %21689 = vst [vmem:[#allocation22_spill] sm:$0xff] %v17444_v16 }
 0x1a8   : > { %21686 = vst [vmem:[#allocation19_spill] sm:$0xff] %v17403_v24  ;;  %v14336_v41 = vpack.c.bf16 %v17403_v24, %v17413_v28 }
 0x1a9   : > { %21687 = vst [vmem:[#allocation20_spill] sm:$0xff] %v17406_v25  ;;  %v13526_v29 = vpop.f32.mrb[20].mxu0  ;;  %v14332_v30 = vpack.c.bf16 %v17406_v25, %v17400_v23  ;;  %v17417_v31 = vpop.f32.mrb[20].mxu1 }
 0x1aa   : > { %v821_v34 = vpop.f32.mrb[21].mxu0  ;;  %v17425_v36 = vpop.f32.mrb[21].mxu1  ;;  %v1019_v12 = vmul.f32 %v13526_v29, %v17377_v5 }
 0x1ab   : > { %v1017_v37 = vmul.f32 %v17377_v5, %v821_v34  ;;  %v13527_v39 = vpop.f32.mrb[22].mxu0  ;;  %14333 = vmatprep.subr.bf16.mxu1 %v14332_v30  ;;  %v17430_v43 = vpop.f32.mrb[22].mxu1 }
 0x1ac   : > { %v1020_v8 = vmul.f32 %v13527_v39, %v17377_v5  ;;  %v824_v9 = vpop.f32.mrb[23].mxu0  ;;  %14335 = vmatpush3.bf16.msra.mxu1 %v14334_v35  ;;  %v17437_v11 = vpop.f32.mrb[23].mxu1  ;;  %v17463_v29 = vadd.f32 %v17391_v18, %v1019_v12  ;;  %v17470_v35 = vadd.f32 %v17391_v18, %v1004_v15  ;;  %v14342_v39 = vpack.c.bf16 %v17444_v16, %v17460_v49 }
 0x1ad   : > { %v1018_v14 = vmul.f32 %v17377_v5, %v824_v9  ;;  %14337 = vmatprep.subr.bf16.mxu1 %v14336_v41  ;;  %v17449_v19 = vadd.f32 %v17391_v18, %v1017_v37  ;;  %v1006_v37 = vmul.f32 %v17377_v5, %v17357_v59  ;;  %v1005_v59 = vmul.f32 %v17377_v5, %v17349_v55 }
 0x1ae   : > { %v17452_v20 = vadd.f32 %v17391_v18, %v1020_v8  ;;  %21693 = vst [vmem:[#allocation26_spill] sm:$0xff] %v17463_v29  ;;  %21694 = vst [vmem:[#allocation27_spill] sm:$0xff] %v17470_v35 }
 0x1af   : > { %21690 = vst [vmem:[#allocation23_spill] sm:$0xff] %v17449_v19  ;;  %v17455_v21 = vadd.f32 %v17391_v18, %v1018_v14  ;;  %v17484_v14 = vadd.f32 %v17391_v18, %v1003_v26  ;;  %v17496_v26 = vadd.f32 %v17391_v18, %v1006_v37 }
 0x1b0   : > { %21691 = vst [vmem:[#allocation24_spill] sm:$0xff] %v17452_v20  ;;  %14339 = vmatpush3.bf16.msra.mxu1 %v14338_v47  ;;  %v14344_v9 = vpack.c.bf16 %v17452_v20, %v17463_v29  ;;  %v1008_v29 = vmul.f32 %v17353_v57, %v17377_v5  ;;  %v17512_v57 = vadd.f32 %v17391_v18, %v1005_v59 }
 0x1b1   : > { %21692 = vst [vmem:[#allocation25_spill] sm:$0xff] %v17455_v21  ;;  %v13530_v30 = vpop.f32.mrb[24].mxu0  ;;  %v14340_v33 = vpack.c.bf16 %v17455_v21, %v17449_v19  ;;  %v17467_v34 = vpop.f32.mrb[24].mxu1  ;;  %21695 = vst [vmem:[#allocation28_spill] sm:$0xff] %v17484_v14  ;;  %v14346_v55 = vpack.c.bf16 %v17470_v35, %v17484_v14 }
 0x1b2   : > { %v837_v45 = vpop.f32.mrb[25].mxu0  ;;  %v17476_v41 = vpop.f32.mrb[25].mxu1  ;;  %21696 = vst [vmem:[#allocation29_spill] sm:$0xff] %v17496_v26  ;;  %21700 = vst [vmem:[#allocation33_spill] sm:$0xff] %v17512_v57 }
 0x1b3   : > { %v1021_v51 = vmul.f32 %v17377_v5, %v837_v45  ;;  %v13531_v8 = vpop.f32.mrb[26].mxu0  ;;  %14341 = vmatprep.subr.bf16.mxu1 %v14340_v33  ;;  %v17481_v12 = vpop.f32.mrb[26].mxu1  ;;  %v1023_v45 = vmul.f32 %v13530_v30, %v17377_v5 }
 0x1b4   : > { %v1024_v15 = vmul.f32 %v13531_v8, %v17377_v5  ;;  %v840_v47 = vpop.f32.mrb[27].mxu0  ;;  %14343 = vmatpush3.bf16.msra.mxu1 %v14342_v39  ;;  %v17489_v19 = vpop.f32.mrb[27].mxu1 }
 0x1b5   : > { %v1022_v33 = vmul.f32 %v17377_v5, %v840_v47  ;;  %14345 = vmatprep.subr.bf16.mxu1 %v14344_v9  ;;  %v17501_v8 = vadd.f32 %v17391_v18, %v1021_v51  ;;  %v1007_v9 = vmul.f32 %v17345_v53, %v17377_v5  ;;  %v17515_v37 = vadd.f32 %v17391_v18, %v1023_v45 }
 0x1b6   : > { %v17504_v39 = vadd.f32 %v17391_v18, %v1024_v15  ;;  %v17520_v15 = vadd.f32 %v17391_v18, %v1008_v29  ;;  %v14350_v53 = vpack.c.bf16 %v17496_v26, %v17512_v57  ;;  %v1009_v29 = vmul.f32 %v17377_v5, %v17365_v63 }
 0x1b7   : > { %21697 = vst [vmem:[#allocation30_spill] sm:$0xff] %v17501_v8  ;;  %v17507_v30 = vadd.f32 %v17391_v18, %v1022_v33  ;;  %21701 = vst [vmem:[#allocation34_spill] sm:$0xff] %v17515_v37  ;;  %v1010_v33 = vmul.f32 %v17377_v5, %v17373_v3  ;;  %v17530_v14 = vadd.f32 %v17391_v18, %v1007_v9 }
 0x1b8   : > { %21698 = vst [vmem:[#allocation31_spill] sm:$0xff] %v17504_v39  ;;  %14347 = vmatpush3.bf16.msra.mxu1 %v14346_v55  ;;  %21702 = vst [vmem:[#allocation35_spill] sm:$0xff] %v17520_v15  ;;  %v14352_v45 = vpack.c.bf16 %v17504_v39, %v17515_v37  ;;  %v1012_v9 = vmul.f32 %v17369_v1, %v17377_v5  ;;  %v17560_v1 = vadd.f32 %v17391_v18, %v1009_v29 }
 0x1b9   : > { %21699 = vst [vmem:[#allocation32_spill] sm:$0xff] %v17507_v30  ;;  %v13534_v47 = vpop.f32.mrb[28].mxu0  ;;  %v14348_v51 = vpack.c.bf16 %v17507_v30, %v17501_v8  ;;  %21703 = vst [vmem:[#allocation36_spill] sm:$0xff] %v17530_v14  ;;  %v17544_v63 = vadd.f32 %v17391_v18, %v1010_v33 }
 0x1ba   : > { %v853_v20 = vpop.f32.mrb[29].mxu0  ;;  %v1027_v30 = vmul.f32 %v13534_v47, %v17377_v5  ;;  %21708 = vst [vmem:[#allocation41_spill] sm:$0xff] %v17560_v1 }
 0x1bb   : > { %v1025_v59 = vmul.f32 %v17377_v5, %v853_v20  ;;  %v13535_v55 = vpop.f32.mrb[30].mxu0  ;;  %14349 = vmatprep.subr.bf16.mxu1 %v14348_v51  ;;  %v1045_v20 = vmul.f32 %v17377_v5, %v17367_v0  ;;  %v1046_v51 = vmul.f32 %v17377_v5, %v17375_v4  ;;  %21704 = vst [vmem:[#allocation37_spill] sm:$0xff] %v17544_v63 }
 0x1bc   : > { %v1028_v8 = vmul.f32 %v13535_v55, %v17377_v5  ;;  %v856_v3 = vpop.f32.mrb[31].mxu0  ;;  %14351 = vmatpush3.bf16.msra.mxu1 %v14350_v53  ;;  %v14354_v53 = vpack.c.bf16 %v17520_v15, %v17530_v14  ;;  %v1011_v4 = vmul.f32 %v17361_v61, %v17377_v5  ;;  %v17563_v33 = vadd.f32 %v17391_v18, %v1027_v30 }
 0x1bd   : > { %v1026_v57 = vmul.f32 %v17377_v5, %v856_v3  ;;  %14353 = vmatprep.subr.bf16.mxu1 %v14352_v45  ;;  %v17549_v47 = vadd.f32 %v17391_v18, %v1025_v59  ;;  %v17566_v45 = vadd.f32 %v17391_v18, %v1045_v20  ;;  %v17574_v3 = vadd.f32 %v17391_v18, %v1012_v9 }
 0x1be   : > { %v17552_v55 = vadd.f32 %v17391_v18, %v1028_v8  ;;  %21709 = vst [vmem:[#allocation42_spill] sm:$0xff] %v17563_v33  ;;  %v17569_v8 = vadd.f32 %v17391_v18, %v1046_v51  ;;  %v14358_v29 = vpack.c.bf16 %v17544_v63, %v17560_v1  ;;  %v1047_v30 = vmul.f32 %v17363_v62, %v17377_v5 }
 0x1bf   : > { %21705 = vst [vmem:[#allocation38_spill] sm:$0xff] %v17549_v47  ;;  %v17555_v0 = vadd.f32 %v17391_v18, %v1026_v57  ;;  %21710 = vst [vmem:[#allocation43_spill] sm:$0xff] %v17566_v45  ;;  %v1048_v20 = vmul.f32 %v17371_v2, %v17377_v5  ;;  %v17586_v9 = vadd.f32 %v17391_v18, %v1011_v4 }
 0x1c0   : > { %21706 = vst [vmem:[#allocation39_spill] sm:$0xff] %v17552_v55  ;;  %14355 = vmatpush3.bf16.msra.mxu1 %v14354_v53  ;;  %21711 = vst [vmem:[#allocation44_spill] sm:$0xff] %v17569_v8  ;;  %v1049_v62 = vmul.f32 %v17377_v5, %v17382_v10  ;;  %v1050_v2 = vmul.f32 %v17377_v5, %v17389_v17 }
 0x1c1   : > { %21707 = vst [vmem:[#allocation40_spill] sm:$0xff] %v17555_v0  ;;  %v13538_v59 = vpop.f32.mrb[32].mxu0  ;;  %v14356_v57 = vpack.c.bf16 %v17555_v0, %v17549_v47  ;;  %21712 = vst [vmem:[#allocation45_spill] sm:$0xff] %v17574_v3  ;;  %v14360_v47 = vpack.c.bf16 %v17552_v55, %v17563_v33  ;;  %v14362_v4 = vpack.c.bf16 %v17574_v3, %v17586_v9 }
 0x1c2   : > { %v869_v61 = vpop.f32.mrb[33].mxu0  ;;  %21713 = vst [vmem:[#allocation46_spill] sm:$0xff] %v17586_v9 }
 0x1c3   : > { %v1029_v53 = vmul.f32 %v17377_v5, %v869_v61  ;;  %v13539_v51 = vpop.f32.mrb[34].mxu0  ;;  %14357 = vmatprep.subr.bf16.mxu1 %v14356_v57  ;;  %v14364_v57 = vpack.c.bf16 %v17569_v8, %v17566_v45  ;;  %v1031_v61 = vmul.f32 %v13538_v59, %v17377_v5  ;;  %v17614_v59 = vadd.f32 %v17391_v18, %v1049_v62  ;;  %v17651_v45 = vld [vmem:[#allocation7 + $0x18] sm:$0xff] }
 0x1c4   : > { %v872_v0 = vpop.f32.mrb[35].mxu0  ;;  %14359 = vmatpush3.bf16.msra.mxu1 %v14358_v29  ;;  %v1032_v33 = vmul.f32 %v13539_v51, %v17377_v5  ;;  %v17600_v29 = vadd.f32 %v17391_v18, %v1047_v30  ;;  %v17617_v51 = vadd.f32 %v17391_v18, %v1050_v2  ;;  %v1051_v2 = vmul.f32 %v17379_v7, %v17377_v5 }
 0x1c5   : > { %v1030_v1 = vmul.f32 %v17377_v5, %v872_v0  ;;  %14361 = vmatprep.subr.bf16.mxu1 %v14360_v47  ;;  %v17603_v47 = vadd.f32 %v17391_v18, %v1048_v20  ;;  %v17606_v10 = vadd.f32 %v17391_v18, %v1029_v53  ;;  %v17611_v0 = vld [vmem:[#allocation7] sm:$0xff]  ;;  %21717 = vst [vmem:[#allocation50_spill] sm:$0xff] %v17614_v59  ;;  %v17621_v20 = vld [vmem:[#allocation7 + $0x50] sm:$0xff] }
 0x1c6   : > { %21714 = vst [vmem:[#allocation47_spill] sm:$0xff] %v17600_v29  ;;  %21718 = vst [vmem:[#allocation51_spill] sm:$0xff] %v17617_v51  ;;  %v1033_v53 = vmul.f32 %v17377_v5, %v17327_v40  ;;  %v17631_v62 = vadd.f32 %v17391_v18, %v1032_v33  ;;  %v1035_v33 = vmul.f32 %v17325_v38, %v17377_v5 }
 0x1c7   : > { %21715 = vst [vmem:[#allocation48_spill] sm:$0xff] %v17603_v47  ;;  %v17609_v17 = vadd.f32 %v17391_v18, %v1030_v1  ;;  %v1034_v1 = vmul.f32 %v17377_v5, %v17331_v44  ;;  %v14368_v40 = vpack.c.bf16 %v17603_v47, %v17600_v29  ;;  %v17641_v44 = vld [vmem:[#allocation7 + $0x48] sm:$0xff]  ;;  %v1053_v7 = vmul.f32 %v17377_v5, %v17425_v36 }
 0x1c8   : > { %14363 = vmatpush3.bf16.msra.mxu1 %v14362_v4  ;;  %v17628_v4 = vadd.f32 %v17391_v18, %v1031_v61  ;;  %21720 = vst [vmem:[#allocation53_spill] sm:$0xff] %v17631_v62  ;;  %v14372_v61 = vpack.c.bf16 %v17617_v51, %v17614_v59  ;;  %v1036_v29 = vmul.f32 %v17329_v42, %v17377_v5 }
 0x1c9   : > { %21716 = vst [vmem:[#allocation49_spill] sm:$0xff] %v17609_v17  ;;  %14365 = vmatprep.subr.bf16.mxu1 %v14364_v57  ;;  %v14366_v30 = vpack.c.bf16 %v17609_v17, %v17606_v10  ;;  %v1052_v57 = vmul.f32 %v17385_v13, %v17377_v5  ;;  %v1054_v13 = vmul.f32 %v17377_v5, %v17437_v11 }
 0x1ca   : > { %21719 = vst [vmem:[#allocation52_spill] sm:$0xff] %v17628_v4  ;;  %v17659_v38 = vadd.f32 %v17391_v18, %v1034_v1  ;;  %v14370_v36 = vpack.c.bf16 %v17631_v62, %v17628_v4  ;;  %v17675_v42 = vadd.f32 %v17391_v18, %v1053_v7  ;;  %v1055_v7 = vmul.f32 %v17417_v31, %v17377_v5 }
 0x1cb   : > { %1263 = vmatmul.mubr.f32.vlgmr.msra.gmra.mrb[28].mxu1 %v17611_v0  ;;  %v17667_v11 = vadd.f32 %v17391_v18, %v1052_v57  ;;  %v17678_v1 = vadd.f32 %v17391_v18, %v1054_v13  ;;  %v1037_v57 = vmul.f32 %v17377_v5, %v17337_v48  ;;  %v1056_v13 = vmul.f32 %v17430_v43, %v17377_v5 }
 0x1cc   : > { %14367 = vmatpush3.bf16.msra.mxu1 %v14366_v30  ;;  %1267 = vmatprep.mubr.f32.mxu1 %v17621_v20  ;;  %v17654_v30 = vadd.f32 %v17391_v18, %v1033_v53  ;;  %21722 = vst [vmem:[#allocation55_spill] sm:$0xff] %v17659_v38  ;;  %v17672_v53 = vadd.f32 %v17391_v18, %v1035_v33  ;;  %21726 = vst [vmem:[#allocation59_spill] sm:$0xff] %v17675_v42 }
 0x1cd   : > { %14369 = vmatprep.subr.bf16.mxu1 %v14368_v40  ;;  %v17664_v40 = vadd.f32 %v17391_v18, %v1051_v2  ;;  %21724 = vst [vmem:[#allocation57_spill] sm:$0xff] %v17667_v11  ;;  %21727 = vst [vmem:[#allocation60_spill] sm:$0xff] %v17678_v1  ;;  %v17681_v2 = vadd.f32 %v17391_v18, %v1036_v29  ;;  %v1039_v29 = vmul.f32 %v17335_v46, %v17377_v5 }
 0x1ce   : > { %21721 = vst [vmem:[#allocation54_spill] sm:$0xff] %v17654_v30  ;;  %21725 = vst [vmem:[#allocation58_spill] sm:$0xff] %v17672_v53  ;;  %v14374_v33 = vpack.c.bf16 %v17659_v38, %v17654_v30  ;;  %v1040_v48 = vmul.f32 %v17341_v50, %v17377_v5  ;;  %v1058_v31 = vmul.f32 %v17377_v5, %v17489_v19 }
 0x1cf   : > { %21723 = vst [vmem:[#allocation56_spill] sm:$0xff] %v17664_v40  ;;  %1268 = vmatmul.mubr.f32.gmra.mrb[30].mxu1 %v17641_v44  ;;  %21728 = vst [vmem:[#allocation61_spill] sm:$0xff] %v17681_v2  ;;  %v14380_v43 = vpack.c.bf16 %v17678_v1, %v17675_v42  ;;  %v17706_v59 = vadd.f32 %v17391_v18, %v1037_v57  ;;  %v14378_v46 = vpack.c.bf16 %v17681_v2, %v17672_v53 }
 0x1d0   : > { %14371 = vmatpush3.bf16.msra.mxu1 %v14370_v36  ;;  %1337 = vmatprep.mubr.f32.mxu1 %v17651_v45  ;;  %v1038_v36 = vmul.f32 %v17377_v5, %v17343_v52  ;;  %v1057_v52 = vmul.f32 %v17377_v5, %v17476_v41  ;;  %v17714_v50 = vadd.f32 %v17391_v18, %v1055_v7 }
 0x1d1   : > { %14373 = vmatprep.subr.bf16.mxu1 %v14372_v61  ;;  %v14376_v61 = vpack.c.bf16 %v17667_v11, %v17664_v40  ;;  %21729 = vst [vmem:[#allocation62_spill] sm:$0xff] %v17706_v59  ;;  %v17717_v41 = vadd.f32 %v17391_v18, %v1056_v13  ;;  %v17720_v19 = vadd.f32 %v17391_v18, %v1039_v29 }
 0x1d2   : > { %v17709_v40 = vadd.f32 %v17391_v18, %v1038_v36  ;;  %21731 = vst [vmem:[#allocation64_spill] sm:$0xff] %v17714_v50  ;;  %v17726_v57 = vadd.f32 %v17391_v18, %v1057_v52  ;;  %v17729_v36 = vadd.f32 %v17391_v18, %v1058_v31  ;;  %v1041_v7 = vmul.f32 %v17377_v5, %v17351_v56 }
 0x1d3   : > { %21732 = vst [vmem:[#allocation65_spill] sm:$0xff] %v17717_v41  ;;  %21733 = vst [vmem:[#allocation66_spill] sm:$0xff] %v17720_v19  ;;  %v1042_v13 = vmul.f32 %v17377_v5, %v17359_v60  ;;  %v1059_v29 = vmul.f32 %v17467_v34, %v17377_v5  ;;  %v14384_v52 = vpack.c.bf16 %v17717_v41, %v17714_v50 }
 0x1d4   : > { %14375 = vmatpush3.bf16.msra.mxu1 %v14374_v33  ;;  %21730 = vst [vmem:[#allocation63_spill] sm:$0xff] %v17709_v40  ;;  %v17723_v33 = vadd.f32 %v17391_v18, %v1040_v48  ;;  %21735 = vst [vmem:[#allocation68_spill] sm:$0xff] %v17726_v57  ;;  %v1060_v48 = vmul.f32 %v17481_v12, %v17377_v5  ;;  %v14388_v60 = vpack.c.bf16 %v17729_v36, %v17726_v57 }
 0x1d5   : > { %14377 = vmatprep.subr.bf16.mxu1 %v14376_v61  ;;  %21736 = vst [vmem:[#allocation69_spill] sm:$0xff] %v17729_v36  ;;  %v14382_v61 = vpack.c.bf16 %v17709_v40, %v17706_v59  ;;  %v1043_v31 = vmul.f32 %v17347_v54, %v17377_v5  ;;  %v1044_v34 = vmul.f32 %v17355_v58, %v17377_v5 }
 0x1d6   : > { %21734 = vst [vmem:[#allocation67_spill] sm:$0xff] %v17723_v33  ;;  %v14386_v56 = vpack.c.bf16 %v17723_v33, %v17720_v19  ;;  %v17755_v12 = vadd.f32 %v17391_v18, %v1042_v13  ;;  %v17775_v13 = vld [vmem:[#allocation7 + $0x10] sm:$0xff] }
 0x1d7   : > { %v17767_v54 = vadd.f32 %v17391_v18, %v1044_v34  ;;  %21743 = vst [vmem:[#allocation76_spill] sm:$0xff] %v17775_v13 }
 0x1d8   : > { %14379 = vmatpush3.bf16.msra.mxu1 %v14378_v46  ;;  %21738 = vst [vmem:[#allocation71_spill] sm:$0xff] %v17755_v12  ;;  %v17758_v46 = vadd.f32 %v17391_v18, %v1059_v29  ;;  %v17777_v29 = vld [vmem:[#allocation7 + $0x60] sm:$0xff] }
 0x1d9   : > { %14381 = vmatprep.subr.bf16.mxu1 %v14380_v43  ;;  %v17750_v43 = vadd.f32 %v17391_v18, %v1041_v7  ;;  %21742 = vst [vmem:[#allocation75_spill] sm:$0xff] %v17767_v54  ;;  %21744 = vst [vmem:[#allocation77_spill] sm:$0xff] %v17777_v29 }
 0x1da   : > { %21739 = vst [vmem:[#allocation72_spill] sm:$0xff] %v17758_v46 }
 0x1db   : > { %21737 = vst [vmem:[#allocation70_spill] sm:$0xff] %v17750_v43  ;;  %v14390_v58 = vpack.c.bf16 %v17755_v12, %v17750_v43 }
 0x1dc   : > { %14383 = vmatpush3.bf16.msra.mxu1 %v14382_v61  ;;  %v17761_v61 = vadd.f32 %v17391_v18, %v1060_v48  ;;  %v17787_v48 = vld [vmem:[%s21411_s4] sm:$0xff] }
 0x1dd   : > { %14385 = vmatprep.subr.bf16.mxu1 %v14384_v52  ;;  %v17764_v52 = vadd.f32 %v17391_v18, %v1043_v31  ;;  %v17781_v18 = vld [vmem:[#allocation7 + $0x58] sm:$0xff]  ;;  %21746 = vst [vmem:[#allocation79_spill] sm:$0xff] %v17787_v48 }
 0x1de   : > { %21740 = vst [vmem:[#allocation73_spill] sm:$0xff] %v17761_v61  ;;  %v14392_v5 = vpack.c.bf16 %v17761_v61, %v17758_v46  ;;  %21745 = vst [vmem:[#allocation78_spill] sm:$0xff] %v17781_v18 }
 0x1df   : > { %21741 = vst [vmem:[#allocation74_spill] sm:$0xff] %v17764_v52  ;;  %v14394_v7 = vpack.c.bf16 %v17767_v54, %v17764_v52 }
 0x1e0   : > { %14387 = vmatpush3.bf16.msra.mxu1 %v14386_v56 }
 0x1e1   : > { %14389 = vmatprep.subr.bf16.mxu1 %v14388_v60 }
 0x1e4   : > { %14391 = vmatpush3.bf16.msra.mxu1 %v14390_v58 }
 0x1e5   : > { %14393 = vmatprep.subr.bf16.mxu1 %v14392_v5 }
 0x1e8   : > { %14395 = vmatpush3.bf16.msra.mxu1 %v14394_v7 }
 0x1eb   : > { %1338 = vmatmul.mubr.f32.vlgmr.msra.gmra.mrb[32].mxu1 %v17775_v13 }
 0x1ec   : > { %1342 = vmatprep.mubr.f32.mxu1 %v17777_v29 }
 0x1ef   : > { %1343 = vmatmul.mubr.f32.gmra.mrb[34].mxu1 %v17781_v18 }
 0x1f0   : > { %13572 = vmatprep.mubr.msk.f32.mxu1 %vm1350_vm1, %v17787_v48 }
 0x29e   : > { %v12607_v56 = vpop.f32.mrb[28].mxu1 }
 0x29f   : > { %v12608_v60 = vpop.f32.mrb[29].mxu1 }
 0x2a0   : > { %v12609_v31 = vadd.f32 %v12608_v60, %v12607_v56  ;;  %v17794_v56 = vld [vmem:[%s21411_s4 + $0x8] sm:$0xff]  ;;  %v17799_v60 = vld [vmem:[%s21411_s4 + $0x10] sm:$0xff] }
 0x2a1   : > { %21747 = vst [vmem:[#allocation80_spill] sm:$0xff] %v17794_v56  ;;  %21748 = vst [vmem:[#allocation81_spill] sm:$0xff] %v17799_v60 }
 0x2a2   : > { %v12610_v34 = vpop.f32.mrb[30].mxu1 }
 0x2a3   : > { %v12611_v58 = vpop.f32.mrb[31].mxu1 }
 0x2a4   : > { %v12612_v5 = vadd.f32 %v12611_v58, %v12610_v34  ;;  %v17883_v34 = vld [vmem:[%s21411_s4 + $0x70] sm:$0xff]  ;;  %v17892_v58 = vld [vmem:[%s21411_s4 + $0x78] sm:$0xff] }
 0x2a5   : > { %21760 = vst [vmem:[#allocation93_spill] sm:$0xff] %v17883_v34  ;;  %21761 = vst [vmem:[#allocation94_spill] sm:$0xff] %v17892_v58 }
 0x2be   : > { %v12645_v7 = vpop.f32.mrb[32].mxu1 }
 0x2bf   : > { %v12646_v29 = vpop.f32.mrb[33].mxu1 }
 0x2c0   : > { %v12647_v13 = vadd.f32 %v12646_v29, %v12645_v7  ;;  %v17864_v29 = vld [vmem:[%s21411_s4 + $0x58] sm:$0xff]  ;;  %v17906_v7 = vld [vmem:[%s21411_s4 + $0x88] sm:$0xff] }
 0x2c1   : > { %21757 = vst [vmem:[#allocation90_spill] sm:$0xff] %v17864_v29  ;;  %21763 = vst [vmem:[#allocation96_spill] sm:$0xff] %v17906_v7 }
 0x2c2   : > { %v1340_v46 = vadd.f32 %v12647_v13, %v12609_v31  ;;  %v12648_v18 = vpop.f32.mrb[34].mxu1  ;;  %v17855_v13 = vld [vmem:[%s21411_s4 + $0x50] sm:$0xff]  ;;  %v17878_v31 = vld [vmem:[%s21411_s4 + $0x68] sm:$0xff] }
 0x2c3   : > { %v12649_v61 = vpop.f32.mrb[35].mxu1  ;;  %21756 = vst [vmem:[#allocation89_spill] sm:$0xff] %v17855_v13  ;;  %21759 = vst [vmem:[#allocation92_spill] sm:$0xff] %v17878_v31 }
 0x2c4   : > { %v12650_v52 = vadd.f32 %v12649_v61, %v12648_v18  ;;  %v1348_v57 = vmul.f32 0.03125, %v1340_v46  ;;  %v17827_v46 = vld [vmem:[%s21411_s4 + $0x30] sm:$0xff]  ;;  %v17836_v61 = vld [vmem:[%s21411_s4 + $0x38] sm:$0xff]  ;;  %v17869_v18 = vld [vmem:[%s21411_s4 + $0x60] sm:$0xff] }
 0x2c5   : > { %21752 = vst [vmem:[#allocation85_spill] sm:$0xff] %v17827_v46  ;;  %21753 = vst [vmem:[#allocation86_spill] sm:$0xff] %v17836_v61 }
 0x2c6   : > { %v1345_v54 = vadd.f32 %v12650_v52, %v12612_v5  ;;  %v17841_v52 = vld [vmem:[%s21411_s4 + $0x40] sm:$0xff]  ;;  %21758 = vst [vmem:[#allocation91_spill] sm:$0xff] %v17869_v18 }
 0x2c7   : > { %21754 = vst [vmem:[#allocation87_spill] sm:$0xff] %v17841_v52  ;;  %v17897_v5 = vld [vmem:[%s21411_s4 + $0x80] sm:$0xff] }
 0x2c8   : > { %v1349_v36 = vmul.f32 0.03125, %v1345_v54  ;;  %v17850_v54 = vld [vmem:[%s21411_s4 + $0x48] sm:$0xff]  ;;  %21762 = vst [vmem:[#allocation95_spill] sm:$0xff] %v17897_v5 }
 0x2c9   : > { %21755 = vst [vmem:[#allocation88_spill] sm:$0xff] %v17850_v54 }
 0x2ca   : > { %v14396_v43 = vpack.c.bf16 %v1349_v36, %v1348_v57  ;;  %v17808_v57 = vld [vmem:[%s21411_s4 + $0x18] sm:$0xff]  ;;  %v17813_v36 = vld [vmem:[%s21411_s4 + $0x20] sm:$0xff] }
 0x2cb   : > { %21749 = vst [vmem:[#allocation82_spill] sm:$0xff] %v17808_v57  ;;  %21750 = vst [vmem:[#allocation83_spill] sm:$0xff] %v17813_v36 }
 0x2cc   : > { %14397 = vmatprep.subr.bf16.mxu1 %v14396_v43 }
 0x2cd   : > { %14399 = vmatpush3.bf16.msra.mxu1 %v14396_v43  ;;  %v17822_v43 = vld [vmem:[%s21411_s4 + $0x28] sm:$0xff] }
 0x2ce   : > { %21751 = vst [vmem:[#allocation84_spill] sm:$0xff] %v17822_v43 }
 0x2d0   : > { %13573 = vmatmul.mubr.msk.f32.vlgmr.msra.gmra.mrb[36].mxu1 %vm1350_vm1, %v17794_v56 }
 0x2d1   : > { %13575 = vmatprep.mubr.msk.f32.mxu1 %vm1350_vm1, %v17799_v60 }
 0x2d4   : > { %13576 = vmatmul.mubr.msk.f32.gmra.mrb[38].mxu1 %vm1350_vm1, %v17808_v57 }
 0x2d5   : > { %13578 = vmatprep.mubr.msk.f32.mxu1 %vm1350_vm1, %v17813_v36 }
 0x2d8   : > { %13579 = vmatmul.mubr.msk.f32.gmra.mrb[40].mxu1 %vm1350_vm1, %v17822_v43 }
 0x2d9   : > { %13581 = vmatprep.mubr.msk.f32.mxu1 %vm1350_vm1, %v17827_v46 }
 0x2dc   : > { %13582 = vmatmul.mubr.msk.f32.gmra.mrb[42].mxu1 %vm1350_vm1, %v17836_v61 }
 0x2dd   : > { %13584 = vmatprep.mubr.msk.f32.mxu1 %vm1350_vm1, %v17841_v52 }
 0x2e0   : > { %13585 = vmatmul.mubr.msk.f32.gmra.mrb[44].mxu1 %vm1350_vm1, %v17850_v54 }
 0x2e1   : > { %13587 = vmatprep.mubr.msk.f32.mxu1 %vm1350_vm1, %v17855_v13 }
 0x2e4   : > { %13588 = vmatmul.mubr.msk.f32.gmra.mrb[46].mxu1 %vm1350_vm1, %v17864_v29 }
 0x2e5   : > { %13590 = vmatprep.mubr.msk.f32.mxu1 %vm1350_vm1, %v17869_v18 }
 0x2e8   : > { %13591 = vmatmul.mubr.msk.f32.gmra.mrb[48].mxu1 %vm1350_vm1, %v17878_v31 }
 0x2e9   : > { %13593 = vmatprep.mubr.msk.f32.mxu1 %vm1350_vm1, %v17883_v34  ;;  %v17911_v34 = vld [vmem:[%s21411_s4 + $0x90] sm:$0xff] }
 0x2ea   : > { %21764 = vst [vmem:[#allocation97_spill] sm:$0xff] %v17911_v34 }
 0x2ec   : > { %13594 = vmatmul.mubr.msk.f32.gmra.mrb[50].mxu1 %vm1350_vm1, %v17892_v58  ;;  %v17925_v58 = vld [vmem:[%s21411_s4 + $0xa0] sm:$0xff] }
 0x2ed   : > { %13596 = vmatprep.mubr.msk.f32.mxu1 %vm1350_vm1, %v17897_v5  ;;  %v17920_v5 = vld [vmem:[%s21411_s4 + $0x98] sm:$0xff]  ;;  %21766 = vst [vmem:[#allocation99_spill] sm:$0xff] %v17925_v58 }
 0x2ee   : > { %21765 = vst [vmem:[#allocation98_spill] sm:$0xff] %v17920_v5 }
 0x2f0   : > { %13597 = vmatmul.mubr.msk.f32.gmra.mrb[52].mxu1 %vm1350_vm1, %v17906_v7  ;;  %v17939_v7 = vld [vmem:[%s21411_s4 + $0xb0] sm:$0xff] }
 0x2f1   : > { %13599 = vmatprep.mubr.msk.f32.mxu1 %vm1350_vm1, %v17911_v34  ;;  %v17934_v34 = vld [vmem:[%s21411_s4 + $0xa8] sm:$0xff]  ;;  %21768 = vst [vmem:[#allocation101_spill] sm:$0xff] %v17939_v7 }
 0x2f2   : > { %21767 = vst [vmem:[#allocation100_spill] sm:$0xff] %v17934_v34 }
 0x2f4   : > { %13600 = vmatmul.mubr.msk.f32.gmra.mrb[54].mxu1 %vm1350_vm1, %v17920_v5  ;;  %v17953_v5 = vld [vmem:[%s21411_s4 + $0xc0] sm:$0xff] }
 0x2f5   : > { %13602 = vmatprep.mubr.msk.f32.mxu1 %vm1350_vm1, %v17925_v58  ;;  %v17948_v58 = vld [vmem:[%s21411_s4 + $0xb8] sm:$0xff]  ;;  %21770 = vst [vmem:[#allocation103_spill] sm:$0xff] %v17953_v5 }
 0x2f6   : > { %21769 = vst [vmem:[#allocation102_spill] sm:$0xff] %v17948_v58 }
 0x2f8   : > { %13603 = vmatmul.mubr.msk.f32.gmra.mrb[56].mxu1 %vm1350_vm1, %v17934_v34  ;;  %v17967_v34 = vld [vmem:[%s21411_s4 + $0xd0] sm:$0xff] }
 0x2f9   : > { %13605 = vmatprep.mubr.msk.f32.mxu1 %vm1350_vm1, %v17939_v7  ;;  %v17962_v7 = vld [vmem:[%s21411_s4 + $0xc8] sm:$0xff]  ;;  %21772 = vst [vmem:[#allocation105_spill] sm:$0xff] %v17967_v34 }
 0x2fa   : > { %21771 = vst [vmem:[#allocation104_spill] sm:$0xff] %v17962_v7 }
 0x2fc   : > { %13606 = vmatmul.mubr.msk.f32.gmra.mrb[58].mxu1 %vm1350_vm1, %v17948_v58  ;;  %v17981_v58 = vld [vmem:[%s21411_s4 + $0xe0] sm:$0xff] }
 0x2fd   : > { %13608 = vmatprep.mubr.msk.f32.mxu1 %vm1350_vm1, %v17953_v5  ;;  %v17976_v5 = vld [vmem:[%s21411_s4 + $0xd8] sm:$0xff]  ;;  %21774 = vst [vmem:[#allocation107_spill] sm:$0xff] %v17981_v58 }
 0x2fe   : > { %21773 = vst [vmem:[#allocation106_spill] sm:$0xff] %v17976_v5 }
 0x300   : > { %13609 = vmatmul.mubr.msk.f32.gmra.mrb[60].mxu1 %vm1350_vm1, %v17962_v7  ;;  %v17995_v7 = vld [vmem:[%s21411_s4 + $0xf0] sm:$0xff] }
 0x301   : > { %13611 = vmatprep.mubr.msk.f32.mxu1 %vm1350_vm1, %v17967_v34  ;;  %v17990_v34 = vld [vmem:[%s21411_s4 + $0xe8] sm:$0xff]  ;;  %21776 = vst [vmem:[#allocation109_spill] sm:$0xff] %v17995_v7 }
 0x302   : > { %21775 = vst [vmem:[#allocation108_spill] sm:$0xff] %v17990_v34 }
 0x304   : > { %13612 = vmatmul.mubr.msk.f32.gmra.mrb[62].mxu1 %vm1350_vm1, %v17976_v5  ;;  %v18009_v5 = vld [vmem:[%s21411_s4 + $0x100] sm:$0xff] }
 0x305   : > { %13614 = vmatprep.mubr.msk.f32.mxu1 %vm1350_vm1, %v17981_v58  ;;  %v18004_v58 = vld [vmem:[%s21411_s4 + $0xf8] sm:$0xff]  ;;  %21778 = vst [vmem:[#allocation111_spill] sm:$0xff] %v18009_v5 }
 0x306   : > { %21777 = vst [vmem:[#allocation110_spill] sm:$0xff] %v18004_v58 }
 0x308   : > { %13615 = vmatmul.mubr.msk.f32.gmra.mrb[64].mxu1 %vm1350_vm1, %v17990_v34  ;;  %v18023_v34 = vld [vmem:[%s21411_s4 + $0x110] sm:$0xff] }
 0x309   : > { %13617 = vmatprep.mubr.msk.f32.mxu1 %vm1350_vm1, %v17995_v7  ;;  %v18018_v7 = vld [vmem:[%s21411_s4 + $0x108] sm:$0xff]  ;;  %21780 = vst [vmem:[#allocation113_spill] sm:$0xff] %v18023_v34 }
 0x30a   : > { %21779 = vst [vmem:[#allocation112_spill] sm:$0xff] %v18018_v7 }
 0x30c   : > { %13618 = vmatmul.mubr.msk.f32.gmra.mrb[66].mxu1 %vm1350_vm1, %v18004_v58  ;;  %v18037_v58 = vld [vmem:[%s21411_s4 + $0x120] sm:$0xff] }
 0x30d   : > { %13620 = vmatprep.mubr.msk.f32.mxu1 %vm1350_vm1, %v18009_v5  ;;  %v18032_v5 = vld [vmem:[%s21411_s4 + $0x118] sm:$0xff]  ;;  %21782 = vst [vmem:[#allocation115_spill] sm:$0xff] %v18037_v58 }
 0x30e   : > { %21781 = vst [vmem:[#allocation114_spill] sm:$0xff] %v18032_v5 }
 0x310   : > { %13621 = vmatmul.mubr.msk.f32.gmra.mrb[68].mxu1 %vm1350_vm1, %v18018_v7  ;;  %v18051_v7 = vld [vmem:[%s21411_s4 + $0x130] sm:$0xff] }
 0x311   : > { %13623 = vmatprep.mubr.msk.f32.mxu1 %vm1350_vm1, %v18023_v34  ;;  %v18046_v34 = vld [vmem:[%s21411_s4 + $0x128] sm:$0xff]  ;;  %21784 = vst [vmem:[#allocation117_spill] sm:$0xff] %v18051_v7 }
 0x312   : > { %21783 = vst [vmem:[#allocation116_spill] sm:$0xff] %v18046_v34 }
 0x314   : > { %13624 = vmatmul.mubr.msk.f32.gmra.mrb[70].mxu1 %vm1350_vm1, %v18032_v5  ;;  %v18065_v5 = vld [vmem:[%s21411_s4 + $0x140] sm:$0xff] }
 0x315   : > { %13626 = vmatprep.mubr.msk.f32.mxu1 %vm1350_vm1, %v18037_v58  ;;  %v18060_v58 = vld [vmem:[%s21411_s4 + $0x138] sm:$0xff]  ;;  %21786 = vst [vmem:[#allocation119_spill] sm:$0xff] %v18065_v5 }
 0x316   : > { %21785 = vst [vmem:[#allocation118_spill] sm:$0xff] %v18060_v58 }
 0x318   : > { %13627 = vmatmul.mubr.msk.f32.gmra.mrb[72].mxu1 %vm1350_vm1, %v18046_v34  ;;  %v18079_v34 = vld [vmem:[%s21411_s4 + $0x150] sm:$0xff] }
 0x319   : > { %13629 = vmatprep.mubr.msk.f32.mxu1 %vm1350_vm1, %v18051_v7  ;;  %v18074_v7 = vld [vmem:[%s21411_s4 + $0x148] sm:$0xff]  ;;  %21788 = vst [vmem:[#allocation121_spill] sm:$0xff] %v18079_v34 }
 0x31a   : > { %21787 = vst [vmem:[#allocation120_spill] sm:$0xff] %v18074_v7 }
 0x31c   : > { %13630 = vmatmul.mubr.msk.f32.gmra.mrb[74].mxu1 %vm1350_vm1, %v18060_v58  ;;  %v18093_v58 = vld [vmem:[%s21411_s4 + $0x160] sm:$0xff] }
 0x31d   : > { %13632 = vmatprep.mubr.msk.f32.mxu1 %vm1350_vm1, %v18065_v5  ;;  %v18088_v5 = vld [vmem:[%s21411_s4 + $0x158] sm:$0xff]  ;;  %21790 = vst [vmem:[#allocation123_spill] sm:$0xff] %v18093_v58 }
 0x31e   : > { %21789 = vst [vmem:[#allocation122_spill] sm:$0xff] %v18088_v5 }
 0x320   : > { %13633 = vmatmul.mubr.msk.f32.gmra.mrb[76].mxu1 %vm1350_vm1, %v18074_v7  ;;  %v18107_v7 = vld [vmem:[%s21411_s4 + $0x170] sm:$0xff] }
 0x321   : > { %13635 = vmatprep.mubr.msk.f32.mxu1 %vm1350_vm1, %v18079_v34  ;;  %v18102_v34 = vld [vmem:[%s21411_s4 + $0x168] sm:$0xff]  ;;  %21792 = vst [vmem:[#allocation125_spill] sm:$0xff] %v18107_v7 }
 0x322   : > { %21791 = vst [vmem:[#allocation124_spill] sm:$0xff] %v18102_v34 }
 0x324   : > { %13636 = vmatmul.mubr.msk.f32.gmra.mrb[78].mxu1 %vm1350_vm1, %v18088_v5  ;;  %v18121_v5 = vld [vmem:[%s21411_s4 + $0x180] sm:$0xff] }
 0x325   : > { %13638 = vmatprep.mubr.msk.f32.mxu1 %vm1350_vm1, %v18093_v58  ;;  %v18116_v58 = vld [vmem:[%s21411_s4 + $0x178] sm:$0xff]  ;;  %21794 = vst [vmem:[#allocation127_spill] sm:$0xff] %v18121_v5 }
 0x326   : > { %21793 = vst [vmem:[#allocation126_spill] sm:$0xff] %v18116_v58 }
 0x328   : > { %13639 = vmatmul.mubr.msk.f32.gmra.mrb[80].mxu1 %vm1350_vm1, %v18102_v34  ;;  %v18135_v34 = vld [vmem:[%s21411_s4 + $0x190] sm:$0xff] }
 0x329   : > { %13641 = vmatprep.mubr.msk.f32.mxu1 %vm1350_vm1, %v18107_v7  ;;  %v18130_v7 = vld [vmem:[%s21411_s4 + $0x188] sm:$0xff]  ;;  %21796 = vst [vmem:[#allocation129_spill] sm:$0xff] %v18135_v34 }
 0x32a   : > { %21795 = vst [vmem:[#allocation128_spill] sm:$0xff] %v18130_v7 }
 0x32c   : > { %13642 = vmatmul.mubr.msk.f32.gmra.mrb[82].mxu1 %vm1350_vm1, %v18116_v58  ;;  %v18149_v58 = vld [vmem:[%s21411_s4 + $0x1a0] sm:$0xff] }
 0x32d   : > { %13644 = vmatprep.mubr.msk.f32.mxu1 %vm1350_vm1, %v18121_v5  ;;  %v18144_v5 = vld [vmem:[%s21411_s4 + $0x198] sm:$0xff]  ;;  %21798 = vst [vmem:[#allocation131_spill] sm:$0xff] %v18149_v58 }
 0x32e   : > { %21797 = vst [vmem:[#allocation130_spill] sm:$0xff] %v18144_v5 }
 0x330   : > { %13645 = vmatmul.mubr.msk.f32.gmra.mrb[84].mxu1 %vm1350_vm1, %v18130_v7  ;;  %v18163_v7 = vld [vmem:[%s21411_s4 + $0x1b0] sm:$0xff] }
 0x331   : > { %13647 = vmatprep.mubr.msk.f32.mxu1 %vm1350_vm1, %v18135_v34  ;;  %v18158_v34 = vld [vmem:[%s21411_s4 + $0x1a8] sm:$0xff]  ;;  %21800 = vst [vmem:[#allocation133_spill] sm:$0xff] %v18163_v7 }
 0x332   : > { %21799 = vst [vmem:[#allocation132_spill] sm:$0xff] %v18158_v34 }
 0x334   : > { %13648 = vmatmul.mubr.msk.f32.gmra.mrb[86].mxu1 %vm1350_vm1, %v18144_v5  ;;  %v18177_v5 = vld [vmem:[%s21411_s4 + $0x1c0] sm:$0xff] }
 0x335   : > { %13650 = vmatprep.mubr.msk.f32.mxu1 %vm1350_vm1, %v18149_v58  ;;  %v18172_v58 = vld [vmem:[%s21411_s4 + $0x1b8] sm:$0xff]  ;;  %21802 = vst [vmem:[#allocation135_spill] sm:$0xff] %v18177_v5 }
 0x336   : > { %21801 = vst [vmem:[#allocation134_spill] sm:$0xff] %v18172_v58 }
 0x338   : > { %13651 = vmatmul.mubr.msk.f32.gmra.mrb[88].mxu1 %vm1350_vm1, %v18158_v34  ;;  %v18191_v34 = vld [vmem:[%s21411_s4 + $0x1d0] sm:$0xff] }
 0x339   : > { %13653 = vmatprep.mubr.msk.f32.mxu1 %vm1350_vm1, %v18163_v7  ;;  %v18186_v7 = vld [vmem:[%s21411_s4 + $0x1c8] sm:$0xff]  ;;  %21804 = vst [vmem:[#allocation137_spill] sm:$0xff] %v18191_v34 }
 0x33a   : > { %21803 = vst [vmem:[#allocation136_spill] sm:$0xff] %v18186_v7 }
 0x33c   : > { %13654 = vmatmul.mubr.msk.f32.gmra.mrb[90].mxu1 %vm1350_vm1, %v18172_v58  ;;  %v18205_v58 = vld [vmem:[%s21411_s4 + $0x1e0] sm:$0xff] }
 0x33d   : > { %13656 = vmatprep.mubr.msk.f32.mxu1 %vm1350_vm1, %v18177_v5  ;;  %v18200_v5 = vld [vmem:[%s21411_s4 + $0x1d8] sm:$0xff]  ;;  %21806 = vst [vmem:[#allocation139_spill] sm:$0xff] %v18205_v58 }
 0x33e   : > { %21805 = vst [vmem:[#allocation138_spill] sm:$0xff] %v18200_v5 }
 0x340   : > { %13657 = vmatmul.mubr.msk.f32.gmra.mrb[92].mxu1 %vm1350_vm1, %v18186_v7  ;;  %v18219_v7 = vld [vmem:[%s21411_s4 + $0x1f0] sm:$0xff] }
 0x341   : > { %13659 = vmatprep.mubr.msk.f32.mxu1 %vm1350_vm1, %v18191_v34  ;;  %v18214_v34 = vld [vmem:[%s21411_s4 + $0x1e8] sm:$0xff]  ;;  %21808 = vst [vmem:[#allocation141_spill] sm:$0xff] %v18219_v7 }
 0x342   : > { %21807 = vst [vmem:[#allocation140_spill] sm:$0xff] %v18214_v34 }
 0x344   : > { %13660 = vmatmul.mubr.msk.f32.gmra.mrb[94].mxu1 %vm1350_vm1, %v18200_v5 }
 0x345   : > { %13662 = vmatprep.mubr.msk.f32.mxu1 %vm1350_vm1, %v18205_v58  ;;  %v18228_v58 = vld [vmem:[%s21411_s4 + $0x1f8] sm:$0xff] }
 0x346   : > { %21809 = vst [vmem:[#allocation142_spill] sm:$0xff] %v18228_v58 }
 0x348   : > { %13663 = vmatmul.mubr.msk.f32.gmra.mrb[96].mxu1 %vm1350_vm1, %v18214_v34 }
 0x349   : > { %13665 = vmatprep.mubr.msk.f32.mxu1 %vm1350_vm1, %v18219_v7 }
 0x34c   : > { %13666 = vmatmul.mubr.msk.f32.gmra.mrb[98].mxu1 %vm1350_vm1, %v18228_v58 }
 0x3a3   : > { %v13574_v5 = vpop.f32.mrb[36].mxu1 }
 0x3a4   : > { %v1609_v31 = vpop.f32.mrb[37].mxu1  ;;  %v1929_v56 = vsub.f32 %v17397_v22, %v13574_v5 }
 0x3a5   : > { %v1928_v48 = vsub.f32 %v17410_v27, %v1609_v31 }
 0x3a6   : > { %v18245_v42 = vmul.f32 %v1929_v56, %v1929_v56 }
 0x3a7   : > { %v13577_v18 = vpop.f32.mrb[38].mxu1  ;;  %v18248_v1 = vmul.f32 %v1928_v48, %v1928_v48 }
 0x3a8   : > { %v1619_v29 = vpop.f32.mrb[39].mxu1  ;;  %v1931_v33 = vsub.f32 %v17420_v32, %v13577_v18 }
 0x3a9   : > { %v1930_v59 = vsub.f32 %v17433_v6, %v1619_v29  ;;  %v14402_v29 = vpack.c.bf16 %v18245_v42, %v18248_v1 }
 0x3ab   : > { %v13580_v13 = vpop.f32.mrb[40].mxu1 }
 0x3ac   : > { %v1629_v54 = vpop.f32.mrb[41].mxu1  ;;  %v1933_v31 = vsub.f32 %v17444_v16, %v13580_v13 }
 0x3ad   : > { %v1932_v56 = vsub.f32 %v17460_v49, %v1629_v54 }
 0x3af   : > { %v13583_v52 = vpop.f32.mrb[42].mxu1 }
 0x3b0   : > { %v1639_v61 = vpop.f32.mrb[43].mxu1 }
 0x3b3   : > { %v13586_v34 = vpop.f32.mrb[44].mxu1 }
 0x3b4   : > { %v1649_v46 = vpop.f32.mrb[45].mxu1 }
 0x3b7   : > { %v13589_v43 = vpop.f32.mrb[46].mxu1 }
 0x3b8   : > { %v18232_v7 = vpop.f32.mrb[47].mxu1 }
 0x3bb   : > { %v18234_v36 = vpop.f32.mrb[48].mxu1 }
 0x3bc   : > { %v18236_v57 = vpop.f32.mrb[49].mxu1 }
 0x3bf   : > { %v18238_v60 = vpop.f32.mrb[50].mxu1 }
 0x3c0   : > { %v18240_v58 = vpop.f32.mrb[51].mxu1 }
 0x3c3   : > { %v13598_v50 = vpop.f32.mrb[52].mxu1 }
 0x3c4   : > { %v1945_v12 = vsub.f32 %v17406_v25, %v13598_v50  ;;  %v1689_v41 = vpop.f32.mrb[53].mxu1 }
 0x3c5   : > { %v1944_v19 = vsub.f32 %v17400_v23, %v1689_v41  ;;  %v1935_v23 = vsub.f32 %v17470_v35, %v13583_v52 }
 0x3c6   : > { %v18252_v40 = vmul.f32 %v1945_v12, %v1945_v12  ;;  %v18264_v12 = vmul.f32 %v1931_v33, %v1931_v33  ;;  %v21813_v33 = vld [vmem:[#allocation23_spill] sm:$0xff] }
 0x3c7   : > { %v18254_v11 = vmul.f32 %v1944_v19, %v1944_v19  ;;  %v13601_v5 = vpop.f32.mrb[54].mxu1  ;;  %v18266_v19 = vmul.f32 %v1930_v59, %v1930_v59 }
 0x3c8   : > { %v1947_v50 = vsub.f32 %v17403_v24, %v13601_v5  ;;  %v1699_v25 = vpop.f32.mrb[55].mxu1  ;;  %v18272_v24 = vmul.f32 %v1933_v31, %v1933_v31 }
 0x3c9   : > { %21810 = vst [vmem:[#allocation143_spill] sm:$0xff] %v18254_v11  ;;  %v1946_v41 = vsub.f32 %v17413_v28, %v1699_v25  ;;  %v14400_v48 = vpack.c.bf16 %v18252_v40, %v18254_v11  ;;  %v18275_v28 = vmul.f32 %v1932_v56, %v1932_v56  ;;  %v21816_v56 = vld [vmem:[#allocation24_spill] sm:$0xff] }
 0x3ca   : > { %v18268_v18 = vmul.f32 %v1947_v50, %v1947_v50  ;;  %v14406_v50 = vpack.c.bf16 %v18264_v12, %v18266_v19 }
 0x3cb   : > { %v18270_v13 = vmul.f32 %v1946_v41, %v1946_v41  ;;  %v13604_v5 = vpop.f32.mrb[56].mxu1  ;;  %14401 = vmatprep.subr.bf16.mxu0 %v14400_v48  ;;  %v21814_v41 = vld [vmem:[#allocation28_spill] sm:$0xff]  ;;  %v14410_v52 = vpack.c.bf16 %v18272_v24, %v18275_v28 }
 0x3cc   : > { %21811 = vst [vmem:[#allocation144_spill] sm:$0xff] %v18268_v18  ;;  %v1949_v25 = vsub.f32 %v17455_v21, %v13604_v5  ;;  %v1709_v54 = vpop.f32.mrb[57].mxu1  ;;  %14403 = vmatpush3.bf16.msra.mxu0 %v14402_v29  ;;  %v1934_v48 = vsub.f32 %v21814_v41, %v1639_v61 }
 0x3cd   : > { %21812 = vst [vmem:[#allocation145_spill] sm:$0xff] %v18270_v13  ;;  %v1948_v11 = vsub.f32 %v21813_v33, %v1709_v54  ;;  %v14404_v59 = vpack.c.bf16 %v18268_v18, %v18270_v13  ;;  %v18291_v54 = vmul.f32 %v1935_v23, %v1935_v23  ;;  %v21817_v33 = vld [vmem:[#allocation26_spill] sm:$0xff]  ;;  %v21818_v13 = vld [vmem:[#allocation33_spill] sm:$0xff]  ;;  %v1939_v23 = vsub.f32 %v17520_v15, %v13589_v43 }
 0x3ce   : > { %v18284_v31 = vmul.f32 %v1949_v25, %v1949_v25  ;;  %v18296_v25 = vmul.f32 %v1934_v48, %v1934_v48  ;;  %v1938_v48 = vsub.f32 %v17530_v14, %v18232_v7 }
 0x3cf   : > { %v18286_v16 = vmul.f32 %v1948_v11, %v1948_v11  ;;  %v13607_v5 = vpop.f32.mrb[58].mxu1  ;;  %14405 = vmatprep.subr.bf16.mxu0 %v14404_v59  ;;  %v1937_v11 = vsub.f32 %v17496_v26, %v13586_v34  ;;  %v1936_v59 = vsub.f32 %v21818_v13, %v1649_v46  ;;  %v21834_v26 = vld [vmem:[#allocation43_spill] sm:$0xff] }
 0x3d0   : > { %v1951_v29 = vsub.f32 %v21816_v56, %v13607_v5  ;;  %v1719_v21 = vpop.f32.mrb[59].mxu1  ;;  %14407 = vmatpush3.bf16.msra.mxu0 %v14406_v50  ;;  %v21820_v56 = vld [vmem:[#allocation32_spill] sm:$0xff] }
 0x3d1   : > { %21815 = vst [vmem:[#allocation146_spill] sm:$0xff] %v18286_v16  ;;  %v1950_v35 = vsub.f32 %v21817_v33, %v1719_v21  ;;  %v14408_v61 = vpack.c.bf16 %v18284_v31, %v18286_v16  ;;  %v21821_v33 = vld [vmem:[#allocation30_spill] sm:$0xff]  ;;  %v18313_v34 = vmul.f32 %v1937_v11, %v1937_v11  ;;  %v1941_v11 = vsub.f32 %v17544_v63, %v18234_v36 }
 0x3d2   : > { %v18300_v41 = vmul.f32 %v1951_v29, %v1951_v29  ;;  %v18315_v29 = vmul.f32 %v1936_v59, %v1936_v59  ;;  %v21828_v63 = vld [vmem:[#allocation38_spill] sm:$0xff] }
 0x3d3   : > { %v18302_v5 = vmul.f32 %v1950_v35, %v1950_v35  ;;  %v13610_v50 = vpop.f32.mrb[60].mxu1  ;;  %14409 = vmatprep.subr.bf16.mxu0 %v14408_v61  ;;  %v14414_v35 = vpack.c.bf16 %v18291_v54, %v18296_v25 }
 0x3d4   : > { %v1953_v18 = vsub.f32 %v21820_v56, %v13610_v50  ;;  %v1729_v21 = vpop.f32.mrb[61].mxu1  ;;  %14411 = vmatpush3.bf16.msra.mxu0 %v14410_v52  ;;  %v18321_v50 = vmul.f32 %v1939_v23, %v1939_v23  ;;  %v18324_v56 = vmul.f32 %v1938_v48, %v1938_v48  ;;  %v21824_v23 = vld [vmem:[#allocation41_spill] sm:$0xff] }
 0x3d5   : > { %21819 = vst [vmem:[#allocation147_spill] sm:$0xff] %v18302_v5  ;;  %v1952_v16 = vsub.f32 %v21821_v33, %v1729_v21  ;;  %v14412_v46 = vpack.c.bf16 %v18300_v41, %v18302_v5 }
 0x3d6   : > { %v18317_v43 = vmul.f32 %v1953_v18, %v1953_v18 }
 0x3d7   : > { %v18319_v61 = vmul.f32 %v1952_v16, %v1952_v16  ;;  %v13613_v52 = vpop.f32.mrb[62].mxu1  ;;  %14413 = vmatprep.subr.bf16.mxu0 %v14412_v46  ;;  %v14418_v16 = vpack.c.bf16 %v18313_v34, %v18315_v29  ;;  %v1940_v46 = vsub.f32 %v21824_v23, %v18236_v57 }
 0x3d8   : > { %21822 = vst [vmem:[#allocation148_spill] sm:$0xff] %v18317_v43  ;;  %v1955_v7 = vsub.f32 %v17504_v39, %v13613_v52  ;;  %v1739_v21 = vpop.f32.mrb[63].mxu1  ;;  %14415 = vmatpush3.bf16.msra.mxu0 %v14414_v35  ;;  %v21827_v35 = vld [vmem:[#allocation40_spill] sm:$0xff] }
 0x3d9   : > { %21823 = vst [vmem:[#allocation149_spill] sm:$0xff] %v18319_v61  ;;  %v1954_v59 = vsub.f32 %v17515_v37, %v1739_v21  ;;  %v14416_v18 = vpack.c.bf16 %v18317_v43, %v18319_v61  ;;  %v14422_v21 = vpack.c.bf16 %v18321_v50, %v18324_v56  ;;  %v18342_v37 = vmul.f32 %v1941_v11, %v1941_v11 }
 0x3da   : > { %v18335_v33 = vmul.f32 %v1955_v7, %v1955_v7  ;;  %v18347_v7 = vmul.f32 %v1940_v46, %v1940_v46 }
 0x3db   : > { %v18337_v52 = vmul.f32 %v1954_v59, %v1954_v59  ;;  %v13616_v48 = vpop.f32.mrb[64].mxu1  ;;  %14417 = vmatprep.subr.bf16.mxu0 %v14416_v18  ;;  %v1943_v59 = vsub.f32 %v17574_v3, %v18238_v60  ;;  %v1942_v18 = vsub.f32 %v17586_v9, %v18240_v58 }
 0x3dc   : > { %21825 = vst [vmem:[#allocation150_spill] sm:$0xff] %v18335_v33  ;;  %v1957_v39 = vsub.f32 %v21827_v35, %v13616_v48  ;;  %v1749_v36 = vpop.f32.mrb[65].mxu1  ;;  %14419 = vmatpush3.bf16.msra.mxu0 %v14418_v16  ;;  %v14426_v60 = vpack.c.bf16 %v18342_v37, %v18347_v7 }
 0x3dd   : > { %21826 = vst [vmem:[#allocation151_spill] sm:$0xff] %v18337_v52  ;;  %v1956_v15 = vsub.f32 %v21828_v63, %v1749_v36  ;;  %v14420_v57 = vpack.c.bf16 %v18335_v33, %v18337_v52  ;;  %v21831_v63 = vld [vmem:[#allocation42_spill] sm:$0xff]  ;;  %v18363_v3 = vmul.f32 %v1943_v59, %v1943_v59 }
 0x3de   : > { %v18353_v48 = vmul.f32 %v1957_v39, %v1957_v39  ;;  %v18365_v39 = vmul.f32 %v1942_v18, %v1942_v18 }
 0x3df   : > { %v18355_v16 = vmul.f32 %v1956_v15, %v1956_v15  ;;  %v13619_v35 = vpop.f32.mrb[66].mxu1  ;;  %14421 = vmatprep.subr.bf16.mxu0 %v14420_v57 }
 0x3e0   : > { %21829 = vst [vmem:[#allocation152_spill] sm:$0xff] %v18353_v48  ;;  %v1959_v11 = vsub.f32 %v17552_v55, %v13619_v35  ;;  %v1759_v36 = vpop.f32.mrb[67].mxu1  ;;  %14423 = vmatpush3.bf16.msra.mxu0 %v14422_v21 }
 0x3e1   : > { %21830 = vst [vmem:[#allocation153_spill] sm:$0xff] %v18355_v16  ;;  %v1958_v23 = vsub.f32 %v21831_v63, %v1759_v36  ;;  %v14424_v46 = vpack.c.bf16 %v18353_v48, %v18355_v16  ;;  %v14430_v36 = vpack.c.bf16 %v18363_v3, %v18365_v39 }
 0x3e2   : > { %v18367_v15 = vmul.f32 %v1959_v11, %v1959_v11 }
 0x3e3   : > { %v18369_v58 = vmul.f32 %v1958_v23, %v1958_v23  ;;  %v13622_v57 = vpop.f32.mrb[68].mxu1  ;;  %14425 = vmatprep.subr.bf16.mxu0 %v14424_v46 }
 0x3e4   : > { %21832 = vst [vmem:[#allocation154_spill] sm:$0xff] %v18367_v15  ;;  %v1769_v35 = vpop.f32.mrb[69].mxu1  ;;  %14427 = vmatpush3.bf16.msra.mxu0 %v14426_v60 }
 0x3e5   : > { %21833 = vst [vmem:[#allocation155_spill] sm:$0xff] %v18369_v58  ;;  %v14428_v21 = vpack.c.bf16 %v18367_v15, %v18369_v58 }
 0x3e7   : > { %v13625_v55 = vpop.f32.mrb[70].mxu1  ;;  %14429 = vmatprep.subr.bf16.mxu0 %v14428_v21 }
 0x3e8   : > { %v1779_v59 = vpop.f32.mrb[71].mxu1  ;;  %14431 = vmatpush3.bf16.msra.mxu0 %v14430_v36  ;;  %v1963_v13 = vsub.f32 %v17631_v62, %v13625_v55 }
 0x3e9   : > { %v1962_v61 = vsub.f32 %v17628_v4, %v1779_v59 }
 0x3ea   : > { %v18411_v59 = vmul.f32 %v1963_v13, %v1963_v13  ;;  %v21839_v13 = vld [vmem:[#allocation50_spill] sm:$0xff] }
 0x3eb   : > { %v13628_v18 = vpop.f32.mrb[72].mxu1  ;;  %2121 = vmatmul.mubr.f32.vlgmr.msra.gmra.mrb[36].mxu0 %v17611_v0 }
 0x3ec   : > { %v1789_v11 = vpop.f32.mrb[73].mxu1  ;;  %2125 = vmatprep.mubr.f32.mxu0 %v17621_v20  ;;  %v1961_v20 = vsub.f32 %v17609_v17, %v13622_v57  ;;  %v21836_v17 = vld [vmem:[#allocation47_spill] sm:$0xff] }
 0x3ee   : > { %v18392_v48 = vmul.f32 %v1961_v20, %v1961_v20  ;;  %v1964_v20 = vsub.f32 %v17654_v30, %v1789_v11 }
 0x3ef   : > { %v13631_v23 = vpop.f32.mrb[74].mxu1  ;;  %2126 = vmatmul.mubr.f32.gmra.mrb[38].mxu0 %v17641_v44  ;;  %v1960_v44 = vsub.f32 %v17606_v10, %v1769_v35  ;;  %v1965_v35 = vsub.f32 %v17659_v38, %v13628_v18 }
 0x3f0   : > { %v1799_v46 = vpop.f32.mrb[75].mxu1  ;;  %2195 = vmatprep.mubr.f32.mxu0 %v17651_v45 }
 0x3f1   : > { %v18395_v33 = vmul.f32 %v1960_v44, %v1960_v44 }
 0x3f3   : > { %v13634_v60 = vpop.f32.mrb[76].mxu1  ;;  %v14434_v55 = vpack.c.bf16 %v18392_v48, %v18395_v33 }
 0x3f4   : > { %v1809_v63 = vpop.f32.mrb[77].mxu1 }
 0x3f7   : > { %v13637_v58 = vpop.f32.mrb[78].mxu1 }
 0x3f8   : > { %v18379_v9 = vpop.f32.mrb[79].mxu1 }
 0x3fb   : > { %v18381_v21 = vpop.f32.mrb[80].mxu1 }
 0x3fc   : > { %v18383_v36 = vpop.f32.mrb[81].mxu1 }
 0x3ff   : > { %v18385_v15 = vpop.f32.mrb[82].mxu1 }
 0x400   : > { %v18387_v0 = vpop.f32.mrb[83].mxu1 }
 0x403   : > { %v13646_v14 = vpop.f32.mrb[84].mxu1 }
 0x404   : > { %v1977_v45 = vsub.f32 %v17569_v8, %v13646_v14  ;;  %v1849_v16 = vpop.f32.mrb[85].mxu1 }
 0x405   : > { %v1976_v52 = vsub.f32 %v21834_v26, %v1849_v16  ;;  %v1967_v26 = vsub.f32 %v17681_v2, %v13631_v23 }
 0x406   : > { %v18399_v43 = vmul.f32 %v1977_v45, %v1977_v45 }
 0x407   : > { %v18401_v5 = vmul.f32 %v1976_v52, %v1976_v52  ;;  %v13649_v57 = vpop.f32.mrb[86].mxu1  ;;  %v18413_v52 = vmul.f32 %v1962_v61, %v1962_v61 }
 0x408   : > { %v1979_v14 = vsub.f32 %v17603_v47, %v13649_v57  ;;  %v1859_v8 = vpop.f32.mrb[87].mxu1  ;;  %v18419_v47 = vmul.f32 %v1965_v35, %v1965_v35 }
 0x409   : > { %21835 = vst [vmem:[#allocation156_spill] sm:$0xff] %v18401_v5  ;;  %v1978_v16 = vsub.f32 %v21836_v17, %v1859_v8  ;;  %v14432_v44 = vpack.c.bf16 %v18399_v43, %v18401_v5  ;;  %v18422_v17 = vmul.f32 %v1964_v20, %v1964_v20  ;;  %v21842_v20 = vld [vmem:[#allocation57_spill] sm:$0xff] }
 0x40a   : > { %v18415_v45 = vmul.f32 %v1979_v14, %v1979_v14  ;;  %v14438_v14 = vpack.c.bf16 %v18411_v59, %v18413_v52 }
 0x40b   : > { %v18417_v18 = vmul.f32 %v1978_v16, %v1978_v16  ;;  %v13652_v57 = vpop.f32.mrb[88].mxu1  ;;  %14433 = vmatprep.subr.bf16.mxu0 %v14432_v44  ;;  %v1966_v16 = vsub.f32 %v17672_v53, %v1799_v46  ;;  %v14442_v23 = vpack.c.bf16 %v18419_v47, %v18422_v17 }
 0x40c   : > { %21837 = vst [vmem:[#allocation157_spill] sm:$0xff] %v18415_v45  ;;  %v1981_v8 = vsub.f32 %v17617_v51, %v13652_v57  ;;  %v1869_v11 = vpop.f32.mrb[89].mxu1  ;;  %14435 = vmatpush3.bf16.msra.mxu0 %v14434_v55 }
 0x40d   : > { %21838 = vst [vmem:[#allocation158_spill] sm:$0xff] %v18417_v18  ;;  %v1980_v38 = vsub.f32 %v21839_v13, %v1869_v11  ;;  %v14436_v61 = vpack.c.bf16 %v18415_v45, %v18417_v18  ;;  %v18438_v11 = vmul.f32 %v1967_v26, %v1967_v26  ;;  %v21843_v13 = vld [vmem:[#allocation56_spill] sm:$0xff]  ;;  %v21845_v18 = vld [vmem:[#allocation62_spill] sm:$0xff] }
 0x40e   : > { %v18431_v35 = vmul.f32 %v1981_v8, %v1981_v8  ;;  %v18443_v8 = vmul.f32 %v1966_v16, %v1966_v16  ;;  %v21849_v45 = vld [vmem:[#allocation60_spill] sm:$0xff] }
 0x40f   : > { %v18433_v44 = vmul.f32 %v1980_v38, %v1980_v38  ;;  %v13655_v57 = vpop.f32.mrb[90].mxu1  ;;  %14437 = vmatprep.subr.bf16.mxu0 %v14436_v61  ;;  %v21844_v38 = vld [vmem:[#allocation63_spill] sm:$0xff]  ;;  %v1968_v61 = vsub.f32 %v21845_v18, %v1809_v63 }
 0x410   : > { %21840 = vst [vmem:[#allocation159_spill] sm:$0xff] %v18431_v35  ;;  %v1983_v55 = vsub.f32 %v21842_v20, %v13655_v57  ;;  %v1879_v51 = vpop.f32.mrb[91].mxu1  ;;  %14439 = vmatpush3.bf16.msra.mxu0 %v14438_v14  ;;  %v1969_v53 = vsub.f32 %v21844_v38, %v13634_v60  ;;  %v21848_v20 = vld [vmem:[#allocation67_spill] sm:$0xff] }
 0x411   : > { %21841 = vst [vmem:[#allocation160_spill] sm:$0xff] %v18433_v44  ;;  %v1982_v2 = vsub.f32 %v21843_v13, %v1879_v51  ;;  %v14440_v46 = vpack.c.bf16 %v18431_v35, %v18433_v44  ;;  %v1971_v26 = vsub.f32 %v21848_v20, %v13637_v58  ;;  %v21850_v13 = vld [vmem:[#allocation66_spill] sm:$0xff]  ;;  %v21851_v44 = vld [vmem:[#allocation59_spill] sm:$0xff] }
 0x412   : > { %v18447_v30 = vmul.f32 %v1983_v55, %v1983_v55  ;;  %v1970_v16 = vsub.f32 %v21850_v13, %v18379_v9  ;;  %v18460_v60 = vmul.f32 %v1969_v53, %v1969_v53  ;;  %v18462_v55 = vmul.f32 %v1968_v61, %v1968_v61  ;;  %v21854_v9 = vld [vmem:[#allocation65_spill] sm:$0xff]  ;;  %v21855_v20 = vld [vmem:[#allocation71_spill] sm:$0xff]  ;;  %v21856_v13 = vld [vmem:[#allocation64_spill] sm:$0xff] }
 0x413   : > { %v18449_v57 = vmul.f32 %v1982_v2, %v1982_v2  ;;  %v13658_v14 = vpop.f32.mrb[92].mxu1  ;;  %14441 = vmatprep.subr.bf16.mxu0 %v14440_v46  ;;  %v14446_v2 = vpack.c.bf16 %v18438_v11, %v18443_v8  ;;  %v1973_v53 = vsub.f32 %v21855_v20, %v18381_v21  ;;  %v21861_v20 = vld [vmem:[#allocation68_spill] sm:$0xff] }
 0x414   : > { %21846 = vst [vmem:[#allocation161_spill] sm:$0xff] %v18447_v30  ;;  %v1985_v5 = vsub.f32 %v21849_v45, %v13658_v14  ;;  %v1889_v51 = vpop.f32.mrb[93].mxu1  ;;  %14443 = vmatpush3.bf16.msra.mxu0 %v14442_v23  ;;  %v18468_v14 = vmul.f32 %v1971_v26, %v1971_v26  ;;  %v18471_v45 = vmul.f32 %v1970_v16, %v1970_v16  ;;  %v21857_v26 = vld [vmem:[#allocation70_spill] sm:$0xff] }
 0x415   : > { %21847 = vst [vmem:[#allocation162_spill] sm:$0xff] %v18449_v57  ;;  %v1984_v35 = vsub.f32 %v21851_v44, %v1889_v51  ;;  %v14444_v63 = vpack.c.bf16 %v18447_v30, %v18449_v57 }
 0x416   : > { %v18464_v58 = vmul.f32 %v1985_v5, %v1985_v5 }
 0x417   : > { %v18466_v46 = vmul.f32 %v1984_v35, %v1984_v35  ;;  %v13661_v23 = vpop.f32.mrb[94].mxu1  ;;  %14445 = vmatprep.subr.bf16.mxu0 %v14444_v63  ;;  %v14450_v35 = vpack.c.bf16 %v18460_v60, %v18462_v55  ;;  %v1972_v63 = vsub.f32 %v21857_v26, %v18383_v36 }
 0x418   : > { %21852 = vst [vmem:[#allocation163_spill] sm:$0xff] %v18464_v58  ;;  %v1987_v51 = vsub.f32 %v21854_v9, %v13661_v23  ;;  %v1899_v44 = vpop.f32.mrb[95].mxu1  ;;  %14447 = vmatpush3.bf16.msra.mxu0 %v14446_v2  ;;  %v21860_v2 = vld [vmem:[#allocation69_spill] sm:$0xff] }
 0x419   : > { %21853 = vst [vmem:[#allocation164_spill] sm:$0xff] %v18466_v46  ;;  %v1986_v61 = vsub.f32 %v21856_v13, %v1899_v44  ;;  %v14448_v5 = vpack.c.bf16 %v18464_v58, %v18466_v46  ;;  %v14454_v44 = vpack.c.bf16 %v18468_v14, %v18471_v45  ;;  %v18489_v13 = vmul.f32 %v1973_v53, %v1973_v53  ;;  %v21866_v53 = vld [vmem:[#allocation73_spill] sm:$0xff] }
 0x41a   : > { %v18482_v38 = vmul.f32 %v1987_v51, %v1987_v51  ;;  %v18494_v51 = vmul.f32 %v1972_v63, %v1972_v63 }
 0x41b   : > { %v18484_v23 = vmul.f32 %v1986_v61, %v1986_v61  ;;  %v13664_v16 = vpop.f32.mrb[96].mxu1  ;;  %14449 = vmatprep.subr.bf16.mxu0 %v14448_v5  ;;  %v21862_v61 = vld [vmem:[#allocation75_spill] sm:$0xff]  ;;  %v21863_v5 = vld [vmem:[#allocation74_spill] sm:$0xff] }
 0x41c   : > { %21858 = vst [vmem:[#allocation165_spill] sm:$0xff] %v18482_v38  ;;  %v1989_v9 = vsub.f32 %v21860_v2, %v13664_v16  ;;  %v1909_v21 = vpop.f32.mrb[97].mxu1  ;;  %14451 = vmatpush3.bf16.msra.mxu0 %v14450_v35  ;;  %v1975_v26 = vsub.f32 %v21862_v61, %v18385_v15  ;;  %v1974_v16 = vsub.f32 %v21863_v5, %v18387_v0 }
 0x41d   : > { %21859 = vst [vmem:[#allocation166_spill] sm:$0xff] %v18484_v23  ;;  %v1988_v18 = vsub.f32 %v21861_v20, %v1909_v21  ;;  %v14452_v36 = vpack.c.bf16 %v18482_v38, %v18484_v23  ;;  %v21867_v20 = vld [vmem:[#allocation72_spill] sm:$0xff]  ;;  %v14458_v15 = vpack.c.bf16 %v18489_v13, %v18494_v51 }
 0x41e   : > { %v18500_v2 = vmul.f32 %v1989_v9, %v1989_v9  ;;  %v18510_v61 = vmul.f32 %v1975_v26, %v1975_v26  ;;  %v18512_v0 = vmul.f32 %v1974_v16, %v1974_v16  ;;  %v21871_v26 = vld [vmem:[#allocation77_spill] sm:$0xff]  ;;  %v21872_v16 = vld [vmem:[#allocation78_spill] sm:$0xff] }
 0x41f   : > { %v18502_v35 = vmul.f32 %v1988_v18, %v1988_v18  ;;  %v13667_v46 = vpop.f32.mrb[98].mxu1  ;;  %14453 = vmatprep.subr.bf16.mxu0 %v14452_v36  ;;  %v21870_v36 = vld [vmem:[#allocation76_spill] sm:$0xff] }
 0x420   : > { %21864 = vst [vmem:[#allocation167_spill] sm:$0xff] %v18500_v2  ;;  %v1991_v58 = vsub.f32 %v21866_v53, %v13667_v46  ;;  %v1919_v21 = vpop.f32.mrb[99].mxu1  ;;  %14455 = vmatpush3.bf16.msra.mxu0 %v14454_v44  ;;  %v14462_v44 = vpack.c.bf16 %v18510_v61, %v18512_v0 }
 0x421   : > { %21865 = vst [vmem:[#allocation168_spill] sm:$0xff] %v18502_v35  ;;  %v1990_v23 = vsub.f32 %v21867_v20, %v1919_v21  ;;  %v14456_v63 = vpack.c.bf16 %v18500_v2, %v18502_v35 }
 0x422   : > { %v18514_v18 = vmul.f32 %v1991_v58, %v1991_v58  ;;  %v21873_v58 = vld [vmem:[#allocation79_spill] sm:$0xff] }
 0x423   : > { %v18516_v9 = vmul.f32 %v1990_v23, %v1990_v23  ;;  %14457 = vmatprep.subr.bf16.mxu0 %v14456_v63 }
 0x424   : > { %21868 = vst [vmem:[#allocation169_spill] sm:$0xff] %v18514_v18  ;;  %14459 = vmatpush3.bf16.msra.mxu0 %v14458_v15 }
 0x425   : > { %21869 = vst [vmem:[#allocation170_spill] sm:$0xff] %v18516_v9  ;;  %v14460_v46 = vpack.c.bf16 %v18514_v18, %v18516_v9 }
 0x427   : > { %14461 = vmatprep.subr.bf16.mxu0 %v14460_v46 }
 0x428   : > { %14463 = vmatpush3.bf16.msra.mxu0 %v14462_v44 }
 0x42b   : > { %2196 = vmatmul.mubr.f32.vlgmr.msra.gmra.mrb[40].mxu0 %v21870_v36 }
 0x42c   : > { %2200 = vmatprep.mubr.f32.mxu0 %v21871_v26 }
 0x42f   : > { %2201 = vmatmul.mubr.f32.gmra.mrb[42].mxu0 %v21872_v16  ;;  %v21874_v16 = vld [vmem:[#allocation80_spill] sm:$0xff] }
 0x430   : > { %13672 = vmatprep.mubr.msk.f32.mxu0 %vm1350_vm1, %v21873_v58  ;;  %v21875_v58 = vld [vmem:[#allocation81_spill] sm:$0xff] }
 0x4be   : > { %v12749_v23 = vpop.f32.mrb[36].mxu0 }
 0x4bf   : > { %v12750_v21 = vpop.f32.mrb[37].mxu0 }
 0x4c0   : > { %v12751_v63 = vadd.f32 %v12750_v21, %v12749_v23  ;;  %v21876_v23 = vld [vmem:[#allocation82_spill] sm:$0xff] }
 0x4c1   : > { %v21884_v21 = vld [vmem:[#allocation90_spill] sm:$0xff] }
 0x4c2   : > { %v12752_v15 = vpop.f32.mrb[38].mxu0 }
 0x4c3   : > { %v12753_v20 = vpop.f32.mrb[39].mxu0 }
 0x4c4   : > { %v12754_v53 = vadd.f32 %v12753_v20, %v12752_v15  ;;  %v21877_v20 = vld [vmem:[#allocation83_spill] sm:$0xff]  ;;  %v21886_v15 = vld [vmem:[#allocation92_spill] sm:$0xff] }
 0x4fe   : > { %v12787_v5 = vpop.f32.mrb[40].mxu0 }
 0x4ff   : > { %v12788_v9 = vpop.f32.mrb[41].mxu0 }
 0x500   : > { %v12789_v18 = vadd.f32 %v12788_v9, %v12787_v5  ;;  %v21878_v5 = vld [vmem:[#allocation84_spill] sm:$0xff]  ;;  %v21883_v9 = vld [vmem:[#allocation89_spill] sm:$0xff] }
 0x502   : > { %v2198_v46 = vadd.f32 %v12789_v18, %v12751_v63  ;;  %v12790_v44 = vpop.f32.mrb[42].mxu0  ;;  %v21882_v18 = vld [vmem:[#allocation88_spill] sm:$0xff]  ;;  %v21885_v63 = vld [vmem:[#allocation91_spill] sm:$0xff] }
 0x503   : > { %v12791_v35 = vpop.f32.mrb[43].mxu0 }
 0x504   : > { %v12792_v36 = vadd.f32 %v12791_v35, %v12790_v44  ;;  %v21879_v35 = vld [vmem:[#allocation85_spill] sm:$0xff]  ;;  %v21888_v44 = vld [vmem:[#allocation94_spill] sm:$0xff] }
 0x506   : > { %v2203_v2 = vadd.f32 %v12792_v36, %v12754_v53  ;;  %v21881_v53 = vld [vmem:[#allocation87_spill] sm:$0xff] }
 0x507   : > { %v21889_v36 = vld [vmem:[#allocation95_spill] sm:$0xff] }
 0x508   : > { %v14464_v26 = vpack.c.bf16 %v2203_v2, %v2198_v46  ;;  %v21880_v2 = vld [vmem:[#allocation86_spill] sm:$0xff]  ;;  %v21887_v46 = vld [vmem:[#allocation93_spill] sm:$0xff] }
 0x50a   : > { %14465 = vmatprep.subr.bf16.mxu0 %v14464_v26 }
 0x50b   : > { %14467 = vmatpush3.bf16.msra.mxu0 %v14464_v26  ;;  %v21890_v26 = vld [vmem:[#allocation96_spill] sm:$0xff] }
 0x50e   : > { %13673 = vmatmul.mubr.msk.f32.vlgmr.msra.gmra.mrb[44].mxu0 %vm1350_vm1, %v21874_v16  ;;  %v21891_v16 = vld [vmem:[#allocation97_spill] sm:$0xff] }
 0x50f   : > { %13675 = vmatprep.mubr.msk.f32.mxu0 %vm1350_vm1, %v21875_v58  ;;  %v21892_v58 = vld [vmem:[#allocation98_spill] sm:$0xff] }
 0x512   : > { %13676 = vmatmul.mubr.msk.f32.gmra.mrb[46].mxu0 %vm1350_vm1, %v21876_v23  ;;  %v21893_v23 = vld [vmem:[#allocation99_spill] sm:$0xff] }
 0x513   : > { %13678 = vmatprep.mubr.msk.f32.mxu0 %vm1350_vm1, %v21877_v20  ;;  %v21894_v20 = vld [vmem:[#allocation100_spill] sm:$0xff] }
 0x516   : > { %13679 = vmatmul.mubr.msk.f32.gmra.mrb[48].mxu0 %vm1350_vm1, %v21878_v5  ;;  %v21895_v5 = vld [vmem:[#allocation101_spill] sm:$0xff] }
 0x517   : > { %13681 = vmatprep.mubr.msk.f32.mxu0 %vm1350_vm1, %v21879_v35  ;;  %v21896_v35 = vld [vmem:[#allocation102_spill] sm:$0xff] }
 0x51a   : > { %13682 = vmatmul.mubr.msk.f32.gmra.mrb[50].mxu0 %vm1350_vm1, %v21880_v2  ;;  %v21897_v2 = vld [vmem:[#allocation103_spill] sm:$0xff] }
 0x51b   : > { %13684 = vmatprep.mubr.msk.f32.mxu0 %vm1350_vm1, %v21881_v53  ;;  %v21898_v53 = vld [vmem:[#allocation104_spill] sm:$0xff] }
 0x51e   : > { %13685 = vmatmul.mubr.msk.f32.gmra.mrb[52].mxu0 %vm1350_vm1, %v21882_v18  ;;  %v21899_v18 = vld [vmem:[#allocation105_spill] sm:$0xff] }
 0x51f   : > { %13687 = vmatprep.mubr.msk.f32.mxu0 %vm1350_vm1, %v21883_v9  ;;  %v21900_v9 = vld [vmem:[#allocation106_spill] sm:$0xff] }
 0x522   : > { %13688 = vmatmul.mubr.msk.f32.gmra.mrb[54].mxu0 %vm1350_vm1, %v21884_v21  ;;  %v21901_v21 = vld [vmem:[#allocation107_spill] sm:$0xff] }
 0x523   : > { %13690 = vmatprep.mubr.msk.f32.mxu0 %vm1350_vm1, %v21885_v63  ;;  %v21902_v63 = vld [vmem:[#allocation108_spill] sm:$0xff] }
 0x526   : > { %13691 = vmatmul.mubr.msk.f32.gmra.mrb[56].mxu0 %vm1350_vm1, %v21886_v15  ;;  %v21903_v15 = vld [vmem:[#allocation109_spill] sm:$0xff] }
 0x527   : > { %13693 = vmatprep.mubr.msk.f32.mxu0 %vm1350_vm1, %v21887_v46  ;;  %v21904_v46 = vld [vmem:[#allocation110_spill] sm:$0xff] }
 0x52a   : > { %13694 = vmatmul.mubr.msk.f32.gmra.mrb[58].mxu0 %vm1350_vm1, %v21888_v44  ;;  %v21905_v44 = vld [vmem:[#allocation111_spill] sm:$0xff] }
 0x52b   : > { %13696 = vmatprep.mubr.msk.f32.mxu0 %vm1350_vm1, %v21889_v36  ;;  %v21906_v36 = vld [vmem:[#allocation112_spill] sm:$0xff] }
 0x52e   : > { %13697 = vmatmul.mubr.msk.f32.gmra.mrb[60].mxu0 %vm1350_vm1, %v21890_v26  ;;  %v21907_v26 = vld [vmem:[#allocation113_spill] sm:$0xff] }
 0x52f   : > { %13699 = vmatprep.mubr.msk.f32.mxu0 %vm1350_vm1, %v21891_v16  ;;  %v21908_v16 = vld [vmem:[#allocation114_spill] sm:$0xff] }
 0x532   : > { %13700 = vmatmul.mubr.msk.f32.gmra.mrb[62].mxu0 %vm1350_vm1, %v21892_v58  ;;  %v21909_v58 = vld [vmem:[#allocation115_spill] sm:$0xff] }
 0x533   : > { %13702 = vmatprep.mubr.msk.f32.mxu0 %vm1350_vm1, %v21893_v23  ;;  %v21910_v23 = vld [vmem:[#allocation116_spill] sm:$0xff] }
 0x536   : > { %13703 = vmatmul.mubr.msk.f32.gmra.mrb[64].mxu0 %vm1350_vm1, %v21894_v20  ;;  %v21911_v20 = vld [vmem:[#allocation117_spill] sm:$0xff] }
 0x537   : > { %13705 = vmatprep.mubr.msk.f32.mxu0 %vm1350_vm1, %v21895_v5  ;;  %v21912_v5 = vld [vmem:[#allocation118_spill] sm:$0xff] }
 0x53a   : > { %13706 = vmatmul.mubr.msk.f32.gmra.mrb[66].mxu0 %vm1350_vm1, %v21896_v35  ;;  %v21913_v35 = vld [vmem:[#allocation119_spill] sm:$0xff] }
 0x53b   : > { %13708 = vmatprep.mubr.msk.f32.mxu0 %vm1350_vm1, %v21897_v2  ;;  %v21914_v2 = vld [vmem:[#allocation120_spill] sm:$0xff] }
 0x53e   : > { %13709 = vmatmul.mubr.msk.f32.gmra.mrb[68].mxu0 %vm1350_vm1, %v21898_v53  ;;  %v21915_v53 = vld [vmem:[#allocation121_spill] sm:$0xff] }
 0x53f   : > { %13711 = vmatprep.mubr.msk.f32.mxu0 %vm1350_vm1, %v21899_v18  ;;  %v21916_v18 = vld [vmem:[#allocation122_spill] sm:$0xff] }
 0x542   : > { %13712 = vmatmul.mubr.msk.f32.gmra.mrb[70].mxu0 %vm1350_vm1, %v21900_v9  ;;  %v21917_v9 = vld [vmem:[#allocation123_spill] sm:$0xff] }
 0x543   : > { %13714 = vmatprep.mubr.msk.f32.mxu0 %vm1350_vm1, %v21901_v21  ;;  %v21918_v21 = vld [vmem:[#allocation124_spill] sm:$0xff] }
 0x546   : > { %13715 = vmatmul.mubr.msk.f32.gmra.mrb[72].mxu0 %vm1350_vm1, %v21902_v63  ;;  %v21919_v63 = vld [vmem:[#allocation125_spill] sm:$0xff] }
 0x547   : > { %13717 = vmatprep.mubr.msk.f32.mxu0 %vm1350_vm1, %v21903_v15  ;;  %v21920_v15 = vld [vmem:[#allocation126_spill] sm:$0xff] }
 0x54a   : > { %13718 = vmatmul.mubr.msk.f32.gmra.mrb[74].mxu0 %vm1350_vm1, %v21904_v46  ;;  %v21921_v46 = vld [vmem:[#allocation127_spill] sm:$0xff] }
 0x54b   : > { %13720 = vmatprep.mubr.msk.f32.mxu0 %vm1350_vm1, %v21905_v44  ;;  %v21922_v44 = vld [vmem:[#allocation128_spill] sm:$0xff] }
 0x54e   : > { %13721 = vmatmul.mubr.msk.f32.gmra.mrb[76].mxu0 %vm1350_vm1, %v21906_v36  ;;  %v21923_v36 = vld [vmem:[#allocation129_spill] sm:$0xff] }
 0x54f   : > { %13723 = vmatprep.mubr.msk.f32.mxu0 %vm1350_vm1, %v21907_v26  ;;  %v21924_v26 = vld [vmem:[#allocation130_spill] sm:$0xff] }
 0x552   : > { %13724 = vmatmul.mubr.msk.f32.gmra.mrb[78].mxu0 %vm1350_vm1, %v21908_v16  ;;  %v21925_v16 = vld [vmem:[#allocation131_spill] sm:$0xff] }
 0x553   : > { %13726 = vmatprep.mubr.msk.f32.mxu0 %vm1350_vm1, %v21909_v58  ;;  %v21926_v58 = vld [vmem:[#allocation132_spill] sm:$0xff] }
 0x556   : > { %13727 = vmatmul.mubr.msk.f32.gmra.mrb[80].mxu0 %vm1350_vm1, %v21910_v23  ;;  %v21927_v23 = vld [vmem:[#allocation133_spill] sm:$0xff] }
 0x557   : > { %13729 = vmatprep.mubr.msk.f32.mxu0 %vm1350_vm1, %v21911_v20  ;;  %v21928_v20 = vld [vmem:[#allocation134_spill] sm:$0xff] }
 0x55a   : > { %13730 = vmatmul.mubr.msk.f32.gmra.mrb[82].mxu0 %vm1350_vm1, %v21912_v5  ;;  %v21929_v5 = vld [vmem:[#allocation135_spill] sm:$0xff] }
 0x55b   : > { %13732 = vmatprep.mubr.msk.f32.mxu0 %vm1350_vm1, %v21913_v35  ;;  %v21930_v35 = vld [vmem:[#allocation136_spill] sm:$0xff] }
 0x55e   : > { %13733 = vmatmul.mubr.msk.f32.gmra.mrb[84].mxu0 %vm1350_vm1, %v21914_v2  ;;  %v21931_v2 = vld [vmem:[#allocation137_spill] sm:$0xff] }
 0x55f   : > { %13735 = vmatprep.mubr.msk.f32.mxu0 %vm1350_vm1, %v21915_v53  ;;  %v21932_v53 = vld [vmem:[#allocation138_spill] sm:$0xff] }
 0x562   : > { %13736 = vmatmul.mubr.msk.f32.gmra.mrb[86].mxu0 %vm1350_vm1, %v21916_v18  ;;  %v21933_v18 = vld [vmem:[#allocation139_spill] sm:$0xff] }
 0x563   : > { %13738 = vmatprep.mubr.msk.f32.mxu0 %vm1350_vm1, %v21917_v9  ;;  %v21934_v9 = vld [vmem:[#allocation140_spill] sm:$0xff] }
 0x566   : > { %13739 = vmatmul.mubr.msk.f32.gmra.mrb[88].mxu0 %vm1350_vm1, %v21918_v21  ;;  %v21935_v21 = vld [vmem:[#allocation141_spill] sm:$0xff] }
 0x567   : > { %13741 = vmatprep.mubr.msk.f32.mxu0 %vm1350_vm1, %v21919_v63  ;;  %v21936_v63 = vld [vmem:[#allocation142_spill] sm:$0xff] }
 0x56a   : > { %13742 = vmatmul.mubr.msk.f32.gmra.mrb[90].mxu0 %vm1350_vm1, %v21920_v15  ;;  %v21602_v15 = vmov 0.0|0.0  }
 0x56b   : > { %13744 = vmatprep.mubr.msk.f32.mxu0 %vm1350_vm1, %v21921_v46  ;;  %14468 = vmatprep.subr.bf16.mxu1 %v21602_v15 }
 0x56c   : > { %14564 = vmatprep.subr.bf16.mxu0 %v21602_v15 }
 0x56e   : > { %13745 = vmatmul.mubr.msk.f32.gmra.mrb[92].mxu0 %vm1350_vm1, %v21922_v44 }
 0x56f   : > { %13747 = vmatprep.mubr.msk.f32.mxu0 %vm1350_vm1, %v21923_v36 }
 0x572   : > { %13748 = vmatmul.mubr.msk.f32.gmra.mrb[94].mxu0 %vm1350_vm1, %v21924_v26 }
 0x573   : > { %13750 = vmatprep.mubr.msk.f32.mxu0 %vm1350_vm1, %v21925_v16 }
 0x576   : > { %13751 = vmatmul.mubr.msk.f32.gmra.mrb[96].mxu0 %vm1350_vm1, %v21926_v58 }
 0x577   : > { %13753 = vmatprep.mubr.msk.f32.mxu0 %vm1350_vm1, %v21927_v23 }
 0x57a   : > { %13754 = vmatmul.mubr.msk.f32.gmra.mrb[98].mxu0 %vm1350_vm1, %v21928_v20 }
 0x57b   : > { %13756 = vmatprep.mubr.msk.f32.mxu0 %vm1350_vm1, %v21929_v5 }
 0x57e   : > { %13757 = vmatmul.mubr.msk.f32.gmra.mrb[100].mxu0 %vm1350_vm1, %v21930_v35 }
 0x57f   : > { %13759 = vmatprep.mubr.msk.f32.mxu0 %vm1350_vm1, %v21931_v2 }
 0x582   : > { %13760 = vmatmul.mubr.msk.f32.gmra.mrb[102].mxu0 %vm1350_vm1, %v21932_v53 }
 0x583   : > { %13762 = vmatprep.mubr.msk.f32.mxu0 %vm1350_vm1, %v21933_v18 }
 0x586   : > { %13763 = vmatmul.mubr.msk.f32.gmra.mrb[104].mxu0 %vm1350_vm1, %v21934_v9 }
 0x587   : > { %13765 = vmatprep.mubr.msk.f32.mxu0 %vm1350_vm1, %v21935_v21 }
 0x58a   : > { %13766 = vmatmul.mubr.msk.f32.gmra.mrb[106].mxu0 %vm1350_vm1, %v21936_v63 }
 0x5e1   : > { %v13674_v46 = vpop.f32.mrb[44].mxu0 }
 0x5e2   : > { %v2592_v44 = vmul.f32 0.032258064, %v13674_v46  ;;  %v2272_v36 = vpop.f32.mrb[45].mxu0 }
 0x5e3   : > { %v2591_v26 = vmul.f32 0.032258064, %v2272_v36 }
 0x5e4   : > { %v2656_v16 = vadd.f32 0.0001, %v2592_v44 }
 0x5e5   : > { %v2655_v58 = vadd.f32 0.0001, %v2591_v26  ;;  %v13677_v23 = vpop.f32.mrb[46].mxu0 }
 0x5e6   : > { %v2720_v20 = vmul.f32 4.0, %v2656_v16  ;;  %v2594_v5 = vmul.f32 0.032258064, %v13677_v23  ;;  %v2282_v35 = vpop.f32.mrb[47].mxu0 }
 0x5e7   : > { %v2719_v2 = vmul.f32 4.0, %v2655_v58  ;;  %v2593_v53 = vmul.f32 0.032258064, %v2282_v35 }
 0x5e8   : > { %16026 = vrcp.f32 %v2720_v20  ;;  %v2658_v18 = vadd.f32 0.0001, %v2594_v5 }
 0x5e9   : > { %16028 = vrcp.f32 %v2719_v2  ;;  %v2657_v9 = vadd.f32 0.0001, %v2593_v53  ;;  %v13680_v21 = vpop.f32.mrb[48].mxu0 }
 0x5ea   : > { %v2722_v63 = vmul.f32 4.0, %v2658_v18  ;;  %v2596_v38 = vmul.f32 0.032258064, %v13680_v21  ;;  %v2292_v15 = vpop.f32.mrb[49].mxu0 }
 0x5eb   : > { %v2721_v57 = vmul.f32 4.0, %v2657_v9  ;;  %v2595_v46 = vmul.f32 0.032258064, %v2292_v15 }
 0x5ec   : > { %16030 = vrcp.f32 %v2722_v63  ;;  %v2660_v36 = vadd.f32 0.0001, %v2596_v38 }
 0x5ed   : > { %16032 = vrcp.f32 %v2721_v57  ;;  %v2659_v44 = vadd.f32 0.0001, %v2595_v46  ;;  %v13683_v26 = vpop.f32.mrb[50].mxu0 }
 0x5ee   : > { %v2724_v16 = vmul.f32 4.0, %v2660_v36  ;;  %v2598_v23 = vmul.f32 0.032258064, %v13683_v26  ;;  %v2302_v30 = vpop.f32.mrb[51].mxu0 }
 0x5ef   : > { %v2723_v58 = vmul.f32 4.0, %v2659_v44  ;;  %v2597_v35 = vmul.f32 0.032258064, %v2302_v30 }
 0x5f0   : > { %16034 = vrcp.f32 %v2724_v16  ;;  %v2662_v20 = vadd.f32 0.0001, %v2598_v23 }
 0x5f1   : > { %16036 = vrcp.f32 %v2723_v58  ;;  %v2661_v5 = vadd.f32 0.0001, %v2597_v35  ;;  %v13686_v2 = vpop.f32.mrb[52].mxu0 }
 0x5f2   : > { %v16027_v53 = vpop.eup %16026  ;;  %v2726_v18 = vmul.f32 4.0, %v2662_v20  ;;  %v2600_v21 = vmul.f32 0.032258064, %v13686_v2  ;;  %v2312_v9 = vpop.f32.mrb[53].mxu0 }
 0x5f3   : > { %v16029_v15 = vpop.eup %16028  ;;  %v2786_v38 = vmul.f32 %v16027_v53, %v18245_v42  ;;  %v2725_v57 = vmul.f32 4.0, %v2661_v5  ;;  %v2599_v63 = vmul.f32 0.032258064, %v2312_v9 }
 0x5f4   : > { %v2784_v46 = vmul.f32 %v16029_v15, %v18248_v1  ;;  %16038 = vrcp.f32 %v2726_v18  ;;  %v2664_v36 = vadd.f32 0.0001, %v2600_v21 }
 0x5f5   : > { %v2912_v44 = vadd.f32 0.5, %v2786_v38  ;;  %16040 = vrcp.f32 %v2725_v57  ;;  %v2663_v30 = vadd.f32 0.0001, %v2599_v63  ;;  %v13689_v26 = vpop.f32.mrb[54].mxu0 }
 0x5f6   : > { %v16031_v16 = vpop.eup %16030  ;;  %v2911_v23 = vadd.f32 0.5, %v2784_v46  ;;  %v2728_v58 = vmul.f32 4.0, %v2664_v36  ;;  %v2602_v35 = vmul.f32 0.032258064, %v13689_v26  ;;  %v2322_v20 = vpop.f32.mrb[55].mxu0 }
 0x5f7   : > { %v16033_v2 = vpop.eup %16032  ;;  %v12099_v62 = vmul.f32 -1.442695, %v2912_v44  ;;  %v2790_v4 = vmul.f32 %v16031_v16, %v18264_v12  ;;  %v2727_v42 = vmul.f32 4.0, %v2663_v30  ;;  %v2601_v5 = vmul.f32 0.032258064, %v2322_v20 }
 0x5f8   : > { %v12098_v53 = vmul.f32 -1.442695, %v2911_v23  ;;  %v2788_v1 = vmul.f32 %v16033_v2, %v18266_v19  ;;  %16042 = vrcp.f32 %v2728_v58  ;;  %v2666_v18 = vadd.f32 0.0001, %v2602_v35 }
 0x5f9   : > { %16044 = vpow2.f32 %v12099_v62  ;;  %v2914_v21 = vadd.f32 0.5, %v2790_v4  ;;  %v2665_v9 = vadd.f32 0.0001, %v2601_v5  ;;  %v13692_v15 = vpop.f32.mrb[56].mxu0 }
 0x5fa   : > { %v16035_v38 = vpop.eup %16034  ;;  %16046 = vpow2.f32 %v12098_v53  ;;  %v2913_v57 = vadd.f32 0.5, %v2788_v1  ;;  %v2730_v63 = vmul.f32 4.0, %v2666_v18  ;;  %v2604_v46 = vmul.f32 0.032258064, %v13692_v15  ;;  %v2332_v36 = vpop.f32.mrb[57].mxu0 }
 0x5fb   : > { %v16037_v44 = vpop.eup %16036  ;;  %v12101_v26 = vmul.f32 -1.442695, %v2914_v21  ;;  %v2794_v12 = vmul.f32 %v16035_v38, %v18272_v24  ;;  %16048 = vrcp.f32 %v2727_v42  ;;  %v2729_v30 = vmul.f32 4.0, %v2665_v9 }
 0x5fc   : > { %v12100_v16 = vmul.f32 -1.442695, %v2913_v57  ;;  %v2792_v19 = vmul.f32 %v16037_v44, %v18275_v28  ;;  %16050 = vrcp.f32 %v2730_v63  ;;  %v2668_v62 = vadd.f32 0.0001, %v2604_v46 }
 0x5fd   : > { %16052 = vpow2.f32 %v12101_v26  ;;  %v2916_v4 = vadd.f32 0.5, %v2794_v12  ;;  %v2603_v23 = vmul.f32 0.032258064, %v2332_v36  ;;  %v13695_v58 = vpop.f32.mrb[58].mxu0 }
 0x5fe   : > { %v16039_v35 = vpop.eup %16038  ;;  %16054 = vpow2.f32 %v12100_v16  ;;  %v2915_v20 = vadd.f32 0.5, %v2792_v19  ;;  %v2732_v2 = vmul.f32 4.0, %v2668_v62  ;;  %v2606_v5 = vmul.f32 0.032258064, %v13695_v58  ;;  %v2342_v53 = vpop.f32.mrb[59].mxu0 }
 0x5ff   : > { %v16041_v1 = vpop.eup %16040  ;;  %v12103_v18 = vmul.f32 -1.442695, %v2916_v4  ;;  %v2798_v24 = vmul.f32 %v16039_v35, %v18291_v54  ;;  %16056 = vrcp.f32 %v2729_v30  ;;  %v2667_v42 = vadd.f32 0.0001, %v2603_v23 }
 0x600   : > { %v12102_v21 = vmul.f32 -1.442695, %v2915_v20  ;;  %v2796_v28 = vmul.f32 %v16041_v1, %v18296_v25  ;;  %16058 = vrcp.f32 %v2732_v2  ;;  %v2670_v9 = vadd.f32 0.0001, %v2606_v5 }
 0x601   : > { %16060 = vpow2.f32 %v12103_v18  ;;  %v2918_v15 = vadd.f32 0.5, %v2798_v24  ;;  %v2731_v38 = vmul.f32 4.0, %v2667_v42  ;;  %v2605_v57 = vmul.f32 0.032258064, %v2342_v53  ;;  %v13698_v63 = vpop.f32.mrb[60].mxu0 }
 0x602   : > { %v16043_v46 = vpop.eup %16042  ;;  %16062 = vpow2.f32 %v12102_v21  ;;  %v2917_v36 = vadd.f32 0.5, %v2796_v28  ;;  %v2734_v44 = vmul.f32 4.0, %v2670_v9  ;;  %v2608_v26 = vmul.f32 0.032258064, %v13698_v63  ;;  %v2352_v12 = vpop.f32.mrb[61].mxu0 }
 0x603   : > { %v16045_v16 = vpop.eup %16044  ;;  %v12105_v54 = vmul.f32 -1.442695, %v2918_v15  ;;  %v2802_v30 = vmul.f32 %v16043_v46, %v18313_v34  ;;  %16064 = vrcp.f32 %v2731_v38  ;;  %v2669_v19 = vadd.f32 0.0001, %v2605_v57  ;;  %v3488_v46 = vld [vmem:[#allocation8 + $0x8] sm:$0xff] }
 0x604   : > { %v16047_v25 = vpop.eup %16046  ;;  %v3168_v62 = vadd.f32 1.0, %v16045_v16  ;;  %v12104_v4 = vmul.f32 -1.442695, %v2917_v36  ;;  %16066 = vrcp.f32 %v2734_v44  ;;  %v2672_v23 = vadd.f32 0.0001, %v2608_v26  ;;  %v4066_v36 = vld [vmem:[#allocation8 + $0x408] sm:$0xff]  ;;  %3679 = vmatprep.mubr.f32.mxu1 %v3488_v46 }
 0x605   : > { %v16049_v58 = vpop.eup %16048  ;;  %v3167_v35 = vadd.f32 1.0, %v16047_v25  ;;  %16068 = vpow2.f32 %v12105_v54  ;;  %v2920_v20 = vadd.f32 0.5, %v2802_v30  ;;  %v18664_v2 = vmul.f32 4.0, %v2669_v19  ;;  %v13701_v5 = vpop.f32.mrb[62].mxu0  ;;  %4257 = vmatprep.mubr.f32.mxu0 %v4066_v36 }
 0x606   : > { %v16051_v53 = vpop.eup %16050  ;;  %16070 = vrcp.f32 %v3168_v62  ;;  %v2800_v1 = vmul.f32 %v16049_v58, %v18315_v29  ;;  %v18667_v18 = vmul.f32 4.0, %v2672_v23  ;;  %v2607_v34 = vmul.f32 0.032258064, %v2352_v12  ;;  %v2362_v24 = vpop.f32.mrb[63].mxu0 }
 0x607   : > { %v16053_v42 = vpop.eup %16052  ;;  %16072 = vrcp.f32 %v3167_v35  ;;  %v12107_v21 = vmul.f32 -1.442695, %v2920_v20  ;;  %v2806_v28 = vmul.f32 %v16051_v53, %v18321_v50  ;;  %v2610_v9 = vmul.f32 0.032258064, %v13701_v5 }
 0x608   : > { %v16055_v15 = vpop.eup %16054  ;;  %v3170_v38 = vadd.f32 1.0, %v16053_v42  ;;  %16074 = vpow2.f32 %v12104_v4  ;;  %v2919_v57 = vadd.f32 0.5, %v2800_v1  ;;  %v2671_v63 = vadd.f32 0.0001, %v2607_v34 }
 0x609   : > { %v16057_v44 = vpop.eup %16056  ;;  %v3169_v26 = vadd.f32 1.0, %v16055_v15  ;;  %16076 = vpow2.f32 %v12107_v21  ;;  %v2922_v29 = vadd.f32 0.5, %v2806_v28  ;;  %v2674_v16 = vadd.f32 0.0001, %v2610_v9  ;;  %v13704_v12 = vpop.f32.mrb[64].mxu0 }
 0x60a   : > { %v16059_v54 = vpop.eup %16058  ;;  %16078 = vrcp.f32 %v3170_v38  ;;  %v12106_v30 = vmul.f32 -1.442695, %v2919_v57  ;;  %v2804_v50 = vmul.f32 %v16057_v44, %v18324_v56  ;;  %v18671_v19 = vmul.f32 4.0, %v2671_v63  ;;  %v2372_v25 = vpop.f32.mrb[65].mxu0 }
 0x60b   : > { %v16061_v62 = vpop.eup %16060  ;;  %16080 = vrcp.f32 %v3169_v26  ;;  %v12109_v4 = vmul.f32 -1.442695, %v2922_v29  ;;  %v2810_v23 = vmul.f32 %v16059_v54, %v18342_v37  ;;  %v18674_v58 = vmul.f32 4.0, %v2674_v16 }
 0x60c   : > { %v16063_v35 = vpop.eup %16062  ;;  %v3172_v20 = vadd.f32 1.0, %v16061_v62  ;;  %16082 = vpow2.f32 %v12106_v30  ;;  %v2921_v5 = vadd.f32 0.5, %v2804_v50  ;;  %v2609_v53 = vmul.f32 0.032258064, %v2362_v24 }
 0x60d   : > { %v16065_v1 = vpop.eup %16064  ;;  %v3171_v34 = vadd.f32 1.0, %v16063_v35  ;;  %16084 = vpow2.f32 %v12109_v4  ;;  %v2924_v42 = vadd.f32 0.5, %v2810_v23  ;;  %v2612_v56 = vmul.f32 0.032258064, %v13704_v12  ;;  %v13707_v21 = vpop.f32.mrb[66].mxu0 }
 0x60e   : > { %v16067_v28 = vpop.eup %16066  ;;  %16086 = vrcp.f32 %v3172_v20  ;;  %v12108_v9 = vmul.f32 -1.442695, %v2921_v5  ;;  %v2808_v15 = vmul.f32 %v16065_v1, %v18347_v7  ;;  %v2673_v38 = vadd.f32 0.0001, %v2609_v53  ;;  %v2382_v37 = vpop.f32.mrb[67].mxu0 }
 0x60f   : > { %v16069_v57 = vpop.eup %16068  ;;  %16088 = vrcp.f32 %v3171_v34  ;;  %v12111_v63 = vmul.f32 -1.442695, %v2924_v42  ;;  %v2814_v46 = vmul.f32 %v16067_v28, %v18363_v3  ;;  %v2676_v36 = vadd.f32 0.0001, %v2612_v56 }
 0x610   : > { %v16071_v24 = vpop.eup %16070  ;;  %v3174_v44 = vadd.f32 1.0, %v16069_v57  ;;  %16090 = vpow2.f32 %v12108_v9  ;;  %v2923_v26 = vadd.f32 0.5, %v2808_v15  ;;  %v18678_v29 = vmul.f32 4.0, %v2673_v38 }
 0x611   : > { %v16073_v16 = vpop.eup %16072  ;;  %16092 = vpow2.f32 %v12111_v63  ;;  %v2926_v12 = vadd.f32 0.5, %v2814_v46  ;;  %v18680_v54 = vmul.f32 4.0, %v2676_v36  ;;  %v2611_v7 = vmul.f32 0.032258064, %v2372_v25  ;;  %v13710_v30 = vpop.f32.mrb[68].mxu0 }
 0x612   : > { %v16075_v50 = vpop.eup %16074  ;;  %16094 = vrcp.f32 %v3174_v44  ;;  %v12110_v62 = vmul.f32 -1.442695, %v2923_v26  ;;  %v2614_v4 = vmul.f32 0.032258064, %v13707_v21  ;;  %v2613_v23 = vmul.f32 0.032258064, %v2382_v37 }
 0x613   : > { %v16077_v3 = vpop.eup %16076  ;;  %v3173_v35 = vadd.f32 1.0, %v16075_v50  ;;  %v12113_v20 = vmul.f32 -1.442695, %v2926_v12  ;;  %16096 = vrcp.f32 %v18664_v2  ;;  %v2675_v5 = vadd.f32 0.0001, %v2611_v7  ;;  %v2392_v53 = vpop.f32.mrb[69].mxu0 }
 0x614   : > { %v16079_v1 = vpop.eup %16078  ;;  %v3176_v34 = vadd.f32 1.0, %v16077_v3  ;;  %16098 = vpow2.f32 %v12110_v62  ;;  %v2678_v42 = vadd.f32 0.0001, %v2614_v4  ;;  %v2677_v56 = vadd.f32 0.0001, %v2613_v23 }
 0x615   : > { %v16081_v28 = vpop.eup %16080  ;;  %16100 = vrcp.f32 %v3173_v35  ;;  %v18683_v25 = vmul.f32 4.0, %v2675_v5  ;;  %v2616_v9 = vmul.f32 0.032258064, %v13710_v30  ;;  %v2615_v15 = vmul.f32 0.032258064, %v2392_v53  ;;  %v13713_v21 = vpop.f32.mrb[70].mxu0 }
 0x616   : > { %v16083_v38 = vpop.eup %16082  ;;  %16102 = vrcp.f32 %v3176_v34  ;;  %v18685_v37 = vmul.f32 4.0, %v2678_v42  ;;  %v18687_v57 = vmul.f32 4.0, %v2677_v56  ;;  %v2618_v2 = vmul.f32 0.032258064, %v13713_v21  ;;  %v2402_v63 = vpop.f32.mrb[71].mxu0 }
 0x617   : > { %v16085_v46 = vpop.eup %16084  ;;  %v3175_v36 = vadd.f32 1.0, %v16083_v38  ;;  %16104 = vpow2.f32 %v12113_v20  ;;  %v2680_v44 = vadd.f32 0.0001, %v2616_v9  ;;  %v2679_v26 = vadd.f32 0.0001, %v2615_v15 }
 0x618   : > { %v18689_v12 = vpop.eup %16086  ;;  %v3178_v7 = vadd.f32 1.0, %v16085_v46  ;;  %16106 = vrcp.f32 %v18667_v18  ;;  %v2682_v30 = vadd.f32 0.0001, %v2618_v2  ;;  %v2617_v50 = vmul.f32 0.032258064, %v2402_v63 }
 0x619   : > { %v18692_v62 = vpop.eup %16088  ;;  %16108 = vrcp.f32 %v3175_v36  ;;  %v18694_v4 = vmul.f32 4.0, %v2680_v44  ;;  %v18696_v23 = vmul.f32 4.0, %v2679_v26  ;;  %v3359_v3 = vmul.f32 %v16073_v16, %v17410_v27  ;;  %v13716_v35 = vpop.f32.mrb[72].mxu0 }
 0x61a   : > { %v16091_v20 = vpop.eup %16090  ;;  %16110 = vrcp.f32 %v3178_v7  ;;  %v18699_v5 = vmul.f32 4.0, %v2682_v30  ;;  %v2681_v53 = vadd.f32 0.0001, %v2617_v50  ;;  %v3360_v34 = vmul.f32 %v16071_v24, %v17397_v22  ;;  %v2412_v18 = vpop.f32.mrb[73].mxu0 }
 0x61b   : > { %v16093_v42 = vpop.eup %16092  ;;  %v3177_v56 = vadd.f32 1.0, %v16091_v20  ;;  %16112 = vrcp.f32 %v18671_v19  ;;  %v3423_v9 = vmax.f32 %v3359_v3, 0.0  ;;  %v2620_v15 = vmul.f32 0.032258064, %v13716_v35 }
 0x61c   : > { %v18703_v21 = vpop.eup %16094  ;;  %v3180_v38 = vadd.f32 1.0, %v16093_v42  ;;  %16114 = vrcp.f32 %v18674_v58  ;;  %v18706_v27 = vmul.f32 4.0, %v2681_v53  ;;  %v3424_v16 = vmax.f32 %v3360_v34, 0.0 }
 0x61d   : > { %v16097_v2 = vpop.eup %16096  ;;  %16116 = vrcp.f32 %v3177_v56  ;;  %v2684_v63 = vadd.f32 0.0001, %v2620_v15  ;;  %v2619_v46 = vmul.f32 0.032258064, %v2412_v18  ;;  %v3361_v22 = vmul.f32 %v16081_v28, %v17433_v6  ;;  %v13719_v24 = vpop.f32.mrb[74].mxu0 }
 0x61e   : > { %v16099_v36 = vpop.eup %16098  ;;  %16118 = vrcp.f32 %v3180_v38  ;;  %v2812_v19 = vmul.f32 %v16097_v2, %v18365_v39  ;;  %v18710_v44 = vpack.c.bf16 %v3424_v16, %v3423_v9  ;;  %v3362_v26 = vmul.f32 %v16079_v1, %v17420_v32  ;;  %v2422_v7 = vpop.f32.mrb[75].mxu0 }
 0x61f   : > { %v18713_v58 = vpop.eup %16100  ;;  %v3179_v30 = vadd.f32 1.0, %v16099_v36  ;;  %16120 = vrcp.f32 %v18678_v29  ;;  %v18716_v50 = vmul.f32 4.0, %v2684_v63  ;;  %v2683_v3 = vadd.f32 0.0001, %v2619_v46  ;;  %v21938_v46 = vld [vmem:[#allocation22_spill] sm:$0xff] }
 0x620   : > { %v18718_v35 = vpop.eup %16102  ;;  %v2925_v6 = vadd.f32 0.5, %v2812_v19  ;;  %16122 = vrcp.f32 %v18680_v54  ;;  %14470 = vmatpush1.bf16.msra.mxu1 %v18710_v44  ;;  %14566 = vmatpush1.bf16.msra.mxu0 %v18710_v44  ;;  %v3425_v39 = vmax.f32 %v3361_v22, 0.0  ;;  %v3426_v32 = vmax.f32 %v3362_v26, 0.0 }
 0x621   : > { %v16105_v1 = vpop.eup %16104  ;;  %16124 = vrcp.f32 %v3179_v30  ;;  %v18723_v28 = vmul.f32 4.0, %v2683_v3  ;;  %v21937_v20 = vmov 0.0|0.0   ;;  %v2622_v29 = vmul.f32 0.032258064, %v13719_v24  ;;  %v13722_v34 = vpop.f32.mrb[76].mxu0  ;;  %v21939_v30 = vld [vmem:[#allocation143_spill] sm:$0xff] }
 0x622   : > { %14471 = vmatprep.subr.bf16.mxu1 %v21937_v20  ;;  %14567 = vmatprep.subr.bf16.mxu0 %v21937_v20  ;;  %v2621_v53 = vmul.f32 0.032258064, %v2422_v7  ;;  %v16107_v18 = vpop.eup %16106  ;;  %v3182_v42 = vadd.f32 1.0, %v16105_v1  ;;  %v12112_v54 = vmul.f32 -1.442695, %v2925_v6  ;;  %16126 = vrcp.f32 %v18683_v25  ;;  %v2432_v9 = vpop.f32.mrb[77].mxu0 }
 0x623   : > { %v18728_v56 = vpack.c.bf16 %v3426_v32, %v3425_v39  ;;  %v18730_v15 = vpop.eup %16108  ;;  %v2818_v38 = vmul.f32 %v16107_v18, %v18252_v40  ;;  %16128 = vrcp.f32 %v18685_v37  ;;  %v2686_v16 = vadd.f32 0.0001, %v2622_v29  ;;  %v21940_v32 = vld [vmem:[#allocation144_spill] sm:$0xff] }
 0x624   : > { %v2685_v2 = vadd.f32 0.0001, %v2621_v53  ;;  %v18734_v63 = vpop.eup %16110  ;;  %16130 = vrcp.f32 %v3182_v42  ;;  %v3363_v25 = vmul.f32 %v18692_v62, %v17460_v49  ;;  %v3364_v22 = vmul.f32 %v18689_v12, %v21938_v46 }
 0x625   : > { %14473 = vmatpush1.bf16.msra.mxu1 %v18728_v56  ;;  %14569 = vmatpush1.bf16.msra.mxu0 %v18728_v56  ;;  %v2624_v24 = vmul.f32 0.032258064, %v13722_v34  ;;  %v16113_v36 = vpop.eup %16112  ;;  %16132 = vpow2.f32 %v12112_v54  ;;  %v2928_v40 = vadd.f32 0.5, %v2818_v38  ;;  %v18742_v37 = vmul.f32 4.0, %v2686_v16  ;;  %v13725_v26 = vpop.f32.mrb[78].mxu0  ;;  %v21942_v16 = vld [vmem:[#allocation28_spill] sm:$0xff] }
 0x626   : > { %v18744_v19 = vmul.f32 4.0, %v2685_v2  ;;  %14474 = vmatprep.subr.bf16.mxu1 %v21937_v20  ;;  %14570 = vmatprep.subr.bf16.mxu0 %v21937_v20  ;;  %v16115_v7 = vpop.eup %16114  ;;  %v2816_v3 = vmul.f32 %v16113_v36, %v21939_v30  ;;  %16134 = vrcp.f32 %v18687_v57  ;;  %v3427_v49 = vmax.f32 %v3363_v25, 0.0  ;;  %v18750_v62 = vpop.f32.mrb[79].mxu0 }
 0x627   : > { %v3428_v12 = vmax.f32 %v3364_v22, 0.0  ;;  %v18752_v6 = vpop.eup %16116  ;;  %v12115_v39 = vmul.f32 -1.442695, %v2928_v40  ;;  %v2822_v1 = vmul.f32 %v16115_v7, %v21940_v32  ;;  %16136 = vrcp.f32 %v18694_v4  ;;  %v21943_v22 = vld [vmem:[#allocation145_spill] sm:$0xff]  ;;  %v21944_v7 = vld [vmem:[#allocation27_spill] sm:$0xff] }
 0x628   : > { %v2688_v29 = vadd.f32 0.0001, %v2624_v24  ;;  %v18756_v53 = vpop.eup %16118  ;;  %v2927_v34 = vadd.f32 0.5, %v2816_v3  ;;  %16138 = vrcp.f32 %v18696_v23  ;;  %v2623_v57 = vmul.f32 0.032258064, %v2432_v9 }
 0x629   : > { %v18759_v18 = vpack.c.bf16 %v3428_v12, %v3427_v49  ;;  %v16121_v42 = vpop.eup %16120  ;;  %16140 = vpow2.f32 %v12115_v39  ;;  %v2930_v54 = vadd.f32 0.5, %v2822_v1  ;;  %v3365_v2 = vmul.f32 %v18713_v58, %v21942_v16  ;;  %v18765_v25 = vpop.f32.mrb[80].mxu0  ;;  %v21945_v1 = vld [vmem:[#allocation146_spill] sm:$0xff] }
 0x62a   : > { %v18761_v38 = vmul.f32 4.0, %v2688_v29  ;;  %v16123_v4 = vpop.eup %16122  ;;  %v12114_v46 = vmul.f32 -1.442695, %v2927_v34  ;;  %v2820_v24 = vmul.f32 %v16121_v42, %v21943_v22  ;;  %16142 = vrcp.f32 %v18699_v5  ;;  %v18771_v9 = vpop.f32.mrb[81].mxu0 }
 0x62b   : > { %21941 = vst [vmem:[#allocation76_spill] sm:$0xff] %v18759_v18  ;;  %14476 = vmatpush1.bf16.msra.mxu1 %v18759_v18  ;;  %14572 = vmatpush1.bf16.msra.mxu0 %v18759_v18  ;;  %v2687_v23 = vadd.f32 0.0001, %v2623_v57  ;;  %v18773_v36 = vpop.eup %16124  ;;  %v12117_v40 = vmul.f32 -1.442695, %v2930_v54  ;;  %v2826_v58 = vmul.f32 %v16123_v4, %v18284_v31  ;;  %16144 = vrcp.f32 %v18706_v27 }
 0x62c   : > { %14477 = vmatprep.subr.bf16.mxu1 %v21937_v20  ;;  %14573 = vmatprep.subr.bf16.mxu0 %v21937_v20  ;;  %v3366_v5 = vmul.f32 %v18703_v21, %v21944_v7  ;;  %v16127_v30 = vpop.eup %16126  ;;  %16146 = vpow2.f32 %v12114_v46  ;;  %v2929_v3 = vadd.f32 0.5, %v2820_v24  ;;  %v3429_v12 = vmax.f32 %v3365_v2, 0.0  ;;  %v21947_v7 = vld [vmem:[#allocation147_spill] sm:$0xff] }
 0x62d   : > { %v18781_v49 = vmul.f32 4.0, %v2687_v23  ;;  %v16129_v39 = vpop.eup %16128  ;;  %16148 = vpow2.f32 %v12117_v40  ;;  %v2932_v32 = vadd.f32 0.5, %v2826_v58  ;;  %v2824_v31 = vmul.f32 %v16127_v30, %v21945_v1  ;;  %v18784_v27 = vpop.f32.mrb[82].mxu0 }
 0x62e   : > { %v3430_v29 = vmax.f32 %v3366_v5, 0.0  ;;  %v18786_v34 = vpop.eup %16130  ;;  %v12116_v57 = vmul.f32 -1.442695, %v2929_v3  ;;  %v2830_v42 = vmul.f32 %v16129_v39, %v18300_v41  ;;  %16150 = vrcp.f32 %v18716_v50  ;;  %v18790_v54 = vpop.f32.mrb[83].mxu0  ;;  %v21948_v3 = vld [vmem:[#allocation148_spill] sm:$0xff] }
 0x62f   : > { %v2626_v21 = vmul.f32 0.032258064, %v13725_v26  ;;  %v16133_v16 = vpop.eup %16132  ;;  %v12119_v2 = vmul.f32 -1.442695, %v2932_v32  ;;  %v2931_v4 = vadd.f32 0.5, %v2824_v31  ;;  %16152 = vrcp.f32 %v18723_v28 }
 0x630   : > { %v18793_v46 = vpack.c.bf16 %v3430_v29, %v3429_v12  ;;  %v16135_v22 = vpop.eup %16134  ;;  %v3181_v24 = vadd.f32 1.0, %v16133_v16  ;;  %16154 = vpow2.f32 %v12116_v57  ;;  %v2934_v23 = vadd.f32 0.5, %v2830_v42  ;;  %v21949_v29 = vld [vmem:[#allocation149_spill] sm:$0xff] }
 0x631   : > { %v2690_v40 = vadd.f32 0.0001, %v2626_v21  ;;  %v16137_v58 = vpop.eup %16136  ;;  %16156 = vpow2.f32 %v12119_v2  ;;  %v12118_v41 = vmul.f32 -1.442695, %v2931_v4  ;;  %v2828_v50 = vmul.f32 %v16135_v22, %v21947_v7  ;;  %v18799_v5 = vpop.f32.mrb[84].mxu0  ;;  %v21950_v2 = vld [vmem:[#allocation33_spill] sm:$0xff] }
 0x632   : > { %21946 = vst [vmem:[#allocation77_spill] sm:$0xff] %v18793_v46  ;;  %14479 = vmatpush1.bf16.msra.mxu1 %v18793_v46  ;;  %14575 = vmatpush1.bf16.msra.mxu0 %v18793_v46  ;;  %v2625_v26 = vmul.f32 0.032258064, %v18750_v62  ;;  %v16139_v28 = vpop.eup %16138  ;;  %16158 = vrcp.f32 %v3181_v24  ;;  %v12121_v30 = vmul.f32 -1.442695, %v2934_v23  ;;  %v2834_v12 = vmul.f32 %v16137_v58, %v21948_v3  ;;  %v18806_v32 = vpop.f32.mrb[85].mxu0 }
 0x633   : > { %v18802_v39 = vmul.f32 4.0, %v2690_v40  ;;  %14480 = vmatprep.subr.bf16.mxu1 %v21937_v20  ;;  %14576 = vmatprep.subr.bf16.mxu0 %v21937_v20  ;;  %v16141_v1 = vpop.eup %16140  ;;  %16160 = vpow2.f32 %v12118_v41  ;;  %v2933_v31 = vadd.f32 0.5, %v2828_v50  ;;  %v2832_v62 = vmul.f32 %v16139_v28, %v21949_v29  ;;  %v21951_v40 = vld [vmem:[#allocation150_spill] sm:$0xff] }
 0x634   : > { %v2689_v57 = vadd.f32 0.0001, %v2625_v26  ;;  %v16143_v42 = vpop.eup %16142  ;;  %v3184_v21 = vadd.f32 1.0, %v16141_v1  ;;  %16162 = vpow2.f32 %v12121_v30  ;;  %v2936_v16 = vadd.f32 0.5, %v2834_v12  ;;  %v21952_v26 = vld [vmem:[#allocation151_spill] sm:$0xff] }
 0x635   : > { %v3367_v4 = vmul.f32 %v18730_v15, %v21950_v2  ;;  %v16145_v22 = vpop.eup %16144  ;;  %v12120_v24 = vmul.f32 -1.442695, %v2933_v31  ;;  %v2935_v23 = vadd.f32 0.5, %v2832_v62  ;;  %v2838_v58 = vmul.f32 %v16143_v42, %v21951_v40  ;;  %v18813_v7 = vpop.f32.mrb[86].mxu0  ;;  %v21953_v42 = vld [vmem:[#allocation29_spill] sm:$0xff] }
 0x636   : > { %16164 = vrcp.f32 %v18742_v37  ;;  %v16147_v41 = vpop.eup %16146  ;;  %v12123_v50 = vmul.f32 -1.442695, %v2936_v16  ;;  %v2836_v28 = vmul.f32 %v16145_v22, %v21952_v26  ;;  %v18816_v3 = vmul.f32 4.0, %v2689_v57  ;;  %v18818_v30 = vpop.f32.mrb[87].mxu0  ;;  %v21954_v22 = vld [vmem:[#allocation152_spill] sm:$0xff] }
 0x637   : > { %16166 = vrcp.f32 %v3184_v21  ;;  %v16149_v12 = vpop.eup %16148  ;;  %v3183_v15 = vadd.f32 1.0, %v16147_v41  ;;  %v12122_v1 = vmul.f32 -1.442695, %v2935_v23  ;;  %v2938_v31 = vadd.f32 0.5, %v2838_v58  ;;  %v21955_v23 = vld [vmem:[#allocation153_spill] sm:$0xff] }
 0x638   : > { %16168 = vpow2.f32 %v12120_v24  ;;  %v16151_v29 = vpop.eup %16150  ;;  %v3186_v62 = vadd.f32 1.0, %v16149_v12  ;;  %v2937_v37 = vadd.f32 0.5, %v2836_v28  ;;  %v3368_v2 = vmul.f32 %v18718_v35, %v21953_v42 }
 0x639   : > { %16170 = vpow2.f32 %v12123_v50  ;;  %v16153_v21 = vpop.eup %16152  ;;  %v12125_v16 = vmul.f32 -1.442695, %v2938_v31  ;;  %v2842_v57 = vmul.f32 %v16151_v29, %v21954_v22  ;;  %v3431_v40 = vmax.f32 %v3367_v4, 0.0  ;;  %v18823_v26 = vpop.f32.mrb[88].mxu0 }
 0x63a   : > { %16172 = vrcp.f32 %v3183_v15  ;;  %v16155_v46 = vpop.eup %16154  ;;  %v12124_v24 = vmul.f32 -1.442695, %v2937_v37  ;;  %v2840_v58 = vmul.f32 %v16153_v21, %v21955_v23  ;;  %v3432_v41 = vmax.f32 %v3368_v2, 0.0  ;;  %v18826_v12 = vpop.f32.mrb[89].mxu0 }
 0x63b   : > { %16174 = vrcp.f32 %v3186_v62  ;;  %v16157_v50 = vpop.eup %16156  ;;  %v3185_v28 = vadd.f32 1.0, %v16155_v46  ;;  %v2940_v35 = vadd.f32 0.5, %v2842_v57  ;;  %v2628_v15 = vmul.f32 0.032258064, %v18765_v25  ;;  %v21957_v25 = vld [vmem:[#allocation36_spill] sm:$0xff] }
 0x63c   : > { %16176 = vpow2.f32 %v12122_v1  ;;  %v18829_v31 = vpop.eup %16158  ;;  %v3188_v29 = vadd.f32 1.0, %v16157_v50  ;;  %v2939_v4 = vadd.f32 0.5, %v2840_v58  ;;  %v18831_v42 = vpack.c.bf16 %v3432_v41, %v3431_v40 }
 0x63d   : > { %16178 = vpow2.f32 %v12125_v16  ;;  %v16161_v62 = vpop.eup %16160  ;;  %v12127_v37 = vmul.f32 -1.442695, %v2940_v35  ;;  %v2692_v21 = vadd.f32 0.0001, %v2628_v15  ;;  %v2627_v2 = vmul.f32 0.032258064, %v18771_v9 }
 0x63e   : > { %21956 = vst [vmem:[#allocation78_spill] sm:$0xff] %v18831_v42  ;;  %16180 = vrcp.f32 %v3185_v28  ;;  %v16163_v22 = vpop.eup %16162  ;;  %v3187_v46 = vadd.f32 1.0, %v16161_v62  ;;  %v12126_v1 = vmul.f32 -1.442695, %v2939_v4  ;;  %14482 = vmatpush1.bf16.msra.mxu1 %v18831_v42  ;;  %14578 = vmatpush1.bf16.msra.mxu0 %v18831_v42  ;;  %v3369_v16 = vmul.f32 %v18752_v6, %v21957_v25  ;;  %v18838_v57 = vpop.f32.mrb[90].mxu0  ;;  %v21958_v28 = vld [vmem:[#allocation154_spill] sm:$0xff] }
 0x63f   : > { %16182 = vrcp.f32 %v3188_v29  ;;  %v3190_v23 = vadd.f32 1.0, %v16163_v22  ;;  %v18840_v58 = vmul.f32 4.0, %v2692_v21  ;;  %v2691_v41 = vadd.f32 0.0001, %v2627_v2  ;;  %14483 = vmatprep.subr.bf16.mxu1 %v21937_v20  ;;  %14579 = vmatprep.subr.bf16.mxu0 %v21937_v20  ;;  %v18844_v9 = vpop.f32.mrb[91].mxu0  ;;  %v21959_v6 = vld [vmem:[#allocation35_spill] sm:$0xff] }
 0x640   : > { %v16165_v40 = vpop.eup %16164  ;;  %16184 = vpow2.f32 %v12124_v24  ;;  %v3370_v15 = vmul.f32 %v18734_v63, %v21959_v6  ;;  %v3433_v29 = vmax.f32 %v3369_v16, 0.0  ;;  %v2630_v62 = vmul.f32 0.032258064, %v18784_v27 }
 0x641   : > { %v18846_v50 = vpop.eup %16166  ;;  %16186 = vrcp.f32 %v3187_v46  ;;  %v2846_v35 = vmul.f32 %v16165_v40, %v21958_v28  ;;  %v18851_v24 = vmul.f32 4.0, %v2691_v41  ;;  %v2629_v21 = vmul.f32 0.032258064, %v18790_v54  ;;  %v18855_v2 = vpop.f32.mrb[92].mxu0  ;;  %v21961_v54 = vld [vmem:[#allocation41_spill] sm:$0xff] }
 0x642   : > { %v16169_v4 = vpop.eup %16168  ;;  %16188 = vrcp.f32 %v3190_v23  ;;  %v3434_v42 = vmax.f32 %v3370_v15, 0.0  ;;  %v18857_v40 = vpop.f32.mrb[93].mxu0  ;;  %v2694_v16 = vadd.f32 0.0001, %v2630_v62  ;;  %v3371_v18 = vmul.f32 %v18773_v36, %v21961_v54  ;;  %v21962_v15 = vld [vmem:[#allocation37_spill] sm:$0xff] }
 0x643   : > { %v16171_v22 = vpop.eup %16170  ;;  %v3189_v25 = vadd.f32 1.0, %v16169_v4  ;;  %16190 = vpow2.f32 %v12127_v37  ;;  %v2942_v46 = vadd.f32 0.5, %v2846_v35  ;;  %v2693_v23 = vadd.f32 0.0001, %v2629_v21 }
 0x644   : > { %v16173_v28 = vpop.eup %16172  ;;  %v3192_v63 = vadd.f32 1.0, %v16171_v22  ;;  %16192 = vpow2.f32 %v12126_v1  ;;  %v18861_v6 = vpack.c.bf16 %v3434_v42, %v3433_v29  ;;  %v18865_v37 = vmul.f32 4.0, %v2694_v16 }
 0x645   : > { %v18859_v41 = vpop.eup %16174  ;;  %16194 = vrcp.f32 %v3189_v25  ;;  %v12129_v27 = vmul.f32 -1.442695, %v2942_v46  ;;  %v18867_v35 = vmul.f32 4.0, %v2693_v23  ;;  %v3372_v1 = vmul.f32 %v18756_v53, %v21962_v15  ;;  %v18871_v62 = vpop.f32.mrb[94].mxu0 }
 0x646   : > { %21960 = vst [vmem:[#allocation79_spill] sm:$0xff] %v18861_v6  ;;  %v16177_v4 = vpop.eup %16176  ;;  %16196 = vrcp.f32 %v3192_v63  ;;  %14485 = vmatpush1.bf16.msra.mxu1 %v18861_v6  ;;  %14581 = vmatpush1.bf16.msra.mxu0 %v18861_v6  ;;  %v3435_v42 = vmax.f32 %v3371_v18, 0.0  ;;  %v2632_v36 = vmul.f32 0.032258064, %v18799_v5  ;;  %v18876_v29 = vpop.f32.mrb[95].mxu0  ;;  %v21963_v18 = vld [vmem:[#allocation46_spill] sm:$0xff] }
 0x647   : > { %v16179_v21 = vpop.eup %16178  ;;  %v3191_v22 = vadd.f32 1.0, %v16177_v4  ;;  %16198 = vpow2.f32 %v12129_v27  ;;  %14486 = vmatprep.subr.bf16.mxu1 %v21937_v20  ;;  %14582 = vmatprep.subr.bf16.mxu0 %v21937_v20  ;;  %v3436_v53 = vmax.f32 %v3372_v1, 0.0  ;;  %v2631_v63 = vmul.f32 0.032258064, %v18806_v32  ;;  %v21964_v27 = vld [vmem:[#allocation45_spill] sm:$0xff] }
 0x648   : > { %v16181_v25 = vpop.eup %16180  ;;  %v3194_v46 = vadd.f32 1.0, %v16179_v21  ;;  %16200 = vrcp.f32 %v18744_v19  ;;  %v2696_v23 = vadd.f32 0.0001, %v2632_v36  ;;  %v3373_v5 = vmul.f32 %v18829_v31, %v21963_v18  ;;  %v21967_v18 = vld [vmem:[#allocation20_spill] sm:$0xff] }
 0x649   : > { %v18882_v16 = vpop.eup %16182  ;;  %16202 = vrcp.f32 %v3191_v22  ;;  %v3374_v54 = vmul.f32 %v18786_v34, %v21964_v27  ;;  %v18888_v19 = vpack.c.bf16 %v3436_v53, %v3435_v42  ;;  %v2695_v15 = vadd.f32 0.0001, %v2631_v63  ;;  %v18891_v1 = vpop.f32.mrb[96].mxu0  ;;  %v21966_v63 = vld [vmem:[#allocation18_spill] sm:$0xff] }
 0x64a   : > { %v16185_v4 = vpop.eup %16184  ;;  %16204 = vrcp.f32 %v3194_v46  ;;  %v2634_v21 = vmul.f32 0.032258064, %v18813_v7  ;;  %v18896_v22 = vmul.f32 4.0, %v2696_v23  ;;  %v3437_v31 = vmax.f32 %v3373_v5, 0.0  ;;  %v18898_v36 = vpop.f32.mrb[97].mxu0 }
 0x64b   : > { %21965 = vst [vmem:[#allocation80_spill] sm:$0xff] %v18888_v19  ;;  %v18893_v32 = vpop.eup %16186  ;;  %v3193_v6 = vadd.f32 1.0, %v16185_v4  ;;  %16206 = vrcp.f32 %v18761_v38  ;;  %14488 = vmatpush1.bf16.msra.mxu1 %v18888_v19  ;;  %14584 = vmatpush1.bf16.msra.mxu0 %v18888_v19  ;;  %v18905_v7 = vmul.f32 4.0, %v2695_v15  ;;  %v3438_v42 = vmax.f32 %v3374_v54, 0.0 }
 0x64c   : > { %v18900_v34 = vpop.eup %16188  ;;  %16208 = vrcp.f32 %v18781_v49  ;;  %v2698_v46 = vadd.f32 0.0001, %v2634_v21  ;;  %14489 = vmatprep.subr.bf16.mxu1 %v21937_v20  ;;  %14585 = vmatprep.subr.bf16.mxu0 %v21937_v20  ;;  %v2633_v38 = vmul.f32 0.032258064, %v18818_v30  ;;  %v3375_v23 = vmul.f32 %v16173_v28, %v21966_v63 }
 0x64d   : > { %v16191_v53 = vpop.eup %16190  ;;  %16210 = vrcp.f32 %v3193_v6  ;;  %v3376_v49 = vmul.f32 %v18846_v50, %v21967_v18  ;;  %v18914_v4 = vpack.c.bf16 %v3438_v42, %v3437_v31  ;;  %v18918_v6 = vpop.f32.mrb[98].mxu0  ;;  %v2636_v31 = vmul.f32 0.032258064, %v18823_v26 }
 0x64e   : > { %v16193_v5 = vpop.eup %16192  ;;  %v3196_v27 = vadd.f32 1.0, %v16191_v53  ;;  %16212 = vrcp.f32 %v18802_v39  ;;  %v18916_v54 = vmul.f32 4.0, %v2698_v46  ;;  %v2697_v30 = vadd.f32 0.0001, %v2633_v38  ;;  %v18923_v63 = vpop.f32.mrb[99].mxu0 }
 0x64f   : > { %21968 = vst [vmem:[#allocation81_spill] sm:$0xff] %v18914_v4  ;;  %v18920_v15 = vpop.eup %16194  ;;  %v3195_v21 = vadd.f32 1.0, %v16193_v5  ;;  %16214 = vrcp.f32 %v18816_v3  ;;  %v3439_v28 = vmax.f32 %v3375_v23, 0.0  ;;  %14491 = vmatpush1.bf16.msra.mxu1 %v18914_v4  ;;  %14587 = vmatpush1.bf16.msra.mxu0 %v18914_v4  ;;  %v3440_v39 = vmax.f32 %v3376_v49, 0.0  ;;  %v21969_v3 = vld [vmem:[#allocation21_spill] sm:$0xff]  ;;  %v21970_v23 = vld [vmem:[#allocation19_spill] sm:$0xff] }
 0x650   : > { %v18925_v50 = vpop.eup %16196  ;;  %16216 = vrcp.f32 %v3196_v27  ;;  %v2635_v42 = vmul.f32 0.032258064, %v18826_v12  ;;  %v18931_v53 = vmul.f32 4.0, %v2697_v30  ;;  %14492 = vmatprep.subr.bf16.mxu1 %v21937_v20  ;;  %14588 = vmatprep.subr.bf16.mxu0 %v21937_v20  ;;  %v3377_v38 = vmul.f32 %v16181_v25, %v21969_v3  ;;  %v21971_v30 = vld [vmem:[#allocation155_spill] sm:$0xff] }
 0x651   : > { %v16199_v46 = vpop.eup %16198  ;;  %16218 = vrcp.f32 %v3195_v21  ;;  %v3378_v18 = vmul.f32 %v18859_v41, %v21970_v23  ;;  %v18939_v26 = vpack.c.bf16 %v3440_v39, %v3439_v28  ;;  %v2700_v12 = vadd.f32 0.0001, %v2636_v31  ;;  %v18941_v49 = vpop.f32.mrb[100].mxu0 }
 0x652   : > { %v16201_v5 = vpop.eup %16200  ;;  %v3198_v27 = vadd.f32 1.0, %v16199_v46  ;;  %16220 = vrcp.f32 %v18840_v58  ;;  %v2699_v19 = vadd.f32 0.0001, %v2635_v42  ;;  %v3441_v25 = vmax.f32 %v3377_v38, 0.0  ;;  %v18947_v3 = vpop.f32.mrb[101].mxu0 }
 0x653   : > { %v18943_v21 = vpop.eup %16202  ;;  %v2844_v4 = vmul.f32 %v16201_v5, %v21971_v30  ;;  %16222 = vrcp.f32 %v18851_v24  ;;  %14494 = vmatpush1.bf16.msra.mxu1 %v18939_v26  ;;  %14590 = vmatpush1.bf16.msra.mxu0 %v18939_v26  ;;  %v2764_v58 = vmul.f32 4.0, %v2700_v12  ;;  %v3442_v28 = vmax.f32 %v3378_v18, 0.0 }
 0x654   : > { %v18949_v41 = vpop.eup %16204  ;;  %16224 = vrcp.f32 %v3198_v27  ;;  %v2638_v39 = vmul.f32 0.032258064, %v18838_v57  ;;  %v18955_v24 = vmul.f32 4.0, %v2699_v19  ;;  %14495 = vmatprep.subr.bf16.mxu1 %v21937_v20  ;;  %14591 = vmatprep.subr.bf16.mxu0 %v21937_v20  ;;  %v2637_v42 = vmul.f32 0.032258064, %v18844_v9 }
 0x655   : > { %v16207_v31 = vpop.eup %16206  ;;  %v2941_v46 = vadd.f32 0.5, %v2844_v4  ;;  %16226 = vrcp.f32 %v18865_v37  ;;  %v18962_v18 = vpack.c.bf16 %v3442_v28, %v3441_v25  ;;  %v18964_v5 = vpop.f32.mrb[102].mxu0 }
 0x656   : > { %v16209_v38 = vpop.eup %16208  ;;  %v2850_v23 = vmul.f32 %v16207_v31, %v18392_v48  ;;  %16228 = vrcp.f32 %v18867_v35  ;;  %v2702_v57 = vadd.f32 0.0001, %v2638_v39  ;;  %v2701_v27 = vadd.f32 0.0001, %v2637_v42  ;;  %v18970_v12 = vpop.f32.mrb[103].mxu0  ;;  %v21972_v35 = vld [vmem:[#allocation23_spill] sm:$0xff] }
 0x657   : > { %v18966_v4 = vpop.eup %16210  ;;  %v12128_v37 = vmul.f32 -1.442695, %v2941_v46  ;;  %v2848_v19 = vmul.f32 %v16209_v38, %v18395_v33  ;;  %16230 = vrcp.f32 %v18896_v22  ;;  %14497 = vmatpush1.bf16.msra.mxu1 %v18962_v18  ;;  %14593 = vmatpush1.bf16.msra.mxu0 %v18962_v18  ;;  %v3379_v25 = vmul.f32 %v18893_v32, %v21972_v35  ;;  %v21973_v42 = vld [vmem:[#allocation25_spill] sm:$0xff] }
 0x658   : > { %v16213_v9 = vpop.eup %16212  ;;  %v2944_v30 = vadd.f32 0.5, %v2850_v23  ;;  %16232 = vrcp.f32 %v18905_v7  ;;  %v2766_v48 = vmul.f32 4.0, %v2702_v57  ;;  %v18978_v39 = vmul.f32 4.0, %v2701_v27  ;;  %14498 = vmatprep.subr.bf16.mxu1 %v21937_v20  ;;  %14594 = vmatprep.subr.bf16.mxu0 %v21937_v20 }
 0x659   : > { %v16215_v28 = vpop.eup %16214  ;;  %16234 = vpow2.f32 %v12128_v37  ;;  %v2943_v33 = vadd.f32 0.5, %v2848_v19  ;;  %v2854_v22 = vmul.f32 %v16213_v9, %v18411_v59  ;;  %v3380_v32 = vmul.f32 %v18882_v16, %v21973_v42  ;;  %v18988_v38 = vpop.f32.mrb[104].mxu0 }
 0x65a   : > { %v18982_v7 = vpop.eup %16216  ;;  %v12131_v31 = vmul.f32 -1.442695, %v2944_v30  ;;  %v2852_v46 = vmul.f32 %v16215_v28, %v18413_v52  ;;  %16236 = vrcp.f32 %v18916_v54  ;;  %v3443_v37 = vmax.f32 %v3379_v25, 0.0  ;;  %v18993_v19 = vpop.f32.mrb[105].mxu0 }
 0x65b   : > { %v18990_v23 = vpop.eup %16218  ;;  %v12130_v59 = vmul.f32 -1.442695, %v2943_v33  ;;  %v2946_v57 = vadd.f32 0.5, %v2854_v22  ;;  %16238 = vrcp.f32 %v18931_v53  ;;  %v3444_v52 = vmax.f32 %v3380_v32, 0.0 }
 0x65c   : > { %v16221_v27 = vpop.eup %16220  ;;  %16240 = vpow2.f32 %v12131_v31  ;;  %v2945_v9 = vadd.f32 0.5, %v2852_v46  ;;  %v2640_v54 = vmul.f32 0.032258064, %v18855_v2  ;;  %v2639_v28 = vmul.f32 0.032258064, %v18857_v40 }
 0x65d   : > { %v16223_v30 = vpop.eup %16222  ;;  %16242 = vpow2.f32 %v12130_v59  ;;  %v12133_v16 = vmul.f32 -1.442695, %v2946_v57  ;;  %v2858_v35 = vmul.f32 %v16221_v27, %v18419_v47  ;;  %v19001_v25 = vpack.c.bf16 %v3444_v52, %v3443_v37  ;;  %v19003_v31 = vpop.f32.mrb[106].mxu0 }
 0x65e   : > { %v18998_v33 = vpop.eup %16224  ;;  %v12132_v22 = vmul.f32 -1.442695, %v2945_v9  ;;  %v2856_v53 = vmul.f32 %v16223_v30, %v18422_v17  ;;  %16244 = vrcp.f32 %v2764_v58  ;;  %v2704_v42 = vadd.f32 0.0001, %v2640_v54  ;;  %v19005_v59 = vpop.f32.mrb[107].mxu0  ;;  %v21974_v17 = vld [vmem:[#allocation26_spill] sm:$0xff] }
 0x65f   : > { %v16227_v46 = vpop.eup %16226  ;;  %16246 = vpow2.f32 %v12133_v16  ;;  %v2948_v2 = vadd.f32 0.5, %v2858_v35  ;;  %v2703_v32 = vadd.f32 0.0001, %v2639_v28  ;;  %14500 = vmatpush1.bf16.msra.mxu1 %v19001_v25  ;;  %14596 = vmatpush1.bf16.msra.mxu0 %v19001_v25  ;;  %v3381_v58 = vmul.f32 %v18920_v15, %v21974_v17 }
 0x660   : > { %v16229_v47 = vpop.eup %16228  ;;  %16248 = vpow2.f32 %v12132_v22  ;;  %v2947_v40 = vadd.f32 0.5, %v2856_v53  ;;  %v2862_v57 = vmul.f32 %v16227_v46, %v18438_v11  ;;  %v19014_v52 = vmul.f32 4.0, %v2704_v42  ;;  %14501 = vmatprep.subr.bf16.mxu1 %v21937_v20  ;;  %14597 = vmatprep.subr.bf16.mxu0 %v21937_v20 }
 0x661   : > { %v16231_v37 = vpop.eup %16230  ;;  %v12135_v27 = vmul.f32 -1.442695, %v2948_v2  ;;  %v2860_v9 = vmul.f32 %v16229_v47, %v18443_v8  ;;  %16250 = vrcp.f32 %v18955_v24  ;;  %v19020_v8 = vmul.f32 4.0, %v2703_v32 }
 0x662   : > { %v16233_v11 = vpop.eup %16232  ;;  %v12134_v54 = vmul.f32 -1.442695, %v2947_v40  ;;  %v2950_v30 = vadd.f32 0.5, %v2862_v57  ;;  %v2866_v16 = vmul.f32 %v16231_v37, %v18460_v60  ;;  %16252 = vrcp.f32 %v2766_v48 }
 0x663   : > { %v16235_v35 = vpop.eup %16234  ;;  %16254 = vpow2.f32 %v12135_v27  ;;  %v2949_v15 = vadd.f32 0.5, %v2860_v9  ;;  %v2864_v28 = vmul.f32 %v16233_v11, %v18462_v55  ;;  %v21975_v55 = vld [vmem:[#allocation24_spill] sm:$0xff] }
 0x664   : > { %v16237_v24 = vpop.eup %16236  ;;  %v3197_v22 = vadd.f32 1.0, %v16235_v35  ;;  %16256 = vpow2.f32 %v12134_v54  ;;  %v12137_v53 = vmul.f32 -1.442695, %v2950_v30  ;;  %v2952_v46 = vadd.f32 0.5, %v2866_v16 }
 0x665   : > { %v16239_v2 = vpop.eup %16238  ;;  %v12136_v42 = vmul.f32 -1.442695, %v2949_v15  ;;  %v2951_v47 = vadd.f32 0.5, %v2864_v28  ;;  %v2870_v40 = vmul.f32 %v16237_v24, %v18468_v14  ;;  %16258 = vrcp.f32 %v18978_v39 }
 0x666   : > { %v16241_v60 = vpop.eup %16240  ;;  %16260 = vrcp.f32 %v3197_v22  ;;  %v12139_v48 = vmul.f32 -1.442695, %v2952_v46  ;;  %v2868_v57 = vmul.f32 %v16239_v2, %v18471_v45  ;;  %v3382_v32 = vmul.f32 %v18900_v34, %v21975_v55 }
 0x667   : > { %v16243_v17 = vpop.eup %16242  ;;  %v3200_v37 = vadd.f32 1.0, %v16241_v60  ;;  %16262 = vpow2.f32 %v12137_v53  ;;  %v12138_v27 = vmul.f32 -1.442695, %v2951_v47  ;;  %v2954_v9 = vadd.f32 0.5, %v2870_v40 }
 0x668   : > { %v16245_v11 = vpop.eup %16244  ;;  %v3199_v54 = vadd.f32 1.0, %v16243_v17  ;;  %16264 = vpow2.f32 %v12136_v42  ;;  %v2953_v30 = vadd.f32 0.5, %v2868_v57  ;;  %v3445_v14 = vmax.f32 %v3381_v58, 0.0 }
 0x669   : > { %v16247_v16 = vpop.eup %16246  ;;  %16266 = vrcp.f32 %v3200_v37  ;;  %v12141_v39 = vmul.f32 -1.442695, %v2954_v9  ;;  %v2874_v35 = vmul.f32 %v16245_v11, %v18489_v13  ;;  %v3446_v15 = vmax.f32 %v3382_v32, 0.0 }
 0x66a   : > { %v16249_v45 = vpop.eup %16248  ;;  %16268 = vrcp.f32 %v3199_v54  ;;  %v3202_v28 = vadd.f32 1.0, %v16247_v16  ;;  %v12140_v34 = vmul.f32 -1.442695, %v2953_v30  ;;  %v2642_v24 = vmul.f32 0.032258064, %v18871_v62  ;;  %v21976_v62 = vld [vmem:[#allocation30_spill] sm:$0xff] }
 0x66b   : > { %v16251_v22 = vpop.eup %16250  ;;  %v3201_v53 = vadd.f32 1.0, %v16249_v45  ;;  %16270 = vpow2.f32 %v12139_v48  ;;  %v2956_v46 = vadd.f32 0.5, %v2874_v35  ;;  %v19029_v2 = vpack.c.bf16 %v3446_v15, %v3445_v14  ;;  %v21977_v30 = vld [vmem:[#allocation32_spill] sm:$0xff] }
 0x66c   : > { %v16253_v42 = vpop.eup %16252  ;;  %16272 = vrcp.f32 %v3202_v28  ;;  %v2872_v58 = vmul.f32 %v16251_v22, %v18494_v51  ;;  %v2706_v47 = vadd.f32 0.0001, %v2642_v24  ;;  %v2641_v13 = vmul.f32 0.032258064, %v18876_v29 }
 0x66d   : > { %v16255_v40 = vpop.eup %16254  ;;  %16274 = vrcp.f32 %v3201_v53  ;;  %v12143_v60 = vmul.f32 -1.442695, %v2956_v46  ;;  %v2878_v57 = vmul.f32 %v16253_v42, %v18510_v61  ;;  %14503 = vmatpush1.bf16.msra.mxu1 %v19029_v2  ;;  %14599 = vmatpush1.bf16.msra.mxu0 %v19029_v2  ;;  %v3383_v48 = vmul.f32 %v18943_v21, %v21976_v62  ;;  %v21979_v62 = vld [vmem:[#allocation31_spill] sm:$0xff] }
 0x66e   : > { %v16257_v55 = vpop.eup %16256  ;;  %v3204_v32 = vadd.f32 1.0, %v16255_v40  ;;  %16276 = vpow2.f32 %v12138_v27  ;;  %v2955_v17 = vadd.f32 0.5, %v2872_v58  ;;  %v19038_v51 = vmul.f32 4.0, %v2706_v47  ;;  %14504 = vmatprep.subr.bf16.mxu1 %v21937_v20  ;;  %14600 = vmatprep.subr.bf16.mxu0 %v21937_v20  ;;  %v21978_v47 = vld [vmem:[#allocation34_spill] sm:$0xff] }
 0x66f   : > { %v16259_v29 = vpop.eup %16258  ;;  %v3203_v37 = vadd.f32 1.0, %v16257_v55  ;;  %16278 = vpow2.f32 %v12141_v39  ;;  %v2958_v61 = vadd.f32 0.5, %v2878_v57  ;;  %v2705_v9 = vadd.f32 0.0001, %v2641_v13 }
 0x670   : > { %v19042_v11 = vpop.eup %16260  ;;  %16280 = vrcp.f32 %v3204_v32  ;;  %v12142_v54 = vmul.f32 -1.442695, %v2955_v17  ;;  %v2876_v21 = vmul.f32 %v16259_v29, %v18512_v0  ;;  %v3384_v27 = vmul.f32 %v18925_v50, %v21977_v30 }
 0x671   : > { %v16263_v14 = vpop.eup %16262  ;;  %16282 = vrcp.f32 %v3203_v37  ;;  %v12145_v16 = vmul.f32 -1.442695, %v2958_v61  ;;  %v19047_v35 = vmul.f32 4.0, %v2705_v9  ;;  %v3447_v15 = vmax.f32 %v3383_v48, 0.0  ;;  %v21980_v9 = vld [vmem:[#allocation38_spill] sm:$0xff] }
 0x672   : > { %v16265_v45 = vpop.eup %16264  ;;  %v3206_v28 = vadd.f32 1.0, %v16263_v14  ;;  %16284 = vpow2.f32 %v12140_v34  ;;  %v2957_v39 = vadd.f32 0.5, %v2876_v21  ;;  %v3448_v24 = vmax.f32 %v3384_v27, 0.0  ;;  %v21981_v27 = vld [vmem:[#allocation40_spill] sm:$0xff] }
 0x673   : > { %v19049_v22 = vpop.eup %16266  ;;  %v3205_v53 = vadd.f32 1.0, %v16265_v45  ;;  %16286 = vpow2.f32 %v12143_v60  ;;  %v2644_v0 = vmul.f32 0.032258064, %v18891_v1  ;;  %v2643_v46 = vmul.f32 0.032258064, %v18898_v36 }
 0x674   : > { %v19053_v50 = vpop.eup %16268  ;;  %16288 = vrcp.f32 %v3206_v28  ;;  %v12144_v42 = vmul.f32 -1.442695, %v2957_v39  ;;  %v19055_v58 = vpack.c.bf16 %v3448_v24, %v3447_v15  ;;  %v3385_v13 = vmul.f32 %v18966_v4, %v21978_v47 }
 0x675   : > { %v16271_v34 = vpop.eup %16270  ;;  %16290 = vrcp.f32 %v3205_v53  ;;  %v2708_v40 = vadd.f32 0.0001, %v2644_v0  ;;  %v2707_v57 = vadd.f32 0.0001, %v2643_v46  ;;  %v3386_v60 = vmul.f32 %v18949_v41, %v21979_v62  ;;  %v21982_v0 = vld [vmem:[#allocation42_spill] sm:$0xff]  ;;  %v21983_v62 = vld [vmem:[#allocation39_spill] sm:$0xff] }
 0x676   : > { %v19061_v48 = vpop.eup %16272  ;;  %v3208_v1 = vadd.f32 1.0, %v16271_v34  ;;  %16292 = vpow2.f32 %v12142_v54  ;;  %14506 = vmatpush1.bf16.msra.mxu1 %v19055_v58  ;;  %14602 = vmatpush1.bf16.msra.mxu0 %v19055_v58  ;;  %v3449_v36 = vmax.f32 %v3385_v13, 0.0  ;;  %v2646_v55 = vmul.f32 0.032258064, %v18918_v6 }
 0x677   : > { %v19066_v32 = vpop.eup %16274  ;;  %16294 = vpow2.f32 %v12145_v16  ;;  %v19068_v4 = vmul.f32 4.0, %v2708_v40  ;;  %v19070_v17 = vmul.f32 4.0, %v2707_v57  ;;  %14507 = vmatprep.subr.bf16.mxu1 %v21937_v20  ;;  %14603 = vmatprep.subr.bf16.mxu0 %v21937_v20  ;;  %v3450_v41 = vmax.f32 %v3386_v60, 0.0 }
 0x678   : > { %v16277_v29 = vpop.eup %16276  ;;  %16296 = vrcp.f32 %v3208_v1  ;;  %v2710_v37 = vadd.f32 0.0001, %v2646_v55  ;;  %v2645_v61 = vmul.f32 0.032258064, %v18923_v63  ;;  %v3387_v6 = vmul.f32 %v18990_v23, %v21980_v9 }
 0x679   : > { %v16279_v54 = vpop.eup %16278  ;;  %v3207_v21 = vadd.f32 1.0, %v16277_v29  ;;  %16298 = vpow2.f32 %v12144_v42  ;;  %v19077_v30 = vpack.c.bf16 %v3450_v41, %v3449_v36  ;;  %v3388_v14 = vmul.f32 %v18982_v7, %v21981_v27 }
 0x67a   : > { %v19081_v16 = vpop.eup %16280  ;;  %v3210_v15 = vadd.f32 1.0, %v16279_v54  ;;  %16300 = vrcp.f32 %v19014_v52  ;;  %v19084_v45 = vmul.f32 4.0, %v2710_v37  ;;  %v2709_v28 = vadd.f32 0.0001, %v2645_v61 }
 0x67b   : > { %v19086_v63 = vpop.eup %16282  ;;  %16302 = vrcp.f32 %v3207_v21  ;;  %14509 = vmatpush1.bf16.msra.mxu1 %v19077_v30  ;;  %14605 = vmatpush1.bf16.msra.mxu0 %v19077_v30  ;;  %v3451_v23 = vmax.f32 %v3387_v6, 0.0  ;;  %v3452_v39 = vmax.f32 %v3388_v14, 0.0  ;;  %v2648_v24 = vmul.f32 0.032258064, %v18941_v49 }
 0x67c   : > { %v16285_v7 = vpop.eup %16284  ;;  %16304 = vrcp.f32 %v3210_v15  ;;  %v19091_v53 = vmul.f32 4.0, %v2709_v28  ;;  %14510 = vmatprep.subr.bf16.mxu1 %v21937_v20  ;;  %14606 = vmatprep.subr.bf16.mxu0 %v21937_v20  ;;  %v2647_v52 = vmul.f32 0.032258064, %v18947_v3  ;;  %v3389_v46 = vmul.f32 %v19042_v11, %v21982_v0  ;;  %v4070_v0 = vld [vmem:[#allocation8 + $0x428] sm:$0xff] }
 0x67d   : > { %v16287_v42 = vpop.eup %16286  ;;  %v3209_v47 = vadd.f32 1.0, %v16285_v7  ;;  %16306 = vrcp.f32 %v19020_v8  ;;  %v19099_v13 = vpack.c.bf16 %v3452_v39, %v3451_v23  ;;  %v2712_v49 = vadd.f32 0.0001, %v2648_v24 }
 0x67e   : > { %v19101_v34 = vpop.eup %16288  ;;  %v3212_v40 = vadd.f32 1.0, %v16287_v42  ;;  %16308 = vrcp.f32 %v19038_v51  ;;  %v2711_v57 = vadd.f32 0.0001, %v2647_v52  ;;  %v3390_v60 = vmul.f32 %v18998_v33, %v21983_v62  ;;  %v3492_v52 = vld [vmem:[#allocation8 + $0x28] sm:$0xff] }
 0x67f   : > { %v19106_v3 = vpop.eup %16290  ;;  %16310 = vrcp.f32 %v3209_v47  ;;  %14512 = vmatpush1.bf16.msra.mxu1 %v19099_v13  ;;  %14608 = vmatpush1.bf16.msra.mxu0 %v19099_v13  ;;  %v19110_v8 = vmul.f32 4.0, %v2712_v49  ;;  %v3453_v11 = vmax.f32 %v3389_v46, 0.0  ;;  %v2650_v1 = vmul.f32 0.032258064, %v18964_v5  ;;  %v21986_v49 = vld [vmem:[#allocation53_spill] sm:$0xff] }
 0x680   : > { %v16293_v36 = vpop.eup %16292  ;;  %16312 = vrcp.f32 %v3212_v40  ;;  %v19113_v55 = vmul.f32 4.0, %v2711_v57  ;;  %14513 = vmatprep.subr.bf16.mxu1 %v21937_v20  ;;  %14609 = vmatprep.subr.bf16.mxu0 %v21937_v20  ;;  %v3454_v33 = vmax.f32 %v3390_v60, 0.0  ;;  %v2649_v51 = vmul.f32 0.032258064, %v18970_v12  ;;  %v21984_v12 = vld [vmem:[#allocation49_spill] sm:$0xff]  ;;  %v21987_v60 = vld [vmem:[#allocation156_spill] sm:$0xff] }
 0x681   : > { %v16295_v41 = vpop.eup %16294  ;;  %v3211_v29 = vadd.f32 1.0, %v16293_v36  ;;  %16314 = vrcp.f32 %v19047_v35  ;;  %v2714_v37 = vadd.f32 0.0001, %v2650_v1  ;;  %v3391_v61 = vmul.f32 %v19053_v50, %v17606_v10  ;;  %v3487_v50 = vld [vmem:[#allocation8] sm:$0xff] }
 0x682   : > { %v19121_v5 = vpop.eup %16296  ;;  %v3214_v9 = vadd.f32 1.0, %v16295_v41  ;;  %16316 = vrcp.f32 %v19068_v4  ;;  %v19124_v6 = vpack.c.bf16 %v3454_v33, %v3453_v11  ;;  %v2713_v54 = vadd.f32 0.0001, %v2649_v51  ;;  %v4065_v4 = vld [vmem:[#allocation8 + $0x400] sm:$0xff] }
 0x683   : > { %v16299_v21 = vpop.eup %16298  ;;  %16318 = vrcp.f32 %v3211_v29  ;;  %v19126_v27 = vmul.f32 4.0, %v2714_v37  ;;  %v3392_v14 = vmul.f32 %v19049_v22, %v21984_v12  ;;  %v3455_v35 = vmax.f32 %v3391_v61, 0.0  ;;  %v4069_v36 = vld [vmem:[#allocation8 + $0x420] sm:$0xff]  ;;  %v3496_v37 = vld [vmem:[#allocation8 + $0x48] sm:$0xff] }
 0x684   : > { %v16301_v15 = vpop.eup %16300  ;;  %16320 = vrcp.f32 %v3214_v9  ;;  %v3213_v28 = vadd.f32 1.0, %v16299_v21  ;;  %14515 = vmatpush1.bf16.msra.mxu1 %v19124_v6  ;;  %14611 = vmatpush1.bf16.msra.mxu0 %v19124_v6  ;;  %v19132_v10 = vmul.f32 4.0, %v2713_v54  ;;  %v2652_v23 = vmul.f32 0.032258064, %v18988_v38  ;;  %v21985_v38 = vld [vmem:[#allocation52_spill] sm:$0xff] }
 0x685   : > { %v19135_v39 = vpop.eup %16302  ;;  %v2882_v24 = vmul.f32 %v16301_v15, %v18399_v43  ;;  %16322 = vrcp.f32 %v19070_v17  ;;  %14516 = vmatprep.subr.bf16.mxu1 %v21937_v20  ;;  %14612 = vmatprep.subr.bf16.mxu0 %v21937_v20  ;;  %v3456_v22 = vmax.f32 %v3392_v14, 0.0  ;;  %v2651_v7 = vmul.f32 0.032258064, %v18993_v19 }
 0x686   : > { %v19142_v46 = vpop.eup %16304  ;;  %16324 = vrcp.f32 %v3213_v28  ;;  %v2716_v42 = vadd.f32 0.0001, %v2652_v23  ;;  %v3393_v47 = vmul.f32 %v19066_v32, %v21985_v38  ;;  %v3394_v43 = vmul.f32 %v19061_v48, %v21986_v49  ;;  %v3491_v32 = vld [vmem:[#allocation8 + $0x20] sm:$0xff]  ;;  %v21992_v38 = vld [vmem:[#allocation55_spill] sm:$0xff] }
 0x687   : > { %v16307_v17 = vpop.eup %16306  ;;  %v2960_v40 = vadd.f32 0.5, %v2882_v24  ;;  %16326 = vrcp.f32 %v19084_v45  ;;  %3680 = vmatmul.mubr.f32.vlgmr.msra.gmra.mrb[100].mxu1 %v3487_v50  ;;  %4258 = vmatmul.mubr.f32.vlgmr.msra.gmra.mrb[108].mxu0 %v4065_v4  ;;  %v19149_v57 = vpack.c.bf16 %v3456_v22, %v3455_v35  ;;  %v2715_v19 = vadd.f32 0.0001, %v2651_v7  ;;  %v21988_v45 = vld [vmem:[#allocation157_spill] sm:$0xff]  ;;  %v21989_v35 = vld [vmem:[#allocation54_spill] sm:$0xff]  ;;  %v21991_v7 = vld [vmem:[#allocation159_spill] sm:$0xff] }
 0x688   : > { %v16309_v62 = vpop.eup %16308  ;;  %v2880_v11 = vmul.f32 %v16307_v17, %v21987_v60  ;;  %16328 = vrcp.f32 %v19091_v53  ;;  %v2780_v1 = vmul.f32 4.0, %v2716_v42  ;;  %3684 = vmatprep.mubr.f32.mxu1 %v3492_v52  ;;  %4262 = vmatprep.mubr.f32.mxu0 %v4070_v0  ;;  %v3457_v48 = vmax.f32 %v3393_v47, 0.0  ;;  %v4074_v53 = vld [vmem:[#allocation8 + $0x448] sm:$0xff] }
 0x689   : > { %v19153_v33 = vpop.eup %16310  ;;  %v12147_v51 = vmul.f32 -1.442695, %v2960_v40  ;;  %v2886_v41 = vmul.f32 %v16309_v62, %v21988_v45  ;;  %16330 = vrcp.f32 %v19110_v8  ;;  %14518 = vmatpush1.bf16.msra.mxu1 %v19149_v57  ;;  %14614 = vmatpush1.bf16.msra.mxu0 %v19149_v57  ;;  %v2779_v29 = vmul.f32 4.0, %v2715_v19  ;;  %v3500_v49 = vld [vmem:[#allocation8 + $0x68] sm:$0xff] }
 0x68a   : > { %v19159_v61 = vpop.eup %16312  ;;  %v2959_v9 = vadd.f32 0.5, %v2880_v11  ;;  %16332 = vrcp.f32 %v19113_v55  ;;  %14519 = vmatprep.subr.bf16.mxu1 %v21937_v20  ;;  %14615 = vmatprep.subr.bf16.mxu0 %v21937_v20  ;;  %v3458_v54 = vmax.f32 %v3394_v43, 0.0  ;;  %v2654_v21 = vmul.f32 0.032258064, %v19003_v31  ;;  %v21990_v55 = vld [vmem:[#allocation158_spill] sm:$0xff]  ;;  %v4078_v43 = vld [vmem:[#allocation8 + $0x468] sm:$0xff] }
 0x68b   : > { %v16315_v8 = vpop.eup %16314  ;;  %16334 = vpow2.f32 %v12147_v51  ;;  %v2962_v12 = vadd.f32 0.5, %v2886_v41  ;;  %3685 = vmatmul.mubr.f32.gmra.mrb[102].mxu1 %v3491_v32  ;;  %4263 = vmatmul.mubr.f32.gmra.mrb[110].mxu0 %v4069_v36  ;;  %v2653_v14 = vmul.f32 0.032258064, %v19005_v59  ;;  %v3395_v15 = vmul.f32 %v19086_v63, %v21989_v35  ;;  %v3495_v31 = vld [vmem:[#allocation8 + $0x40] sm:$0xff]  ;;  %v21993_v11 = vld [vmem:[#allocation160_spill] sm:$0xff] }
 0x68c   : > { %v16317_v28 = vpop.eup %16316  ;;  %v12146_v50 = vmul.f32 -1.442695, %v2959_v9  ;;  %v2884_v4 = vmul.f32 %v16315_v8, %v21990_v55  ;;  %16336 = vrcp.f32 %v19126_v27  ;;  %v19170_v23 = vpack.c.bf16 %v3458_v54, %v3457_v48  ;;  %3689 = vmatprep.mubr.f32.mxu1 %v3496_v37  ;;  %4267 = vmatprep.mubr.f32.mxu0 %v4074_v53  ;;  %v4073_v63 = vld [vmem:[#allocation8 + $0x440] sm:$0xff]  ;;  %v3504_v9 = vld [vmem:[#allocation8 + $0x88] sm:$0xff] }
 0x68d   : > { %v19172_v24 = vpop.eup %16318  ;;  %v12149_v22 = vmul.f32 -1.442695, %v2962_v12  ;;  %v2890_v52 = vmul.f32 %v16317_v28, %v21991_v7  ;;  %16338 = vrcp.f32 %v19132_v10  ;;  %v2718_v59 = vadd.f32 0.0001, %v2654_v21  ;;  %v4077_v41 = vld [vmem:[#allocation8 + $0x460] sm:$0xff]  ;;  %v21996_v12 = vld [vmem:[#allocation61_spill] sm:$0xff] }
 0x68e   : > { %v19176_v0 = vpop.eup %16320  ;;  %16340 = vpow2.f32 %v12146_v50  ;;  %v2961_v42 = vadd.f32 0.5, %v2884_v4  ;;  %14521 = vmatpush1.bf16.msra.mxu1 %v19170_v23  ;;  %14617 = vmatpush1.bf16.msra.mxu0 %v19170_v23  ;;  %v2717_v27 = vadd.f32 0.0001, %v2653_v14  ;;  %v3396_v47 = vmul.f32 %v19081_v16, %v21992_v38  ;;  %v3499_v16 = vld [vmem:[#allocation8 + $0x60] sm:$0xff]  ;;  %v4082_v7 = vld [vmem:[#allocation8 + $0x488] sm:$0xff] }
 0x68f   : > { %v16323_v17 = vpop.eup %16322  ;;  %16342 = vpow2.f32 %v12149_v22  ;;  %v2964_v40 = vadd.f32 0.5, %v2890_v52  ;;  %v2782_v10 = vmul.f32 4.0, %v2718_v59  ;;  %3690 = vmatmul.mubr.f32.gmra.mrb[104].mxu1 %v3495_v31  ;;  %14522 = vmatprep.subr.bf16.mxu1 %v21937_v20  ;;  %v3459_v19 = vmax.f32 %v3395_v15, 0.0  ;;  %v21994_v37 = vld [vmem:[#allocation58_spill] sm:$0xff]  ;;  %v21998_v31 = vld [vmem:[#allocation163_spill] sm:$0xff] }
 0x690   : > { %v19183_v62 = vpop.eup %16324  ;;  %v12148_v60 = vmul.f32 -1.442695, %v2961_v42  ;;  %v2888_v32 = vmul.f32 %v16323_v17, %v21993_v11  ;;  %16344 = vrcp.f32 %v2780_v1  ;;  %v2781_v36 = vmul.f32 4.0, %v2717_v27  ;;  %4268 = vmatmul.mubr.f32.gmra.mrb[112].mxu0 %v4073_v63  ;;  %14618 = vmatprep.subr.bf16.mxu0 %v21937_v20  ;;  %v21995_v1 = vld [vmem:[#allocation161_spill] sm:$0xff]  ;;  %v21997_v15 = vld [vmem:[#allocation162_spill] sm:$0xff]  ;;  %v21999_v63 = vld [vmem:[#allocation164_spill] sm:$0xff] }
 0x691   : > { %v16327_v48 = vpop.eup %16326  ;;  %v12151_v51 = vmul.f32 -1.442695, %v2964_v40  ;;  %16346 = vrcp.f32 %v2779_v29  ;;  %v3460_v45 = vmax.f32 %v3396_v47, 0.0  ;;  %3694 = vmatprep.mubr.f32.mxu1 %v3500_v49  ;;  %4272 = vmatprep.mubr.f32.mxu0 %v4078_v43  ;;  %v3397_v53 = vmul.f32 %v19106_v3, %v21994_v37  ;;  %v3503_v52 = vld [vmem:[#allocation8 + $0x80] sm:$0xff]  ;;  %v3508_v47 = vld [vmem:[#allocation8 + $0xa8] sm:$0xff]  ;;  %v22000_v11 = vld [vmem:[#allocation165_spill] sm:$0xff] }
 0x692   : > { %v16329_v54 = vpop.eup %16328  ;;  %16348 = vpow2.f32 %v12148_v60  ;;  %v2963_v21 = vadd.f32 0.5, %v2888_v32  ;;  %v2894_v8 = vmul.f32 %v16327_v48, %v21995_v1  ;;  %v3398_v14 = vmul.f32 %v19101_v34, %v21996_v12  ;;  %v4081_v38 = vld [vmem:[#allocation8 + $0x480] sm:$0xff] }
 0x693   : > { %v16331_v35 = vpop.eup %16330  ;;  %16350 = vpow2.f32 %v12151_v51  ;;  %v2892_v29 = vmul.f32 %v16329_v54, %v21997_v15  ;;  %v19193_v28 = vpack.c.bf16 %v3460_v45, %v3459_v19  ;;  %3695 = vmatmul.mubr.f32.gmra.mrb[106].mxu1 %v3499_v16  ;;  %v3461_v50 = vmax.f32 %v3397_v53, 0.0  ;;  %v22001_v51 = vld [vmem:[#allocation166_spill] sm:$0xff]  ;;  %v4086_v53 = vld [vmem:[#allocation8 + $0x4a8] sm:$0xff] }
 0x694   : > { %v16333_v55 = vpop.eup %16332  ;;  %v12150_v4 = vmul.f32 -1.442695, %v2963_v21  ;;  %v2966_v3 = vadd.f32 0.5, %v2894_v8  ;;  %v2898_v22 = vmul.f32 %v16331_v35, %v21998_v31  ;;  %16352 = vrcp.f32 %v2782_v10  ;;  %4273 = vmatmul.mubr.f32.gmra.mrb[114].mxu0 %v4077_v41  ;;  %3699 = vmatprep.mubr.f32.mxu1 %v3504_v9  ;;  %v22002_v41 = vld [vmem:[#allocation62_spill] sm:$0xff]  ;;  %v22004_v31 = vld [vmem:[#allocation167_spill] sm:$0xff] }
 0x695   : > { %v16335_v59 = vpop.eup %16334  ;;  %v2965_v34 = vadd.f32 0.5, %v2892_v29  ;;  %v2896_v42 = vmul.f32 %v16333_v55, %v21999_v63  ;;  %16354 = vrcp.f32 %v2781_v36  ;;  %14524 = vmatpush1.bf16.msra.mxu1 %v19193_v28  ;;  %14620 = vmatpush1.bf16.msra.mxu0 %v19193_v28  ;;  %v3462_v27 = vmax.f32 %v3398_v14, 0.0  ;;  %v3507_v9 = vld [vmem:[#allocation8 + $0xa0] sm:$0xff]  ;;  %v3512_v14 = vld [vmem:[#allocation8 + $0xc8] sm:$0xff] }
 0x696   : > { %v16337_v49 = vpop.eup %16336  ;;  %v3216_v43 = vadd.f32 1.0, %v16335_v59  ;;  %16356 = vpow2.f32 %v12150_v4  ;;  %v12153_v17 = vmul.f32 -1.442695, %v2966_v3  ;;  %v2968_v40 = vadd.f32 0.5, %v2898_v22  ;;  %14525 = vmatprep.subr.bf16.mxu1 %v21937_v20  ;;  %14621 = vmatprep.subr.bf16.mxu0 %v21937_v20  ;;  %v4085_v12 = vld [vmem:[#allocation8 + $0x4a0] sm:$0xff]  ;;  %v4090_v55 = vld [vmem:[#allocation8 + $0x4c8] sm:$0xff] }
 0x697   : > { %v16339_v10 = vpop.eup %16338  ;;  %v12152_v19 = vmul.f32 -1.442695, %v2965_v34  ;;  %v2967_v60 = vadd.f32 0.5, %v2896_v42  ;;  %v2902_v32 = vmul.f32 %v16337_v49, %v22000_v11  ;;  %v19202_v36 = vpack.c.bf16 %v3462_v27, %v3461_v50  ;;  %4277 = vmatprep.mubr.f32.mxu0 %v4082_v7  ;;  %3700 = vmatmul.mubr.f32.gmra.mrb[108].mxu1 %v3503_v52  ;;  %v22005_v34 = vld [vmem:[#allocation168_spill] sm:$0xff]  ;;  %v3511_v27 = vld [vmem:[#allocation8 + $0xc0] sm:$0xff] }
 0x698   : > { %v16341_v16 = vpop.eup %16340  ;;  %16358 = vrcp.f32 %v3216_v43  ;;  %v12155_v48 = vmul.f32 -1.442695, %v2968_v40  ;;  %v2900_v45 = vmul.f32 %v16339_v10, %v22001_v51  ;;  %4278 = vmatmul.mubr.f32.gmra.mrb[116].mxu0 %v4081_v38  ;;  %v3399_v37 = vmul.f32 %v19135_v39, %v22002_v41  ;;  %3704 = vmatprep.mubr.f32.mxu1 %v3508_v47  ;;  %v22003_v39 = vld [vmem:[#allocation63_spill] sm:$0xff]  ;;  %v22006_v49 = vld [vmem:[#allocation66_spill] sm:$0xff] }
 0x699   : > { %v16343_v54 = vpop.eup %16342  ;;  %v3215_v21 = vadd.f32 1.0, %v16341_v16  ;;  %16360 = vpow2.f32 %v12153_v17  ;;  %v12154_v1 = vmul.f32 -1.442695, %v2967_v60  ;;  %v2970_v8 = vadd.f32 0.5, %v2902_v32  ;;  %14527 = vmatpush1.bf16.msra.mxu1 %v19202_v36  ;;  %14623 = vmatpush1.bf16.msra.mxu0 %v19202_v36  ;;  %v22007_v32 = vld [vmem:[#allocation169_spill] sm:$0xff]  ;;  %v22008_v51 = vld [vmem:[#allocation67_spill] sm:$0xff] }
 0x69a   : > { %v16345_v35 = vpop.eup %16344  ;;  %v3218_v15 = vadd.f32 1.0, %v16343_v54  ;;  %16362 = vpow2.f32 %v12152_v19  ;;  %v2969_v29 = vadd.f32 0.5, %v2900_v45  ;;  %14528 = vmatprep.subr.bf16.mxu1 %v21937_v20  ;;  %14624 = vmatprep.subr.bf16.mxu0 %v21937_v20  ;;  %v3400_v50 = vmul.f32 %v19121_v5, %v22003_v39  ;;  %v3516_v41 = vld [vmem:[#allocation8 + $0xe8] sm:$0xff] }
 0x69b   : > { %v16347_v4 = vpop.eup %16346  ;;  %16364 = vrcp.f32 %v3215_v21  ;;  %v12157_v3 = vmul.f32 -1.442695, %v2970_v8  ;;  %v2906_v22 = vmul.f32 %v16345_v35, %v22004_v31  ;;  %v3463_v7 = vmax.f32 %v3399_v37, 0.0  ;;  %4282 = vmatprep.mubr.f32.mxu0 %v4086_v53  ;;  %3705 = vmatmul.mubr.f32.gmra.mrb[110].mxu1 %v3507_v9  ;;  %v22009_v53 = vld [vmem:[#allocation170_spill] sm:$0xff]  ;;  %v4094_v21 = vld [vmem:[#allocation8 + $0x4e8] sm:$0xff] }
 0x69c   : > { %v16349_v52 = vpop.eup %16348  ;;  %16366 = vrcp.f32 %v3218_v15  ;;  %v12156_v59 = vmul.f32 -1.442695, %v2969_v29  ;;  %v2904_v63 = vmul.f32 %v16347_v4, %v22005_v34  ;;  %v3464_v42 = vmax.f32 %v3400_v50, 0.0  ;;  %4283 = vmatmul.mubr.f32.gmra.mrb[118].mxu0 %v4085_v12  ;;  %3709 = vmatprep.mubr.f32.mxu1 %v3512_v14  ;;  %v3520_v14 = vld [vmem:[#allocation8 + $0x108] sm:$0xff]  ;;  %v22010_v29 = vld [vmem:[#allocation70_spill] sm:$0xff] }
 0x69d   : > { %v16351_v38 = vpop.eup %16350  ;;  %v3217_v5 = vadd.f32 1.0, %v16349_v52  ;;  %16368 = vpow2.f32 %v12155_v48  ;;  %v2972_v47 = vadd.f32 0.5, %v2906_v22  ;;  %v3401_v43 = vmul.f32 %v19153_v33, %v22006_v49  ;;  %4287 = vmatprep.mubr.f32.mxu0 %v4090_v55  ;;  %v4089_v48 = vld [vmem:[#allocation8 + $0x4c0] sm:$0xff]  ;;  %v22011_v50 = vld [vmem:[#allocation71_spill] sm:$0xff] }
 0x69e   : > { %v16353_v17 = vpop.eup %16352  ;;  %v3220_v40 = vadd.f32 1.0, %v16351_v38  ;;  %16370 = vpow2.f32 %v12154_v1  ;;  %v2971_v10 = vadd.f32 0.5, %v2904_v63  ;;  %v19217_v19 = vpack.c.bf16 %v3464_v42, %v3463_v7  ;;  %v3515_v1 = vld [vmem:[#allocation8 + $0xe0] sm:$0xff]  ;;  %v3524_v49 = vld [vmem:[#allocation8 + $0x128] sm:$0xff] }
 0x69f   : > { %v16355_v60 = vpop.eup %16354  ;;  %16372 = vrcp.f32 %v3217_v5  ;;  %v12159_v11 = vmul.f32 -1.442695, %v2972_v47  ;;  %v2910_v16 = vmul.f32 %v16353_v17, %v22007_v32  ;;  %v3402_v45 = vmul.f32 %v19142_v46, %v22008_v51  ;;  %3710 = vmatmul.mubr.f32.gmra.mrb[112].mxu1 %v3511_v27  ;;  %v22012_v22 = vld [vmem:[#allocation74_spill] sm:$0xff]  ;;  %v22013_v5 = vld [vmem:[#allocation75_spill] sm:$0xff] }
 0x6a0   : > { %v16357_v37 = vpop.eup %16356  ;;  %16374 = vrcp.f32 %v3220_v40  ;;  %v12158_v33 = vmul.f32 -1.442695, %v2971_v10  ;;  %v2908_v9 = vmul.f32 %v16355_v60, %v22009_v53  ;;  %14530 = vmatpush1.bf16.msra.mxu1 %v19217_v19  ;;  %14626 = vmatpush1.bf16.msra.mxu0 %v19217_v19  ;;  %v3465_v54 = vmax.f32 %v3401_v43, 0.0  ;;  %v3519_v42 = vld [vmem:[#allocation8 + $0x100] sm:$0xff]  ;;  %v22014_v40 = vld [vmem:[#allocation43_spill] sm:$0xff]  ;;  %v22015_v60 = vld [vmem:[#allocation44_spill] sm:$0xff] }
 0x6a1   : > { %v3219_v8 = vadd.f32 1.0, %v16357_v37  ;;  %16376 = vpow2.f32 %v12157_v3  ;;  %v2974_v12 = vadd.f32 0.5, %v2910_v16  ;;  %14531 = vmatprep.subr.bf16.mxu1 %v21937_v20  ;;  %14627 = vmatprep.subr.bf16.mxu0 %v21937_v20  ;;  %v3466_v46 = vmax.f32 %v3402_v45, 0.0  ;;  %v4097_v37 = vld [vmem:[#allocation8 + $0x500] sm:$0xff] }
 0x6a2   : > { %v16359_v35 = vpop.eup %16358  ;;  %16378 = vpow2.f32 %v12156_v59  ;;  %v2973_v15 = vadd.f32 0.5, %v2908_v9  ;;  %4288 = vmatmul.mubr.f32.gmra.mrb[120].mxu0 %v4089_v48  ;;  %v3403_v39 = vmul.f32 %v19172_v24, %v22010_v29  ;;  %v3404_v55 = vmul.f32 %v19159_v61, %v22011_v50  ;;  %3714 = vmatprep.mubr.f32.mxu1 %v3516_v41  ;;  %v4093_v24 = vld [vmem:[#allocation8 + $0x4e0] sm:$0xff]  ;;  %v22018_v50 = vld [vmem:[#allocation51_spill] sm:$0xff] }
 0x6a3   : > { %v16361_v4 = vpop.eup %16360  ;;  %16380 = vrcp.f32 %v3219_v8  ;;  %v12161_v3 = vmul.f32 -1.442695, %v2974_v12  ;;  %v19231_v31 = vpack.c.bf16 %v3466_v46, %v3465_v54  ;;  %4292 = vmatprep.mubr.f32.mxu0 %v4094_v21  ;;  %3715 = vmatmul.mubr.f32.gmra.mrb[114].mxu1 %v3515_v1  ;;  %v3405_v7 = vmul.f32 %v19183_v62, %v22012_v22  ;;  %v4098_v62 = vld [vmem:[#allocation8 + $0x508] sm:$0xff]  ;;  %v3523_v9 = vld [vmem:[#allocation8 + $0x120] sm:$0xff] }
 0x6a4   : > { %v16363_v52 = vpop.eup %16362  ;;  %v3222_v59 = vadd.f32 1.0, %v16361_v4  ;;  %16382 = vpow2.f32 %v12159_v11  ;;  %v12160_v34 = vmul.f32 -1.442695, %v2973_v15  ;;  %v3467_v63 = vmax.f32 %v3403_v39, 0.0  ;;  %3719 = vmatprep.mubr.f32.mxu1 %v3520_v14  ;;  %v4102_v8 = vld [vmem:[#allocation8 + $0x528] sm:$0xff]  ;;  %v4101_v22 = vld [vmem:[#allocation8 + $0x520] sm:$0xff] }
 0x6a5   : > { %v16365_v61 = vpop.eup %16364  ;;  %v3221_v27 = vadd.f32 1.0, %v16363_v52  ;;  %16384 = vpow2.f32 %v12158_v33  ;;  %14533 = vmatpush1.bf16.msra.mxu1 %v19231_v31  ;;  %14629 = vmatpush1.bf16.msra.mxu0 %v19231_v31  ;;  %v3468_v38 = vmax.f32 %v3404_v55, 0.0  ;;  %v3406_v47 = vmul.f32 %v19176_v0, %v22013_v5  ;;  %v22016_v0 = vld [vmem:[#allocation48_spill] sm:$0xff]  ;;  %v3528_v12 = vld [vmem:[#allocation8 + $0x148] sm:$0xff]  ;;  %v3527_v52 = vld [vmem:[#allocation8 + $0x140] sm:$0xff] }
 0x6a6   : > { %v16367_v43 = vpop.eup %16366  ;;  %16386 = vrcp.f32 %v3222_v59  ;;  %14534 = vmatprep.subr.bf16.mxu1 %v21937_v20  ;;  %14630 = vmatprep.subr.bf16.mxu0 %v21937_v20  ;;  %v3469_v17 = vmax.f32 %v3405_v7, 0.0  ;;  %v3407_v10 = vmul.f32 %v16365_v61, %v22014_v40  ;;  %v3408_v11 = vmul.f32 %v16359_v35, %v22015_v60  ;;  %v22017_v35 = vld [vmem:[#allocation47_spill] sm:$0xff] }
 0x6a7   : > { %v16369_v32 = vpop.eup %16368  ;;  %16388 = vrcp.f32 %v3221_v27  ;;  %v19243_v16 = vpack.c.bf16 %v3468_v38, %v3467_v63  ;;  %4293 = vmatmul.mubr.f32.gmra.mrb[122].mxu0 %v4093_v24  ;;  %v3470_v51 = vmax.f32 %v3406_v47, 0.0  ;;  %3720 = vmatmul.mubr.f32.gmra.mrb[116].mxu1 %v3519_v42  ;;  %v3410_v45 = vmul.f32 %v16367_v43, %v22016_v0  ;;  %v4106_v63 = vld [vmem:[#allocation8 + $0x548] sm:$0xff]  ;;  %v22019_v27 = vld [vmem:[#allocation50_spill] sm:$0xff] }
 0x6a8   : > { %v16371_v48 = vpop.eup %16370  ;;  %v3224_v41 = vadd.f32 1.0, %v16369_v32  ;;  %16390 = vpow2.f32 %v12161_v3  ;;  %4297 = vmatprep.mubr.f32.mxu0 %v4098_v62  ;;  %v3471_v33 = vmax.f32 %v3407_v10, 0.0  ;;  %v3472_v53 = vmax.f32 %v3408_v11, 0.0  ;;  %3724 = vmatprep.mubr.f32.mxu1 %v3524_v49  ;;  %v3532_v24 = vld [vmem:[#allocation8 + $0x168] sm:$0xff]  ;;  %v3531_v10 = vld [vmem:[#allocation8 + $0x160] sm:$0xff]  ;;  %v22020_v32 = vld [vmem:[#allocation57_spill] sm:$0xff] }
 0x6a9   : > { %v16373_v54 = vpop.eup %16372  ;;  %v3223_v21 = vadd.f32 1.0, %v16371_v48  ;;  %16392 = vpow2.f32 %v12160_v34  ;;  %14536 = vmatpush1.bf16.msra.mxu1 %v19243_v16  ;;  %14632 = vmatpush1.bf16.msra.mxu0 %v19243_v16  ;;  %v19248_v1 = vpack.c.bf16 %v3470_v51, %v3469_v17  ;;  %v3474_v29 = vmax.f32 %v3410_v45, 0.0  ;;  %v4105_v17 = vld [vmem:[#allocation8 + $0x540] sm:$0xff]  ;;  %v4110_v11 = vld [vmem:[#allocation8 + $0x568] sm:$0xff] }
 0x6aa   : > { %v16375_v46 = vpop.eup %16374  ;;  %16394 = vrcp.f32 %v3224_v41  ;;  %14537 = vmatprep.subr.bf16.mxu1 %v21937_v20  ;;  %14633 = vmatprep.subr.bf16.mxu0 %v21937_v20  ;;  %v19252_v14 = vpack.c.bf16 %v3472_v53, %v3471_v33  ;;  %v3409_v15 = vmul.f32 %v16373_v54, %v22017_v35  ;;  %v3536_v0 = vld [vmem:[#allocation8 + $0x188] sm:$0xff]  ;;  %v22021_v41 = vld [vmem:[#allocation56_spill] sm:$0xff] }
 0x6ab   : > { %v16377_v39 = vpop.eup %16376  ;;  %16396 = vrcp.f32 %v3223_v21  ;;  %4298 = vmatmul.mubr.f32.gmra.mrb[124].mxu0 %v4097_v37  ;;  %3725 = vmatmul.mubr.f32.gmra.mrb[118].mxu1 %v3523_v9  ;;  %v3412_v55 = vmul.f32 %v16375_v46, %v22018_v50  ;;  %v3535_v46 = vld [vmem:[#allocation8 + $0x180] sm:$0xff]  ;;  %v3540_v50 = vld [vmem:[#allocation8 + $0x1a8] sm:$0xff] }
 0x6ac   : > { %v16379_v4 = vpop.eup %16378  ;;  %v3226_v3 = vadd.f32 1.0, %v16377_v39  ;;  %4302 = vmatprep.mubr.f32.mxu0 %v4102_v8  ;;  %v3473_v7 = vmax.f32 %v3409_v15, 0.0  ;;  %3729 = vmatprep.mubr.f32.mxu1 %v3528_v12  ;;  %v4109_v8 = vld [vmem:[#allocation8 + $0x560] sm:$0xff]  ;;  %v4114_v15 = vld [vmem:[#allocation8 + $0x588] sm:$0xff] }
 0x6ad   : > { %v16381_v59 = vpop.eup %16380  ;;  %v3225_v34 = vadd.f32 1.0, %v16379_v4  ;;  %14539 = vmatpush1.bf16.msra.mxu1 %v19248_v1  ;;  %14635 = vmatpush1.bf16.msra.mxu0 %v19248_v1  ;;  %v3476_v5 = vmax.f32 %v3412_v55, 0.0  ;;  %v22023_v4 = vld [vmem:[#allocation59_spill] sm:$0xff] }
 0x6ae   : > { %v16383_v42 = vpop.eup %16382  ;;  %16398 = vrcp.f32 %v3226_v3  ;;  %14540 = vmatprep.subr.bf16.mxu1 %v21937_v20  ;;  %14636 = vmatprep.subr.bf16.mxu0 %v21937_v20  ;;  %v19260_v61 = vpack.c.bf16 %v3474_v29, %v3473_v7  ;;  %v3411_v38 = vmul.f32 %v16381_v59, %v22019_v27  ;;  %v22022_v29 = vld [vmem:[#allocation60_spill] sm:$0xff] }
 0x6af   : > { %v16385_v47 = vpop.eup %16384  ;;  %16400 = vrcp.f32 %v3225_v34  ;;  %v3228_v62 = vadd.f32 1.0, %v16383_v42  ;;  %4303 = vmatmul.mubr.f32.gmra.mrb[126].mxu0 %v4101_v22  ;;  %3730 = vmatmul.mubr.f32.gmra.mrb[120].mxu1 %v3527_v52  ;;  %v4113_v52 = vld [vmem:[#allocation8 + $0x580] sm:$0xff]  ;;  %v22024_v42 = vld [vmem:[#allocation65_spill] sm:$0xff] }
 0x6b0   : > { %v16387_v49 = vpop.eup %16386  ;;  %v3227_v43 = vadd.f32 1.0, %v16385_v47  ;;  %4307 = vmatprep.mubr.f32.mxu0 %v4106_v63  ;;  %v3475_v40 = vmax.f32 %v3411_v38, 0.0  ;;  %3734 = vmatprep.mubr.f32.mxu1 %v3532_v24  ;;  %v3539_v34 = vld [vmem:[#allocation8 + $0x1a0] sm:$0xff]  ;;  %v4118_v24 = vld [vmem:[#allocation8 + $0x5a8] sm:$0xff]  ;;  %v22025_v47 = vld [vmem:[#allocation64_spill] sm:$0xff] }
 0x6b1   : > { %v16389_v60 = vpop.eup %16388  ;;  %16402 = vrcp.f32 %v3228_v62  ;;  %14542 = vmatpush1.bf16.msra.mxu1 %v19252_v14  ;;  %14638 = vmatpush1.bf16.msra.mxu0 %v19252_v14  ;;  %v3414_v51 = vmul.f32 %v16387_v49, %v22020_v32  ;;  %v3544_v38 = vld [vmem:[#allocation8 + $0x1c8] sm:$0xff] }
 0x6b2   : > { %v16391_v45 = vpop.eup %16390  ;;  %16404 = vrcp.f32 %v3227_v43  ;;  %14543 = vmatprep.subr.bf16.mxu1 %v21937_v20  ;;  %14639 = vmatprep.subr.bf16.mxu0 %v21937_v20  ;;  %v19268_v48 = vpack.c.bf16 %v3476_v5, %v3475_v40  ;;  %v3413_v37 = vmul.f32 %v16389_v60, %v22021_v41  ;;  %v4117_v40 = vld [vmem:[#allocation8 + $0x5a0] sm:$0xff]  ;;  %v3548_v41 = vld [vmem:[#allocation8 + $0x1e8] sm:$0xff] }
 0x6b3   : > { %v16393_v33 = vpop.eup %16392  ;;  %v3230_v53 = vadd.f32 1.0, %v16391_v45  ;;  %4308 = vmatmul.mubr.f32.gmra.mrb[128].mxu0 %v4105_v17  ;;  %3735 = vmatmul.mubr.f32.gmra.mrb[122].mxu1 %v3531_v10  ;;  %v3478_v9 = vmax.f32 %v3414_v51, 0.0  ;;  %v3543_v60 = vld [vmem:[#allocation8 + $0x1c0] sm:$0xff]  ;;  %v4122_v51 = vld [vmem:[#allocation8 + $0x5c8] sm:$0xff] }
 0x6b4   : > { %v16395_v54 = vpop.eup %16394  ;;  %v3229_v21 = vadd.f32 1.0, %v16393_v33  ;;  %4312 = vmatprep.mubr.f32.mxu0 %v4110_v11  ;;  %v3477_v12 = vmax.f32 %v3413_v37, 0.0  ;;  %3739 = vmatprep.mubr.f32.mxu1 %v3536_v0  ;;  %v22026_v11 = vld [vmem:[#allocation69_spill] sm:$0xff]  ;;  %v22027_v0 = vld [vmem:[#allocation68_spill] sm:$0xff] }
 0x6b5   : > { %v16397_v35 = vpop.eup %16396  ;;  %16406 = vrcp.f32 %v3230_v53  ;;  %14545 = vmatpush1.bf16.msra.mxu1 %v19260_v61  ;;  %14641 = vmatpush1.bf16.msra.mxu0 %v19260_v61  ;;  %v3416_v39 = vmul.f32 %v16395_v54, %v22022_v29  ;;  %v22029_v29 = vld [vmem:[#allocation72_spill] sm:$0xff] }
 0x6b6   : > { %16408 = vrcp.f32 %v3229_v21  ;;  %14546 = vmatprep.subr.bf16.mxu1 %v21937_v20  ;;  %14642 = vmatprep.subr.bf16.mxu0 %v21937_v20  ;;  %v19276_v55 = vpack.c.bf16 %v3478_v9, %v3477_v12  ;;  %v3415_v3 = vmul.f32 %v16397_v35, %v22023_v4  ;;  %v4121_v21 = vld [vmem:[#allocation8 + $0x5c0] sm:$0xff]  ;;  %v22028_v12 = vld [vmem:[#allocation73_spill] sm:$0xff] }
 0x6b7   : > { %4313 = vmatmul.mubr.f32.gmra.mrb[130].mxu0 %v4109_v8  ;;  %3740 = vmatmul.mubr.f32.gmra.mrb[124].mxu1 %v3535_v46  ;;  %v3480_v22 = vmax.f32 %v3416_v39, 0.0  ;;  %v3547_v8 = vld [vmem:[#allocation8 + $0x1e0] sm:$0xff] }
 0x6b8   : > { %v16399_v7 = vpop.eup %16398  ;;  %4317 = vmatprep.mubr.f32.mxu0 %v4114_v15  ;;  %v3479_v59 = vmax.f32 %v3415_v3, 0.0  ;;  %3744 = vmatprep.mubr.f32.mxu1 %v3540_v50  ;;  %v4126_v15 = vld [vmem:[#allocation8 + $0x5e8] sm:$0xff] }
 0x6b9   : > { %v16401_v63 = vpop.eup %16400  ;;  %14548 = vmatpush1.bf16.msra.mxu1 %v19268_v48  ;;  %14644 = vmatpush1.bf16.msra.mxu0 %v19268_v48  ;;  %v3418_v27 = vmul.f32 %v16399_v7, %v22024_v42  ;;  %v3552_v50 = vld [vmem:[#allocation8 + $0x208] sm:$0xff]  ;;  %v3551_v7 = vld [vmem:[#allocation8 + $0x200] sm:$0xff] }
 0x6ba   : > { %14549 = vmatprep.subr.bf16.mxu1 %v21937_v20  ;;  %14645 = vmatprep.subr.bf16.mxu0 %v21937_v20  ;;  %v19284_v5 = vpack.c.bf16 %v3480_v22, %v3479_v59  ;;  %v3417_v62 = vmul.f32 %v16401_v63, %v22025_v47  ;;  %v4125_v22 = vld [vmem:[#allocation8 + $0x5e0] sm:$0xff]  ;;  %v4130_v59 = vld [vmem:[#allocation8 + $0x608] sm:$0xff] }
 0x6bb   : > { %v16403_v49 = vpop.eup %16402  ;;  %4318 = vmatmul.mubr.f32.gmra.mrb[132].mxu0 %v4113_v52  ;;  %3745 = vmatmul.mubr.f32.gmra.mrb[126].mxu1 %v3539_v34  ;;  %v3482_v43 = vmax.f32 %v3418_v27, 0.0  ;;  %v3556_v34 = vld [vmem:[#allocation8 + $0x228] sm:$0xff]  ;;  %v4129_v63 = vld [vmem:[#allocation8 + $0x600] sm:$0xff] }
 0x6bc   : > { %v16405_v17 = vpop.eup %16404  ;;  %4322 = vmatprep.mubr.f32.mxu0 %v4118_v24  ;;  %v3481_v10 = vmax.f32 %v3417_v62, 0.0  ;;  %3749 = vmatprep.mubr.f32.mxu1 %v3544_v38  ;;  %v3420_v32 = vmul.f32 %v16403_v49, %v22026_v11  ;;  %v3555_v24 = vld [vmem:[#allocation8 + $0x220] sm:$0xff]  ;;  %v4134_v42 = vld [vmem:[#allocation8 + $0x628] sm:$0xff] }
 0x6bd   : > { %14551 = vmatpush1.bf16.msra.mxu1 %v19276_v55  ;;  %14647 = vmatpush1.bf16.msra.mxu0 %v19276_v55  ;;  %v3419_v45 = vmul.f32 %v16405_v17, %v22027_v0  ;;  %v3560_v27 = vld [vmem:[#allocation8 + $0x248] sm:$0xff]  ;;  %v4133_v38 = vld [vmem:[#allocation8 + $0x620] sm:$0xff] }
 0x6be   : > { %14552 = vmatprep.subr.bf16.mxu1 %v21937_v20  ;;  %14648 = vmatprep.subr.bf16.mxu0 %v21937_v20  ;;  %v19293_v37 = vpack.c.bf16 %v3482_v43, %v3481_v10  ;;  %v3484_v33 = vmax.f32 %v3420_v32, 0.0  ;;  %v3559_v47 = vld [vmem:[#allocation8 + $0x240] sm:$0xff]  ;;  %v4138_v62 = vld [vmem:[#allocation8 + $0x648] sm:$0xff] }
 0x6bf   : > { %v16407_v53 = vpop.eup %16406  ;;  %4323 = vmatmul.mubr.f32.gmra.mrb[134].mxu0 %v4117_v40  ;;  %3750 = vmatmul.mubr.f32.gmra.mrb[128].mxu1 %v3543_v60  ;;  %v3483_v9 = vmax.f32 %v3419_v45, 0.0  ;;  %v3564_v49 = vld [vmem:[#allocation8 + $0x268] sm:$0xff]  ;;  %v4137_v43 = vld [vmem:[#allocation8 + $0x640] sm:$0xff] }
 0x6c0   : > { %v16409_v54 = vpop.eup %16408  ;;  %4327 = vmatprep.mubr.f32.mxu0 %v4122_v51  ;;  %3754 = vmatprep.mubr.f32.mxu1 %v3548_v41  ;;  %v3422_v46 = vmul.f32 %v16407_v53, %v22028_v12  ;;  %v3563_v17 = vld [vmem:[#allocation8 + $0x260] sm:$0xff]  ;;  %v4142_v40 = vld [vmem:[#allocation8 + $0x668] sm:$0xff] }
 0x6c1   : > { %14554 = vmatpush1.bf16.msra.mxu1 %v19284_v5  ;;  %14650 = vmatpush1.bf16.msra.mxu0 %v19284_v5  ;;  %v19298_v35 = vpack.c.bf16 %v3484_v33, %v3483_v9  ;;  %v3421_v39 = vmul.f32 %v16409_v54, %v22029_v29  ;;  %v3568_v10 = vld [vmem:[#allocation8 + $0x288] sm:$0xff]  ;;  %v4141_v60 = vld [vmem:[#allocation8 + $0x660] sm:$0xff] }
 0x6c2   : > { %14555 = vmatprep.subr.bf16.mxu1 %v21937_v20  ;;  %14651 = vmatprep.subr.bf16.mxu0 %v21937_v20  ;;  %v3486_v4 = vmax.f32 %v3422_v46, 0.0  ;;  %v3567_v11 = vld [vmem:[#allocation8 + $0x280] sm:$0xff]  ;;  %v4146_v32 = vld [vmem:[#allocation8 + $0x688] sm:$0xff] }
 0x6c3   : > { %4328 = vmatmul.mubr.f32.gmra.mrb[136].mxu0 %v4121_v21  ;;  %3755 = vmatmul.mubr.f32.gmra.mrb[130].mxu1 %v3547_v8  ;;  %v3485_v3 = vmax.f32 %v3421_v39, 0.0  ;;  %v3572_v51 = vld [vmem:[#allocation8 + $0x2a8] sm:$0xff]  ;;  %v4145_v0 = vld [vmem:[#allocation8 + $0x680] sm:$0xff] }
 0x6c4   : > { %4332 = vmatprep.mubr.f32.mxu0 %v4126_v15  ;;  %3759 = vmatprep.mubr.f32.mxu1 %v3552_v50  ;;  %v3571_v45 = vld [vmem:[#allocation8 + $0x2a0] sm:$0xff]  ;;  %v4150_v41 = vld [vmem:[#allocation8 + $0x6a8] sm:$0xff] }
 0x6c5   : > { %14557 = vmatpush1.bf16.msra.mxu1 %v19293_v37  ;;  %14653 = vmatpush1.bf16.msra.mxu0 %v19293_v37  ;;  %v19305_v52 = vpack.c.bf16 %v3486_v4, %v3485_v3  ;;  %v3576_v33 = vld [vmem:[#allocation8 + $0x2c8] sm:$0xff]  ;;  %v4149_v53 = vld [vmem:[#allocation8 + $0x6a0] sm:$0xff] }
 0x6c6   : > { %14558 = vmatprep.subr.bf16.mxu1 %v21937_v20  ;;  %14654 = vmatprep.subr.bf16.mxu0 %v21937_v20  ;;  %v3575_v9 = vld [vmem:[#allocation8 + $0x2c0] sm:$0xff]  ;;  %v4154_v54 = vld [vmem:[#allocation8 + $0x6c8] sm:$0xff] }
 0x6c7   : > { %4333 = vmatmul.mubr.f32.gmra.mrb[138].mxu0 %v4125_v22  ;;  %3760 = vmatmul.mubr.f32.gmra.mrb[132].mxu1 %v3551_v7  ;;  %v3580_v21 = vld [vmem:[#allocation8 + $0x2e8] sm:$0xff]  ;;  %v4153_v8 = vld [vmem:[#allocation8 + $0x6c0] sm:$0xff] }
 0x6c8   : > { %4337 = vmatprep.mubr.f32.mxu0 %v4130_v59  ;;  %3764 = vmatprep.mubr.f32.mxu1 %v3556_v34  ;;  %v3579_v12 = vld [vmem:[#allocation8 + $0x2e0] sm:$0xff]  ;;  %v4158_v46 = vld [vmem:[#allocation8 + $0x6e8] sm:$0xff] }
 0x6c9   : > { %14560 = vmatpush1.bf16.msra.mxu1 %v19298_v35  ;;  %14656 = vmatpush1.bf16.msra.mxu0 %v19298_v35  ;;  %v3584_v15 = vld [vmem:[#allocation8 + $0x308] sm:$0xff]  ;;  %v4157_v29 = vld [vmem:[#allocation8 + $0x6e0] sm:$0xff] }
 0x6ca   : > { %14561 = vmatprep.subr.bf16.mxu1 %v21937_v20  ;;  %14657 = vmatprep.subr.bf16.mxu0 %v21937_v20  ;;  %v3583_v39 = vld [vmem:[#allocation8 + $0x300] sm:$0xff]  ;;  %v4162_v50 = vld [vmem:[#allocation8 + $0x708] sm:$0xff] }
 0x6cb   : > { %4338 = vmatmul.mubr.f32.gmra.mrb[140].mxu0 %v4129_v63  ;;  %3765 = vmatmul.mubr.f32.gmra.mrb[134].mxu1 %v3555_v24  ;;  %v3588_v4 = vld [vmem:[#allocation8 + $0x328] sm:$0xff]  ;;  %v4161_v3 = vld [vmem:[#allocation8 + $0x700] sm:$0xff] }
 0x6cc   : > { %4342 = vmatprep.mubr.f32.mxu0 %v4134_v42  ;;  %3769 = vmatprep.mubr.f32.mxu1 %v3560_v27  ;;  %v3587_v22 = vld [vmem:[#allocation8 + $0x320] sm:$0xff]  ;;  %v4166_v7 = vld [vmem:[#allocation8 + $0x728] sm:$0xff] }
 0x6cd   : > { %14563 = vmatpush1.bf16.msra.mxu1 %v19305_v52  ;;  %14659 = vmatpush1.bf16.msra.mxu0 %v19305_v52  ;;  %v3592_v59 = vld [vmem:[#allocation8 + $0x348] sm:$0xff]  ;;  %v4165_v34 = vld [vmem:[#allocation8 + $0x720] sm:$0xff] }
 0x6ce   : > { %14660 = vmatprep.subr.bf16.mxu1 %v21937_v20  ;;  %v3591_v63 = vld [vmem:[#allocation8 + $0x340] sm:$0xff]  ;;  %v4170_v24 = vld [vmem:[#allocation8 + $0x748] sm:$0xff] }
 0x6cf   : > { %4343 = vmatmul.mubr.f32.gmra.mrb[142].mxu0 %v4133_v38  ;;  %3770 = vmatmul.mubr.f32.gmra.mrb[136].mxu1 %v3559_v47  ;;  %v3596_v42 = vld [vmem:[#allocation8 + $0x368] sm:$0xff]  ;;  %v4169_v27 = vld [vmem:[#allocation8 + $0x740] sm:$0xff] }
 0x6d0   : > { %4347 = vmatprep.mubr.f32.mxu0 %v4138_v62  ;;  %3774 = vmatprep.mubr.f32.mxu1 %v3564_v49  ;;  %v3595_v38 = vld [vmem:[#allocation8 + $0x360] sm:$0xff]  ;;  %v4174_v47 = vld [vmem:[#allocation8 + $0x768] sm:$0xff] }
 0x6d1   : > { %v3600_v62 = vld [vmem:[#allocation8 + $0x388] sm:$0xff]  ;;  %v4173_v49 = vld [vmem:[#allocation8 + $0x760] sm:$0xff] }
 0x6d3   : > { %4348 = vmatmul.mubr.f32.gmra.mrb[144].mxu0 %v4137_v43  ;;  %3775 = vmatmul.mubr.f32.gmra.mrb[138].mxu1 %v3563_v17  ;;  %v3599_v43 = vld [vmem:[#allocation8 + $0x380] sm:$0xff]  ;;  %v4178_v17 = vld [vmem:[#allocation8 + $0x788] sm:$0xff] }
 0x6d4   : > { %4352 = vmatprep.mubr.f32.mxu0 %v4142_v40  ;;  %3779 = vmatprep.mubr.f32.mxu1 %v3568_v10  ;;  %v3604_v40 = vld [vmem:[#allocation8 + $0x3a8] sm:$0xff]  ;;  %v4177_v10 = vld [vmem:[#allocation8 + $0x780] sm:$0xff] }
 0x6d7   : > { %4353 = vmatmul.mubr.f32.gmra.mrb[146].mxu0 %v4141_v60  ;;  %3780 = vmatmul.mubr.f32.gmra.mrb[140].mxu1 %v3567_v11  ;;  %v3603_v60 = vld [vmem:[#allocation8 + $0x3a0] sm:$0xff]  ;;  %v4182_v11 = vld [vmem:[#allocation8 + $0x7a8] sm:$0xff] }
 0x6d8   : > { %4357 = vmatprep.mubr.f32.mxu0 %v4146_v32  ;;  %3784 = vmatprep.mubr.f32.mxu1 %v3572_v51  ;;  %v3608_v32 = vld [vmem:[#allocation8 + $0x3c8] sm:$0xff]  ;;  %v4181_v51 = vld [vmem:[#allocation8 + $0x7a0] sm:$0xff] }
 0x6db   : > { %4358 = vmatmul.mubr.f32.gmra.mrb[148].mxu0 %v4145_v0  ;;  %3785 = vmatmul.mubr.f32.gmra.mrb[142].mxu1 %v3571_v45  ;;  %v3607_v0 = vld [vmem:[#allocation8 + $0x3c0] sm:$0xff]  ;;  %v4186_v45 = vld [vmem:[#allocation8 + $0x7c8] sm:$0xff] }
 0x6dc   : > { %4362 = vmatprep.mubr.f32.mxu0 %v4150_v41  ;;  %3789 = vmatprep.mubr.f32.mxu1 %v3576_v33  ;;  %v3612_v41 = vld [vmem:[#allocation8 + $0x3e8] sm:$0xff]  ;;  %v4185_v33 = vld [vmem:[#allocation8 + $0x7c0] sm:$0xff] }
 0x6df   : > { %4363 = vmatmul.mubr.f32.gmra.mrb[150].mxu0 %v4149_v53  ;;  %3790 = vmatmul.mubr.f32.gmra.mrb[144].mxu1 %v3575_v9  ;;  %v3611_v53 = vld [vmem:[#allocation8 + $0x3e0] sm:$0xff]  ;;  %v4190_v9 = vld [vmem:[#allocation8 + $0x7e8] sm:$0xff] }
 0x6e0   : > { %4367 = vmatprep.mubr.f32.mxu0 %v4154_v54  ;;  %3794 = vmatprep.mubr.f32.mxu1 %v3580_v21  ;;  %v3490_v54 = vld [vmem:[#allocation8 + $0x18] sm:$0xff]  ;;  %v4189_v21 = vld [vmem:[#allocation8 + $0x7e0] sm:$0xff] }
 0x6e3   : > { %4368 = vmatmul.mubr.f32.gmra.mrb[152].mxu0 %v4153_v8  ;;  %3795 = vmatmul.mubr.f32.gmra.mrb[146].mxu1 %v3579_v12  ;;  %v3489_v8 = vld [vmem:[#allocation8 + $0x10] sm:$0xff]  ;;  %v4068_v12 = vld [vmem:[#allocation8 + $0x418] sm:$0xff] }
 0x6e4   : > { %4372 = vmatprep.mubr.f32.mxu0 %v4158_v46  ;;  %3799 = vmatprep.mubr.f32.mxu1 %v3584_v15  ;;  %v3494_v46 = vld [vmem:[#allocation8 + $0x38] sm:$0xff]  ;;  %v4067_v15 = vld [vmem:[#allocation8 + $0x410] sm:$0xff] }
 0x6e7   : > { %4373 = vmatmul.mubr.f32.gmra.mrb[154].mxu0 %v4157_v29  ;;  %3800 = vmatmul.mubr.f32.gmra.mrb[148].mxu1 %v3583_v39  ;;  %v3493_v29 = vld [vmem:[#allocation8 + $0x30] sm:$0xff]  ;;  %v4072_v39 = vld [vmem:[#allocation8 + $0x438] sm:$0xff] }
 0x6e8   : > { %4377 = vmatprep.mubr.f32.mxu0 %v4162_v50  ;;  %3804 = vmatprep.mubr.f32.mxu1 %v3588_v4  ;;  %v3498_v50 = vld [vmem:[#allocation8 + $0x58] sm:$0xff]  ;;  %v4071_v4 = vld [vmem:[#allocation8 + $0x430] sm:$0xff] }
 0x6eb   : > { %4378 = vmatmul.mubr.f32.gmra.mrb[156].mxu0 %v4161_v3  ;;  %3805 = vmatmul.mubr.f32.gmra.mrb[150].mxu1 %v3587_v22  ;;  %v3497_v3 = vld [vmem:[#allocation8 + $0x50] sm:$0xff]  ;;  %v4076_v22 = vld [vmem:[#allocation8 + $0x458] sm:$0xff] }
 0x6ec   : > { %4382 = vmatprep.mubr.f32.mxu0 %v4166_v7  ;;  %3809 = vmatprep.mubr.f32.mxu1 %v3592_v59  ;;  %v3502_v7 = vld [vmem:[#allocation8 + $0x78] sm:$0xff]  ;;  %v22030_v59 = vld [vmem:[#allocation76_spill] sm:$0xff] }
 0x6ef   : > { %4383 = vmatmul.mubr.f32.gmra.mrb[158].mxu0 %v4165_v34  ;;  %3810 = vmatmul.mubr.f32.gmra.mrb[152].mxu1 %v3591_v63  ;;  %v3501_v34 = vld [vmem:[#allocation8 + $0x70] sm:$0xff]  ;;  %v4080_v63 = vld [vmem:[#allocation8 + $0x478] sm:$0xff] }
 0x6f0   : > { %4387 = vmatprep.mubr.f32.mxu0 %v4170_v24  ;;  %3814 = vmatprep.mubr.f32.mxu1 %v3596_v42  ;;  %v3506_v24 = vld [vmem:[#allocation8 + $0x98] sm:$0xff] }
 0x6f1   : > { %v22031_v42 = vld [vmem:[#allocation77_spill] sm:$0xff] }
 0x6f3   : > { %4388 = vmatmul.mubr.f32.gmra.mrb[160].mxu0 %v4169_v27  ;;  %3815 = vmatmul.mubr.f32.gmra.mrb[154].mxu1 %v3595_v38  ;;  %v3505_v27 = vld [vmem:[#allocation8 + $0x90] sm:$0xff]  ;;  %v4084_v38 = vld [vmem:[#allocation8 + $0x498] sm:$0xff] }
 0x6f4   : > { %4392 = vmatprep.mubr.f32.mxu0 %v4174_v47  ;;  %3819 = vmatprep.mubr.f32.mxu1 %v3600_v62  ;;  %v3510_v47 = vld [vmem:[#allocation8 + $0xb8] sm:$0xff]  ;;  %v4083_v62 = vld [vmem:[#allocation8 + $0x490] sm:$0xff] }
 0x6f7   : > { %4393 = vmatmul.mubr.f32.gmra.mrb[162].mxu0 %v4173_v49  ;;  %3820 = vmatmul.mubr.f32.gmra.mrb[156].mxu1 %v3599_v43  ;;  %v22032_v49 = vld [vmem:[#allocation78_spill] sm:$0xff]  ;;  %v3509_v43 = vld [vmem:[#allocation8 + $0xb0] sm:$0xff] }
 0x6f8   : > { %4397 = vmatprep.mubr.f32.mxu0 %v4178_v17  ;;  %3824 = vmatprep.mubr.f32.mxu1 %v3604_v40  ;;  %v4088_v17 = vld [vmem:[#allocation8 + $0x4b8] sm:$0xff] }
 0x6f9   : > { %v3514_v40 = vld [vmem:[#allocation8 + $0xd8] sm:$0xff] }
 0x6fb   : > { %4398 = vmatmul.mubr.f32.gmra.mrb[164].mxu0 %v4177_v10  ;;  %3825 = vmatmul.mubr.f32.gmra.mrb[158].mxu1 %v3603_v60  ;;  %v4087_v10 = vld [vmem:[#allocation8 + $0x4b0] sm:$0xff]  ;;  %v22033_v60 = vld [vmem:[#allocation79_spill] sm:$0xff] }
 0x6fc   : > { %4402 = vmatprep.mubr.f32.mxu0 %v4182_v11  ;;  %3829 = vmatprep.mubr.f32.mxu1 %v3608_v32  ;;  %v3513_v11 = vld [vmem:[#allocation8 + $0xd0] sm:$0xff]  ;;  %v3518_v32 = vld [vmem:[#allocation8 + $0xf8] sm:$0xff] }
 0x6ff   : > { %4403 = vmatmul.mubr.f32.gmra.mrb[166].mxu0 %v4181_v51  ;;  %3830 = vmatmul.mubr.f32.gmra.mrb[160].mxu1 %v3607_v0  ;;  %v4092_v51 = vld [vmem:[#allocation8 + $0x4d8] sm:$0xff]  ;;  %v22034_v0 = vld [vmem:[#allocation80_spill] sm:$0xff] }
 0x700   : > { %4407 = vmatprep.mubr.f32.mxu0 %v4186_v45  ;;  %3834 = vmatprep.mubr.f32.mxu1 %v3612_v41  ;;  %v3517_v45 = vld [vmem:[#allocation8 + $0xf0] sm:$0xff] }
 0x701   : > { %v4091_v41 = vld [vmem:[#allocation8 + $0x4d0] sm:$0xff] }
 0x703   : > { %4408 = vmatmul.mubr.f32.gmra.mrb[168].mxu0 %v4185_v33  ;;  %3835 = vmatmul.mubr.f32.gmra.mrb[162].mxu1 %v3611_v53  ;;  %v3522_v33 = vld [vmem:[#allocation8 + $0x118] sm:$0xff] }
 0x704   : > { %4412 = vmatprep.mubr.f32.mxu0 %v4190_v9  ;;  %3904 = vmatprep.mubr.f32.mxu1 %v3490_v54  ;;  %v4096_v53 = vld [vmem:[#allocation8 + $0x4f8] sm:$0xff]  ;;  %v3521_v54 = vld [vmem:[#allocation8 + $0x110] sm:$0xff] }
 0x705   : > { %v22035_v9 = vld [vmem:[#allocation81_spill] sm:$0xff] }
 0x707   : > { %4413 = vmatmul.mubr.f32.gmra.mrb[170].mxu0 %v4189_v21  ;;  %3905 = vmatmul.mubr.f32.vlgmr.msra.gmra.mrb[100].mxu1 %v3489_v8  ;;  %v4095_v21 = vld [vmem:[#allocation8 + $0x4f0] sm:$0xff]  ;;  %v3526_v8 = vld [vmem:[#allocation8 + $0x138] sm:$0xff] }
 0x708   : > { %4482 = vmatprep.mubr.f32.mxu0 %v4068_v12  ;;  %14662 = vmatpush1.bf16.msra.mxu1 %v18710_v44  ;;  %v4075_v44 = vld [vmem:[#allocation8 + $0x450] sm:$0xff]  ;;  %v4100_v12 = vld [vmem:[#allocation8 + $0x518] sm:$0xff] }
 0x709   : > { %3909 = vmatprep.mubr.f32.mxu1 %v3494_v46  ;;  %14663 = vmatprep.subr.bf16.mxu1 %v21937_v20  ;;  %v3525_v46 = vld [vmem:[#allocation8 + $0x130] sm:$0xff] }
 0x70b   : > { %4483 = vmatmul.mubr.f32.vlgmr.msra.gmra.mrb[108].mxu0 %v4067_v15  ;;  %3910 = vmatmul.mubr.f32.gmra.mrb[102].mxu1 %v3493_v29  ;;  %v4099_v15 = vld [vmem:[#allocation8 + $0x510] sm:$0xff]  ;;  %v3530_v29 = vld [vmem:[#allocation8 + $0x158] sm:$0xff] }
 0x70c   : > { %4487 = vmatprep.mubr.f32.mxu0 %v4072_v39  ;;  %14665 = vmatpush1.bf16.msra.mxu1 %v18728_v56  ;;  %v4079_v56 = vld [vmem:[#allocation8 + $0x470] sm:$0xff]  ;;  %v4104_v39 = vld [vmem:[#allocation8 + $0x538] sm:$0xff] }
 0x70d   : > { %3914 = vmatprep.mubr.f32.mxu1 %v3498_v50  ;;  %14666 = vmatprep.subr.bf16.mxu1 %v21937_v20  ;;  %v3529_v50 = vld [vmem:[#allocation8 + $0x150] sm:$0xff] }
 0x70f   : > { %4488 = vmatmul.mubr.f32.gmra.mrb[110].mxu0 %v4071_v4  ;;  %3915 = vmatmul.mubr.f32.gmra.mrb[104].mxu1 %v3497_v3  ;;  %v4103_v4 = vld [vmem:[#allocation8 + $0x530] sm:$0xff]  ;;  %v3534_v3 = vld [vmem:[#allocation8 + $0x178] sm:$0xff] }
 0x710   : > { %4492 = vmatprep.mubr.f32.mxu0 %v4076_v22  ;;  %14668 = vmatpush1.bf16.msra.mxu1 %v22030_v59  ;;  %v3533_v22 = vld [vmem:[#allocation8 + $0x170] sm:$0xff] }
 0x711   : > { %3919 = vmatprep.mubr.f32.mxu1 %v3502_v7  ;;  %14669 = vmatprep.subr.bf16.mxu1 %v21937_v20  ;;  %v4107_v7 = vld [vmem:[#allocation8 + $0x550] sm:$0xff] }
 0x712   : > { %v3537_v59 = vld [vmem:[#allocation8 + $0x190] sm:$0xff] }
 0x713   : > { %4493 = vmatmul.mubr.f32.gmra.mrb[112].mxu0 %v4075_v44  ;;  %3920 = vmatmul.mubr.f32.gmra.mrb[106].mxu1 %v3501_v34  ;;  %v3538_v44 = vld [vmem:[#allocation8 + $0x198] sm:$0xff]  ;;  %v4111_v34 = vld [vmem:[#allocation8 + $0x570] sm:$0xff] }
 0x714   : > { %4497 = vmatprep.mubr.f32.mxu0 %v4080_v63  ;;  %14671 = vmatpush1.bf16.msra.mxu1 %v22031_v42  ;;  %v3542_v63 = vld [vmem:[#allocation8 + $0x1b8] sm:$0xff] }
 0x715   : > { %3924 = vmatprep.mubr.f32.mxu1 %v3506_v24  ;;  %14672 = vmatprep.subr.bf16.mxu1 %v21937_v20  ;;  %v3541_v24 = vld [vmem:[#allocation8 + $0x1b0] sm:$0xff]  ;;  %v3546_v42 = vld [vmem:[#allocation8 + $0x1d8] sm:$0xff] }
 0x717   : > { %4498 = vmatmul.mubr.f32.gmra.mrb[114].mxu0 %v4079_v56  ;;  %3925 = vmatmul.mubr.f32.gmra.mrb[108].mxu1 %v3505_v27  ;;  %v4115_v56 = vld [vmem:[#allocation8 + $0x590] sm:$0xff] }
 0x718   : > { %4502 = vmatprep.mubr.f32.mxu0 %v4084_v38  ;;  %14674 = vmatpush1.bf16.msra.mxu1 %v22032_v49  ;;  %v3545_v27 = vld [vmem:[#allocation8 + $0x1d0] sm:$0xff] }
 0x719   : > { %3929 = vmatprep.mubr.f32.mxu1 %v3510_v47  ;;  %14675 = vmatprep.subr.bf16.mxu1 %v21937_v20  ;;  %v4119_v38 = vld [vmem:[#allocation8 + $0x5b0] sm:$0xff]  ;;  %v3550_v47 = vld [vmem:[#allocation8 + $0x1f8] sm:$0xff] }
 0x71a   : > { %v4123_v49 = vld [vmem:[#allocation8 + $0x5d0] sm:$0xff] }
 0x71b   : > { %4503 = vmatmul.mubr.f32.gmra.mrb[116].mxu0 %v4083_v62  ;;  %3930 = vmatmul.mubr.f32.gmra.mrb[110].mxu1 %v3509_v43  ;;  %v3549_v62 = vld [vmem:[#allocation8 + $0x1f0] sm:$0xff]  ;;  %v3554_v43 = vld [vmem:[#allocation8 + $0x218] sm:$0xff] }
 0x71c   : > { %4507 = vmatprep.mubr.f32.mxu0 %v4088_v17  ;;  %14677 = vmatpush1.bf16.msra.mxu1 %v22033_v60  ;;  %v3553_v17 = vld [vmem:[#allocation8 + $0x210] sm:$0xff] }
 0x71d   : > { %3934 = vmatprep.mubr.f32.mxu1 %v3514_v40  ;;  %14678 = vmatprep.subr.bf16.mxu1 %v21937_v20  ;;  %v4127_v40 = vld [vmem:[#allocation8 + $0x5f0] sm:$0xff] }
 0x71e   : > { %v3557_v60 = vld [vmem:[#allocation8 + $0x230] sm:$0xff] }
 0x71f   : > { %4508 = vmatmul.mubr.f32.gmra.mrb[118].mxu0 %v4087_v10  ;;  %3935 = vmatmul.mubr.f32.gmra.mrb[112].mxu1 %v3513_v11  ;;  %v3558_v10 = vld [vmem:[#allocation8 + $0x238] sm:$0xff]  ;;  %v4131_v11 = vld [vmem:[#allocation8 + $0x610] sm:$0xff] }
 0x720   : > { %14680 = vmatpush1.bf16.msra.mxu1 %v22034_v0  ;;  %3939 = vmatprep.mubr.f32.mxu1 %v3518_v32  ;;  %v3562_v32 = vld [vmem:[#allocation8 + $0x258] sm:$0xff]  ;;  %v4135_v0 = vld [vmem:[#allocation8 + $0x630] sm:$0xff] }
 0x721   : > { %14681 = vmatprep.subr.bf16.mxu1 %v21937_v20  ;;  %4512 = vmatprep.mubr.f32.mxu0 %v4092_v51  ;;  %v4136_v51 = vld [vmem:[#allocation8 + $0x638] sm:$0xff] }
 0x723   : > { %3940 = vmatmul.mubr.f32.gmra.mrb[114].mxu1 %v3517_v45  ;;  %4513 = vmatmul.mubr.f32.gmra.mrb[120].mxu0 %v4091_v41  ;;  %v3566_v45 = vld [vmem:[#allocation8 + $0x278] sm:$0xff] }
 0x724   : > { %14683 = vmatpush1.bf16.msra.mxu1 %v22035_v9  ;;  %3944 = vmatprep.mubr.f32.mxu1 %v3522_v33  ;;  %v4140_v41 = vld [vmem:[#allocation8 + $0x658] sm:$0xff]  ;;  %v3565_v33 = vld [vmem:[#allocation8 + $0x270] sm:$0xff] }
 0x725   : > { %14684 = vmatprep.subr.bf16.mxu1 %v21937_v20  ;;  %4517 = vmatprep.mubr.f32.mxu0 %v4096_v53  ;;  %v4139_v53 = vld [vmem:[#allocation8 + $0x650] sm:$0xff]  ;;  %v3570_v9 = vld [vmem:[#allocation8 + $0x298] sm:$0xff] }
 0x727   : > { %3945 = vmatmul.mubr.f32.gmra.mrb[116].mxu1 %v3521_v54  ;;  %4518 = vmatmul.mubr.f32.gmra.mrb[122].mxu0 %v4095_v21  ;;  %v4144_v54 = vld [vmem:[#allocation8 + $0x678] sm:$0xff]  ;;  %v3569_v21 = vld [vmem:[#allocation8 + $0x290] sm:$0xff] }
 0x728   : > { %14686 = vmatpush1.bf16.msra.mxu1 %v18939_v26  ;;  %3949 = vmatprep.mubr.f32.mxu1 %v3526_v8  ;;  %v4108_v26 = vld [vmem:[#allocation8 + $0x558] sm:$0xff]  ;;  %v4143_v8 = vld [vmem:[#allocation8 + $0x670] sm:$0xff] }
 0x729   : > { %14687 = vmatprep.subr.bf16.mxu1 %v21937_v20  ;;  %4522 = vmatprep.mubr.f32.mxu0 %v4100_v12  ;;  %v3574_v12 = vld [vmem:[#allocation8 + $0x2b8] sm:$0xff] }
 0x72b   : > { %3950 = vmatmul.mubr.f32.gmra.mrb[118].mxu1 %v3525_v46  ;;  %4523 = vmatmul.mubr.f32.gmra.mrb[124].mxu0 %v4099_v15  ;;  %v4148_v46 = vld [vmem:[#allocation8 + $0x698] sm:$0xff]  ;;  %v3573_v15 = vld [vmem:[#allocation8 + $0x2b0] sm:$0xff] }
 0x72c   : > { %14689 = vmatpush1.bf16.msra.mxu1 %v18962_v18  ;;  %3954 = vmatprep.mubr.f32.mxu1 %v3530_v29  ;;  %v4112_v18 = vld [vmem:[#allocation8 + $0x578] sm:$0xff]  ;;  %v4147_v29 = vld [vmem:[#allocation8 + $0x690] sm:$0xff] }
 0x72d   : > { %14690 = vmatprep.subr.bf16.mxu1 %v21937_v20  ;;  %4527 = vmatprep.mubr.f32.mxu0 %v4104_v39  ;;  %v3578_v39 = vld [vmem:[#allocation8 + $0x2d8] sm:$0xff] }
 0x72f   : > { %3955 = vmatmul.mubr.f32.gmra.mrb[120].mxu1 %v3529_v50  ;;  %4528 = vmatmul.mubr.f32.gmra.mrb[126].mxu0 %v4103_v4  ;;  %v4152_v50 = vld [vmem:[#allocation8 + $0x6b8] sm:$0xff]  ;;  %v3577_v4 = vld [vmem:[#allocation8 + $0x2d0] sm:$0xff] }
 0x730   : > { %14692 = vmatpush1.bf16.msra.mxu1 %v19001_v25  ;;  %3959 = vmatprep.mubr.f32.mxu1 %v3534_v3  ;;  %v4116_v25 = vld [vmem:[#allocation8 + $0x598] sm:$0xff]  ;;  %v4151_v3 = vld [vmem:[#allocation8 + $0x6b0] sm:$0xff] }
 0x731   : > { %14693 = vmatprep.subr.bf16.mxu1 %v21937_v20  ;;  %4532 = vmatprep.mubr.f32.mxu0 %v4108_v26  ;;  %v3582_v26 = vld [vmem:[#allocation8 + $0x2f8] sm:$0xff] }
 0x733   : > { %3960 = vmatmul.mubr.f32.gmra.mrb[122].mxu1 %v3533_v22  ;;  %4533 = vmatmul.mubr.f32.gmra.mrb[128].mxu0 %v4107_v7  ;;  %v4156_v22 = vld [vmem:[#allocation8 + $0x6d8] sm:$0xff]  ;;  %v3581_v7 = vld [vmem:[#allocation8 + $0x2f0] sm:$0xff] }
 0x734   : > { %14695 = vmatpush1.bf16.msra.mxu1 %v19029_v2  ;;  %3964 = vmatprep.mubr.f32.mxu1 %v3538_v44  ;;  %v4120_v2 = vld [vmem:[#allocation8 + $0x5b8] sm:$0xff]  ;;  %v4155_v44 = vld [vmem:[#allocation8 + $0x6d0] sm:$0xff] }
 0x735   : > { %14696 = vmatprep.subr.bf16.mxu1 %v21937_v20  ;;  %4537 = vmatprep.mubr.f32.mxu0 %v4112_v18  ;;  %v3586_v18 = vld [vmem:[#allocation8 + $0x318] sm:$0xff] }
 0x737   : > { %3965 = vmatmul.mubr.f32.gmra.mrb[124].mxu1 %v3537_v59  ;;  %4538 = vmatmul.mubr.f32.gmra.mrb[130].mxu0 %v4111_v34  ;;  %v4160_v59 = vld [vmem:[#allocation8 + $0x6f8] sm:$0xff]  ;;  %v3585_v34 = vld [vmem:[#allocation8 + $0x310] sm:$0xff] }
 0x738   : > { %14698 = vmatpush1.bf16.msra.mxu1 %v19055_v58  ;;  %3969 = vmatprep.mubr.f32.mxu1 %v3542_v63  ;;  %v4124_v58 = vld [vmem:[#allocation8 + $0x5d8] sm:$0xff]  ;;  %v4159_v63 = vld [vmem:[#allocation8 + $0x6f0] sm:$0xff] }
 0x739   : > { %14699 = vmatprep.subr.bf16.mxu1 %v21937_v20  ;;  %4542 = vmatprep.mubr.f32.mxu0 %v4116_v25  ;;  %v3590_v25 = vld [vmem:[#allocation8 + $0x338] sm:$0xff] }
 0x73b   : > { %3970 = vmatmul.mubr.f32.gmra.mrb[126].mxu1 %v3541_v24  ;;  %4543 = vmatmul.mubr.f32.gmra.mrb[132].mxu0 %v4115_v56  ;;  %v4164_v24 = vld [vmem:[#allocation8 + $0x718] sm:$0xff]  ;;  %v3589_v56 = vld [vmem:[#allocation8 + $0x330] sm:$0xff] }
 0x73c   : > { %14701 = vmatpush1.bf16.msra.mxu1 %v19077_v30  ;;  %3974 = vmatprep.mubr.f32.mxu1 %v3546_v42  ;;  %v4128_v30 = vld [vmem:[#allocation8 + $0x5f8] sm:$0xff]  ;;  %v4163_v42 = vld [vmem:[#allocation8 + $0x710] sm:$0xff] }
 0x73d   : > { %14702 = vmatprep.subr.bf16.mxu1 %v21937_v20  ;;  %4547 = vmatprep.mubr.f32.mxu0 %v4120_v2  ;;  %v3594_v2 = vld [vmem:[#allocation8 + $0x358] sm:$0xff] }
 0x73f   : > { %3975 = vmatmul.mubr.f32.gmra.mrb[128].mxu1 %v3545_v27  ;;  %4548 = vmatmul.mubr.f32.gmra.mrb[134].mxu0 %v4119_v38  ;;  %v4168_v27 = vld [vmem:[#allocation8 + $0x738] sm:$0xff]  ;;  %v3593_v38 = vld [vmem:[#allocation8 + $0x350] sm:$0xff] }
 0x740   : > { %14704 = vmatpush1.bf16.msra.mxu1 %v19099_v13  ;;  %3979 = vmatprep.mubr.f32.mxu1 %v3550_v47  ;;  %v4132_v13 = vld [vmem:[#allocation8 + $0x618] sm:$0xff]  ;;  %v4167_v47 = vld [vmem:[#allocation8 + $0x730] sm:$0xff] }
 0x741   : > { %14705 = vmatprep.subr.bf16.mxu1 %v21937_v20  ;;  %4552 = vmatprep.mubr.f32.mxu0 %v4124_v58  ;;  %v3598_v58 = vld [vmem:[#allocation8 + $0x378] sm:$0xff] }
 0x743   : > { %3980 = vmatmul.mubr.f32.gmra.mrb[130].mxu1 %v3549_v62  ;;  %4553 = vmatmul.mubr.f32.gmra.mrb[136].mxu0 %v4123_v49  ;;  %v4172_v62 = vld [vmem:[#allocation8 + $0x758] sm:$0xff]  ;;  %v3597_v49 = vld [vmem:[#allocation8 + $0x370] sm:$0xff] }
 0x744   : > { %14707 = vmatpush1.bf16.msra.mxu1 %v19124_v6  ;;  %3984 = vmatprep.mubr.f32.mxu1 %v3554_v43  ;;  %v3561_v6 = vld [vmem:[#allocation8 + $0x250] sm:$0xff] }
 0x745   : > { %14708 = vmatprep.subr.bf16.mxu1 %v21937_v20  ;;  %4557 = vmatprep.mubr.f32.mxu0 %v4128_v30  ;;  %v4171_v43 = vld [vmem:[#allocation8 + $0x750] sm:$0xff]  ;;  %v3602_v30 = vld [vmem:[#allocation8 + $0x398] sm:$0xff] }
 0x747   : > { %3985 = vmatmul.mubr.f32.gmra.mrb[132].mxu1 %v3553_v17  ;;  %4558 = vmatmul.mubr.f32.gmra.mrb[138].mxu0 %v4127_v40  ;;  %v4176_v17 = vld [vmem:[#allocation8 + $0x778] sm:$0xff]  ;;  %v3601_v40 = vld [vmem:[#allocation8 + $0x390] sm:$0xff] }
 0x748   : > { %3989 = vmatprep.mubr.f32.mxu1 %v3558_v10  ;;  %4562 = vmatprep.mubr.f32.mxu0 %v4132_v13  ;;  %v4175_v10 = vld [vmem:[#allocation8 + $0x770] sm:$0xff]  ;;  %v3606_v13 = vld [vmem:[#allocation8 + $0x3b8] sm:$0xff] }
 0x74b   : > { %3990 = vmatmul.mubr.f32.gmra.mrb[134].mxu1 %v3557_v60  ;;  %4563 = vmatmul.mubr.f32.gmra.mrb[140].mxu0 %v4131_v11  ;;  %v4180_v60 = vld [vmem:[#allocation8 + $0x798] sm:$0xff]  ;;  %v3605_v11 = vld [vmem:[#allocation8 + $0x3b0] sm:$0xff] }
 0x74c   : > { %3994 = vmatprep.mubr.f32.mxu1 %v3562_v32  ;;  %4567 = vmatprep.mubr.f32.mxu0 %v4136_v51  ;;  %v4179_v32 = vld [vmem:[#allocation8 + $0x790] sm:$0xff]  ;;  %v3610_v51 = vld [vmem:[#allocation8 + $0x3d8] sm:$0xff] }
 0x74f   : > { %3995 = vmatmul.mubr.f32.gmra.mrb[136].mxu1 %v3561_v6  ;;  %4568 = vmatmul.mubr.f32.gmra.mrb[142].mxu0 %v4135_v0  ;;  %v4184_v6 = vld [vmem:[#allocation8 + $0x7b8] sm:$0xff]  ;;  %v3609_v0 = vld [vmem:[#allocation8 + $0x3d0] sm:$0xff] }
 0x750   : > { %3999 = vmatprep.mubr.f32.mxu1 %v3566_v45  ;;  %4572 = vmatprep.mubr.f32.mxu0 %v4140_v41  ;;  %v4183_v45 = vld [vmem:[#allocation8 + $0x7b0] sm:$0xff]  ;;  %v3614_v41 = vld [vmem:[#allocation8 + $0x3f8] sm:$0xff] }
 0x753   : > { %4000 = vmatmul.mubr.f32.gmra.mrb[138].mxu1 %v3565_v33  ;;  %4573 = vmatmul.mubr.f32.gmra.mrb[144].mxu0 %v4139_v53  ;;  %v4188_v33 = vld [vmem:[#allocation8 + $0x7d8] sm:$0xff]  ;;  %v3613_v53 = vld [vmem:[#allocation8 + $0x3f0] sm:$0xff] }
 0x754   : > { %4004 = vmatprep.mubr.f32.mxu1 %v3570_v9  ;;  %4577 = vmatprep.mubr.f32.mxu0 %v4144_v54  ;;  %v4187_v9 = vld [vmem:[#allocation8 + $0x7d0] sm:$0xff]  ;;  %v4644_v54 = vld [vmem:[#allocation8 + $0x808] sm:$0xff] }
 0x757   : > { %4005 = vmatmul.mubr.f32.gmra.mrb[140].mxu1 %v3569_v21  ;;  %4578 = vmatmul.mubr.f32.gmra.mrb[146].mxu0 %v4143_v8  ;;  %v4192_v21 = vld [vmem:[#allocation8 + $0x7f8] sm:$0xff]  ;;  %v4643_v8 = vld [vmem:[#allocation8 + $0x800] sm:$0xff] }
 0x758   : > { %4009 = vmatprep.mubr.f32.mxu1 %v3574_v12  ;;  %4582 = vmatprep.mubr.f32.mxu0 %v4148_v46  ;;  %v4191_v12 = vld [vmem:[#allocation8 + $0x7f0] sm:$0xff]  ;;  %v4648_v46 = vld [vmem:[#allocation8 + $0x828] sm:$0xff] }
 0x75b   : > { %4010 = vmatmul.mubr.f32.gmra.mrb[142].mxu1 %v3573_v15  ;;  %4583 = vmatmul.mubr.f32.gmra.mrb[148].mxu0 %v4147_v29  ;;  %v4647_v15 = vld [vmem:[#allocation8 + $0x820] sm:$0xff]  ;;  %v4652_v29 = vld [vmem:[#allocation8 + $0x848] sm:$0xff] }
 0x75c   : > { %4014 = vmatprep.mubr.f32.mxu1 %v3578_v39  ;;  %4587 = vmatprep.mubr.f32.mxu0 %v4152_v50  ;;  %v4651_v39 = vld [vmem:[#allocation8 + $0x840] sm:$0xff]  ;;  %v4656_v50 = vld [vmem:[#allocation8 + $0x868] sm:$0xff] }
 0x75f   : > { %4015 = vmatmul.mubr.f32.gmra.mrb[144].mxu1 %v3577_v4  ;;  %4588 = vmatmul.mubr.f32.gmra.mrb[150].mxu0 %v4151_v3  ;;  %v4655_v4 = vld [vmem:[#allocation8 + $0x860] sm:$0xff] }
 0x760   : > { %4019 = vmatprep.mubr.f32.mxu1 %v3582_v26  ;;  %4592 = vmatprep.mubr.f32.mxu0 %v4156_v22  ;;  %v4659_v3 = vld [vmem:[#allocation8 + $0x880] sm:$0xff] }
 0x761   : > { %v4663_v26 = vld [vmem:[#allocation8 + $0x8a0] sm:$0xff] }
 0x762   : > { %v4667_v22 = vld [vmem:[#allocation8 + $0x8c0] sm:$0xff] }
 0x763   : > { %4020 = vmatmul.mubr.f32.gmra.mrb[146].mxu1 %v3581_v7  ;;  %4593 = vmatmul.mubr.f32.gmra.mrb[152].mxu0 %v4155_v44  ;;  %v4671_v7 = vld [vmem:[#allocation8 + $0x8e0] sm:$0xff] }
 0x764   : > { %4024 = vmatprep.mubr.f32.mxu1 %v3586_v18  ;;  %4597 = vmatprep.mubr.f32.mxu0 %v4160_v59  ;;  %v4675_v44 = vld [vmem:[#allocation8 + $0x900] sm:$0xff] }
 0x765   : > { %v4679_v18 = vld [vmem:[#allocation8 + $0x920] sm:$0xff] }
 0x766   : > { %v4683_v59 = vld [vmem:[#allocation8 + $0x940] sm:$0xff] }
 0x767   : > { %4025 = vmatmul.mubr.f32.gmra.mrb[148].mxu1 %v3585_v34  ;;  %4598 = vmatmul.mubr.f32.gmra.mrb[154].mxu0 %v4159_v63  ;;  %v4687_v34 = vld [vmem:[#allocation8 + $0x960] sm:$0xff] }
 0x768   : > { %4029 = vmatprep.mubr.f32.mxu1 %v3590_v25  ;;  %4602 = vmatprep.mubr.f32.mxu0 %v4164_v24  ;;  %v4691_v63 = vld [vmem:[#allocation8 + $0x980] sm:$0xff] }
 0x769   : > { %v4695_v25 = vld [vmem:[#allocation8 + $0x9a0] sm:$0xff] }
 0x76a   : > { %v4699_v24 = vld [vmem:[#allocation8 + $0x9c0] sm:$0xff] }
 0x76b   : > { %4030 = vmatmul.mubr.f32.gmra.mrb[150].mxu1 %v3589_v56  ;;  %4603 = vmatmul.mubr.f32.gmra.mrb[156].mxu0 %v4163_v42  ;;  %v4703_v56 = vld [vmem:[#allocation8 + $0x9e0] sm:$0xff] }
 0x76c   : > { %4034 = vmatprep.mubr.f32.mxu1 %v3594_v2  ;;  %4607 = vmatprep.mubr.f32.mxu0 %v4168_v27  ;;  %v4707_v42 = vld [vmem:[#allocation8 + $0xa00] sm:$0xff]  ;;  %v4712_v2 = vld [vmem:[#allocation8 + $0xa28] sm:$0xff] }
 0x76d   : > { %v4716_v27 = vld [vmem:[#allocation8 + $0xa48] sm:$0xff] }
 0x76f   : > { %4035 = vmatmul.mubr.f32.gmra.mrb[152].mxu1 %v3593_v38  ;;  %4608 = vmatmul.mubr.f32.gmra.mrb[158].mxu0 %v4167_v47  ;;  %v4715_v38 = vld [vmem:[#allocation8 + $0xa40] sm:$0xff]  ;;  %v4720_v47 = vld [vmem:[#allocation8 + $0xa68] sm:$0xff] }
 0x770   : > { %4039 = vmatprep.mubr.f32.mxu1 %v3598_v58  ;;  %4612 = vmatprep.mubr.f32.mxu0 %v4172_v62  ;;  %v4724_v58 = vld [vmem:[#allocation8 + $0xa88] sm:$0xff] }
 0x771   : > { %v4728_v62 = vld [vmem:[#allocation8 + $0xaa8] sm:$0xff] }
 0x773   : > { %4040 = vmatmul.mubr.f32.gmra.mrb[154].mxu1 %v3597_v49  ;;  %4613 = vmatmul.mubr.f32.gmra.mrb[160].mxu0 %v4171_v43  ;;  %v4732_v49 = vld [vmem:[#allocation8 + $0xac8] sm:$0xff] }
 0x774   : > { %4044 = vmatprep.mubr.f32.mxu1 %v3602_v30  ;;  %4617 = vmatprep.mubr.f32.mxu0 %v4176_v17  ;;  %v4731_v17 = vld [vmem:[#allocation8 + $0xac0] sm:$0xff] }
 0x777   : > { %4045 = vmatmul.mubr.f32.gmra.mrb[156].mxu1 %v3601_v40  ;;  %4618 = vmatmul.mubr.f32.gmra.mrb[162].mxu0 %v4175_v10  ;;  %v4736_v40 = vld [vmem:[#allocation8 + $0xae8] sm:$0xff] }
 0x778   : > { %4049 = vmatprep.mubr.f32.mxu1 %v3606_v13  ;;  %4622 = vmatprep.mubr.f32.mxu0 %v4180_v60 }
 0x77b   : > { %4050 = vmatmul.mubr.f32.gmra.mrb[158].mxu1 %v3605_v11  ;;  %4623 = vmatmul.mubr.f32.gmra.mrb[164].mxu0 %v4179_v32  ;;  %v4735_v32 = vld [vmem:[#allocation8 + $0xae0] sm:$0xff] }
 0x77c   : > { %4054 = vmatprep.mubr.f32.mxu1 %v3610_v51  ;;  %4627 = vmatprep.mubr.f32.mxu0 %v4184_v6  ;;  %v4740_v51 = vld [vmem:[#allocation8 + $0xb08] sm:$0xff] }
 0x77f   : > { %4055 = vmatmul.mubr.f32.gmra.mrb[160].mxu1 %v3609_v0  ;;  %4628 = vmatmul.mubr.f32.gmra.mrb[166].mxu0 %v4183_v45 }
 0x780   : > { %4059 = vmatprep.mubr.f32.mxu1 %v3614_v41  ;;  %4632 = vmatprep.mubr.f32.mxu0 %v4188_v33 }
 0x783   : > { %4060 = vmatmul.mubr.f32.gmra.mrb[162].mxu1 %v3613_v53  ;;  %4633 = vmatmul.mubr.f32.gmra.mrb[168].mxu0 %v4187_v9  ;;  %v4739_v53 = vld [vmem:[#allocation8 + $0xb00] sm:$0xff]  ;;  %v4744_v9 = vld [vmem:[#allocation8 + $0xb28] sm:$0xff] }
 0x784   : > { %4835 = vmatprep.mubr.f32.mxu1 %v4644_v54  ;;  %4637 = vmatprep.mubr.f32.mxu0 %v4192_v21 }
 0x787   : > { %4836 = vmatmul.mubr.f32.vlgmr.msra.gmra.mrb[164].mxu1 %v4643_v8  ;;  %4638 = vmatmul.mubr.f32.gmra.mrb[170].mxu0 %v4191_v12 }
 0x788   : > { %14710 = vmatpush1.bf16.msra.mxu1 %v19149_v57  ;;  %4840 = vmatprep.mubr.f32.mxu1 %v4648_v46  ;;  %v4660_v57 = vld [vmem:[#allocation8 + $0x888] sm:$0xff]  ;;  %v4743_v46 = vld [vmem:[#allocation8 + $0xb20] sm:$0xff] }
 0x789   : > { %14711 = vmatprep.subr.bf16.mxu1 %v21937_v20 }
 0x78b   : > { %4841 = vmatmul.mubr.f32.gmra.mrb[166].mxu1 %v4647_v15  ;;  %v4748_v15 = vld [vmem:[#allocation8 + $0xb48] sm:$0xff] }
 0x78c   : > { %14713 = vmatpush1.bf16.msra.mxu1 %v19170_v23  ;;  %4845 = vmatprep.mubr.f32.mxu1 %v4652_v29  ;;  %v4664_v23 = vld [vmem:[#allocation8 + $0x8a8] sm:$0xff] }
 0x78d   : > { %14714 = vmatprep.subr.bf16.mxu1 %v21937_v20 }
 0x78f   : > { %4846 = vmatmul.mubr.f32.gmra.mrb[168].mxu1 %v4651_v39 }
 0x790   : > { %14716 = vmatpush1.bf16.msra.mxu1 %v19193_v28  ;;  %4850 = vmatprep.mubr.f32.mxu1 %v4656_v50  ;;  %v4668_v28 = vld [vmem:[#allocation8 + $0x8c8] sm:$0xff] }
 0x791   : > { %14717 = vmatprep.subr.bf16.mxu1 %v21937_v20 }
 0x793   : > { %4851 = vmatmul.mubr.f32.gmra.mrb[170].mxu1 %v4655_v4 }
 0x794   : > { %14719 = vmatpush1.bf16.msra.mxu1 %v19202_v36  ;;  %4855 = vmatprep.mubr.f32.mxu1 %v4660_v57  ;;  %v4672_v36 = vld [vmem:[#allocation8 + $0x8e8] sm:$0xff] }
 0x795   : > { %14720 = vmatprep.subr.bf16.mxu1 %v21937_v20 }
 0x797   : > { %4856 = vmatmul.mubr.f32.gmra.mrb[172].mxu1 %v4659_v3  ;;  %v4747_v3 = vld [vmem:[#allocation8 + $0xb40] sm:$0xff] }
 0x798   : > { %14722 = vmatpush1.bf16.msra.mxu1 %v19217_v19  ;;  %4860 = vmatprep.mubr.f32.mxu1 %v4664_v23  ;;  %v4676_v19 = vld [vmem:[#allocation8 + $0x908] sm:$0xff] }
 0x799   : > { %14723 = vmatprep.subr.bf16.mxu1 %v21937_v20  ;;  %v4752_v23 = vld [vmem:[#allocation8 + $0xb68] sm:$0xff] }
 0x79b   : > { %4861 = vmatmul.mubr.f32.gmra.mrb[174].mxu1 %v4663_v26 }
 0x79c   : > { %14725 = vmatpush1.bf16.msra.mxu1 %v19231_v31  ;;  %4865 = vmatprep.mubr.f32.mxu1 %v4668_v28  ;;  %v4680_v31 = vld [vmem:[#allocation8 + $0x928] sm:$0xff] }
 0x79d   : > { %14726 = vmatprep.subr.bf16.mxu1 %v21937_v20 }
 0x79f   : > { %4866 = vmatmul.mubr.f32.gmra.mrb[176].mxu1 %v4667_v22 }
 0x7a0   : > { %14728 = vmatpush1.bf16.msra.mxu1 %v19243_v16  ;;  %4870 = vmatprep.mubr.f32.mxu1 %v4672_v36  ;;  %v4684_v16 = vld [vmem:[#allocation8 + $0x948] sm:$0xff] }
 0x7a1   : > { %14729 = vmatprep.subr.bf16.mxu1 %v21937_v20 }
 0x7a3   : > { %4871 = vmatmul.mubr.f32.gmra.mrb[178].mxu1 %v4671_v7  ;;  %v4751_v7 = vld [vmem:[#allocation8 + $0xb60] sm:$0xff] }
 0x7a4   : > { %14731 = vmatpush1.bf16.msra.mxu1 %v19248_v1  ;;  %4875 = vmatprep.mubr.f32.mxu1 %v4676_v19  ;;  %v4688_v1 = vld [vmem:[#allocation8 + $0x968] sm:$0xff] }
 0x7a5   : > { %14732 = vmatprep.subr.bf16.mxu1 %v21937_v20  ;;  %v4756_v19 = vld [vmem:[#allocation8 + $0xb88] sm:$0xff] }
 0x7a7   : > { %4876 = vmatmul.mubr.f32.gmra.mrb[180].mxu1 %v4675_v44 }
 0x7a8   : > { %14734 = vmatpush1.bf16.msra.mxu1 %v19252_v14  ;;  %4880 = vmatprep.mubr.f32.mxu1 %v4680_v31  ;;  %v4692_v14 = vld [vmem:[#allocation8 + $0x988] sm:$0xff] }
 0x7a9   : > { %14735 = vmatprep.subr.bf16.mxu1 %v21937_v20 }
 0x7ab   : > { %4881 = vmatmul.mubr.f32.gmra.mrb[182].mxu1 %v4679_v18 }
 0x7ac   : > { %14737 = vmatpush1.bf16.msra.mxu1 %v19260_v61  ;;  %4885 = vmatprep.mubr.f32.mxu1 %v4684_v16  ;;  %v4696_v61 = vld [vmem:[#allocation8 + $0x9a8] sm:$0xff] }
 0x7ad   : > { %14738 = vmatprep.subr.bf16.mxu1 %v21937_v20 }
 0x7af   : > { %4886 = vmatmul.mubr.f32.gmra.mrb[184].mxu1 %v4683_v59 }
 0x7b0   : > { %14740 = vmatpush1.bf16.msra.mxu1 %v19268_v48  ;;  %4890 = vmatprep.mubr.f32.mxu1 %v4688_v1  ;;  %v4700_v48 = vld [vmem:[#allocation8 + $0x9c8] sm:$0xff]  ;;  %v4755_v1 = vld [vmem:[#allocation8 + $0xb80] sm:$0xff] }
 0x7b1   : > { %14741 = vmatprep.subr.bf16.mxu1 %v21937_v20 }
 0x7b3   : > { %4891 = vmatmul.mubr.f32.gmra.mrb[186].mxu1 %v4687_v34  ;;  %v4760_v34 = vld [vmem:[#allocation8 + $0xba8] sm:$0xff] }
 0x7b4   : > { %14743 = vmatpush1.bf16.msra.mxu1 %v19276_v55  ;;  %4895 = vmatprep.mubr.f32.mxu1 %v4692_v14  ;;  %v4704_v55 = vld [vmem:[#allocation8 + $0x9e8] sm:$0xff] }
 0x7b5   : > { %14744 = vmatprep.subr.bf16.mxu1 %v21937_v20 }
 0x7b7   : > { %4896 = vmatmul.mubr.f32.gmra.mrb[188].mxu1 %v4691_v63 }
 0x7b8   : > { %14746 = vmatpush1.bf16.msra.mxu1 %v19284_v5  ;;  %4900 = vmatprep.mubr.f32.mxu1 %v4696_v61  ;;  %v4708_v5 = vld [vmem:[#allocation8 + $0xa08] sm:$0xff] }
 0x7b9   : > { %14747 = vmatprep.subr.bf16.mxu1 %v21937_v20 }
 0x7bb   : > { %4901 = vmatmul.mubr.f32.gmra.mrb[190].mxu1 %v4695_v25 }
 0x7bc   : > { %14749 = vmatpush1.bf16.msra.mxu1 %v19293_v37  ;;  %4905 = vmatprep.mubr.f32.mxu1 %v4700_v48  ;;  %v4711_v37 = vld [vmem:[#allocation8 + $0xa20] sm:$0xff] }
 0x7bd   : > { %14750 = vmatprep.subr.bf16.mxu1 %v21937_v20  ;;  %v4759_v48 = vld [vmem:[#allocation8 + $0xba0] sm:$0xff] }
 0x7bf   : > { %4906 = vmatmul.mubr.f32.gmra.mrb[192].mxu1 %v4699_v24  ;;  %v4764_v24 = vld [vmem:[#allocation8 + $0xbc8] sm:$0xff] }
 0x7c0   : > { %14752 = vmatpush1.bf16.msra.mxu1 %v19298_v35  ;;  %4910 = vmatprep.mubr.f32.mxu1 %v4704_v55  ;;  %v4719_v35 = vld [vmem:[#allocation8 + $0xa60] sm:$0xff] }
 0x7c1   : > { %14753 = vmatprep.subr.bf16.mxu1 %v21937_v20  ;;  %v4723_v20 = vld [vmem:[#allocation8 + $0xa80] sm:$0xff] }
 0x7c3   : > { %4911 = vmatmul.mubr.f32.gmra.mrb[194].mxu1 %v4703_v56 }
 0x7c4   : > { %14755 = vmatpush1.bf16.msra.mxu1 %v19305_v52  ;;  %4915 = vmatprep.mubr.f32.mxu1 %v4708_v5  ;;  %v4727_v52 = vld [vmem:[#allocation8 + $0xaa0] sm:$0xff] }
 0x7c7   : > { %4916 = vmatmul.mubr.f32.gmra.mrb[196].mxu1 %v4707_v42  ;;  %v4726_v42 = vld [vmem:[#allocation8 + $0xa98] sm:$0xff] }
 0x7c8   : > { %4920 = vmatprep.mubr.f32.mxu1 %v4712_v2 }
 0x7cb   : > { %4921 = vmatmul.mubr.f32.gmra.mrb[198].mxu1 %v4711_v37  ;;  %v4763_v37 = vld [vmem:[#allocation8 + $0xbc0] sm:$0xff] }
 0x7cc   : > { %4925 = vmatprep.mubr.f32.mxu1 %v4716_v27  ;;  %v4768_v27 = vld [vmem:[#allocation8 + $0xbe8] sm:$0xff] }
 0x7cf   : > { %4926 = vmatmul.mubr.f32.gmra.mrb[200].mxu1 %v4715_v38 }
 0x7d0   : > { %4930 = vmatprep.mubr.f32.mxu1 %v4720_v47 }
 0x7d3   : > { %4931 = vmatmul.mubr.f32.gmra.mrb[202].mxu1 %v4719_v35 }
 0x7d4   : > { %4935 = vmatprep.mubr.f32.mxu1 %v4724_v58 }
 0x7d7   : > { %4936 = vmatmul.mubr.f32.gmra.mrb[204].mxu1 %v4723_v20  ;;  %v4767_v20 = vld [vmem:[#allocation8 + $0xbe0] sm:$0xff] }
 0x7d8   : > { %4940 = vmatprep.mubr.f32.mxu1 %v4728_v62  ;;  %v4646_v62 = vld [vmem:[#allocation8 + $0x818] sm:$0xff] }
 0x7da   : > { %v19379_v43 = vpop.f32.mrb[100].mxu1 }
 0x7db   : > { %v3908_v30 = vpop.f32.mrb[101].mxu1  ;;  %4941 = vmatmul.mubr.f32.gmra.mrb[206].mxu1 %v4727_v52 }
 0x7dc   : > { %4945 = vmatprep.mubr.f32.mxu1 %v4732_v49 }
 0x7de   : > { %v4484_v10 = vpop.f32.mrb[108].mxu0  ;;  %v19381_v13 = vpop.f32.mrb[102].mxu1 }
 0x7df   : > { %v4486_v60 = vpop.f32.mrb[109].mxu0  ;;  %v3913_v11 = vpop.f32.mrb[103].mxu1  ;;  %4946 = vmatmul.mubr.f32.gmra.mrb[208].mxu1 %v4731_v17 }
 0x7e0   : > { %4950 = vmatprep.mubr.f32.mxu1 %v4736_v40  ;;  %v4650_v60 = vld [vmem:[#allocation8 + $0x838] sm:$0xff] }
 0x7e2   : > { %v4489_v6 = vpop.f32.mrb[110].mxu0  ;;  %v19383_v0 = vpop.f32.mrb[104].mxu1 }
 0x7e3   : > { %v15541_v45 = vpack.i.bf16 %v4489_v6, %v4484_v10  ;;  %v3918_v41 = vpop.f32.mrb[105].mxu1  ;;  %v4491_v33 = vpop.f32.mrb[111].mxu0  ;;  %4951 = vmatmul.mubr.f32.gmra.mrb[210].mxu1 %v4735_v32  ;;  %v4645_v10 = vld [vmem:[#allocation8 + $0x810] sm:$0xff] }
 0x7e4   : > { %4955 = vmatprep.mubr.f32.mxu1 %v4740_v51  ;;  %v4654_v41 = vld [vmem:[#allocation8 + $0x858] sm:$0xff] }
 0x7e5   : > { %15542 = vrot.lane.b32.xlu0 %v15541_v45, %s17024_s17  ;;  %v4649_v45 = vld [vmem:[#allocation8 + $0x830] sm:$0xff] }
 0x7e6   : > { %v4494_v54 = vpop.f32.mrb[112].mxu0  ;;  %v19386_v21 = vpop.f32.mrb[106].mxu1 }
 0x7e7   : > { %v4496_v8 = vpop.f32.mrb[113].mxu0  ;;  %v3923_v12 = vpop.f32.mrb[107].mxu1  ;;  %4956 = vmatmul.mubr.f32.gmra.mrb[212].mxu1 %v4739_v53 }
 0x7e8   : > { %4960 = vmatprep.mubr.f32.mxu1 %v4744_v9  ;;  %v4653_v12 = vld [vmem:[#allocation8 + $0x850] sm:$0xff] }
 0x7ea   : > { %v4499_v29 = vpop.f32.mrb[114].mxu0  ;;  %v19388_v39 = vpop.f32.mrb[108].mxu1 }
 0x7eb   : > { %v15546_v50 = vpack.i.bf16 %v4499_v29, %v4494_v54  ;;  %v3928_v4 = vpop.f32.mrb[109].mxu1  ;;  %v4501_v57 = vpop.f32.mrb[115].mxu0  ;;  %4961 = vmatmul.mubr.f32.gmra.mrb[214].mxu1 %v4743_v46  ;;  %v4658_v46 = vld [vmem:[#allocation8 + $0x878] sm:$0xff] }
 0x7ec   : > { %4965 = vmatprep.mubr.f32.mxu1 %v4748_v15  ;;  %v4657_v57 = vld [vmem:[#allocation8 + $0x870] sm:$0xff]  ;;  %v4722_v54 = vld [vmem:[#allocation8 + $0xa78] sm:$0xff] }
 0x7ed   : > { %15547 = vrot.lane.b32.xlu0 %v15546_v50, %s17024_s17 }
 0x7ee   : > { %v4504_v26 = vpop.f32.mrb[116].mxu0  ;;  %v19391_v28 = vpop.f32.mrb[110].mxu1 }
 0x7ef   : > { %v4506_v22 = vpop.f32.mrb[117].mxu0  ;;  %v3933_v36 = vpop.f32.mrb[111].mxu1  ;;  %4966 = vmatmul.mubr.f32.gmra.mrb[216].mxu1 %v4747_v3  ;;  %v4662_v3 = vld [vmem:[#allocation8 + $0x898] sm:$0xff] }
 0x7f0   : > { %4970 = vmatprep.mubr.f32.mxu1 %v4752_v23 }
 0x7f2   : > { %v4509_v44 = vpop.f32.mrb[118].mxu0  ;;  %v19393_v31 = vpop.f32.mrb[112].mxu1 }
 0x7f3   : > { %v15551_v18 = vpack.i.bf16 %v4509_v44, %v4504_v26  ;;  %v3938_v16 = vpop.f32.mrb[113].mxu1  ;;  %4971 = vmatmul.mubr.f32.gmra.mrb[218].mxu1 %v4751_v7  ;;  %v4511_v59 = vpop.f32.mrb[119].mxu0  ;;  %v4666_v44 = vld [vmem:[#allocation8 + $0x8b8] sm:$0xff] }
 0x7f4   : > { %4975 = vmatprep.mubr.f32.mxu1 %v4756_v19  ;;  %v4661_v19 = vld [vmem:[#allocation8 + $0x890] sm:$0xff] }
 0x7f5   : > { %15552 = vrot.lane.b32.xlu0 %v15551_v18, %s17024_s17 }
 0x7f6   : > { %v19396_v14 = vpop.f32.mrb[114].mxu1  ;;  %v19398_v63 = vpop.f32.mrb[120].mxu0 }
 0x7f7   : > { %v3943_v61 = vpop.f32.mrb[115].mxu1  ;;  %4976 = vmatmul.mubr.f32.gmra.mrb[220].mxu1 %v4755_v1  ;;  %v4516_v25 = vpop.f32.mrb[121].mxu0 }
 0x7f8   : > { %4980 = vmatprep.mubr.f32.mxu1 %v4760_v34  ;;  %v4665_v34 = vld [vmem:[#allocation8 + $0x8b0] sm:$0xff]  ;;  %v4670_v61 = vld [vmem:[#allocation8 + $0x8d8] sm:$0xff] }
 0x7fa   : > { %v19400_v55 = vpop.f32.mrb[116].mxu1  ;;  %v19402_v56 = vpop.f32.mrb[122].mxu0 }
 0x7fb   : > { %v3948_v5 = vpop.f32.mrb[117].mxu1  ;;  %4981 = vmatmul.mubr.f32.gmra.mrb[222].mxu1 %v4759_v48  ;;  %v4521_v2 = vpop.f32.mrb[123].mxu0 }
 0x7fc   : > { %4985 = vmatprep.mubr.f32.mxu1 %v4764_v24  ;;  %v4718_v5 = vld [vmem:[#allocation8 + $0xa58] sm:$0xff] }
 0x7fe   : > { %v19406_v38 = vpop.f32.mrb[118].mxu1  ;;  %v19408_v47 = vpop.f32.mrb[124].mxu0 }
 0x7ff   : > { %v3953_v35 = vpop.f32.mrb[119].mxu1  ;;  %4986 = vmatmul.mubr.f32.gmra.mrb[224].mxu1 %v4763_v37  ;;  %v4526_v58 = vpop.f32.mrb[125].mxu0  ;;  %v4669_v37 = vld [vmem:[#allocation8 + $0x8d0] sm:$0xff] }
 0x800   : > { %4990 = vmatprep.mubr.f32.mxu1 %v4768_v27  ;;  %v4674_v27 = vld [vmem:[#allocation8 + $0x8f8] sm:$0xff] }
 0x802   : > { %v19410_v52 = vpop.f32.mrb[120].mxu1  ;;  %v19412_v49 = vpop.f32.mrb[126].mxu0 }
 0x803   : > { %v3958_v30 = vpop.f32.mrb[121].mxu1  ;;  %4991 = vmatmul.mubr.f32.gmra.mrb[226].mxu1 %v4767_v20  ;;  %v4531_v40 = vpop.f32.mrb[127].mxu0 }
 0x804   : > { %5060 = vmatprep.mubr.f32.mxu1 %v4646_v62  ;;  %v4673_v30 = vld [vmem:[#allocation8 + $0x8f0] sm:$0xff]  ;;  %v4678_v40 = vld [vmem:[#allocation8 + $0x918] sm:$0xff] }
 0x806   : > { %v19416_v11 = vpop.f32.mrb[122].mxu1  ;;  %v19418_v32 = vpop.f32.mrb[128].mxu0 }
 0x807   : > { %v3963_v51 = vpop.f32.mrb[123].mxu1  ;;  %5061 = vmatmul.mubr.f32.vlgmr.msra.gmra.mrb[164].mxu1 %v4645_v10  ;;  %v4536_v6 = vpop.f32.mrb[129].mxu0 }
 0x808   : > { %5065 = vmatprep.mubr.f32.mxu1 %v4650_v60 }
 0x80a   : > { %v19420_v33 = vpop.f32.mrb[124].mxu1  ;;  %v19422_v53 = vpop.f32.mrb[130].mxu0 }
 0x80b   : > { %v3968_v9 = vpop.f32.mrb[125].mxu1  ;;  %5066 = vmatmul.mubr.f32.gmra.mrb[166].mxu1 %v4649_v45  ;;  %v4541_v8 = vpop.f32.mrb[131].mxu0 }
 0x80c   : > { %5070 = vmatprep.mubr.f32.mxu1 %v4654_v41  ;;  %v4677_v41 = vld [vmem:[#allocation8 + $0x910] sm:$0xff]  ;;  %v4682_v9 = vld [vmem:[#allocation8 + $0x938] sm:$0xff] }
 0x80e   : > { %v19426_v15 = vpop.f32.mrb[126].mxu1  ;;  %v19428_v29 = vpop.f32.mrb[132].mxu0 }
 0x80f   : > { %v3973_v50 = vpop.f32.mrb[127].mxu1  ;;  %5071 = vmatmul.mubr.f32.gmra.mrb[168].mxu1 %v4653_v12  ;;  %v4546_v4 = vpop.f32.mrb[133].mxu0 }
 0x810   : > { %5075 = vmatprep.mubr.f32.mxu1 %v4658_v46  ;;  %v4681_v4 = vld [vmem:[#allocation8 + $0x930] sm:$0xff] }
 0x812   : > { %v19430_v23 = vpop.f32.mrb[128].mxu1  ;;  %v19432_v26 = vpop.f32.mrb[134].mxu0 }
 0x813   : > { %v3978_v22 = vpop.f32.mrb[129].mxu1  ;;  %5076 = vmatmul.mubr.f32.gmra.mrb[170].mxu1 %v4657_v57  ;;  %v4551_v7 = vpop.f32.mrb[135].mxu0  ;;  %v4686_v57 = vld [vmem:[#allocation8 + $0x958] sm:$0xff] }
 0x814   : > { %5080 = vmatprep.mubr.f32.mxu1 %v4662_v3 }
 0x816   : > { %v19436_v18 = vpop.f32.mrb[130].mxu1  ;;  %v19438_v16 = vpop.f32.mrb[136].mxu0 }
 0x817   : > { %v3983_v59 = vpop.f32.mrb[131].mxu1  ;;  %5081 = vmatmul.mubr.f32.gmra.mrb[172].mxu1 %v4661_v19  ;;  %v4556_v1 = vpop.f32.mrb[137].mxu0  ;;  %v4714_v19 = vld [vmem:[#allocation8 + $0xa38] sm:$0xff] }
 0x818   : > { %5085 = vmatprep.mubr.f32.mxu1 %v4666_v44  ;;  %v4685_v59 = vld [vmem:[#allocation8 + $0x950] sm:$0xff]  ;;  %v4690_v1 = vld [vmem:[#allocation8 + $0x978] sm:$0xff] }
 0x81a   : > { %v19440_v25 = vpop.f32.mrb[132].mxu1  ;;  %v19442_v48 = vpop.f32.mrb[138].mxu0 }
 0x81b   : > { %v3988_v24 = vpop.f32.mrb[133].mxu1  ;;  %5086 = vmatmul.mubr.f32.gmra.mrb[174].mxu1 %v4665_v34  ;;  %v4561_v2 = vpop.f32.mrb[139].mxu0 }
 0x81c   : > { %5090 = vmatprep.mubr.f32.mxu1 %v4670_v61 }
 0x81e   : > { %v19446_v35 = vpop.f32.mrb[134].mxu1  ;;  %v19448_v58 = vpop.f32.mrb[140].mxu0 }
 0x81f   : > { %v3993_v20 = vpop.f32.mrb[135].mxu1  ;;  %5091 = vmatmul.mubr.f32.gmra.mrb[176].mxu1 %v4669_v37  ;;  %v4566_v62 = vpop.f32.mrb[141].mxu0  ;;  %v4689_v37 = vld [vmem:[#allocation8 + $0x970] sm:$0xff] }
 0x820   : > { %5095 = vmatprep.mubr.f32.mxu1 %v4674_v27  ;;  %v4694_v27 = vld [vmem:[#allocation8 + $0x998] sm:$0xff] }
 0x822   : > { %v19450_v10 = vpop.f32.mrb[136].mxu1  ;;  %v19452_v60 = vpop.f32.mrb[142].mxu0 }
 0x823   : > { %v3998_v51 = vpop.f32.mrb[137].mxu1  ;;  %5096 = vmatmul.mubr.f32.gmra.mrb[178].mxu1 %v4673_v30  ;;  %v4571_v45 = vpop.f32.mrb[143].mxu0 }
 0x824   : > { %5100 = vmatprep.mubr.f32.mxu1 %v4678_v40  ;;  %v4693_v45 = vld [vmem:[#allocation8 + $0x990] sm:$0xff] }
 0x826   : > { %v19456_v8 = vpop.f32.mrb[138].mxu1  ;;  %v19458_v12 = vpop.f32.mrb[144].mxu0 }
 0x827   : > { %v4003_v46 = vpop.f32.mrb[139].mxu1  ;;  %5101 = vmatmul.mubr.f32.gmra.mrb[180].mxu1 %v4677_v41  ;;  %v4576_v50 = vpop.f32.mrb[145].mxu0  ;;  %v4698_v41 = vld [vmem:[#allocation8 + $0x9b8] sm:$0xff] }
 0x828   : > { %5105 = vmatprep.mubr.f32.mxu1 %v4682_v9 }
 0x82a   : > { %v19460_v3 = vpop.f32.mrb[140].mxu1  ;;  %v19462_v22 = vpop.f32.mrb[146].mxu0 }
 0x82b   : > { %v4008_v7 = vpop.f32.mrb[141].mxu1  ;;  %5106 = vmatmul.mubr.f32.gmra.mrb[182].mxu1 %v4681_v4  ;;  %v4581_v44 = vpop.f32.mrb[147].mxu0 }
 0x82c   : > { %5110 = vmatprep.mubr.f32.mxu1 %v4686_v57  ;;  %v4697_v57 = vld [vmem:[#allocation8 + $0x9b0] sm:$0xff]  ;;  %v4702_v7 = vld [vmem:[#allocation8 + $0x9d8] sm:$0xff] }
 0x82e   : > { %v19466_v34 = vpop.f32.mrb[142].mxu1  ;;  %v19468_v61 = vpop.f32.mrb[148].mxu0 }
 0x82f   : > { %v4013_v24 = vpop.f32.mrb[143].mxu1  ;;  %5111 = vmatmul.mubr.f32.gmra.mrb[184].mxu1 %v4685_v59  ;;  %v4586_v2 = vpop.f32.mrb[149].mxu0 }
 0x830   : > { %5115 = vmatprep.mubr.f32.mxu1 %v4690_v1  ;;  %v4709_v24 = vld [vmem:[#allocation8 + $0xa10] sm:$0xff] }
 0x832   : > { %v19470_v20 = vpop.f32.mrb[144].mxu1  ;;  %v19472_v62 = vpop.f32.mrb[150].mxu0 }
 0x833   : > { %v4018_v30 = vpop.f32.mrb[145].mxu1  ;;  %5116 = vmatmul.mubr.f32.gmra.mrb[186].mxu1 %v4689_v37  ;;  %v4591_v40 = vpop.f32.mrb[151].mxu0  ;;  %v4701_v37 = vld [vmem:[#allocation8 + $0x9d0] sm:$0xff] }
 0x834   : > { %5120 = vmatprep.mubr.f32.mxu1 %v4694_v27  ;;  %v4706_v27 = vld [vmem:[#allocation8 + $0x9f8] sm:$0xff] }
 0x836   : > { %v19476_v9 = vpop.f32.mrb[146].mxu1  ;;  %v19478_v46 = vpop.f32.mrb[152].mxu0 }
 0x837   : > { %v4023_v50 = vpop.f32.mrb[147].mxu1  ;;  %5121 = vmatmul.mubr.f32.gmra.mrb[188].mxu1 %v4693_v45  ;;  %v4596_v4 = vpop.f32.mrb[153].mxu0 }
 0x838   : > { %5125 = vmatprep.mubr.f32.mxu1 %v4698_v41  ;;  %v4705_v50 = vld [vmem:[#allocation8 + $0x9f0] sm:$0xff]  ;;  %v4710_v4 = vld [vmem:[#allocation8 + $0xa18] sm:$0xff] }
 0x83a   : > { %v19480_v44 = vpop.f32.mrb[148].mxu1  ;;  %v19482_v59 = vpop.f32.mrb[154].mxu0 }
 0x83b   : > { %22036 = vst [vmem:[#allocation82_spill] sm:$0xff] %v19480_v44  ;;  %v4028_v1 = vpop.f32.mrb[149].mxu1  ;;  %5126 = vmatmul.mubr.f32.gmra.mrb[190].mxu1 %v4697_v57  ;;  %v4601_v2 = vpop.f32.mrb[155].mxu0  ;;  %v15839_v44 = vld [vmem:[#allocation2 + $0x60] ss:$8 sps:$4 sm:$0xff]  }
 0x83c   : > { %5130 = vmatprep.mubr.f32.mxu1 %v4702_v7  ;;  %v4717_v7 = vld [vmem:[#allocation8 + $0xa50] sm:$0xff] }
 0x83e   : > { %v19486_v30 = vpop.f32.mrb[150].mxu1  ;;  %v19488_v40 = vpop.f32.mrb[156].mxu0 }
 0x83f   : > { %v4033_v45 = vpop.f32.mrb[151].mxu1  ;;  %5131 = vmatmul.mubr.f32.gmra.mrb[192].mxu1 %v4701_v37  ;;  %v4606_v41 = vpop.f32.mrb[157].mxu0 }
 0x840   : > { %5135 = vmatprep.mubr.f32.mxu1 %v4706_v27  ;;  %v4713_v41 = vld [vmem:[#allocation8 + $0xa30] sm:$0xff] }
 0x842   : > { %v19490_v51 = vpop.f32.mrb[152].mxu1  ;;  %v19492_v57 = vpop.f32.mrb[158].mxu0 }
 0x843   : > { %22037 = vst [vmem:[#allocation83_spill] sm:$0xff] %v19490_v51  ;;  %v4038_v1 = vpop.f32.mrb[153].mxu1  ;;  %5136 = vmatmul.mubr.f32.gmra.mrb[194].mxu1 %v4705_v50  ;;  %v4611_v2 = vpop.f32.mrb[159].mxu0 }
 0x844   : > { %5140 = vmatprep.mubr.f32.mxu1 %v4710_v4  ;;  %v4725_v4 = vld [vmem:[#allocation8 + $0xa90] sm:$0xff] }
 0x846   : > { %v19496_v6 = vpop.f32.mrb[154].mxu1  ;;  %v19498_v37 = vpop.f32.mrb[160].mxu0 }
 0x847   : > { %22038 = vst [vmem:[#allocation84_spill] sm:$0xff] %v19496_v6  ;;  %v4043_v27 = vpop.f32.mrb[155].mxu1  ;;  %5141 = vmatmul.mubr.f32.gmra.mrb[196].mxu1 %v4709_v24  ;;  %v4616_v45 = vpop.f32.mrb[161].mxu0 }
 0x848   : > { %5145 = vmatprep.mubr.f32.mxu1 %v4714_v19  ;;  %v4721_v45 = vld [vmem:[#allocation8 + $0xa70] sm:$0xff] }
 0x84a   : > { %v19500_v36 = vpop.f32.mrb[156].mxu1  ;;  %v19502_v50 = vpop.f32.mrb[162].mxu0 }
 0x84b   : > { %22039 = vst [vmem:[#allocation85_spill] sm:$0xff] %v19500_v36  ;;  %v4048_v1 = vpop.f32.mrb[157].mxu1  ;;  %5146 = vmatmul.mubr.f32.gmra.mrb[198].mxu1 %v4713_v41  ;;  %v4621_v2 = vpop.f32.mrb[163].mxu0 }
 0x84c   : > { %5150 = vmatprep.mubr.f32.mxu1 %v4718_v5  ;;  %v4737_v5 = vld [vmem:[#allocation8 + $0xaf0] sm:$0xff] }
 0x84e   : > { %v19506_v17 = vpop.f32.mrb[158].mxu1  ;;  %v19508_v24 = vpop.f32.mrb[164].mxu0 }
 0x84f   : > { %22040 = vst [vmem:[#allocation86_spill] sm:$0xff] %v19506_v17  ;;  %v4053_v19 = vpop.f32.mrb[159].mxu1  ;;  %5151 = vmatmul.mubr.f32.gmra.mrb[200].mxu1 %v4717_v7  ;;  %v4626_v27 = vpop.f32.mrb[165].mxu0  ;;  %v4730_v17 = vld [vmem:[#allocation8 + $0xab8] sm:$0xff] }
 0x850   : > { %5155 = vmatprep.mubr.f32.mxu1 %v4722_v54  ;;  %v4729_v19 = vld [vmem:[#allocation8 + $0xab0] sm:$0xff] }
 0x852   : > { %v19510_v36 = vpop.f32.mrb[160].mxu1  ;;  %v19512_v41 = vpop.f32.mrb[166].mxu0 }
 0x853   : > { %22041 = vst [vmem:[#allocation87_spill] sm:$0xff] %v19510_v36  ;;  %v4058_v1 = vpop.f32.mrb[161].mxu1  ;;  %5156 = vmatmul.mubr.f32.gmra.mrb[202].mxu1 %v4721_v45  ;;  %v4631_v2 = vpop.f32.mrb[167].mxu0  ;;  %v4734_v36 = vld [vmem:[#allocation8 + $0xad8] sm:$0xff] }
 0x854   : > { %5160 = vmatprep.mubr.f32.mxu1 %v4726_v42  ;;  %v4733_v42 = vld [vmem:[#allocation8 + $0xad0] sm:$0xff]  ;;  %v4738_v2 = vld [vmem:[#allocation8 + $0xaf8] sm:$0xff] }
 0x855   : > { %v4754_v45 = vld [vmem:[#allocation8 + $0xb78] sm:$0xff] }
 0x856   : > { %v19516_v51 = vpop.f32.mrb[162].mxu1  ;;  %v19518_v7 = vpop.f32.mrb[168].mxu0 }
 0x857   : > { %22042 = vst [vmem:[#allocation88_spill] sm:$0xff] %v19516_v51  ;;  %v4063_v54 = vpop.f32.mrb[163].mxu1  ;;  %5161 = vmatmul.mubr.f32.gmra.mrb[204].mxu1 %v4725_v4  ;;  %v4636_v27 = vpop.f32.mrb[169].mxu0  ;;  %v4742_v51 = vld [vmem:[#allocation8 + $0xb18] sm:$0xff] }
 0x858   : > { %5165 = vmatprep.mubr.f32.mxu1 %v4730_v17  ;;  %v4741_v17 = vld [vmem:[#allocation8 + $0xb10] sm:$0xff]  ;;  %v4746_v4 = vld [vmem:[#allocation8 + $0xb38] sm:$0xff] }
 0x859   : > { %v4745_v54 = vld [vmem:[#allocation8 + $0xb30] sm:$0xff]  ;;  %v4750_v27 = vld [vmem:[#allocation8 + $0xb58] sm:$0xff] }
 0x85a   : > { %v19520_v6 = vpop.f32.mrb[170].mxu0 }
 0x85b   : > { %5166 = vmatmul.mubr.f32.gmra.mrb[206].mxu1 %v4729_v19  ;;  %v4641_v1 = vpop.f32.mrb[171].mxu0  ;;  %v4749_v19 = vld [vmem:[#allocation8 + $0xb50] sm:$0xff] }
 0x85c   : > { %5170 = vmatprep.mubr.f32.mxu1 %v4734_v36  ;;  %v4753_v36 = vld [vmem:[#allocation8 + $0xb70] sm:$0xff]  ;;  %v4758_v1 = vld [vmem:[#allocation8 + $0xb98] sm:$0xff] }
 0x85f   : > { %5171 = vmatmul.mubr.f32.gmra.mrb[208].mxu1 %v4733_v42  ;;  %v4757_v42 = vld [vmem:[#allocation8 + $0xb90] sm:$0xff] }
 0x860   : > { %5175 = vmatprep.mubr.f32.mxu1 %v4738_v2  ;;  %v4762_v2 = vld [vmem:[#allocation8 + $0xbb8] sm:$0xff] }
 0x863   : > { %5176 = vmatmul.mubr.f32.gmra.mrb[210].mxu1 %v4737_v5  ;;  %v4766_v5 = vld [vmem:[#allocation8 + $0xbd8] sm:$0xff] }
 0x864   : > { %5180 = vmatprep.mubr.f32.mxu1 %v4742_v51  ;;  %v4761_v51 = vld [vmem:[#allocation8 + $0xbb0] sm:$0xff] }
 0x867   : > { %5181 = vmatmul.mubr.f32.gmra.mrb[212].mxu1 %v4741_v17  ;;  %v4765_v17 = vld [vmem:[#allocation8 + $0xbd0] sm:$0xff] }
 0x868   : > { %5185 = vmatprep.mubr.f32.mxu1 %v4746_v4  ;;  %v4770_v4 = vld [vmem:[#allocation8 + $0xbf8] sm:$0xff] }
 0x86b   : > { %5186 = vmatmul.mubr.f32.gmra.mrb[214].mxu1 %v4745_v54  ;;  %v4769_v54 = vld [vmem:[#allocation8 + $0xbf0] sm:$0xff] }
 0x86c   : > { %5190 = vmatprep.mubr.f32.mxu1 %v4750_v27  ;;  %v15837_v27 = vld [vmem:[#allocation2 + $0x40] ss:$8 sps:$4 sm:$0xff]  }
 0x86d   : > { %13768 = vmatprep.subr.bf16.mxu0 %v15837_v27 }
 0x86e   : > { %13769 = vmatpush3.bf16.msra.mxu0 %v15837_v27 }
 0x86f   : > { %5191 = vmatmul.mubr.f32.gmra.mrb[216].mxu1 %v4749_v19 }
 0x870   : > { %5195 = vmatprep.mubr.f32.mxu1 %v4754_v45  ;;  %v15838_v45 = vld [vmem:[#allocation2 + $0x50] ss:$8 sps:$4 sm:$0xff]  }
 0x871   : > { %13770 = vmatprep.subr.bf16.mxu0 %v15838_v45 }
 0x872   : > { %13771 = vmatpush3.bf16.msra.mxu0 %v15838_v45  ;;  %v22043_v45 = vpack.i.bf16 %v19402_v56, %v19398_v63  ;;  %v22045_v56 = vpack.i.bf16 %v19422_v53, %v19418_v32  ;;  %v22047_v53 = vpack.i.bf16 %v19442_v48, %v19438_v16  ;;  %v22049_v48 = vpack.i.bf16 %v19462_v22, %v19458_v12 }
 0x873   : > { %5196 = vmatmul.mubr.f32.gmra.mrb[218].mxu1 %v4753_v36  ;;  %13772 = vmatprep.subr.bf16.mxu0 %v15839_v44  ;;  %v22051_v22 = vpack.i.bf16 %v19482_v59, %v19478_v46  ;;  %v22053_v59 = vpack.i.bf16 %v19502_v50, %v19498_v37  ;;  %v22055_v50 = vpack.i.bf16 %v19520_v6, %v19518_v7 }
 0x874   : > { %5200 = vmatprep.mubr.f32.mxu1 %v4758_v1 }
 0x876   : > { %13773 = vmatpush3.bf16.msra.mxu0 %v15839_v44 }
 0x877   : > { %5201 = vmatmul.mubr.f32.gmra.mrb[220].mxu1 %v4757_v42 }
 0x878   : > { %5205 = vmatprep.mubr.f32.mxu1 %v4762_v2 }
 0x87b   : > { %5206 = vmatmul.mubr.f32.gmra.mrb[222].mxu1 %v4761_v51 }
 0x87c   : > { %5210 = vmatprep.mubr.f32.mxu1 %v4766_v5 }
 0x87f   : > { %5211 = vmatmul.mubr.f32.gmra.mrb[224].mxu1 %v4765_v17 }
 0x880   : > { %5215 = vmatprep.mubr.f32.mxu1 %v4770_v4 }
 0x883   : > { %5216 = vmatmul.mubr.f32.gmra.mrb[226].mxu1 %v4769_v54 }
 0x8da   : > { %v5062_v19 = vpop.f32.mrb[164].mxu1 }
 0x8db   : > { %v5064_v36 = vpop.f32.mrb[165].mxu1 }
 0x8de   : > { %v5067_v1 = vpop.f32.mrb[166].mxu1 }
 0x8df   : > { %v15556_v42 = vpack.i.bf16 %v5067_v1, %v5062_v19  ;;  %v5069_v2 = vpop.f32.mrb[167].mxu1 }
 0x8e1   : > { %15557 = vrot.lane.b32.xlu1 %v15556_v42, %s17025_s10 }
 0x8e2   : > { %v5072_v51 = vpop.f32.mrb[168].mxu1 }
 0x8e3   : > { %v5074_v5 = vpop.f32.mrb[169].mxu1 }
 0x8e6   : > { %v5077_v17 = vpop.f32.mrb[170].mxu1 }
 0x8e7   : > { %v15561_v4 = vpack.i.bf16 %v5077_v17, %v5072_v51  ;;  %v5079_v54 = vpop.f32.mrb[171].mxu1  ;;  %v22044_v51 = vpack.i.bf16 %v19412_v49, %v19408_v47  ;;  %v22046_v49 = vpack.i.bf16 %v19432_v26, %v19428_v29  ;;  %v22048_v26 = vpack.i.bf16 %v19452_v60, %v19448_v58 }
 0x8e8   : > { %v22050_v60 = vpack.i.bf16 %v19472_v62, %v19468_v61  ;;  %v22052_v62 = vpack.i.bf16 %v19492_v57, %v19488_v40  ;;  %v22054_v57 = vpack.i.bf16 %v19512_v41, %v19508_v24 }
 0x8e9   : > { %15562 = vrot.lane.b32.xlu1 %v15561_v4, %s17025_s10 }
 0x8ea   : > { %v5082_v27 = vpop.f32.mrb[172].mxu1 }
 0x8eb   : > { %v5084_v36 = vpop.f32.mrb[173].mxu1 }
 0x8ed   : > { %15567 = vrot.lane.b32.xlu1 %v22043_v45, %s17024_s17 }
 0x8ee   : > { %v5087_v19 = vpop.f32.mrb[174].mxu1 }
 0x8ef   : > { %v15571_v1 = vpack.i.bf16 %v5087_v19, %v5082_v27  ;;  %v5089_v2 = vpop.f32.mrb[175].mxu1 }
 0x8f1   : > { %15572 = vrot.lane.b32.xlu0 %v15571_v1, %s17025_s10 }
 0x8f2   : > { %v5092_v42 = vpop.f32.mrb[176].mxu1 }
 0x8f3   : > { %v5094_v44 = vpop.f32.mrb[177].mxu1 }
 0x8f5   : > { %15577 = vrot.lane.b32.xlu0 %v22044_v51, %s17024_s17 }
 0x8f6   : > { %v5097_v5 = vpop.f32.mrb[178].mxu1 }
 0x8f7   : > { %v15581_v17 = vpack.i.bf16 %v5097_v5, %v5092_v42  ;;  %v5099_v4 = vpop.f32.mrb[179].mxu1 }
 0x8f9   : > { %15582 = vrot.lane.b32.xlu1 %v15581_v17, %s17025_s10 }
 0x8fa   : > { %v5102_v54 = vpop.f32.mrb[180].mxu1 }
 0x8fb   : > { %v5104_v63 = vpop.f32.mrb[181].mxu1 }
 0x8fd   : > { %15587 = vrot.lane.b32.xlu1 %v22045_v56, %s17024_s17 }
 0x8fe   : > { %v5107_v27 = vpop.f32.mrb[182].mxu1 }
 0x8ff   : > { %v15591_v36 = vpack.i.bf16 %v5107_v27, %v5102_v54  ;;  %v5109_v45 = vpop.f32.mrb[183].mxu1 }
 0x901   : > { %15592 = vrot.lane.b32.xlu0 %v15591_v36, %s17025_s10 }
 0x902   : > { %v5112_v19 = vpop.f32.mrb[184].mxu1 }
 0x903   : > { %v5114_v47 = vpop.f32.mrb[185].mxu1 }
 0x905   : > { %15597 = vrot.lane.b32.xlu0 %v22046_v49, %s17024_s17 }
 0x906   : > { %v5117_v1 = vpop.f32.mrb[186].mxu1 }
 0x907   : > { %v15601_v2 = vpack.i.bf16 %v5117_v1, %v5112_v19  ;;  %v5119_v42 = vpop.f32.mrb[187].mxu1 }
 0x909   : > { %15602 = vrot.lane.b32.xlu1 %v15601_v2, %s17025_s10 }
 0x90a   : > { %v5122_v44 = vpop.f32.mrb[188].mxu1 }
 0x90b   : > { %v5124_v32 = vpop.f32.mrb[189].mxu1 }
 0x90d   : > { %15607 = vrot.lane.b32.xlu1 %v22047_v53, %s17024_s17 }
 0x90e   : > { %v5127_v51 = vpop.f32.mrb[190].mxu1 }
 0x90f   : > { %v15611_v5 = vpack.i.bf16 %v5127_v51, %v5122_v44  ;;  %v5129_v17 = vpop.f32.mrb[191].mxu1 }
 0x911   : > { %15612 = vrot.lane.b32.xlu0 %v15611_v5, %s17025_s10 }
 0x912   : > { %v5132_v4 = vpop.f32.mrb[192].mxu1 }
 0x913   : > { %v5134_v29 = vpop.f32.mrb[193].mxu1 }
 0x915   : > { %15617 = vrot.lane.b32.xlu0 %v22048_v26, %s17024_s17 }
 0x916   : > { %v5137_v54 = vpop.f32.mrb[194].mxu1 }
 0x917   : > { %v15621_v63 = vpack.i.bf16 %v5137_v54, %v5132_v4  ;;  %v5139_v56 = vpop.f32.mrb[195].mxu1 }
 0x919   : > { %15622 = vrot.lane.b32.xlu1 %v15621_v63, %s17025_s10 }
 0x91a   : > { %v5142_v27 = vpop.f32.mrb[196].mxu1 }
 0x91b   : > { %v5144_v16 = vpop.f32.mrb[197].mxu1 }
 0x91d   : > { %15627 = vrot.lane.b32.xlu1 %v22049_v48, %s17024_s17 }
 0x91e   : > { %v5147_v36 = vpop.f32.mrb[198].mxu1 }
 0x91f   : > { %v15631_v45 = vpack.i.bf16 %v5147_v36, %v5142_v27  ;;  %v5149_v19 = vpop.f32.mrb[199].mxu1 }
 0x921   : > { %15632 = vrot.lane.b32.xlu0 %v15631_v45, %s17025_s10  ;;  %v15543_v45 = vpop.permute.xlu0 %15542 }
 0x922   : > { %v5152_v47 = vpop.f32.mrb[200].mxu1 }
 0x923   : > { %v5154_v58 = vpop.f32.mrb[201].mxu1 }
 0x925   : > { %15637 = vrot.lane.b32.xlu0 %v22050_v60, %s17024_s17  ;;  %v15545_v60 = vunpack.i.h.bf16 %v15543_v45  ;;  %v15548_v7 = vpop.permute.xlu0 %15547 }
 0x926   : > { %v5157_v49 = vpop.f32.mrb[202].mxu1 }
 0x927   : > { %v15641_v1 = vpack.i.bf16 %v5157_v49, %v5152_v47  ;;  %v5159_v2 = vpop.f32.mrb[203].mxu1  ;;  %v15544_v49 = vunpack.i.l.bf16 %v15543_v45  ;;  %v5478_v6 = vsel %vm1350_vm1, %v19381_v13, %v15545_v60 }
 0x929   : > { %15642 = vrot.lane.b32.xlu1 %v15641_v1, %s17025_s10 }
 0x92a   : > { %v5162_v42 = vpop.f32.mrb[204].mxu1 }
 0x92b   : > { %v5164_v12 = vpop.f32.mrb[205].mxu1 }
 0x92c   : > { %v5477_v12 = vsel %vm1350_vm1, %v19379_v43, %v15544_v49 }
 0x92d   : > { %15647 = vrot.lane.b32.xlu1 %v22051_v22, %s17024_s17 }
 0x92e   : > { %v5167_v44 = vpop.f32.mrb[206].mxu1 }
 0x92f   : > { %v15651_v32 = vpack.i.bf16 %v5167_v44, %v5162_v42  ;;  %v5169_v53 = vpop.f32.mrb[207].mxu1 }
 0x931   : > { %15652 = vrot.lane.b32.xlu0 %v15651_v32, %s17025_s10 }
 0x932   : > { %v5172_v51 = vpop.f32.mrb[208].mxu1 }
 0x933   : > { %v5174_v61 = vpop.f32.mrb[209].mxu1 }
 0x935   : > { %15657 = vrot.lane.b32.xlu0 %v22052_v62, %s17024_s17  ;;  %v15550_v62 = vunpack.i.h.bf16 %v15548_v7 }
 0x936   : > { %v5177_v5 = vpop.f32.mrb[210].mxu1 }
 0x937   : > { %v15661_v17 = vpack.i.bf16 %v5177_v5, %v5172_v51  ;;  %v5179_v4 = vpop.f32.mrb[211].mxu1  ;;  %v15549_v5 = vunpack.i.l.bf16 %v15548_v7 }
 0x939   : > { %15662 = vrot.lane.b32.xlu1 %v15661_v17, %s17025_s10  ;;  %v5479_v13 = vsel %vm1350_vm1, %v19383_v0, %v15549_v5 }
 0x93a   : > { %v5182_v29 = vpop.f32.mrb[212].mxu1 }
 0x93b   : > { %v5184_v46 = vpop.f32.mrb[213].mxu1 }
 0x93c   : > { %v15553_v46 = vpop.permute.xlu0 %15552 }
 0x93d   : > { %15667 = vrot.lane.b32.xlu1 %v22053_v59, %s17024_s17 }
 0x93e   : > { %v5187_v26 = vpop.f32.mrb[214].mxu1 }
 0x93f   : > { %v15671_v54 = vpack.i.bf16 %v5187_v26, %v5182_v29  ;;  %v5189_v63 = vpop.f32.mrb[215].mxu1  ;;  %v5480_v29 = vsel %vm1350_vm1, %v19386_v21, %v15550_v62 }
 0x940   : > { %v15555_v63 = vunpack.i.h.bf16 %v15553_v46 }
 0x941   : > { %15672 = vrot.lane.b32.xlu0 %v15671_v54, %s17025_s10 }
 0x942   : > { %v5192_v56 = vpop.f32.mrb[216].mxu1  ;;  %v5482_v0 = vsel %vm1350_vm1, %v19391_v28, %v15555_v63 }
 0x943   : > { %v5194_v40 = vpop.f32.mrb[217].mxu1 }
 0x945   : > { %15677 = vrot.lane.b32.xlu0 %v22054_v57, %s17024_s17 }
 0x946   : > { %v5197_v27 = vpop.f32.mrb[218].mxu1 }
 0x947   : > { %v15681_v16 = vpack.i.bf16 %v5197_v27, %v5192_v56  ;;  %v5199_v48 = vpop.f32.mrb[219].mxu1  ;;  %v15554_v56 = vunpack.i.l.bf16 %v15553_v46 }
 0x949   : > { %15682 = vrot.lane.b32.xlu1 %v15681_v16, %s17025_s10  ;;  %v5481_v16 = vsel %vm1350_vm1, %v19388_v39, %v15554_v56 }
 0x94a   : > { %v5202_v36 = vpop.f32.mrb[220].mxu1 }
 0x94b   : > { %v5204_v37 = vpop.f32.mrb[221].mxu1 }
 0x94d   : > { %15687 = vrot.lane.b32.xlu1 %v22055_v50, %s17024_s17 }
 0x94e   : > { %v5207_v19 = vpop.f32.mrb[222].mxu1 }
 0x94f   : > { %v15691_v47 = vpack.i.bf16 %v5207_v19, %v5202_v36  ;;  %v5209_v58 = vpop.f32.mrb[223].mxu1 }
 0x951   : > { %15692 = vrot.lane.b32.xlu0 %v15691_v47, %s17025_s10 }
 0x952   : > { %v5212_v24 = vpop.f32.mrb[224].mxu1 }
 0x953   : > { %v15558_v41 = vpop.permute.xlu1 %15557  ;;  %v5214_v1 = vpop.f32.mrb[225].mxu1 }
 0x954   : > { %v15560_v2 = vunpack.i.h.bf16 %v15558_v41  ;;  %v15559_v42 = vunpack.i.l.bf16 %v15558_v41 }
 0x956   : > { %v5511_v22 = vsel %vm5509_vm2, %v5478_v6, %v15560_v2  ;;  %v5510_v44 = vsel %vm5509_vm2, %v5477_v12, %v15559_v42  ;;  %v5217_v32 = vpop.f32.mrb[226].mxu1 }
 0x957   : > { %v5542_v53 = vpack.c.bf16 %v5511_v22, %v5510_v44  ;;  %v15696_v51 = vpack.i.bf16 %v5217_v32, %v5212_v24  ;;  %v5219_v61 = vpop.f32.mrb[227].mxu1 }
 0x959   : > { %13774 = vmatprep.mubr.msk.bf16.mxu0 %vm5582_vm3, %v5542_v53  ;;  %15697 = vrot.lane.b32.xlu1 %v15696_v51, %s17025_s10 }
 0x95b   : > { %v15563_v43 = vpop.permute.xlu1 %15562 }
 0x95c   : > { %v15565_v17 = vunpack.i.h.bf16 %v15563_v43  ;;  %v15564_v4 = vunpack.i.l.bf16 %v15563_v43 }
 0x95e   : > { %v5513_v59 = vsel %vm5509_vm2, %v5480_v29, %v15565_v17  ;;  %v5512_v26 = vsel %vm5509_vm2, %v5479_v13, %v15564_v4 }
 0x95f   : > { %v5543_v54 = vpack.c.bf16 %v5513_v59, %v5512_v26  ;;  %v15568_v21 = vpop.permute.xlu1 %15567 }
 0x960   : > { %v15570_v50 = vunpack.i.h.bf16 %v15568_v21  ;;  %v15569_v45 = vunpack.i.l.bf16 %v15568_v21 }
 0x961   : > { %13775 = vmatmul.mubr.msk.bf16.vlgmr.msra.gmra.mrb[172].mxu0 %vm5582_vm3, %v5543_v54 }
 0x962   : > { %v5484_v60 = vsel %vm1350_vm1, %v19396_v14, %v15570_v50  ;;  %v5483_v39 = vsel %vm1350_vm1, %v19393_v31, %v15569_v45 }
 0x963   : > { %v15573_v40 = vpop.permute.xlu0 %15572 }
 0x964   : > { %v15575_v57 = vunpack.i.h.bf16 %v15573_v40  ;;  %v15574_v27 = vunpack.i.l.bf16 %v15573_v40 }
 0x966   : > { %v5515_v48 = vsel %vm5509_vm2, %v5482_v0, %v15575_v57  ;;  %v5514_v36 = vsel %vm5509_vm2, %v5481_v16, %v15574_v27 }
 0x967   : > { %v5544_v37 = vpack.c.bf16 %v5515_v48, %v5514_v36  ;;  %v15578_v28 = vpop.permute.xlu0 %15577 }
 0x968   : > { %v15580_v1 = vunpack.i.h.bf16 %v15578_v28  ;;  %v15579_v2 = vunpack.i.l.bf16 %v15578_v28 }
 0x969   : > { %13778 = vmatprep.mubr.msk.bf16.mxu0 %vm5582_vm3, %v5544_v37 }
 0x96a   : > { %v5486_v7 = vsel %vm1350_vm1, %v19406_v38, %v15580_v1  ;;  %v5485_v14 = vsel %vm1350_vm1, %v19400_v55, %v15579_v2 }
 0x96b   : > { %v15583_v19 = vpop.permute.xlu1 %15582 }
 0x96c   : > { %v15585_v47 = vunpack.i.h.bf16 %v15583_v19  ;;  %v15584_v58 = vunpack.i.l.bf16 %v15583_v19 }
 0x96e   : > { %v5517_v49 = vsel %vm5509_vm2, %v5484_v60, %v15585_v47  ;;  %v5516_v24 = vsel %vm5509_vm2, %v5483_v39, %v15584_v58 }
 0x96f   : > { %v5545_v41 = vpack.c.bf16 %v5517_v49, %v5516_v24  ;;  %v15588_v31 = vpop.permute.xlu1 %15587 }
 0x970   : > { %v15590_v53 = vunpack.i.h.bf16 %v15588_v31  ;;  %v15589_v51 = vunpack.i.l.bf16 %v15588_v31 }
 0x971   : > { %13779 = vmatmul.mubr.msk.bf16.gmra.mrb[176].mxu0 %vm5582_vm3, %v5545_v41 }
 0x972   : > { %v5488_v43 = vsel %vm1350_vm1, %v19416_v11, %v15590_v53  ;;  %v5487_v38 = vsel %vm1350_vm1, %v19410_v52, %v15589_v51 }
 0x973   : > { %v15593_v42 = vpop.permute.xlu0 %15592 }
 0x974   : > { %v15595_v12 = vunpack.i.h.bf16 %v15593_v42  ;;  %v15594_v6 = vunpack.i.l.bf16 %v15593_v42 }
 0x976   : > { %v5519_v22 = vsel %vm5509_vm2, %v5486_v7, %v15595_v12  ;;  %v5518_v44 = vsel %vm5509_vm2, %v5485_v14, %v15594_v6 }
 0x977   : > { %v5546_v32 = vpack.c.bf16 %v5519_v22, %v5518_v44  ;;  %v15598_v55 = vpop.permute.xlu0 %15597 }
 0x978   : > { %v15600_v29 = vunpack.i.h.bf16 %v15598_v55  ;;  %v15599_v46 = vunpack.i.l.bf16 %v15598_v55 }
 0x979   : > { %13782 = vmatprep.mubr.msk.bf16.mxu0 %vm5582_vm3, %v5546_v32 }
 0x97a   : > { %v5490_v63 = vsel %vm1350_vm1, %v19426_v15, %v15600_v29  ;;  %v5489_v11 = vsel %vm1350_vm1, %v19420_v33, %v15599_v46 }
 0x97b   : > { %v15603_v61 = vpop.permute.xlu1 %15602 }
 0x97c   : > { %v15605_v62 = vunpack.i.h.bf16 %v15603_v61  ;;  %v15604_v5 = vunpack.i.l.bf16 %v15603_v61 }
 0x97e   : > { %v5521_v17 = vsel %vm5509_vm2, %v5488_v43, %v15605_v62  ;;  %v5520_v4 = vsel %vm5509_vm2, %v5487_v38, %v15604_v5 }
 0x97f   : > { %v5547_v13 = vpack.c.bf16 %v5521_v17, %v5520_v4  ;;  %v15608_v52 = vpop.permute.xlu1 %15607 }
 0x980   : > { %v15610_v27 = vunpack.i.h.bf16 %v15608_v52  ;;  %v15609_v16 = vunpack.i.l.bf16 %v15608_v52 }
 0x981   : > { %13783 = vmatmul.mubr.msk.bf16.gmra.mrb[180].mxu0 %vm5582_vm3, %v5547_v13 }
 0x982   : > { %v5492_v36 = vsel %vm1350_vm1, %v19436_v18, %v15610_v27  ;;  %v5491_v15 = vsel %vm1350_vm1, %v19430_v23, %v15609_v16 }
 0x983   : > { %v15613_v59 = vpop.permute.xlu0 %15612 }
 0x984   : > { %v15615_v26 = vunpack.i.h.bf16 %v15613_v59  ;;  %v15614_v54 = vunpack.i.l.bf16 %v15613_v59 }
 0x986   : > { %v5523_v56 = vsel %vm5509_vm2, %v5490_v63, %v15615_v26  ;;  %v5522_v40 = vsel %vm5509_vm2, %v5489_v11, %v15614_v54 }
 0x987   : > { %v5548_v57 = vpack.c.bf16 %v5523_v56, %v5522_v40  ;;  %v15618_v33 = vpop.permute.xlu0 %15617 }
 0x988   : > { %v15620_v19 = vunpack.i.h.bf16 %v15618_v33  ;;  %v15619_v47 = vunpack.i.l.bf16 %v15618_v33 }
 0x989   : > { %13786 = vmatprep.mubr.msk.bf16.mxu0 %vm5582_vm3, %v5548_v57 }
 0x98a   : > { %v5494_v28 = vsel %vm1350_vm1, %v19446_v35, %v15620_v19  ;;  %v5493_v18 = vsel %vm1350_vm1, %v19440_v25, %v15619_v47 }
 0x98b   : > { %v15623_v0 = vpop.permute.xlu1 %15622 }
 0x98c   : > { %v15625_v21 = vunpack.i.h.bf16 %v15623_v0  ;;  %v15624_v48 = vunpack.i.l.bf16 %v15623_v0 }
 0x98e   : > { %v5525_v37 = vsel %vm5509_vm2, %v5492_v36, %v15625_v21  ;;  %v5524_v50 = vsel %vm5509_vm2, %v5491_v15, %v15624_v48 }
 0x98f   : > { %v5549_v45 = vpack.c.bf16 %v5525_v37, %v5524_v50  ;;  %v15628_v23 = vpop.permute.xlu1 %15627  ;;  %v22057_v50 = vld [vmem:[#allocation84_spill] sm:$0xff] }
 0x990   : > { %v15630_v1 = vunpack.i.h.bf16 %v15628_v23  ;;  %v15629_v2 = vunpack.i.l.bf16 %v15628_v23 }
 0x991   : > { %13787 = vmatmul.mubr.msk.bf16.gmra.mrb[184].mxu0 %vm5582_vm3, %v5549_v45 }
 0x992   : > { %v5496_v7 = vsel %vm1350_vm1, %v19456_v8, %v15630_v1  ;;  %v5495_v35 = vsel %vm1350_vm1, %v19450_v10, %v15629_v2  ;;  %v22060_v2 = vld [vmem:[#allocation85_spill] sm:$0xff] }
 0x993   : > { %v15633_v58 = vpop.permute.xlu0 %15632 }
 0x994   : > { %v15635_v60 = vunpack.i.h.bf16 %v15633_v58  ;;  %v15634_v39 = vunpack.i.l.bf16 %v15633_v58 }
 0x996   : > { %v5527_v49 = vsel %vm5509_vm2, %v5494_v28, %v15635_v60  ;;  %v5526_v24 = vsel %vm5509_vm2, %v5493_v18, %v15634_v39 }
 0x997   : > { %v5550_v41 = vpack.c.bf16 %v5527_v49, %v5526_v24  ;;  %v15638_v25 = vpop.permute.xlu0 %15637 }
 0x998   : > { %v15640_v44 = vunpack.i.h.bf16 %v15638_v25  ;;  %v15639_v32 = vunpack.i.l.bf16 %v15638_v25 }
 0x999   : > { %13790 = vmatprep.mubr.msk.bf16.mxu0 %vm5582_vm3, %v5550_v41  ;;  %v22059_v41 = vld [vmem:[#allocation86_spill] sm:$0xff] }
 0x99a   : > { %v5498_v62 = vsel %vm1350_vm1, %v19466_v34, %v15640_v44  ;;  %v5497_v8 = vsel %vm1350_vm1, %v19460_v3, %v15639_v32  ;;  %v22061_v32 = vld [vmem:[#allocation88_spill] sm:$0xff] }
 0x99b   : > { %v15643_v42 = vpop.permute.xlu1 %15642 }
 0x99c   : > { %v15645_v12 = vunpack.i.h.bf16 %v15643_v42  ;;  %v15644_v6 = vunpack.i.l.bf16 %v15643_v42 }
 0x99e   : > { %v5529_v14 = vsel %vm5509_vm2, %v5496_v7, %v15645_v12  ;;  %v5528_v31 = vsel %vm5509_vm2, %v5495_v35, %v15644_v6 }
 0x99f   : > { %v5551_v22 = vpack.c.bf16 %v5529_v14, %v5528_v31  ;;  %v15648_v10 = vpop.permute.xlu1 %15647 }
 0x9a0   : > { %v15650_v55 = vunpack.i.h.bf16 %v15648_v10  ;;  %v15649_v17 = vunpack.i.l.bf16 %v15648_v10 }
 0x9a1   : > { %13791 = vmatmul.mubr.msk.bf16.gmra.mrb[188].mxu0 %vm5582_vm3, %v5551_v22 }
 0x9a2   : > { %v5500_v46 = vsel %vm1350_vm1, %v19476_v9, %v15650_v55  ;;  %v5499_v34 = vsel %vm1350_vm1, %v19470_v20, %v15649_v17  ;;  %v22056_v9 = vld [vmem:[#allocation82_spill] sm:$0xff] }
 0x9a3   : > { %v15653_v53 = vpop.permute.xlu0 %15652 }
 0x9a4   : > { %v15655_v51 = vunpack.i.h.bf16 %v15653_v53  ;;  %v15654_v61 = vunpack.i.l.bf16 %v15653_v53 }
 0x9a6   : > { %v5531_v5 = vsel %vm5509_vm2, %v5498_v62, %v15655_v51  ;;  %v5530_v43 = vsel %vm5509_vm2, %v5497_v8, %v15654_v61  ;;  %v22062_v51 = vld [vmem:[#allocation87_spill] sm:$0xff] }
 0x9a7   : > { %v5552_v38 = vpack.c.bf16 %v5531_v5, %v5530_v43  ;;  %v15658_v3 = vpop.permute.xlu0 %15657  ;;  %v19704_v5 = vld [vmem:[#allocation7 + $0x28] sm:$0xff] }
 0x9a8   : > { %v15660_v63 = vunpack.i.h.bf16 %v15658_v3  ;;  %v15659_v11 = vunpack.i.l.bf16 %v15658_v3 }
 0x9a9   : > { %13794 = vmatprep.mubr.msk.bf16.mxu0 %vm5582_vm3, %v5552_v38 }
 0x9aa   : > { %v5502_v57 = vsel %vm1350_vm1, %v19486_v30, %v15660_v63  ;;  %v5501_v27 = vsel %vm1350_vm1, %v22056_v9, %v15659_v11  ;;  %v22058_v30 = vld [vmem:[#allocation83_spill] sm:$0xff] }
 0x9ab   : > { %v15663_v4 = vpop.permute.xlu1 %15662 }
 0x9ac   : > { %v15665_v13 = vunpack.i.h.bf16 %v15663_v4  ;;  %v15664_v29 = vunpack.i.l.bf16 %v15663_v4 }
 0x9ae   : > { %v5533_v59 = vsel %vm5509_vm2, %v5500_v46, %v15665_v13  ;;  %v5532_v26 = vsel %vm5509_vm2, %v5499_v34, %v15664_v29 }
 0x9af   : > { %v5553_v54 = vpack.c.bf16 %v5533_v59, %v5532_v26  ;;  %v15668_v20 = vpop.permute.xlu1 %15667 }
 0x9b0   : > { %v15670_v48 = vunpack.i.h.bf16 %v15668_v20  ;;  %v15669_v36 = vunpack.i.l.bf16 %v15668_v20 }
 0x9b1   : > { %13795 = vmatmul.mubr.msk.bf16.gmra.mrb[192].mxu0 %vm5582_vm3, %v5553_v54 }
 0x9b2   : > { %v5504_v45 = vsel %vm1350_vm1, %v22057_v50, %v15670_v48  ;;  %v5503_v19 = vsel %vm1350_vm1, %v22058_v30, %v15669_v36  ;;  %v19729_v48 = vld [vmem:[#allocation5 + $0x3] ss:$0 sm:$0xff] }
 0x9b3   : > { %v15673_v52 = vpop.permute.xlu0 %15672 }
 0x9b4   : > { %v15675_v56 = vunpack.i.h.bf16 %v15673_v52  ;;  %v15674_v40 = vunpack.i.l.bf16 %v15673_v52 }
 0x9b6   : > { %v5535_v16 = vsel %vm5509_vm2, %v5502_v57, %v15675_v56  ;;  %v5534_v0 = vsel %vm5509_vm2, %v5501_v27, %v15674_v40  ;;  %v19723_v56 = vld [vmem:[#allocation5 + $0x2] ss:$0 sm:$0xff] }
 0x9b7   : > { %v5554_v21 = vpack.c.bf16 %v5535_v16, %v5534_v0  ;;  %v15678_v47 = vpop.permute.xlu0 %15677 }
 0x9b8   : > { %v15680_v28 = vunpack.i.h.bf16 %v15678_v47  ;;  %v15679_v18 = vunpack.i.l.bf16 %v15678_v47 }
 0x9b9   : > { %13798 = vmatprep.mubr.msk.bf16.mxu0 %vm5582_vm3, %v5554_v21 }
 0x9ba   : > { %v5506_v1 = vsel %vm1350_vm1, %v22059_v41, %v15680_v28  ;;  %v5505_v42 = vsel %vm1350_vm1, %v22060_v2, %v15679_v18 }
 0x9bb   : > { %v15683_v15 = vpop.permute.xlu1 %15682 }
 0x9bc   : > { %v15685_v33 = vunpack.i.h.bf16 %v15683_v15  ;;  %v15684_v37 = vunpack.i.l.bf16 %v15683_v15 }
 0x9be   : > { %v5537_v58 = vsel %vm5509_vm2, %v5504_v45, %v15685_v33  ;;  %v5536_v60 = vsel %vm5509_vm2, %v5503_v19, %v15684_v37 }
 0x9bf   : > { %v5555_v39 = vpack.c.bf16 %v5537_v58, %v5536_v60  ;;  %v15688_v12 = vpop.permute.xlu1 %15687 }
 0x9c0   : > { %v15690_v25 = vunpack.i.h.bf16 %v15688_v12  ;;  %v15689_v14 = vunpack.i.l.bf16 %v15688_v12 }
 0x9c1   : > { %13799 = vmatmul.mubr.msk.bf16.gmra.mrb[196].mxu0 %vm5582_vm3, %v5555_v39 }
 0x9c2   : > { %v5508_v53 = vsel %vm1350_vm1, %v22061_v32, %v15690_v25  ;;  %v5507_v61 = vsel %vm1350_vm1, %v22062_v51, %v15689_v14 }
 0x9c3   : > { %v15693_v23 = vpop.permute.xlu0 %15692 }
 0x9c4   : > { %v15695_v49 = vunpack.i.h.bf16 %v15693_v23  ;;  %v15694_v24 = vunpack.i.l.bf16 %v15693_v23 }
 0x9c6   : > { %v5539_v6 = vsel %vm5509_vm2, %v5506_v1, %v15695_v49  ;;  %v5538_v7 = vsel %vm5509_vm2, %v5505_v42, %v15694_v24 }
 0x9c7   : > { %v5556_v35 = vpack.c.bf16 %v5539_v6, %v5538_v7 }
 0x9c9   : > { %13802 = vmatprep.mubr.msk.bf16.mxu0 %vm5582_vm3, %v5556_v35 }
 0x9cb   : > { %v15698_v31 = vpop.permute.xlu1 %15697 }
 0x9cc   : > { %v15700_v22 = vunpack.i.h.bf16 %v15698_v31  ;;  %v15699_v44 = vunpack.i.l.bf16 %v15698_v31 }
 0x9ce   : > { %v5541_v62 = vsel %vm5509_vm2, %v5508_v53, %v15700_v22  ;;  %v5540_v8 = vsel %vm5509_vm2, %v5507_v61, %v15699_v44 }
 0x9cf   : > { %v5557_v10 = vpack.c.bf16 %v5541_v62, %v5540_v8 }
 0x9d1   : > { %13803 = vmatmul.mubr.msk.bf16.gmra.mrb[200].mxu0 %vm5582_vm3, %v5557_v10 }
 0x9d2   : > { %5958 = vmatprep.mubr.f32.mxu0 %v19704_v5 }
 0xa34   : > { %v13776_v43 = vpop.f32.mrb[172].mxu0 }
 0xa35   : > { %v5665_v38 = vpop.f32.mrb[173].mxu0  ;;  %v5795_v19 = vmul.f32 %v13776_v43, %v19723_v56 }
 0xa36   : > { %v13777_v55 = vpop.f32.mrb[174].mxu0  ;;  %v5793_v16 = vmul.f32 %v19723_v56, %v5665_v38 }
 0xa37   : > { %v5668_v17 = vpop.f32.mrb[175].mxu0  ;;  %v5796_v33 = vmul.f32 %v13777_v55, %v19723_v56  ;;  %v19763_v23 = vadd.f32 %v19729_v48, %v5795_v19 }
 0xa38   : > { %v5794_v57 = vmul.f32 %v19723_v56, %v5668_v17  ;;  %v19748_v47 = vadd.f32 %v19729_v48, %v5793_v16 }
 0xa39   : > { %v19756_v39 = vadd.f32 %v19729_v48, %v5796_v33 }
 0xa3a   : > { %v19735_v37 = vadd.f32 %v19729_v48, %v5794_v57 }
 0xa3b   : > { %v14762_v49 = vpack.c.bf16 %v19756_v39, %v19763_v23 }
 0xa3c   : > { %v14758_v28 = vpack.c.bf16 %v19735_v37, %v19748_v47 }
 0xa44   : > { %v13780_v4 = vpop.f32.mrb[176].mxu0 }
 0xa45   : > { %v5681_v13 = vpop.f32.mrb[177].mxu0  ;;  %v5799_v53 = vmul.f32 %v13780_v4, %v19723_v56 }
 0xa46   : > { %v13781_v29 = vpop.f32.mrb[178].mxu0  ;;  %v5797_v12 = vmul.f32 %v19723_v56, %v5681_v13 }
 0xa47   : > { %v5684_v46 = vpop.f32.mrb[179].mxu0  ;;  %v5800_v14 = vmul.f32 %v13781_v29, %v19723_v56  ;;  %v19803_v38 = vadd.f32 %v19729_v48, %v5799_v53 }
 0xa48   : > { %v5798_v41 = vmul.f32 %v19723_v56, %v5684_v46  ;;  %v19788_v51 = vadd.f32 %v19729_v48, %v5797_v12 }
 0xa49   : > { %v19796_v8 = vadd.f32 %v19729_v48, %v5800_v14 }
 0xa4a   : > { %v19775_v31 = vadd.f32 %v19729_v48, %v5798_v41 }
 0xa4b   : > { %v14770_v55 = vpack.c.bf16 %v19796_v8, %v19803_v38 }
 0xa4c   : > { %v14766_v10 = vpack.c.bf16 %v19775_v31, %v19788_v51 }
 0xa54   : > { %v19707_v34 = vpop.f32.mrb[180].mxu0 }
 0xa55   : > { %v19709_v3 = vpop.f32.mrb[181].mxu0 }
 0xa56   : > { %v19711_v59 = vpop.f32.mrb[182].mxu0 }
 0xa57   : > { %v19713_v26 = vpop.f32.mrb[183].mxu0  ;;  %v5804_v16 = vmul.f32 %v19711_v59, %v19723_v56 }
 0xa58   : > { %v5802_v4 = vmul.f32 %v19723_v56, %v19713_v26 }
 0xa59   : > { %v19840_v19 = vadd.f32 %v19729_v48, %v5804_v16 }
 0xa64   : > { %v19715_v54 = vpop.f32.mrb[184].mxu0 }
 0xa65   : > { %v19717_v63 = vpop.f32.mrb[185].mxu0 }
 0xa66   : > { %v19719_v11 = vpop.f32.mrb[186].mxu0 }
 0xa67   : > { %v19721_v52 = vpop.f32.mrb[187].mxu0 }
 0xa74   : > { %v13792_v40 = vpop.f32.mrb[188].mxu0 }
 0xa75   : > { %v5729_v9 = vpop.f32.mrb[189].mxu0  ;;  %v5811_v36 = vmul.f32 %v13792_v40, %v19723_v56  ;;  %v5801_v40 = vmul.f32 %v19723_v56, %v19709_v3 }
 0xa76   : > { %v5809_v27 = vmul.f32 %v19723_v56, %v5729_v9  ;;  %v13793_v20 = vpop.f32.mrb[190].mxu0 }
 0xa77   : > { %v5812_v0 = vmul.f32 %v13793_v20, %v19723_v56  ;;  %v5732_v21 = vpop.f32.mrb[191].mxu0  ;;  %v19751_v58 = vadd.f32 %v19729_v48, %v5811_v36  ;;  %v5803_v36 = vmul.f32 %v19707_v34, %v19723_v56 }
 0xa78   : > { %v5810_v15 = vmul.f32 %v19723_v56, %v5732_v21  ;;  %v19738_v50 = vadd.f32 %v19729_v48, %v5809_v27 }
 0xa79   : > { %v19741_v45 = vadd.f32 %v19729_v48, %v5812_v0  ;;  %22066 = vst [vmem:[#allocation92_spill] sm:$0xff] %v19751_v58  ;;  %v19818_v0 = vadd.f32 %v19729_v48, %v5802_v4  ;;  %v19847_v34 = vadd.f32 %v19729_v48, %v5803_v36 }
 0xa7a   : > { %22063 = vst [vmem:[#allocation89_spill] sm:$0xff] %v19738_v50  ;;  %v19744_v30 = vadd.f32 %v19729_v48, %v5810_v15  ;;  %v19832_v15 = vadd.f32 %v19729_v48, %v5801_v40 }
 0xa7b   : > { %22064 = vst [vmem:[#allocation90_spill] sm:$0xff] %v19741_v45  ;;  %v14760_v18 = vpack.c.bf16 %v19741_v45, %v19751_v58 }
 0xa7c   : > { %22065 = vst [vmem:[#allocation91_spill] sm:$0xff] %v19744_v30  ;;  %v14756_v60 = vpack.c.bf16 %v19744_v30, %v19738_v50 }
 0xa7e   : > { %14757 = vmatprep.subr.bf16.mxu0 %v14756_v60  ;;  %v14774_v60 = vpack.c.bf16 %v19818_v0, %v19832_v15 }
 0xa7f   : > { %14759 = vmatpush3.bf16.msra.mxu0 %v14758_v28 }
 0xa80   : > { %14761 = vmatprep.subr.bf16.mxu0 %v14760_v18  ;;  %v14778_v18 = vpack.c.bf16 %v19840_v19, %v19847_v34 }
 0xa83   : > { %14763 = vmatpush3.bf16.msra.mxu0 %v14762_v49 }
 0xa84   : > { %v13796_v24 = vpop.f32.mrb[192].mxu0 }
 0xa85   : > { %v5745_v1 = vpop.f32.mrb[193].mxu0  ;;  %v5815_v35 = vmul.f32 %v13796_v24, %v19723_v56  ;;  %v5806_v24 = vmul.f32 %v19723_v56, %v19721_v52 }
 0xa86   : > { %v5813_v2 = vmul.f32 %v19723_v56, %v5745_v1  ;;  %v13797_v42 = vpop.f32.mrb[194].mxu0 }
 0xa87   : > { %v5816_v6 = vmul.f32 %v13797_v42, %v19723_v56  ;;  %v5748_v7 = vpop.f32.mrb[195].mxu0  ;;  %v19791_v61 = vadd.f32 %v19729_v48, %v5815_v35  ;;  %v5805_v42 = vmul.f32 %v19723_v56, %v19717_v63  ;;  %v19862_v14 = vadd.f32 %v19729_v48, %v5806_v24  ;;  %v19933_v24 = vld [vmem:[%s21411_s4 + $0x220] sm:$0xff] }
 0xa88   : > { %v5814_v25 = vmul.f32 %v19723_v56, %v5748_v7  ;;  %v19778_v22 = vadd.f32 %v19729_v48, %v5813_v2  ;;  %22084 = vst [vmem:[#allocation110_spill] sm:$0xff] %v19933_v24 }
 0xa89   : > { %v19781_v44 = vadd.f32 %v19729_v48, %v5816_v6  ;;  %22070 = vst [vmem:[#allocation96_spill] sm:$0xff] %v19791_v61 }
 0xa8a   : > { %22067 = vst [vmem:[#allocation93_spill] sm:$0xff] %v19778_v22  ;;  %v19784_v32 = vadd.f32 %v19729_v48, %v5814_v25  ;;  %v5808_v25 = vmul.f32 %v19719_v11, %v19723_v56 }
 0xa8b   : > { %22068 = vst [vmem:[#allocation94_spill] sm:$0xff] %v19781_v44  ;;  %v14768_v43 = vpack.c.bf16 %v19781_v44, %v19791_v61 }
 0xa8c   : > { %22069 = vst [vmem:[#allocation95_spill] sm:$0xff] %v19784_v32  ;;  %v14764_v62 = vpack.c.bf16 %v19784_v32, %v19778_v22 }
 0xa8e   : > { %14765 = vmatprep.subr.bf16.mxu0 %v14764_v62  ;;  %v5807_v62 = vmul.f32 %v19715_v54, %v19723_v56 }
 0xa8f   : > { %14767 = vmatpush3.bf16.msra.mxu0 %v14766_v10  ;;  %v19876_v10 = vadd.f32 %v19729_v48, %v5805_v42  ;;  %v19961_v42 = vld [vmem:[%s21411_s4 + $0x240] sm:$0xff] }
 0xa90   : > { %14769 = vmatprep.subr.bf16.mxu0 %v14768_v43  ;;  %v19891_v54 = vadd.f32 %v19729_v48, %v5807_v62  ;;  %22088 = vst [vmem:[#allocation114_spill] sm:$0xff] %v19961_v42  ;;  %v20003_v62 = vld [vmem:[%s21411_s4 + $0x270] sm:$0xff] }
 0xa91   : > { %22094 = vst [vmem:[#allocation120_spill] sm:$0xff] %v20003_v62 }
 0xa92   : > { %22080 = vst [vmem:[#allocation106_spill] sm:$0xff] %v19891_v54 }
 0xa93   : > { %14771 = vmatpush3.bf16.msra.mxu0 %v14770_v55  ;;  %v19884_v55 = vadd.f32 %v19729_v48, %v5808_v25  ;;  %v19998_v25 = vld [vmem:[%s21411_s4 + $0x268] sm:$0xff] }
 0xa94   : > { %v13800_v17 = vpop.f32.mrb[196].mxu0  ;;  %22093 = vst [vmem:[#allocation119_spill] sm:$0xff] %v19998_v25 }
 0xa95   : > { %v5761_v13 = vpop.f32.mrb[197].mxu0  ;;  %v5819_v27 = vmul.f32 %v13800_v17, %v19723_v56  ;;  %22079 = vst [vmem:[#allocation105_spill] sm:$0xff] %v19884_v55  ;;  %v14782_v17 = vpack.c.bf16 %v19862_v14, %v19876_v10 }
 0xa96   : > { %v5817_v29 = vmul.f32 %v19723_v56, %v5761_v13  ;;  %v13801_v46 = vpop.f32.mrb[198].mxu0  ;;  %v19895_v13 = vld [vmem:[#allocation7 + $0x20] sm:$0xff] }
 0xa97   : > { %v5820_v57 = vmul.f32 %v13801_v46, %v19723_v56  ;;  %v5764_v9 = vpop.f32.mrb[199].mxu0  ;;  %v19835_v59 = vadd.f32 %v19729_v48, %v5819_v27  ;;  %v19901_v46 = vld [vmem:[#allocation7 + $0x68] sm:$0xff] }
 0xa98   : > { %v5818_v20 = vmul.f32 %v19723_v56, %v5764_v9  ;;  %v19821_v26 = vadd.f32 %v19729_v48, %v5817_v29  ;;  %v19897_v29 = vld [vmem:[#allocation7 + $0x70] sm:$0xff] }
 0xa99   : > { %v19824_v21 = vadd.f32 %v19729_v48, %v5820_v57  ;;  %22074 = vst [vmem:[#allocation100_spill] sm:$0xff] %v19835_v59 }
 0xa9a   : > { %22071 = vst [vmem:[#allocation97_spill] sm:$0xff] %v19821_v26  ;;  %v19827_v3 = vadd.f32 %v19729_v48, %v5818_v20 }
 0xa9b   : > { %22072 = vst [vmem:[#allocation98_spill] sm:$0xff] %v19824_v21  ;;  %v14776_v28 = vpack.c.bf16 %v19824_v21, %v19835_v59 }
 0xa9c   : > { %22073 = vst [vmem:[#allocation99_spill] sm:$0xff] %v19827_v3  ;;  %v14772_v33 = vpack.c.bf16 %v19827_v3, %v19821_v26 }
 0xa9e   : > { %14773 = vmatprep.subr.bf16.mxu0 %v14772_v33 }
 0xa9f   : > { %14775 = vmatpush3.bf16.msra.mxu0 %v14774_v60 }
 0xaa0   : > { %14777 = vmatprep.subr.bf16.mxu0 %v14776_v28  ;;  %v19914_v28 = vld [vmem:[%s21411_s4 + $0x208] sm:$0xff] }
 0xaa1   : > { %22081 = vst [vmem:[#allocation107_spill] sm:$0xff] %v19914_v28 }
 0xaa3   : > { %14779 = vmatpush3.bf16.msra.mxu0 %v14778_v18  ;;  %v19919_v18 = vld [vmem:[%s21411_s4 + $0x210] sm:$0xff] }
 0xaa4   : > { %v13804_v49 = vpop.f32.mrb[200].mxu0  ;;  %22082 = vst [vmem:[#allocation108_spill] sm:$0xff] %v19919_v18 }
 0xaa5   : > { %v5777_v41 = vpop.f32.mrb[201].mxu0  ;;  %v5823_v7 = vmul.f32 %v13804_v49, %v19723_v56  ;;  %v19928_v49 = vld [vmem:[%s21411_s4 + $0x218] sm:$0xff] }
 0xaa6   : > { %v5821_v1 = vmul.f32 %v19723_v56, %v5777_v41  ;;  %v13805_v2 = vpop.f32.mrb[202].mxu0  ;;  %22083 = vst [vmem:[#allocation109_spill] sm:$0xff] %v19928_v49  ;;  %v19942_v41 = vld [vmem:[%s21411_s4 + $0x228] sm:$0xff] }
 0xaa7   : > { %v5824_v12 = vmul.f32 %v13805_v2, %v19723_v56  ;;  %v5780_v6 = vpop.f32.mrb[203].mxu0  ;;  %v19879_v11 = vadd.f32 %v19729_v48, %v5823_v7  ;;  %22085 = vst [vmem:[#allocation111_spill] sm:$0xff] %v19942_v41  ;;  %v19956_v2 = vld [vmem:[%s21411_s4 + $0x238] sm:$0xff] }
 0xaa8   : > { %v5822_v35 = vmul.f32 %v19723_v56, %v5780_v6  ;;  %v19865_v52 = vadd.f32 %v19729_v48, %v5821_v1  ;;  %v14786_v56 = vpack.c.bf16 %v19884_v55, %v19891_v54  ;;  %v19947_v1 = vld [vmem:[%s21411_s4 + $0x230] sm:$0xff]  ;;  %22087 = vst [vmem:[#allocation113_spill] sm:$0xff] %v19956_v2  ;;  %v19984_v7 = vld [vmem:[%s21411_s4 + $0x258] sm:$0xff] }
 0xaa9   : > { %v19868_v53 = vadd.f32 %v19729_v48, %v5824_v12  ;;  %22078 = vst [vmem:[#allocation104_spill] sm:$0xff] %v19879_v11  ;;  %22086 = vst [vmem:[#allocation112_spill] sm:$0xff] %v19947_v1  ;;  %v19970_v12 = vld [vmem:[%s21411_s4 + $0x248] sm:$0xff]  ;;  %v19975_v6 = vld [vmem:[%s21411_s4 + $0x250] sm:$0xff] }
 0xaaa   : > { %22075 = vst [vmem:[#allocation101_spill] sm:$0xff] %v19865_v52  ;;  %v19871_v63 = vadd.f32 %v19729_v48, %v5822_v35  ;;  %v19907_v48 = vld [vmem:[%s21411_s4 + $0x200] sm:$0xff]  ;;  %22089 = vst [vmem:[#allocation115_spill] sm:$0xff] %v19970_v12 }
 0xaab   : > { %22076 = vst [vmem:[#allocation102_spill] sm:$0xff] %v19868_v53  ;;  %v14784_v4 = vpack.c.bf16 %v19868_v53, %v19879_v11  ;;  %22090 = vst [vmem:[#allocation116_spill] sm:$0xff] %v19975_v6  ;;  %v19989_v35 = vld [vmem:[%s21411_s4 + $0x260] sm:$0xff] }
 0xaac   : > { %22077 = vst [vmem:[#allocation103_spill] sm:$0xff] %v19871_v63  ;;  %v14780_v43 = vpack.c.bf16 %v19871_v63, %v19865_v52  ;;  %22091 = vst [vmem:[#allocation117_spill] sm:$0xff] %v19984_v7 }
 0xaad   : > { %22092 = vst [vmem:[#allocation118_spill] sm:$0xff] %v19989_v35 }
 0xaae   : > { %14781 = vmatprep.subr.bf16.mxu0 %v14780_v43  ;;  %v20012_v43 = vld [vmem:[%s21411_s4 + $0x278] sm:$0xff] }
 0xaaf   : > { %14783 = vmatpush3.bf16.msra.mxu0 %v14782_v17  ;;  %22095 = vst [vmem:[#allocation121_spill] sm:$0xff] %v20012_v43  ;;  %v20017_v17 = vld [vmem:[%s21411_s4 + $0x280] sm:$0xff] }
 0xab0   : > { %14785 = vmatprep.subr.bf16.mxu0 %v14784_v4  ;;  %22096 = vst [vmem:[#allocation122_spill] sm:$0xff] %v20017_v17  ;;  %v20026_v4 = vld [vmem:[%s21411_s4 + $0x288] sm:$0xff] }
 0xab1   : > { %22097 = vst [vmem:[#allocation123_spill] sm:$0xff] %v20026_v4 }
 0xab3   : > { %14787 = vmatpush3.bf16.msra.mxu0 %v14786_v56  ;;  %v20031_v56 = vld [vmem:[%s21411_s4 + $0x290] sm:$0xff] }
 0xab4   : > { %22098 = vst [vmem:[#allocation124_spill] sm:$0xff] %v20031_v56 }
 0xab6   : > { %5959 = vmatmul.mubr.f32.vlgmr.msra.gmra.mrb[204].mxu0 %v19895_v13 }
 0xab7   : > { %5963 = vmatprep.mubr.f32.mxu0 %v19897_v29 }
 0xaba   : > { %5964 = vmatmul.mubr.f32.gmra.mrb[206].mxu0 %v19901_v46 }
 0xabb   : > { %13810 = vmatprep.mubr.msk.f32.mxu0 %vm1350_vm1, %v19907_v48 }
 0xb89   : > { %v12910_v40 = vpop.f32.mrb[204].mxu0 }
 0xb8a   : > { %v12911_v57 = vpop.f32.mrb[205].mxu0 }
 0xb8b   : > { %v12912_v9 = vadd.f32 %v12911_v57, %v12910_v40  ;;  %v20040_v40 = vld [vmem:[%s21411_s4 + $0x298] sm:$0xff]  ;;  %v20045_v57 = vld [vmem:[%s21411_s4 + $0x2a0] sm:$0xff] }
 0xb8c   : > { %22099 = vst [vmem:[#allocation125_spill] sm:$0xff] %v20040_v40  ;;  %22100 = vst [vmem:[#allocation126_spill] sm:$0xff] %v20045_v57 }
 0xb8d   : > { %v12913_v27 = vpop.f32.mrb[206].mxu0  ;;  %v5969_v36 = vmul.f32 0.0625, %v12912_v9  ;;  %v20054_v9 = vld [vmem:[%s21411_s4 + $0x2a8] sm:$0xff] }
 0xb8e   : > { %v12914_v20 = vpop.f32.mrb[207].mxu0  ;;  %22101 = vst [vmem:[#allocation127_spill] sm:$0xff] %v20054_v9 }
 0xb8f   : > { %v12915_v16 = vadd.f32 %v12914_v20, %v12913_v27  ;;  %v20059_v27 = vld [vmem:[%s21411_s4 + $0x2b0] sm:$0xff]  ;;  %v20068_v20 = vld [vmem:[%s21411_s4 + $0x2b8] sm:$0xff] }
 0xb90   : > { %22102 = vst [vmem:[#allocation128_spill] sm:$0xff] %v20059_v27  ;;  %22103 = vst [vmem:[#allocation129_spill] sm:$0xff] %v20068_v20 }
 0xb91   : > { %v5970_v33 = vmul.f32 0.0625, %v12915_v16  ;;  %v20073_v16 = vld [vmem:[%s21411_s4 + $0x2c0] sm:$0xff] }
 0xb92   : > { %22104 = vst [vmem:[#allocation130_spill] sm:$0xff] %v20073_v16 }
 0xb93   : > { %v14788_v60 = vpack.c.bf16 %v5970_v33, %v5969_v36  ;;  %v20082_v36 = vld [vmem:[%s21411_s4 + $0x2c8] sm:$0xff]  ;;  %v20087_v33 = vld [vmem:[%s21411_s4 + $0x2d0] sm:$0xff] }
 0xb94   : > { %22105 = vst [vmem:[#allocation131_spill] sm:$0xff] %v20082_v36  ;;  %22106 = vst [vmem:[#allocation132_spill] sm:$0xff] %v20087_v33 }
 0xb95   : > { %14789 = vmatprep.subr.bf16.mxu0 %v14788_v60 }
 0xb96   : > { %14791 = vmatpush3.bf16.msra.mxu0 %v14788_v60  ;;  %v20096_v60 = vld [vmem:[%s21411_s4 + $0x2d8] sm:$0xff] }
 0xb97   : > { %22107 = vst [vmem:[#allocation133_spill] sm:$0xff] %v20096_v60 }
 0xb99   : > { %13811 = vmatmul.mubr.msk.f32.vlgmr.msra.gmra.mrb[208].mxu0 %vm1350_vm1, %v19914_v28 }
 0xb9a   : > { %13813 = vmatprep.mubr.msk.f32.mxu0 %vm1350_vm1, %v19919_v18 }
 0xb9d   : > { %13814 = vmatmul.mubr.msk.f32.gmra.mrb[210].mxu0 %vm1350_vm1, %v19928_v49 }
 0xb9e   : > { %13816 = vmatprep.mubr.msk.f32.mxu0 %vm1350_vm1, %v19933_v24 }
 0xba1   : > { %13817 = vmatmul.mubr.msk.f32.gmra.mrb[212].mxu0 %vm1350_vm1, %v19942_v41 }
 0xba2   : > { %13819 = vmatprep.mubr.msk.f32.mxu0 %vm1350_vm1, %v19947_v1 }
 0xba5   : > { %13820 = vmatmul.mubr.msk.f32.gmra.mrb[214].mxu0 %vm1350_vm1, %v19956_v2 }
 0xba6   : > { %13822 = vmatprep.mubr.msk.f32.mxu0 %vm1350_vm1, %v19961_v42 }
 0xba9   : > { %13823 = vmatmul.mubr.msk.f32.gmra.mrb[216].mxu0 %vm1350_vm1, %v19970_v12 }
 0xbaa   : > { %13825 = vmatprep.mubr.msk.f32.mxu0 %vm1350_vm1, %v19975_v6 }
 0xbad   : > { %13826 = vmatmul.mubr.msk.f32.gmra.mrb[218].mxu0 %vm1350_vm1, %v19984_v7 }
 0xbae   : > { %13828 = vmatprep.mubr.msk.f32.mxu0 %vm1350_vm1, %v19989_v35 }
 0xbb1   : > { %13829 = vmatmul.mubr.msk.f32.gmra.mrb[220].mxu0 %vm1350_vm1, %v19998_v25 }
 0xbb2   : > { %13831 = vmatprep.mubr.msk.f32.mxu0 %vm1350_vm1, %v20003_v62 }
 0xbb5   : > { %13832 = vmatmul.mubr.msk.f32.gmra.mrb[222].mxu0 %vm1350_vm1, %v20012_v43 }
 0xbb6   : > { %13834 = vmatprep.mubr.msk.f32.mxu0 %vm1350_vm1, %v20017_v17 }
 0xbb9   : > { %13835 = vmatmul.mubr.msk.f32.gmra.mrb[224].mxu0 %vm1350_vm1, %v20026_v4 }
 0xbba   : > { %13837 = vmatprep.mubr.msk.f32.mxu0 %vm1350_vm1, %v20031_v56 }
 0xbbd   : > { %13838 = vmatmul.mubr.msk.f32.gmra.mrb[226].mxu0 %vm1350_vm1, %v20040_v40 }
 0xbbe   : > { %13840 = vmatprep.mubr.msk.f32.mxu0 %vm1350_vm1, %v20045_v57 }
 0xbc1   : > { %13841 = vmatmul.mubr.msk.f32.gmra.mrb[228].mxu0 %vm1350_vm1, %v20054_v9 }
 0xbc2   : > { %13843 = vmatprep.mubr.msk.f32.mxu0 %vm1350_vm1, %v20059_v27 }
 0xbc5   : > { %13844 = vmatmul.mubr.msk.f32.gmra.mrb[230].mxu0 %vm1350_vm1, %v20068_v20 }
 0xbc6   : > { %13846 = vmatprep.mubr.msk.f32.mxu0 %vm1350_vm1, %v20073_v16  ;;  %v20101_v16 = vld [vmem:[%s21411_s4 + $0x2e0] sm:$0xff] }
 0xbc7   : > { %22108 = vst [vmem:[#allocation134_spill] sm:$0xff] %v20101_v16 }
 0xbc9   : > { %13847 = vmatmul.mubr.msk.f32.gmra.mrb[232].mxu0 %vm1350_vm1, %v20082_v36  ;;  %v20115_v36 = vld [vmem:[%s21411_s4 + $0x2f0] sm:$0xff] }
 0xbca   : > { %13849 = vmatprep.mubr.msk.f32.mxu0 %vm1350_vm1, %v20087_v33  ;;  %v20110_v33 = vld [vmem:[%s21411_s4 + $0x2e8] sm:$0xff]  ;;  %22110 = vst [vmem:[#allocation136_spill] sm:$0xff] %v20115_v36 }
 0xbcb   : > { %22109 = vst [vmem:[#allocation135_spill] sm:$0xff] %v20110_v33 }
 0xbcd   : > { %13850 = vmatmul.mubr.msk.f32.gmra.mrb[234].mxu0 %vm1350_vm1, %v20096_v60 }
 0xbce   : > { %13852 = vmatprep.mubr.msk.f32.mxu0 %vm1350_vm1, %v20101_v16  ;;  %v20124_v16 = vld [vmem:[%s21411_s4 + $0x2f8] sm:$0xff] }
 0xbcf   : > { %22111 = vst [vmem:[#allocation137_spill] sm:$0xff] %v20124_v16 }
 0xbd1   : > { %13853 = vmatmul.mubr.msk.f32.gmra.mrb[236].mxu0 %vm1350_vm1, %v20110_v33 }
 0xbd2   : > { %13855 = vmatprep.mubr.msk.f32.mxu0 %vm1350_vm1, %v20115_v36 }
 0xbd5   : > { %13856 = vmatmul.mubr.msk.f32.gmra.mrb[238].mxu0 %vm1350_vm1, %v20124_v16 }
 0xbd6   : > { %6420 = vmatprep.mubr.f32.mxu0 %v19704_v5 }
 0xc6c   : > { %v13812_v60 = vpop.f32.mrb[208].mxu0 }
 0xc6d   : > { %v6133_v20 = vpop.f32.mrb[209].mxu0  ;;  %v6293_v35 = vsub.f32 %v19735_v37, %v13812_v60 }
 0xc6e   : > { %v6292_v7 = vsub.f32 %v19748_v47, %v6133_v20 }
 0xc6f   : > { %v20142_v2 = vmul.f32 %v6293_v35, %v6293_v35 }
 0xc70   : > { %v13815_v27 = vpop.f32.mrb[210].mxu0  ;;  %v20145_v41 = vmul.f32 %v6292_v7, %v6292_v7 }
 0xc71   : > { %v6143_v9 = vpop.f32.mrb[211].mxu0  ;;  %v6295_v24 = vsub.f32 %v19756_v39, %v13815_v27 }
 0xc72   : > { %v6294_v49 = vsub.f32 %v19763_v23, %v6143_v9  ;;  %v14794_v9 = vpack.c.bf16 %v20142_v2, %v20145_v41 }
 0xc74   : > { %v13818_v57 = vpop.f32.mrb[212].mxu0 }
 0xc75   : > { %v6153_v40 = vpop.f32.mrb[213].mxu0  ;;  %v6297_v20 = vsub.f32 %v19775_v31, %v13818_v57 }
 0xc76   : > { %v6296_v35 = vsub.f32 %v19788_v51, %v6153_v40 }
 0xc78   : > { %v13821_v33 = vpop.f32.mrb[214].mxu0 }
 0xc79   : > { %v6163_v56 = vpop.f32.mrb[215].mxu0 }
 0xc7c   : > { %v13824_v4 = vpop.f32.mrb[216].mxu0 }
 0xc7d   : > { %v6173_v36 = vpop.f32.mrb[217].mxu0 }
 0xc80   : > { %v13827_v17 = vpop.f32.mrb[218].mxu0 }
 0xc81   : > { %v20129_v43 = vpop.f32.mrb[219].mxu0 }
 0xc84   : > { %v20131_v62 = vpop.f32.mrb[220].mxu0 }
 0xc85   : > { %v20133_v25 = vpop.f32.mrb[221].mxu0 }
 0xc88   : > { %v20135_v16 = vpop.f32.mrb[222].mxu0 }
 0xc89   : > { %v20137_v5 = vpop.f32.mrb[223].mxu0 }
 0xc8c   : > { %v13836_v6 = vpop.f32.mrb[224].mxu0 }
 0xc8d   : > { %v6309_v12 = vsub.f32 %v19744_v30, %v13836_v6  ;;  %v6213_v42 = vpop.f32.mrb[225].mxu0 }
 0xc8e   : > { %v6308_v1 = vsub.f32 %v19738_v50, %v6213_v42 }
 0xc8f   : > { %v20149_v18 = vmul.f32 %v6309_v12, %v6309_v12  ;;  %v20161_v12 = vmul.f32 %v6295_v24, %v6295_v24 }
 0xc90   : > { %v20151_v28 = vmul.f32 %v6308_v1, %v6308_v1  ;;  %v13839_v60 = vpop.f32.mrb[226].mxu0  ;;  %v20163_v1 = vmul.f32 %v6294_v49, %v6294_v49 }
 0xc91   : > { %v6311_v6 = vsub.f32 %v19741_v45, %v13839_v60  ;;  %v6223_v30 = vpop.f32.mrb[227].mxu0  ;;  %v20169_v45 = vmul.f32 %v6297_v20, %v6297_v20 }
 0xc92   : > { %v14792_v42 = vpack.c.bf16 %v20149_v18, %v20151_v28  ;;  %v6310_v7 = vsub.f32 %v19751_v58, %v6223_v30  ;;  %v20172_v30 = vmul.f32 %v6296_v35, %v6296_v35  ;;  %v6299_v58 = vsub.f32 %v19796_v8, %v13821_v33 }
 0xc93   : > { %v20165_v27 = vmul.f32 %v6311_v6, %v6311_v6  ;;  %v14798_v6 = vpack.c.bf16 %v20161_v12, %v20163_v1 }
 0xc94   : > { %v20167_v57 = vmul.f32 %v6310_v7, %v6310_v7  ;;  %v13842_v60 = vpop.f32.mrb[228].mxu0  ;;  %14793 = vmatprep.subr.bf16.mxu0 %v14792_v42  ;;  %v6298_v42 = vsub.f32 %v19803_v38, %v6163_v56  ;;  %v14802_v33 = vpack.c.bf16 %v20169_v45, %v20172_v30 }
 0xc95   : > { %v6313_v40 = vsub.f32 %v19784_v32, %v13842_v60  ;;  %v6233_v50 = vpop.f32.mrb[229].mxu0  ;;  %14795 = vmatpush3.bf16.msra.mxu0 %v14794_v9  ;;  %v20188_v32 = vmul.f32 %v6299_v58, %v6299_v58  ;;  %v6303_v58 = vsub.f32 %v19840_v19, %v13827_v17 }
 0xc96   : > { %22112 = vst [vmem:[#allocation138_spill] sm:$0xff] %v20167_v57  ;;  %v14796_v49 = vpack.c.bf16 %v20165_v27, %v20167_v57  ;;  %v6312_v24 = vsub.f32 %v19778_v22, %v6233_v50 }
 0xc97   : > { %v20181_v20 = vmul.f32 %v6313_v40, %v6313_v40  ;;  %v20193_v40 = vmul.f32 %v6298_v42, %v6298_v42  ;;  %v6302_v42 = vsub.f32 %v19847_v34, %v20129_v43 }
 0xc98   : > { %v20183_v7 = vmul.f32 %v6312_v24, %v6312_v24  ;;  %v13845_v60 = vpop.f32.mrb[230].mxu0  ;;  %14797 = vmatprep.subr.bf16.mxu0 %v14796_v49  ;;  %v6301_v24 = vsub.f32 %v19818_v0, %v13824_v4  ;;  %v6300_v49 = vsub.f32 %v19832_v15, %v6173_v36 }
 0xc99   : > { %v6315_v35 = vsub.f32 %v19781_v44, %v13845_v60  ;;  %v6243_v9 = vpop.f32.mrb[231].mxu0  ;;  %14799 = vmatpush3.bf16.msra.mxu0 %v14798_v6 }
 0xc9a   : > { %v14800_v50 = vpack.c.bf16 %v20181_v20, %v20183_v7  ;;  %v6314_v56 = vsub.f32 %v19791_v61, %v6243_v9  ;;  %v20210_v9 = vmul.f32 %v6301_v24, %v6301_v24  ;;  %v6305_v24 = vsub.f32 %v19862_v14, %v20131_v62 }
 0xc9b   : > { %v20197_v22 = vmul.f32 %v6315_v35, %v6315_v35  ;;  %v14806_v35 = vpack.c.bf16 %v20188_v32, %v20193_v40 }
 0xc9c   : > { %v20199_v60 = vmul.f32 %v6314_v56, %v6314_v56  ;;  %v13848_v6 = vpop.f32.mrb[232].mxu0  ;;  %14801 = vmatprep.subr.bf16.mxu0 %v14800_v50  ;;  %v20212_v50 = vmul.f32 %v6300_v49, %v6300_v49 }
 0xc9d   : > { %v6317_v44 = vsub.f32 %v19827_v3, %v13848_v6  ;;  %v6253_v57 = vpop.f32.mrb[233].mxu0  ;;  %14803 = vmatpush3.bf16.msra.mxu0 %v14802_v33  ;;  %v20218_v6 = vmul.f32 %v6303_v58, %v6303_v58  ;;  %v6304_v58 = vsub.f32 %v19876_v10, %v20133_v25 }
 0xc9e   : > { %v14804_v4 = vpack.c.bf16 %v20197_v22, %v20199_v60  ;;  %v6316_v36 = vsub.f32 %v19821_v26, %v6253_v57  ;;  %v20221_v57 = vmul.f32 %v6302_v42, %v6302_v42 }
 0xc9f   : > { %v20214_v17 = vmul.f32 %v6317_v44, %v6317_v44 }
 0xca0   : > { %v20216_v56 = vmul.f32 %v6316_v36, %v6316_v36  ;;  %v13851_v33 = vpop.f32.mrb[234].mxu0  ;;  %14805 = vmatprep.subr.bf16.mxu0 %v14804_v4  ;;  %v14810_v36 = vpack.c.bf16 %v20210_v9, %v20212_v50 }
 0xca1   : > { %v6319_v43 = vsub.f32 %v19824_v21, %v13851_v33  ;;  %v6263_v3 = vpop.f32.mrb[235].mxu0  ;;  %14807 = vmatpush3.bf16.msra.mxu0 %v14806_v35  ;;  %v14814_v21 = vpack.c.bf16 %v20218_v6, %v20221_v57 }
 0xca2   : > { %v14808_v49 = vpack.c.bf16 %v20214_v17, %v20216_v56  ;;  %v6318_v44 = vsub.f32 %v19835_v59, %v6263_v3  ;;  %v20239_v3 = vmul.f32 %v6305_v24, %v6305_v24 }
 0xca3   : > { %v20232_v4 = vmul.f32 %v6319_v43, %v6319_v43  ;;  %v20244_v43 = vmul.f32 %v6304_v58, %v6304_v58 }
 0xca4   : > { %v20234_v33 = vmul.f32 %v6318_v44, %v6318_v44  ;;  %v13854_v42 = vpop.f32.mrb[236].mxu0  ;;  %14809 = vmatprep.subr.bf16.mxu0 %v14808_v49  ;;  %v6307_v44 = vsub.f32 %v19884_v55, %v20135_v16  ;;  %v6306_v49 = vsub.f32 %v19891_v54, %v20137_v5 }
 0xca5   : > { %v6321_v35 = vsub.f32 %v19871_v63, %v13854_v42  ;;  %v6273_v62 = vpop.f32.mrb[237].mxu0  ;;  %14811 = vmatpush3.bf16.msra.mxu0 %v14810_v36  ;;  %v14818_v16 = vpack.c.bf16 %v20239_v3, %v20244_v43 }
 0xca6   : > { %v14812_v59 = vpack.c.bf16 %v20232_v4, %v20234_v33  ;;  %v6320_v25 = vsub.f32 %v19865_v52, %v6273_v62  ;;  %v20260_v52 = vmul.f32 %v6307_v44, %v6307_v44  ;;  %v20262_v5 = vmul.f32 %v6306_v49, %v6306_v49 }
 0xca7   : > { %v20250_v42 = vmul.f32 %v6321_v35, %v6321_v35 }
 0xca8   : > { %v20252_v36 = vmul.f32 %v6320_v25, %v6320_v25  ;;  %v13857_v63 = vpop.f32.mrb[238].mxu0  ;;  %14813 = vmatprep.subr.bf16.mxu0 %v14812_v59  ;;  %v14822_v59 = vpack.c.bf16 %v20260_v52, %v20262_v5 }
 0xca9   : > { %v6323_v24 = vsub.f32 %v19868_v53, %v13857_v63  ;;  %v6283_v26 = vpop.f32.mrb[239].mxu0  ;;  %14815 = vmatpush3.bf16.msra.mxu0 %v14814_v21 }
 0xcaa   : > { %22113 = vst [vmem:[#allocation139_spill] sm:$0xff] %v20252_v36  ;;  %v14816_v58 = vpack.c.bf16 %v20250_v42, %v20252_v36  ;;  %v6322_v62 = vsub.f32 %v19879_v11, %v6283_v26 }
 0xcab   : > { %v20264_v35 = vmul.f32 %v6323_v24, %v6323_v24 }
 0xcac   : > { %v20266_v25 = vmul.f32 %v6322_v62, %v6322_v62  ;;  %14817 = vmatprep.subr.bf16.mxu0 %v14816_v58 }
 0xcad   : > { %22114 = vst [vmem:[#allocation140_spill] sm:$0xff] %v20264_v35  ;;  %14819 = vmatpush3.bf16.msra.mxu0 %v14818_v16  ;;  %v22116_v16 = vld [vmem:[#allocation107_spill] sm:$0xff] }
 0xcae   : > { %22115 = vst [vmem:[#allocation141_spill] sm:$0xff] %v20266_v25  ;;  %v14820_v21 = vpack.c.bf16 %v20264_v35, %v20266_v25 }
 0xcb0   : > { %14821 = vmatprep.subr.bf16.mxu0 %v14820_v21  ;;  %v22121_v21 = vld [vmem:[#allocation112_spill] sm:$0xff] }
 0xcb1   : > { %14823 = vmatpush3.bf16.msra.mxu0 %v14822_v59  ;;  %v22122_v59 = vld [vmem:[#allocation113_spill] sm:$0xff] }
 0xcb4   : > { %6421 = vmatmul.mubr.f32.vlgmr.msra.gmra.mrb[240].mxu0 %v19895_v13  ;;  %v22117_v13 = vld [vmem:[#allocation108_spill] sm:$0xff] }
 0xcb5   : > { %6425 = vmatprep.mubr.f32.mxu0 %v19897_v29  ;;  %v22118_v29 = vld [vmem:[#allocation109_spill] sm:$0xff] }
 0xcb8   : > { %6426 = vmatmul.mubr.f32.gmra.mrb[242].mxu0 %v19901_v46  ;;  %v22119_v46 = vld [vmem:[#allocation110_spill] sm:$0xff] }
 0xcb9   : > { %13862 = vmatprep.mubr.msk.f32.mxu0 %vm1350_vm1, %v19907_v48  ;;  %v22120_v48 = vld [vmem:[#allocation111_spill] sm:$0xff] }
 0xd87   : > { %v12982_v26 = vpop.f32.mrb[240].mxu0 }
 0xd88   : > { %v12983_v63 = vpop.f32.mrb[241].mxu0 }
 0xd89   : > { %v12984_v44 = vadd.f32 %v12983_v63, %v12982_v26  ;;  %v22123_v26 = vld [vmem:[#allocation114_spill] sm:$0xff]  ;;  %v22124_v63 = vld [vmem:[#allocation115_spill] sm:$0xff] }
 0xd8b   : > { %v12985_v49 = vpop.f32.mrb[242].mxu0 }
 0xd8c   : > { %v12986_v24 = vpop.f32.mrb[243].mxu0 }
 0xd8d   : > { %v12987_v58 = vadd.f32 %v12986_v24, %v12985_v49  ;;  %v22126_v49 = vld [vmem:[#allocation117_spill] sm:$0xff]  ;;  %v22127_v24 = vld [vmem:[#allocation118_spill] sm:$0xff] }
 0xd8f   : > { %v14824_v62 = vpack.c.bf16 %v12987_v58, %v12984_v44  ;;  %v22125_v44 = vld [vmem:[#allocation116_spill] sm:$0xff]  ;;  %v22128_v58 = vld [vmem:[#allocation119_spill] sm:$0xff] }
 0xd91   : > { %14825 = vmatprep.subr.bf16.mxu0 %v14824_v62 }
 0xd92   : > { %14827 = vmatpush3.bf16.msra.mxu0 %v14824_v62  ;;  %v22129_v62 = vld [vmem:[#allocation120_spill] sm:$0xff] }
 0xd95   : > { %13863 = vmatmul.mubr.msk.f32.vlgmr.msra.gmra.mrb[244].mxu0 %vm1350_vm1, %v22116_v16  ;;  %v22130_v16 = vld [vmem:[#allocation121_spill] sm:$0xff] }
 0xd96   : > { %13865 = vmatprep.mubr.msk.f32.mxu0 %vm1350_vm1, %v22117_v13  ;;  %v22131_v13 = vld [vmem:[#allocation122_spill] sm:$0xff] }
 0xd99   : > { %13866 = vmatmul.mubr.msk.f32.gmra.mrb[246].mxu0 %vm1350_vm1, %v22118_v29  ;;  %v22132_v29 = vld [vmem:[#allocation123_spill] sm:$0xff] }
 0xd9a   : > { %13868 = vmatprep.mubr.msk.f32.mxu0 %vm1350_vm1, %v22119_v46  ;;  %v22133_v46 = vld [vmem:[#allocation124_spill] sm:$0xff] }
 0xd9d   : > { %13869 = vmatmul.mubr.msk.f32.gmra.mrb[248].mxu0 %vm1350_vm1, %v22120_v48  ;;  %v22134_v48 = vld [vmem:[#allocation125_spill] sm:$0xff] }
 0xd9e   : > { %13871 = vmatprep.mubr.msk.f32.mxu0 %vm1350_vm1, %v22121_v21  ;;  %v22135_v21 = vld [vmem:[#allocation126_spill] sm:$0xff] }
 0xda1   : > { %13872 = vmatmul.mubr.msk.f32.gmra.mrb[250].mxu0 %vm1350_vm1, %v22122_v59  ;;  %v22136_v59 = vld [vmem:[#allocation127_spill] sm:$0xff] }
 0xda2   : > { %13874 = vmatprep.mubr.msk.f32.mxu0 %vm1350_vm1, %v22123_v26  ;;  %v22137_v26 = vld [vmem:[#allocation128_spill] sm:$0xff] }
 0xda5   : > { %13875 = vmatmul.mubr.msk.f32.gmra.mrb[252].mxu0 %vm1350_vm1, %v22124_v63  ;;  %v22138_v63 = vld [vmem:[#allocation129_spill] sm:$0xff] }
 0xda6   : > { %13877 = vmatprep.mubr.msk.f32.mxu0 %vm1350_vm1, %v22125_v44  ;;  %v22139_v44 = vld [vmem:[#allocation130_spill] sm:$0xff] }
 0xda9   : > { %13878 = vmatmul.mubr.msk.f32.gmra.mrb[254].mxu0 %vm1350_vm1, %v22126_v49  ;;  %v22140_v49 = vld [vmem:[#allocation131_spill] sm:$0xff] }
 0xdaa   : > { %13880 = vmatprep.mubr.msk.f32.mxu0 %vm1350_vm1, %v22127_v24  ;;  %v22141_v24 = vld [vmem:[#allocation132_spill] sm:$0xff] }
 0xdad   : > { %13881 = vmatmul.mubr.msk.f32.gmra.mrb[0].mxu0 %vm1350_vm1, %v22128_v58  ;;  %v22142_v58 = vld [vmem:[#allocation133_spill] sm:$0xff] }
 0xdae   : > { %13883 = vmatprep.mubr.msk.f32.mxu0 %vm1350_vm1, %v22129_v62  ;;  %v22143_v62 = vld [vmem:[#allocation134_spill] sm:$0xff] }
 0xdb1   : > { %13884 = vmatmul.mubr.msk.f32.gmra.mrb[2].mxu0 %vm1350_vm1, %v22130_v16  ;;  %v22144_v16 = vld [vmem:[#allocation135_spill] sm:$0xff] }
 0xdb2   : > { %13886 = vmatprep.mubr.msk.f32.mxu0 %vm1350_vm1, %v22131_v13  ;;  %v22145_v13 = vld [vmem:[#allocation136_spill] sm:$0xff] }
 0xdb5   : > { %13887 = vmatmul.mubr.msk.f32.gmra.mrb[4].mxu0 %vm1350_vm1, %v22132_v29  ;;  %v22146_v29 = vld [vmem:[#allocation137_spill] sm:$0xff] }
 0xdb6   : > { %13889 = vmatprep.mubr.msk.f32.mxu0 %vm1350_vm1, %v22133_v46 }
 0xdb9   : > { %13890 = vmatmul.mubr.msk.f32.gmra.mrb[6].mxu0 %vm1350_vm1, %v22134_v48 }
 0xdba   : > { %13892 = vmatprep.mubr.msk.f32.mxu0 %vm1350_vm1, %v22135_v21 }
 0xdbd   : > { %13893 = vmatmul.mubr.msk.f32.gmra.mrb[8].mxu0 %vm1350_vm1, %v22136_v59 }
 0xdbe   : > { %13895 = vmatprep.mubr.msk.f32.mxu0 %vm1350_vm1, %v22137_v26 }
 0xdc1   : > { %13896 = vmatmul.mubr.msk.f32.gmra.mrb[10].mxu0 %vm1350_vm1, %v22138_v63 }
 0xdc2   : > { %13898 = vmatprep.mubr.msk.f32.mxu0 %vm1350_vm1, %v22139_v44 }
 0xdc5   : > { %13899 = vmatmul.mubr.msk.f32.gmra.mrb[12].mxu0 %vm1350_vm1, %v22140_v49 }
 0xdc6   : > { %13901 = vmatprep.mubr.msk.f32.mxu0 %vm1350_vm1, %v22141_v24 }
 0xdc9   : > { %13902 = vmatmul.mubr.msk.f32.gmra.mrb[14].mxu0 %vm1350_vm1, %v22142_v58 }
 0xdca   : > { %13904 = vmatprep.mubr.msk.f32.mxu0 %vm1350_vm1, %v22143_v62 }
 0xdcd   : > { %13905 = vmatmul.mubr.msk.f32.gmra.mrb[16].mxu0 %vm1350_vm1, %v22144_v16 }
 0xdce   : > { %13907 = vmatprep.mubr.msk.f32.mxu0 %vm1350_vm1, %v22145_v13 }
 0xdd1   : > { %13908 = vmatmul.mubr.msk.f32.gmra.mrb[18].mxu0 %vm1350_vm1, %v22146_v29 }
 0xe68   : > { %v13864_v46 = vpop.f32.mrb[244].mxu0 }
 0xe69   : > { %v6657_v48 = vmul.f32 0.06666667, %v13864_v46  ;;  %v6497_v21 = vpop.f32.mrb[245].mxu0 }
 0xe6a   : > { %v6656_v59 = vmul.f32 0.06666667, %v6497_v21 }
 0xe6b   : > { %v6689_v26 = vadd.f32 0.0001, %v6657_v48  ;;  %v7105_v48 = vld [vmem:[#allocation8 + $0xc08] sm:$0xff] }
 0xe6c   : > { %v6688_v63 = vadd.f32 0.0001, %v6656_v59  ;;  %v13867_v44 = vpop.f32.mrb[246].mxu0  ;;  %v7282_v59 = vld [vmem:[#allocation8 + $0xe08] sm:$0xff]  ;;  %7200 = vmatprep.mubr.f32.mxu1 %v7105_v48 }
 0xe6d   : > { %v6721_v49 = vmul.f32 4.0, %v6689_v26  ;;  %v6659_v24 = vmul.f32 0.06666667, %v13867_v44  ;;  %v6507_v58 = vpop.f32.mrb[247].mxu0  ;;  %7377 = vmatprep.mubr.f32.mxu0 %v7282_v59 }
 0xe6e   : > { %v6720_v62 = vmul.f32 4.0, %v6688_v63  ;;  %v6658_v11 = vmul.f32 0.06666667, %v6507_v58 }
 0xe6f   : > { %16410 = vrcp.f32 %v6721_v49  ;;  %v6691_v16 = vadd.f32 0.0001, %v6659_v24 }
 0xe70   : > { %16412 = vrcp.f32 %v6720_v62  ;;  %v6690_v53 = vadd.f32 0.0001, %v6658_v11  ;;  %v13870_v13 = vpop.f32.mrb[248].mxu0 }
 0xe71   : > { %v6723_v61 = vmul.f32 4.0, %v6691_v16  ;;  %v6661_v25 = vmul.f32 0.06666667, %v13870_v13  ;;  %v6517_v29 = vpop.f32.mrb[249].mxu0 }
 0xe72   : > { %v6722_v35 = vmul.f32 4.0, %v6690_v53  ;;  %v6660_v46 = vmul.f32 0.06666667, %v6517_v29 }
 0xe73   : > { %16414 = vrcp.f32 %v6723_v61  ;;  %v6693_v21 = vadd.f32 0.0001, %v6661_v25 }
 0xe74   : > { %16416 = vrcp.f32 %v6722_v35  ;;  %v6692_v26 = vadd.f32 0.0001, %v6660_v46  ;;  %v13873_v44 = vpop.f32.mrb[250].mxu0 }
 0xe75   : > { %v6725_v63 = vmul.f32 4.0, %v6693_v21  ;;  %v6663_v49 = vmul.f32 0.06666667, %v13873_v44  ;;  %v6527_v24 = vpop.f32.mrb[251].mxu0 }
 0xe76   : > { %v6724_v58 = vmul.f32 4.0, %v6692_v26  ;;  %v6662_v11 = vmul.f32 0.06666667, %v6527_v24 }
 0xe77   : > { %16418 = vrcp.f32 %v6725_v63  ;;  %v6695_v62 = vadd.f32 0.0001, %v6663_v49 }
 0xe78   : > { %16420 = vrcp.f32 %v6724_v58  ;;  %v6694_v16 = vadd.f32 0.0001, %v6662_v11  ;;  %v13876_v53 = vpop.f32.mrb[252].mxu0 }
 0xe79   : > { %v16411_v13 = vpop.eup %16410  ;;  %v6727_v61 = vmul.f32 4.0, %v6695_v62  ;;  %v6665_v25 = vmul.f32 0.06666667, %v13876_v53  ;;  %v6537_v29 = vpop.f32.mrb[253].mxu0 }
 0xe7a   : > { %v16413_v54 = vpop.eup %16412  ;;  %v6755_v35 = vmul.f32 %v16411_v13, %v20142_v2  ;;  %v6726_v46 = vmul.f32 4.0, %v6694_v16  ;;  %v6664_v48 = vmul.f32 0.06666667, %v6537_v29 }
 0xe7b   : > { %v6753_v21 = vmul.f32 %v16413_v54, %v20145_v41  ;;  %16422 = vrcp.f32 %v6727_v61  ;;  %v6697_v59 = vadd.f32 0.0001, %v6665_v25 }
 0xe7c   : > { %v6817_v26 = vadd.f32 0.5, %v6755_v35  ;;  %16424 = vrcp.f32 %v6726_v46  ;;  %v6696_v44 = vadd.f32 0.0001, %v6664_v48  ;;  %v13879_v63 = vpop.f32.mrb[254].mxu0 }
 0xe7d   : > { %v16415_v49 = vpop.eup %16414  ;;  %v6816_v24 = vadd.f32 0.5, %v6753_v21  ;;  %v6729_v58 = vmul.f32 4.0, %v6697_v59  ;;  %v6667_v11 = vmul.f32 0.06666667, %v13879_v63  ;;  %v6547_v62 = vpop.f32.mrb[255].mxu0 }
 0xe7e   : > { %v16417_v53 = vpop.eup %16416  ;;  %v12246_v36 = vmul.f32 -1.442695, %v6817_v26  ;;  %v6759_v55 = vmul.f32 %v16415_v49, %v20161_v12  ;;  %v6728_v2 = vmul.f32 4.0, %v6696_v44  ;;  %v6666_v16 = vmul.f32 0.06666667, %v6547_v62 }
 0xe7f   : > { %v12245_v13 = vmul.f32 -1.442695, %v6816_v24  ;;  %v6757_v54 = vmul.f32 %v16417_v53, %v20163_v1  ;;  %16426 = vrcp.f32 %v6729_v58  ;;  %v6699_v41 = vadd.f32 0.0001, %v6667_v11 }
 0xe80   : > { %16428 = vpow2.f32 %v12246_v36  ;;  %v6819_v61 = vadd.f32 0.5, %v6759_v55  ;;  %v6698_v25 = vadd.f32 0.0001, %v6666_v16  ;;  %v13882_v29 = vpop.f32.mrb[0].mxu0 }
 0xe81   : > { %v16419_v35 = vpop.eup %16418  ;;  %16430 = vpow2.f32 %v12245_v13  ;;  %v6818_v46 = vadd.f32 0.5, %v6757_v54  ;;  %v6731_v48 = vmul.f32 4.0, %v6699_v41  ;;  %v6669_v21 = vmul.f32 0.06666667, %v13882_v29  ;;  %v6557_v59 = vpop.f32.mrb[1].mxu0 }
 0xe82   : > { %v16421_v26 = vpop.eup %16420  ;;  %v12248_v63 = vmul.f32 -1.442695, %v6819_v61  ;;  %v6763_v12 = vmul.f32 %v16419_v35, %v20169_v45  ;;  %16432 = vrcp.f32 %v6728_v2  ;;  %v6730_v44 = vmul.f32 4.0, %v6698_v25 }
 0xe83   : > { %v12247_v49 = vmul.f32 -1.442695, %v6818_v46  ;;  %v6761_v1 = vmul.f32 %v16421_v26, %v20172_v30  ;;  %16434 = vrcp.f32 %v6731_v48  ;;  %v6701_v36 = vadd.f32 0.0001, %v6669_v21 }
 0xe84   : > { %16436 = vpow2.f32 %v12248_v63  ;;  %v6821_v55 = vadd.f32 0.5, %v6763_v12  ;;  %v6668_v24 = vmul.f32 0.06666667, %v6557_v59  ;;  %v13885_v58 = vpop.f32.mrb[2].mxu0 }
 0xe85   : > { %v16423_v11 = vpop.eup %16422  ;;  %16438 = vpow2.f32 %v12247_v49  ;;  %v6820_v62 = vadd.f32 0.5, %v6761_v1  ;;  %v6733_v53 = vmul.f32 4.0, %v6701_v36  ;;  %v6671_v16 = vmul.f32 0.06666667, %v13885_v58  ;;  %v6567_v13 = vpop.f32.mrb[3].mxu0 }
 0xe86   : > { %v16425_v54 = vpop.eup %16424  ;;  %v12250_v41 = vmul.f32 -1.442695, %v6821_v55  ;;  %v6767_v45 = vmul.f32 %v16423_v11, %v20188_v32  ;;  %16440 = vrcp.f32 %v6730_v44  ;;  %v6700_v2 = vadd.f32 0.0001, %v6668_v24 }
 0xe87   : > { %v12249_v61 = vmul.f32 -1.442695, %v6820_v62  ;;  %v6765_v30 = vmul.f32 %v16425_v54, %v20193_v40  ;;  %16442 = vrcp.f32 %v6733_v53  ;;  %v6703_v25 = vadd.f32 0.0001, %v6671_v16 }
 0xe88   : > { %16444 = vpow2.f32 %v12250_v41  ;;  %v6823_v29 = vadd.f32 0.5, %v6767_v45  ;;  %v6732_v35 = vmul.f32 4.0, %v6700_v2  ;;  %v6670_v46 = vmul.f32 0.06666667, %v6567_v13  ;;  %v13888_v48 = vpop.f32.mrb[4].mxu0 }
 0xe89   : > { %v16427_v21 = vpop.eup %16426  ;;  %16446 = vpow2.f32 %v12249_v61  ;;  %v6822_v59 = vadd.f32 0.5, %v6765_v30  ;;  %v6735_v26 = vmul.f32 4.0, %v6703_v25  ;;  %v6673_v63 = vmul.f32 0.06666667, %v13888_v48  ;;  %v6577_v12 = vpop.f32.mrb[5].mxu0 }
 0xe8a   : > { %v16429_v49 = vpop.eup %16428  ;;  %v12252_v32 = vmul.f32 -1.442695, %v6823_v29  ;;  %v6771_v44 = vmul.f32 %v16427_v21, %v20210_v9  ;;  %16448 = vrcp.f32 %v6732_v35  ;;  %v6702_v1 = vadd.f32 0.0001, %v6670_v46 }
 0xe8b   : > { %v16431_v40 = vpop.eup %16430  ;;  %v6945_v36 = vadd.f32 1.0, %v16429_v49  ;;  %v12251_v55 = vmul.f32 -1.442695, %v6822_v59  ;;  %16450 = vrcp.f32 %v6735_v26  ;;  %v6705_v24 = vadd.f32 0.0001, %v6673_v63 }
 0xe8c   : > { %v16433_v58 = vpop.eup %16432  ;;  %v6944_v11 = vadd.f32 1.0, %v16431_v40  ;;  %16452 = vpow2.f32 %v12252_v32  ;;  %v6825_v62 = vadd.f32 0.5, %v6771_v44  ;;  %v20348_v53 = vmul.f32 4.0, %v6702_v1  ;;  %v13891_v16 = vpop.f32.mrb[6].mxu0 }
 0xe8d   : > { %v16435_v13 = vpop.eup %16434  ;;  %16454 = vrcp.f32 %v6945_v36  ;;  %v6769_v54 = vmul.f32 %v16433_v58, %v20212_v50  ;;  %v20351_v41 = vmul.f32 4.0, %v6705_v24  ;;  %v6672_v9 = vmul.f32 0.06666667, %v6577_v12  ;;  %v6587_v45 = vpop.f32.mrb[7].mxu0 }
 0xe8e   : > { %v16437_v2 = vpop.eup %16436  ;;  %16456 = vrcp.f32 %v6944_v11  ;;  %v12254_v61 = vmul.f32 -1.442695, %v6825_v62  ;;  %v6775_v30 = vmul.f32 %v16435_v13, %v20218_v6  ;;  %v6675_v25 = vmul.f32 0.06666667, %v13891_v16 }
 0xe8f   : > { %v16439_v29 = vpop.eup %16438  ;;  %v6947_v35 = vadd.f32 1.0, %v16437_v2  ;;  %16458 = vpow2.f32 %v12251_v55  ;;  %v6824_v46 = vadd.f32 0.5, %v6769_v54  ;;  %v6704_v48 = vadd.f32 0.0001, %v6672_v9 }
 0xe90   : > { %v16441_v21 = vpop.eup %16440  ;;  %v6946_v59 = vadd.f32 1.0, %v16439_v29  ;;  %16460 = vpow2.f32 %v12254_v61  ;;  %v6827_v26 = vadd.f32 0.5, %v6775_v30  ;;  %v6707_v50 = vadd.f32 0.0001, %v6675_v25  ;;  %v13894_v63 = vpop.f32.mrb[8].mxu0 }
 0xe91   : > { %v16443_v49 = vpop.eup %16442  ;;  %16462 = vrcp.f32 %v6947_v35  ;;  %v12253_v12 = vmul.f32 -1.442695, %v6824_v46  ;;  %v6773_v32 = vmul.f32 %v16441_v21, %v20221_v57  ;;  %v20355_v44 = vmul.f32 4.0, %v6704_v48  ;;  %v6597_v6 = vpop.f32.mrb[9].mxu0 }
 0xe92   : > { %v16445_v1 = vpop.eup %16444  ;;  %16464 = vrcp.f32 %v6946_v59  ;;  %v12256_v40 = vmul.f32 -1.442695, %v6827_v26  ;;  %v6779_v36 = vmul.f32 %v16443_v49, %v20239_v3  ;;  %v20358_v55 = vmul.f32 4.0, %v6707_v50 }
 0xe93   : > { %v16447_v24 = vpop.eup %16446  ;;  %v6949_v58 = vadd.f32 1.0, %v16445_v1  ;;  %16466 = vpow2.f32 %v12253_v12  ;;  %v6826_v11 = vadd.f32 0.5, %v6773_v32  ;;  %v6674_v62 = vmul.f32 0.06666667, %v6587_v45 }
 0xe94   : > { %v16449_v16 = vpop.eup %16448  ;;  %v6948_v13 = vadd.f32 1.0, %v16447_v24  ;;  %16468 = vpow2.f32 %v12256_v40  ;;  %v6829_v54 = vadd.f32 0.5, %v6779_v36  ;;  %v6677_v57 = vmul.f32 0.06666667, %v13894_v63  ;;  %v13897_v9 = vpop.f32.mrb[10].mxu0 }
 0xe95   : > { %v16451_v2 = vpop.eup %16450  ;;  %16470 = vrcp.f32 %v6949_v58  ;;  %v12255_v61 = vmul.f32 -1.442695, %v6826_v11  ;;  %v6777_v30 = vmul.f32 %v16449_v16, %v20244_v43  ;;  %v6706_v25 = vadd.f32 0.0001, %v6674_v62  ;;  %v6607_v3 = vpop.f32.mrb[11].mxu0 }
 0xe96   : > { %v16453_v29 = vpop.eup %16452  ;;  %16472 = vrcp.f32 %v6948_v13  ;;  %v12258_v35 = vmul.f32 -1.442695, %v6829_v54  ;;  %v6783_v46 = vmul.f32 %v16451_v2, %v20260_v52  ;;  %v6709_v48 = vadd.f32 0.0001, %v6677_v57 }
 0xe97   : > { %v20362_v45 = vpop.eup %16454  ;;  %v6951_v21 = vadd.f32 1.0, %v16453_v29  ;;  %16474 = vpow2.f32 %v12255_v61  ;;  %v6828_v59 = vadd.f32 0.5, %v6777_v30  ;;  %v20364_v26 = vmul.f32 4.0, %v6706_v25 }
 0xe98   : > { %v16457_v50 = vpop.eup %16456  ;;  %16476 = vpow2.f32 %v12258_v35  ;;  %v6831_v63 = vadd.f32 0.5, %v6783_v46  ;;  %v20366_v49 = vmul.f32 4.0, %v6709_v48  ;;  %v6676_v43 = vmul.f32 0.06666667, %v6597_v6  ;;  %v13900_v12 = vpop.f32.mrb[12].mxu0 }
 0xe99   : > { %v16459_v32 = vpop.eup %16458  ;;  %16478 = vrcp.f32 %v6951_v21  ;;  %v12257_v1 = vmul.f32 -1.442695, %v6828_v59  ;;  %v6679_v40 = vmul.f32 0.06666667, %v13897_v9  ;;  %v6678_v52 = vmul.f32 0.06666667, %v6607_v3 }
 0xe9a   : > { %v16461_v36 = vpop.eup %16460  ;;  %v6950_v24 = vadd.f32 1.0, %v16459_v32  ;;  %v12260_v58 = vmul.f32 -1.442695, %v6831_v63  ;;  %16480 = vrcp.f32 %v20348_v53  ;;  %v6708_v11 = vadd.f32 0.0001, %v6676_v43  ;;  %v6617_v62 = vpop.f32.mrb[13].mxu0 }
 0xe9b   : > { %v20369_v16 = vpop.eup %16462  ;;  %v6953_v13 = vadd.f32 1.0, %v16461_v36  ;;  %16482 = vpow2.f32 %v12257_v1  ;;  %v6711_v54 = vadd.f32 0.0001, %v6679_v40  ;;  %v6710_v57 = vadd.f32 0.0001, %v6678_v52 }
 0xe9c   : > { %v20371_v6 = vpop.eup %16464  ;;  %16484 = vrcp.f32 %v6950_v24  ;;  %v20373_v2 = vmul.f32 4.0, %v6708_v11  ;;  %v6681_v9 = vmul.f32 0.06666667, %v13900_v12  ;;  %v6680_v61 = vmul.f32 0.06666667, %v6617_v62  ;;  %v13903_v30 = vpop.f32.mrb[14].mxu0 }
 0xe9d   : > { %v16467_v25 = vpop.eup %16466  ;;  %16486 = vrcp.f32 %v6953_v13  ;;  %v20375_v3 = vmul.f32 4.0, %v6711_v54  ;;  %v20377_v53 = vmul.f32 4.0, %v6710_v57  ;;  %v6683_v29 = vmul.f32 0.06666667, %v13903_v30  ;;  %v6627_v35 = vpop.f32.mrb[15].mxu0 }
 0xe9e   : > { %v16469_v46 = vpop.eup %16468  ;;  %v6952_v48 = vadd.f32 1.0, %v16467_v25  ;;  %16488 = vpow2.f32 %v12260_v58  ;;  %v6713_v21 = vadd.f32 0.0001, %v6681_v9  ;;  %v6712_v59 = vadd.f32 0.0001, %v6680_v61 }
 0xe9f   : > { %v20379_v63 = vpop.eup %16470  ;;  %v6955_v43 = vadd.f32 1.0, %v16469_v46  ;;  %16490 = vrcp.f32 %v20351_v41  ;;  %v6715_v12 = vadd.f32 0.0001, %v6683_v29  ;;  %v6682_v32 = vmul.f32 0.06666667, %v6627_v35 }
 0xea0   : > { %v16473_v1 = vpop.eup %16472  ;;  %16492 = vrcp.f32 %v6952_v48  ;;  %v20382_v40 = vmul.f32 4.0, %v6713_v21  ;;  %v20384_v52 = vmul.f32 4.0, %v6712_v59  ;;  %v13906_v36 = vpop.f32.mrb[16].mxu0  ;;  %v7040_v24 = vmul.f32 %v16457_v50, %v19748_v47 }
 0xea1   : > { %v16475_v11 = vpop.eup %16474  ;;  %16494 = vrcp.f32 %v6955_v43  ;;  %v20387_v58 = vmul.f32 4.0, %v6715_v12  ;;  %v6714_v62 = vadd.f32 0.0001, %v6682_v32  ;;  %v6685_v13 = vmul.f32 0.06666667, %v13906_v36  ;;  %v6637_v54 = vpop.f32.mrb[17].mxu0 }
 0xea2   : > { %v16477_v57 = vpop.eup %16476  ;;  %v6954_v41 = vadd.f32 1.0, %v16475_v11  ;;  %16496 = vrcp.f32 %v20355_v44  ;;  %v6684_v9 = vmul.f32 0.06666667, %v6637_v54  ;;  %v7041_v61 = vmul.f32 %v20362_v45, %v19735_v37 }
 0xea3   : > { %v16479_v30 = vpop.eup %16478  ;;  %v6957_v25 = vadd.f32 1.0, %v16477_v57  ;;  %16498 = vrcp.f32 %v20358_v55  ;;  %v20393_v47 = vmul.f32 4.0, %v6714_v62  ;;  %v6717_v50 = vadd.f32 0.0001, %v6685_v13 }
 0xea4   : > { %v16481_v29 = vpop.eup %16480  ;;  %16500 = vrcp.f32 %v6954_v41  ;;  %v6716_v35 = vadd.f32 0.0001, %v6684_v9  ;;  %v13909_v46 = vpop.f32.mrb[18].mxu0  ;;  %v7072_v48 = vmax.f32 %v7040_v24, 0.0  ;;  %v7073_v21 = vmax.f32 %v7041_v61, 0.0 }
 0xea5   : > { %v16483_v59 = vpop.eup %16482  ;;  %16502 = vrcp.f32 %v6957_v25  ;;  %v6781_v44 = vmul.f32 %v16481_v29, %v20262_v5  ;;  %v20396_v43 = vmul.f32 4.0, %v6717_v50  ;;  %v6687_v37 = vmul.f32 0.06666667, %v13909_v46  ;;  %v6647_v45 = vpop.f32.mrb[19].mxu0 }
 0xea6   : > { %v16485_v12 = vpop.eup %16484  ;;  %v6956_v32 = vadd.f32 1.0, %v16483_v59  ;;  %16504 = vrcp.f32 %v20364_v26  ;;  %v20399_v55 = vmul.f32 4.0, %v6716_v35  ;;  %v6686_v36 = vmul.f32 0.06666667, %v6647_v45 }
 0xea7   : > { %v16487_v11 = vpop.eup %16486  ;;  %v6830_v62 = vadd.f32 0.5, %v6781_v44  ;;  %16506 = vrcp.f32 %v20366_v49  ;;  %v6719_v24 = vadd.f32 0.0001, %v6687_v37  ;;  %v20402_v13 = vpack.c.bf16 %v7073_v21, %v7072_v48 }
 0xea8   : > { %v16489_v54 = vpop.eup %16488  ;;  %16508 = vrcp.f32 %v6956_v32  ;;  %v6718_v5 = vadd.f32 0.0001, %v6686_v36  ;;  %v7042_v57 = vmul.f32 %v20371_v6, %v19763_v23  ;;  %v7043_v41 = vmul.f32 %v20369_v16, %v19756_v39 }
 0xea9   : > { %v16491_v26 = vpop.eup %16490  ;;  %v6959_v9 = vadd.f32 1.0, %v16489_v54  ;;  %v12259_v61 = vmul.f32 -1.442695, %v6830_v62  ;;  %16510 = vrcp.f32 %v20373_v2  ;;  %v20409_v25 = vmul.f32 4.0, %v6719_v24 }
 0xeaa   : > { %v16493_v49 = vpop.eup %16492  ;;  %v6787_v50 = vmul.f32 %v16491_v26, %v20149_v18  ;;  %16512 = vrcp.f32 %v20375_v3  ;;  %v20413_v29 = vmul.f32 4.0, %v6718_v5  ;;  %v7074_v35 = vmax.f32 %v7042_v57, 0.0 }
 0xeab   : > { %v16495_v46 = vpop.eup %16494  ;;  %16514 = vrcp.f32 %v6959_v9  ;;  %v7075_v23 = vmax.f32 %v7043_v41, 0.0  ;;  %v7044_v39 = vmul.f32 %v16473_v1, %v19788_v51  ;;  %v7045_v16 = vmul.f32 %v20379_v63, %v19775_v31 }
 0xeac   : > { %v16497_v6 = vpop.eup %16496  ;;  %16516 = vpow2.f32 %v12259_v61  ;;  %v6833_v2 = vadd.f32 0.5, %v6787_v50  ;;  %v7046_v48 = vmul.f32 %v16485_v12, %v19803_v38  ;;  %v7047_v18 = vmul.f32 %v16479_v30, %v19796_v8 }
 0xead   : > { %v16499_v21 = vpop.eup %16498  ;;  %v6785_v3 = vmul.f32 %v16497_v6, %v20151_v28  ;;  %16518 = vrcp.f32 %v20377_v53  ;;  %v20422_v59 = vpack.c.bf16 %v7075_v23, %v7074_v35  ;;  %v7076_v44 = vmax.f32 %v7044_v39, 0.0 }
 0xeae   : > { %v16501_v37 = vpop.eup %16500  ;;  %v12262_v51 = vmul.f32 -1.442695, %v6833_v2  ;;  %v6791_v1 = vmul.f32 %v16499_v21, %v20165_v27  ;;  %16520 = vrcp.f32 %v20382_v40  ;;  %v7077_v31 = vmax.f32 %v7045_v16, 0.0  ;;  %v22147_v27 = vld [vmem:[#allocation138_spill] sm:$0xff] }
 0xeaf   : > { %v20426_v63 = vpop.eup %16502  ;;  %v6832_v38 = vadd.f32 0.5, %v6785_v3  ;;  %16522 = vrcp.f32 %v20384_v52  ;;  %v7078_v8 = vmax.f32 %v7046_v48, 0.0  ;;  %v7079_v30 = vmax.f32 %v7047_v18, 0.0 }
 0xeb0   : > { %v16505_v28 = vpop.eup %16504  ;;  %16524 = vpow2.f32 %v12262_v51  ;;  %v6835_v53 = vadd.f32 0.5, %v6791_v1  ;;  %v20429_v45 = vpack.c.bf16 %v7077_v31, %v7076_v44  ;;  %v7048_v12 = vmul.f32 %v16493_v49, %v19832_v15 }
 0xeb1   : > { %v16507_v32 = vpop.eup %16506  ;;  %v12261_v36 = vmul.f32 -1.442695, %v6832_v38  ;;  %v6789_v62 = vmul.f32 %v16505_v28, %v22147_v27  ;;  %16526 = vrcp.f32 %v20387_v58  ;;  %v20434_v40 = vpack.c.bf16 %v7079_v30, %v7078_v8 }
 0xeb2   : > { %v16509_v24 = vpop.eup %16508  ;;  %v12264_v54 = vmul.f32 -1.442695, %v6835_v53  ;;  %v6795_v52 = vmul.f32 %v16507_v32, %v20181_v20  ;;  %16528 = vrcp.f32 %v20393_v47  ;;  %v7049_v5 = vmul.f32 %v16487_v11, %v19818_v0 }
 0xeb3   : > { %v16511_v57 = vpop.eup %16510  ;;  %16530 = vpow2.f32 %v12261_v36  ;;  %v6834_v41 = vadd.f32 0.5, %v6789_v62  ;;  %v7080_v15 = vmax.f32 %v7048_v12, 0.0  ;;  %v7050_v26 = vmul.f32 %v16501_v37, %v19847_v34 }
 0xeb4   : > { %v16513_v9 = vpop.eup %16512  ;;  %16532 = vpow2.f32 %v12264_v54  ;;  %v6837_v61 = vadd.f32 0.5, %v6795_v52  ;;  %v6793_v58 = vmul.f32 %v16511_v57, %v20183_v7  ;;  %v7081_v49 = vmax.f32 %v7049_v5, 0.0  ;;  %v22148_v54 = vld [vmem:[#allocation105_spill] sm:$0xff]  ;;  %v22149_v5 = vld [vmem:[#allocation139_spill] sm:$0xff] }
 0xeb5   : > { %v16515_v50 = vpop.eup %16514  ;;  %v12263_v35 = vmul.f32 -1.442695, %v6834_v41  ;;  %v6799_v20 = vmul.f32 %v16513_v9, %v20197_v22  ;;  %16534 = vrcp.f32 %v20396_v43  ;;  %v7051_v0 = vmul.f32 %v16495_v46, %v19840_v19 }
 0xeb6   : > { %v16517_v47 = vpop.eup %16516  ;;  %v12266_v11 = vmul.f32 -1.442695, %v6837_v61  ;;  %v6836_v23 = vadd.f32 0.5, %v6793_v58  ;;  %16536 = vrcp.f32 %v20399_v55  ;;  %v20445_v34 = vpack.c.bf16 %v7081_v49, %v7080_v15 }
 0xeb7   : > { %v16519_v39 = vpop.eup %16518  ;;  %v6958_v16 = vadd.f32 1.0, %v16517_v47  ;;  %16538 = vpow2.f32 %v12263_v35  ;;  %v6839_v7 = vadd.f32 0.5, %v6799_v20  ;;  %v7082_v6 = vmax.f32 %v7050_v26, 0.0 }
 0xeb8   : > { %v16521_v2 = vpop.eup %16520  ;;  %16540 = vpow2.f32 %v12266_v11  ;;  %v12265_v48 = vmul.f32 -1.442695, %v6836_v23  ;;  %v6797_v22 = vmul.f32 %v16519_v39, %v20199_v60  ;;  %v7083_v43 = vmax.f32 %v7051_v0, 0.0 }
 0xeb9   : > { %v16523_v18 = vpop.eup %16522  ;;  %16542 = vrcp.f32 %v6958_v16  ;;  %v12268_v19 = vmul.f32 -1.442695, %v6839_v7  ;;  %v6803_v46 = vmul.f32 %v16521_v2, %v20214_v17  ;;  %v7052_v55 = vmul.f32 %v16509_v24, %v19876_v10  ;;  %v22151_v2 = vld [vmem:[#allocation140_spill] sm:$0xff] }
 0xeba   : > { %v16525_v21 = vpop.eup %16524  ;;  %16544 = vpow2.f32 %v12265_v48  ;;  %v6838_v3 = vadd.f32 0.5, %v6797_v22  ;;  %v6801_v44 = vmul.f32 %v16523_v18, %v20216_v56  ;;  %v20451_v37 = vpack.c.bf16 %v7083_v43, %v7082_v6  ;;  %v22152_v18 = vld [vmem:[#allocation141_spill] sm:$0xff] }
 0xebb   : > { %v16527_v51 = vpop.eup %16526  ;;  %16546 = vpow2.f32 %v12268_v19  ;;  %v6841_v1 = vadd.f32 0.5, %v6803_v46  ;;  %v7053_v60 = vmul.f32 %v20426_v63, %v19862_v14  ;;  %v7084_v56 = vmax.f32 %v7052_v55, 0.0 }
 0xebc   : > { %v16529_v31 = vpop.eup %16528  ;;  %v12267_v38 = vmul.f32 -1.442695, %v6838_v3  ;;  %v6840_v8 = vadd.f32 0.5, %v6801_v44  ;;  %v6807_v17 = vmul.f32 %v16527_v51, %v20232_v4  ;;  %16548 = vrcp.f32 %v20409_v25 }
 0xebd   : > { %v16531_v10 = vpop.eup %16530  ;;  %v12270_v30 = vmul.f32 -1.442695, %v6841_v1  ;;  %v6805_v28 = vmul.f32 %v16529_v31, %v20234_v33  ;;  %16550 = vrcp.f32 %v20413_v29  ;;  %v6961_v63 = vadd.f32 1.0, %v16525_v21 }
 0xebe   : > { %v16533_v53 = vpop.eup %16532  ;;  %v6960_v12 = vadd.f32 1.0, %v16531_v10  ;;  %16552 = vpow2.f32 %v12267_v38  ;;  %v12269_v32 = vmul.f32 -1.442695, %v6840_v8  ;;  %v6843_v36 = vadd.f32 0.5, %v6807_v17  ;;  %v22153_v10 = vld [vmem:[#allocation89_spill] sm:$0xff] }
 0xebf   : > { %v16535_v14 = vpop.eup %16534  ;;  %16554 = vpow2.f32 %v12270_v30  ;;  %v6842_v27 = vadd.f32 0.5, %v6805_v28  ;;  %v7085_v62 = vmax.f32 %v7053_v60, 0.0  ;;  %v7055_v33 = vmul.f32 %v16515_v50, %v22148_v54 }
 0xec0   : > { %v16537_v4 = vpop.eup %16536  ;;  %16556 = vpow2.f32 %v12269_v32  ;;  %v12272_v25 = vmul.f32 -1.442695, %v6843_v36  ;;  %v6811_v24 = vmul.f32 %v16535_v14, %v20250_v42  ;;  %v6963_v58 = vadd.f32 1.0, %v16533_v53  ;;  %v22150_v42 = vld [vmem:[#allocation106_spill] sm:$0xff]  ;;  %v22154_v36 = vld [vmem:[#allocation91_spill] sm:$0xff] }
 0xec1   : > { %v16539_v52 = vpop.eup %16538  ;;  %v12271_v29 = vmul.f32 -1.442695, %v6842_v27  ;;  %v6809_v57 = vmul.f32 %v16537_v4, %v22149_v5  ;;  %16558 = vrcp.f32 %v6960_v12  ;;  %v20462_v41 = vpack.c.bf16 %v7085_v62, %v7084_v56  ;;  %v22155_v62 = vld [vmem:[#allocation92_spill] sm:$0xff] }
 0xec2   : > { %v16541_v15 = vpop.eup %16540  ;;  %v6962_v26 = vadd.f32 1.0, %v16539_v52  ;;  %16560 = vpow2.f32 %v12272_v25  ;;  %v6845_v9 = vadd.f32 0.5, %v6811_v24  ;;  %v7087_v0 = vmax.f32 %v7055_v33, 0.0 }
 0xec3   : > { %v16543_v61 = vpop.eup %16542  ;;  %16562 = vpow2.f32 %v12271_v29  ;;  %v6844_v49 = vadd.f32 0.5, %v6809_v57  ;;  %v6965_v16 = vadd.f32 1.0, %v16541_v15  ;;  %v22156_v57 = vld [vmem:[#allocation90_spill] sm:$0xff] }
 0xec4   : > { %v16545_v35 = vpop.eup %16544  ;;  %v12274_v20 = vmul.f32 -1.442695, %v6845_v9  ;;  %16564 = vrcp.f32 %v6961_v63  ;;  %v7054_v50 = vmul.f32 %v16543_v61, %v22150_v42  ;;  %v22157_v61 = vld [vmem:[#allocation93_spill] sm:$0xff] }
 0xec5   : > { %v16547_v47 = vpop.eup %16546  ;;  %v6964_v11 = vadd.f32 1.0, %v16545_v35  ;;  %v12273_v23 = vmul.f32 -1.442695, %v6844_v49  ;;  %16566 = vrcp.f32 %v6962_v26 }
 0xec6   : > { %v16549_v39 = vpop.eup %16548  ;;  %16568 = vpow2.f32 %v12274_v20  ;;  %v7086_v7 = vmax.f32 %v7054_v50, 0.0  ;;  %v6967_v43 = vadd.f32 1.0, %v16547_v47  ;;  %v22158_v20 = vld [vmem:[#allocation95_spill] sm:$0xff]  ;;  %v22159_v47 = vld [vmem:[#allocation96_spill] sm:$0xff] }
 0xec7   : > { %v16551_v6 = vpop.eup %16550  ;;  %16570 = vpow2.f32 %v12273_v23  ;;  %v6815_v48 = vmul.f32 %v16549_v39, %v22151_v2 }
 0xec8   : > { %v16553_v22 = vpop.eup %16552  ;;  %v6813_v19 = vmul.f32 %v16551_v6, %v22152_v18  ;;  %16572 = vrcp.f32 %v6963_v58  ;;  %v20467_v46 = vpack.c.bf16 %v7087_v0, %v7086_v7  ;;  %v22160_v7 = vld [vmem:[#allocation94_spill] sm:$0xff] }
 0xec9   : > { %v16555_v55 = vpop.eup %16554  ;;  %v6966_v21 = vadd.f32 1.0, %v16553_v22  ;;  %v6847_v3 = vadd.f32 0.5, %v6815_v48  ;;  %16574 = vrcp.f32 %v6964_v11 }
 0xeca   : > { %v16557_v44 = vpop.eup %16556  ;;  %v6846_v51 = vadd.f32 0.5, %v6813_v19  ;;  %16576 = vrcp.f32 %v6965_v16  ;;  %v6969_v8 = vadd.f32 1.0, %v16555_v55 }
 0xecb   : > { %v16559_v1 = vpop.eup %16558  ;;  %v6968_v60 = vadd.f32 1.0, %v16557_v44  ;;  %v12276_v31 = vmul.f32 -1.442695, %v6847_v3  ;;  %16578 = vrcp.f32 %v6966_v21  ;;  %v22161_v3 = vld [vmem:[#allocation97_spill] sm:$0xff] }
 0xecc   : > { %v16561_v38 = vpop.eup %16560  ;;  %v12275_v17 = vmul.f32 -1.442695, %v6846_v51  ;;  %v7056_v30 = vmul.f32 %v16559_v1, %v22153_v10  ;;  %16580 = vrcp.f32 %v6967_v43 }
 0xecd   : > { %v16563_v28 = vpop.eup %16562  ;;  %16582 = vpow2.f32 %v12276_v31  ;;  %v6971_v53 = vadd.f32 1.0, %v16561_v38 }
 0xece   : > { %v16565_v56 = vpop.eup %16564  ;;  %v6970_v12 = vadd.f32 1.0, %v16563_v28  ;;  %16584 = vpow2.f32 %v12275_v17  ;;  %v7088_v63 = vmax.f32 %v7056_v30, 0.0  ;;  %v22163_v17 = vld [vmem:[#allocation100_spill] sm:$0xff] }
 0xecf   : > { %v16567_v32 = vpop.eup %16566  ;;  %v7057_v14 = vmul.f32 %v16565_v56, %v22154_v36  ;;  %16586 = vrcp.f32 %v6968_v60  ;;  %v22162_v60 = vld [vmem:[#allocation99_spill] sm:$0xff]  ;;  %v22164_v56 = vld [vmem:[#allocation98_spill] sm:$0xff] }
 0xed0   : > { %v16569_v27 = vpop.eup %16568  ;;  %v7058_v4 = vmul.f32 %v16567_v32, %v22155_v62  ;;  %16588 = vrcp.f32 %v6969_v8  ;;  %v22165_v36 = vld [vmem:[#allocation103_spill] sm:$0xff]  ;;  %v22166_v62 = vld [vmem:[#allocation101_spill] sm:$0xff] }
 0xed1   : > { %v16571_v25 = vpop.eup %16570  ;;  %v6973_v24 = vadd.f32 1.0, %v16569_v27  ;;  %v7089_v54 = vmax.f32 %v7057_v14, 0.0  ;;  %16590 = vrcp.f32 %v6970_v12 }
 0xed2   : > { %v16573_v33 = vpop.eup %16572  ;;  %v6972_v52 = vadd.f32 1.0, %v16571_v25  ;;  %16592 = vrcp.f32 %v6971_v53  ;;  %v7090_v26 = vmax.f32 %v7058_v4, 0.0 }
 0xed3   : > { %v16575_v29 = vpop.eup %16574  ;;  %v20472_v5 = vpack.c.bf16 %v7089_v54, %v7088_v63  ;;  %v7059_v15 = vmul.f32 %v16573_v33, %v22156_v57  ;;  %16594 = vrcp.f32 %v6973_v24  ;;  %v22167_v57 = vld [vmem:[#allocation102_spill] sm:$0xff] }
 0xed4   : > { %v16577_v9 = vpop.eup %16576  ;;  %v7060_v58 = vmul.f32 %v16575_v29, %v22157_v61  ;;  %16596 = vrcp.f32 %v6972_v52 }
 0xed5   : > { %v16579_v49 = vpop.eup %16578  ;;  %14829 = vmatprep.subr.bf16.mxu1 %v20472_v5  ;;  %14861 = vmatprep.subr.bf16.mxu0 %v20472_v5  ;;  %v7091_v35 = vmax.f32 %v7059_v15, 0.0  ;;  %v7061_v42 = vmul.f32 %v16577_v9, %v22158_v20  ;;  %v7281_v20 = vld [vmem:[#allocation8 + $0xe00] sm:$0xff] }
 0xed6   : > { %v16581_v50 = vpop.eup %16580  ;;  %14831 = vmatpush3.bf16.msra.mxu1 %v20402_v13  ;;  %14863 = vmatpush3.bf16.msra.mxu0 %v20402_v13  ;;  %v7092_v0 = vmax.f32 %v7060_v58, 0.0  ;;  %v7062_v11 = vmul.f32 %v16579_v49, %v22159_v47  ;;  %v7283_v47 = vld [vmem:[#allocation8 + $0xe20] sm:$0xff] }
 0xed7   : > { %v16583_v23 = vpop.eup %16582  ;;  %v20482_v39 = vpack.c.bf16 %v7091_v35, %v7090_v26  ;;  %v7093_v16 = vmax.f32 %v7061_v42, 0.0  ;;  %v7063_v6 = vmul.f32 %v16581_v50, %v22160_v7  ;;  %v22168_v26 = vld [vmem:[#allocation104_spill] sm:$0xff]  ;;  %v7104_v35 = vld [vmem:[#allocation8 + $0xc00] sm:$0xff]  ;;  %v7107_v42 = vld [vmem:[#allocation8 + $0xc28] sm:$0xff] }
 0xed8   : > { %v16585_v2 = vpop.eup %16584  ;;  %v6975_v48 = vadd.f32 1.0, %v16583_v23  ;;  %v7094_v22 = vmax.f32 %v7062_v11, 0.0  ;;  %v7284_v50 = vld [vmem:[#allocation8 + $0xe28] sm:$0xff] }
 0xed9   : > { %v16587_v43 = vpop.eup %16586  ;;  %v6974_v18 = vadd.f32 1.0, %v16585_v2  ;;  %14833 = vmatprep.subr.bf16.mxu1 %v20482_v39  ;;  %14865 = vmatprep.subr.bf16.mxu0 %v20482_v39  ;;  %v20487_v19 = vpack.c.bf16 %v7093_v16, %v7092_v0  ;;  %v7095_v55 = vmax.f32 %v7063_v6, 0.0  ;;  %v7106_v0 = vld [vmem:[#allocation8 + $0xc20] sm:$0xff]  ;;  %v7109_v11 = vld [vmem:[#allocation8 + $0xc48] sm:$0xff] }
 0xeda   : > { %v16589_v21 = vpop.eup %16588  ;;  %14835 = vmatpush3.bf16.msra.mxu1 %v20422_v59  ;;  %14867 = vmatpush3.bf16.msra.mxu0 %v20422_v59  ;;  %v7064_v44 = vmul.f32 %v16587_v43, %v22161_v3  ;;  %16598 = vrcp.f32 %v6975_v48  ;;  %v7286_v23 = vld [vmem:[#allocation8 + $0xe48] sm:$0xff]  ;;  %v7285_v16 = vld [vmem:[#allocation8 + $0xe40] sm:$0xff] }
 0xedb   : > { %v16591_v51 = vpop.eup %16590  ;;  %14837 = vmatprep.subr.bf16.mxu1 %v20487_v19  ;;  %14869 = vmatprep.subr.bf16.mxu0 %v20487_v19  ;;  %v20494_v1 = vpack.c.bf16 %v7095_v55, %v7094_v22  ;;  %v7065_v31 = vmul.f32 %v16589_v21, %v22162_v60  ;;  %16600 = vrcp.f32 %v6974_v18  ;;  %v7111_v7 = vld [vmem:[#allocation8 + $0xc68] sm:$0xff]  ;;  %v7287_v6 = vld [vmem:[#allocation8 + $0xe60] sm:$0xff] }
 0xedc   : > { %v16593_v38 = vpop.eup %16592  ;;  %v7096_v8 = vmax.f32 %v7064_v44, 0.0  ;;  %v7066_v10 = vmul.f32 %v16591_v51, %v22163_v17  ;;  %v7113_v2 = vld [vmem:[#allocation8 + $0xc88] sm:$0xff]  ;;  %v7112_v48 = vld [vmem:[#allocation8 + $0xc80] sm:$0xff] }
 0xedd   : > { %v16595_v30 = vpop.eup %16594  ;;  %v7097_v28 = vmax.f32 %v7065_v31, 0.0  ;;  %v7067_v53 = vmul.f32 %v16593_v38, %v22164_v56  ;;  %v7289_v22 = vld [vmem:[#allocation8 + $0xe80] sm:$0xff]  ;;  %v7115_v43 = vld [vmem:[#allocation8 + $0xca8] sm:$0xff] }
 0xede   : > { %v16597_v12 = vpop.eup %16596  ;;  %14839 = vmatpush3.bf16.msra.mxu1 %v20429_v45  ;;  %14871 = vmatpush3.bf16.msra.mxu0 %v20429_v45  ;;  %v7098_v32 = vmax.f32 %v7066_v10, 0.0  ;;  %v7069_v14 = vmul.f32 %v16595_v30, %v22165_v36  ;;  %v7114_v18 = vld [vmem:[#allocation8 + $0xca0] sm:$0xff]  ;;  %v7117_v55 = vld [vmem:[#allocation8 + $0xcc8] sm:$0xff] }
 0xedf   : > { %14841 = vmatprep.subr.bf16.mxu1 %v20494_v1  ;;  %14873 = vmatprep.subr.bf16.mxu0 %v20494_v1  ;;  %v20504_v63 = vpack.c.bf16 %v7097_v28, %v7096_v8  ;;  %v7099_v27 = vmax.f32 %v7067_v53, 0.0  ;;  %v7068_v4 = vmul.f32 %v16597_v12, %v22166_v62  ;;  %v7116_v21 = vld [vmem:[#allocation8 + $0xcc0] sm:$0xff]  ;;  %v7119_v44 = vld [vmem:[#allocation8 + $0xce8] sm:$0xff] }
 0xee0   : > { %v7101_v25 = vmax.f32 %v7069_v14, 0.0  ;;  %v7293_v3 = vld [vmem:[#allocation8 + $0xec0] sm:$0xff]  ;;  %v7121_v60 = vld [vmem:[#allocation8 + $0xd08] sm:$0xff] }
 0xee1   : > { %v20507_v24 = vpack.c.bf16 %v7099_v27, %v7098_v32  ;;  %v7100_v54 = vmax.f32 %v7068_v4, 0.0  ;;  %v7118_v51 = vld [vmem:[#allocation8 + $0xce0] sm:$0xff]  ;;  %v7123_v8 = vld [vmem:[#allocation8 + $0xd28] sm:$0xff] }
 0xee2   : > { %14843 = vmatpush3.bf16.msra.mxu1 %v20434_v40  ;;  %14875 = vmatpush3.bf16.msra.mxu0 %v20434_v40  ;;  %v7120_v31 = vld [vmem:[#allocation8 + $0xd00] sm:$0xff]  ;;  %v7300_v17 = vld [vmem:[#allocation8 + $0xf28] sm:$0xff] }
 0xee3   : > { %14845 = vmatprep.subr.bf16.mxu1 %v20504_v63  ;;  %14877 = vmatprep.subr.bf16.mxu0 %v20504_v63  ;;  %v20513_v33 = vpack.c.bf16 %v7101_v25, %v7100_v54  ;;  %v7297_v38 = vld [vmem:[#allocation8 + $0xf00] sm:$0xff]  ;;  %v7125_v30 = vld [vmem:[#allocation8 + $0xd48] sm:$0xff] }
 0xee4   : > { %v16599_v52 = vpop.eup %16598  ;;  %v7299_v10 = vld [vmem:[#allocation8 + $0xf20] sm:$0xff]  ;;  %v7302_v28 = vld [vmem:[#allocation8 + $0xf48] sm:$0xff] }
 0xee5   : > { %v16601_v29 = vpop.eup %16600  ;;  %v7071_v15 = vmul.f32 %v16599_v52, %v22167_v57  ;;  %v7124_v56 = vld [vmem:[#allocation8 + $0xd40] sm:$0xff]  ;;  %v7127_v53 = vld [vmem:[#allocation8 + $0xd68] sm:$0xff] }
 0xee6   : > { %14847 = vmatpush3.bf16.msra.mxu1 %v20445_v34  ;;  %14879 = vmatpush3.bf16.msra.mxu0 %v20445_v34  ;;  %v7070_v9 = vmul.f32 %v16601_v29, %v22168_v26  ;;  %v7304_v12 = vld [vmem:[#allocation8 + $0xf68] sm:$0xff]  ;;  %v7126_v32 = vld [vmem:[#allocation8 + $0xd60] sm:$0xff] }
 0xee7   : > { %14849 = vmatprep.subr.bf16.mxu1 %v20507_v24  ;;  %14881 = vmatprep.subr.bf16.mxu0 %v20507_v24  ;;  %v7103_v61 = vmax.f32 %v7071_v15, 0.0  ;;  %v7303_v36 = vld [vmem:[#allocation8 + $0xf60] sm:$0xff]  ;;  %v7129_v14 = vld [vmem:[#allocation8 + $0xd88] sm:$0xff] }
 0xee8   : > { %v7102_v58 = vmax.f32 %v7070_v9, 0.0  ;;  %v7128_v27 = vld [vmem:[#allocation8 + $0xd80] sm:$0xff]  ;;  %v7131_v4 = vld [vmem:[#allocation8 + $0xda8] sm:$0xff] }
 0xee9   : > { %v7305_v62 = vld [vmem:[#allocation8 + $0xf80] sm:$0xff]  ;;  %v7308_v25 = vld [vmem:[#allocation8 + $0xfa8] sm:$0xff] }
 0xeea   : > { %14851 = vmatpush3.bf16.msra.mxu1 %v20451_v37  ;;  %14883 = vmatpush3.bf16.msra.mxu0 %v20451_v37  ;;  %v20523_v49 = vpack.c.bf16 %v7103_v61, %v7102_v58  ;;  %v7307_v54 = vld [vmem:[#allocation8 + $0xfa0] sm:$0xff]  ;;  %v7310_v52 = vld [vmem:[#allocation8 + $0xfc8] sm:$0xff] }
 0xeeb   : > { %14853 = vmatprep.subr.bf16.mxu1 %v20513_v33  ;;  %14885 = vmatprep.subr.bf16.mxu0 %v20513_v33  ;;  %v7132_v29 = vld [vmem:[#allocation8 + $0xdc0] sm:$0xff]  ;;  %v7135_v15 = vld [vmem:[#allocation8 + $0xde8] sm:$0xff] }
 0xeec   : > { %v7309_v57 = vld [vmem:[#allocation8 + $0xfc0] sm:$0xff]  ;;  %v7312_v26 = vld [vmem:[#allocation8 + $0xfe8] sm:$0xff] }
 0xeed   : > { %v7134_v9 = vld [vmem:[#allocation8 + $0xde0] sm:$0xff]  ;;  %v7459_v58 = vld [vmem:[#allocation8 + $0x1008] sm:$0xff] }
 0xeee   : > { %14855 = vmatpush3.bf16.msra.mxu1 %v20462_v41  ;;  %14887 = vmatpush3.bf16.msra.mxu0 %v20462_v41  ;;  %v7311_v61 = vld [vmem:[#allocation8 + $0xfe0] sm:$0xff] }
 0xeef   : > { %14857 = vmatprep.subr.bf16.mxu1 %v20523_v49  ;;  %14889 = vmatprep.subr.bf16.mxu0 %v20523_v49 }
 0xef2   : > { %14859 = vmatpush3.bf16.msra.mxu1 %v20467_v46  ;;  %14891 = vmatpush3.bf16.msra.mxu0 %v20467_v46 }
 0xef3   : > { %14893 = vmatprep.subr.bf16.mxu1 %v20472_v5  ;;  %v7108_v5 = vld [vmem:[#allocation8 + $0xc40] sm:$0xff] }
 0xef5   : > { %7201 = vmatmul.mubr.f32.vlgmr.msra.gmra.mrb[228].mxu1 %v7104_v35  ;;  %7378 = vmatmul.mubr.f32.vlgmr.msra.gmra.mrb[20].mxu0 %v7281_v20  ;;  %v7461_v35 = vld [vmem:[#allocation8 + $0x1028] sm:$0xff]  ;;  %v7460_v20 = vld [vmem:[#allocation8 + $0x1020] sm:$0xff] }
 0xef6   : > { %14895 = vmatpush3.bf16.msra.mxu1 %v20402_v13  ;;  %7205 = vmatprep.mubr.f32.mxu1 %v7107_v42  ;;  %v7288_v13 = vld [vmem:[#allocation8 + $0xe68] sm:$0xff] }
 0xef7   : > { %14897 = vmatprep.subr.bf16.mxu1 %v20482_v39  ;;  %7382 = vmatprep.mubr.f32.mxu0 %v7284_v50  ;;  %v7110_v39 = vld [vmem:[#allocation8 + $0xc60] sm:$0xff]  ;;  %v7463_v42 = vld [vmem:[#allocation8 + $0x1048] sm:$0xff] }
 0xef8   : > { %v7462_v50 = vld [vmem:[#allocation8 + $0x1040] sm:$0xff] }
 0xef9   : > { %7206 = vmatmul.mubr.f32.gmra.mrb[230].mxu1 %v7106_v0  ;;  %7383 = vmatmul.mubr.f32.gmra.mrb[22].mxu0 %v7283_v47  ;;  %v7465_v0 = vld [vmem:[#allocation8 + $0x1068] sm:$0xff]  ;;  %v7464_v47 = vld [vmem:[#allocation8 + $0x1060] sm:$0xff] }
 0xefa   : > { %14899 = vmatpush3.bf16.msra.mxu1 %v20422_v59  ;;  %7210 = vmatprep.mubr.f32.mxu1 %v7109_v11  ;;  %v7290_v59 = vld [vmem:[#allocation8 + $0xe88] sm:$0xff] }
 0xefb   : > { %14901 = vmatprep.subr.bf16.mxu1 %v20487_v19  ;;  %7387 = vmatprep.mubr.f32.mxu0 %v7286_v23  ;;  %v7291_v19 = vld [vmem:[#allocation8 + $0xea0] sm:$0xff]  ;;  %v7467_v11 = vld [vmem:[#allocation8 + $0x1088] sm:$0xff] }
 0xefc   : > { %v7466_v23 = vld [vmem:[#allocation8 + $0x1080] sm:$0xff] }
 0xefd   : > { %7211 = vmatmul.mubr.f32.gmra.mrb[232].mxu1 %v7108_v5  ;;  %7388 = vmatmul.mubr.f32.gmra.mrb[24].mxu0 %v7285_v16  ;;  %v7469_v5 = vld [vmem:[#allocation8 + $0x10a8] sm:$0xff]  ;;  %v7468_v16 = vld [vmem:[#allocation8 + $0x10a0] sm:$0xff] }
 0xefe   : > { %14903 = vmatpush3.bf16.msra.mxu1 %v20429_v45  ;;  %7215 = vmatprep.mubr.f32.mxu1 %v7111_v7  ;;  %v7292_v45 = vld [vmem:[#allocation8 + $0xea8] sm:$0xff] }
 0xeff   : > { %14905 = vmatprep.subr.bf16.mxu1 %v20494_v1  ;;  %7392 = vmatprep.mubr.f32.mxu0 %v7288_v13  ;;  %v7295_v1 = vld [vmem:[#allocation8 + $0xee0] sm:$0xff]  ;;  %v7471_v7 = vld [vmem:[#allocation8 + $0x10c8] sm:$0xff] }
 0xf00   : > { %v7470_v13 = vld [vmem:[#allocation8 + $0x10c0] sm:$0xff] }
 0xf01   : > { %7216 = vmatmul.mubr.f32.gmra.mrb[234].mxu1 %v7110_v39  ;;  %7393 = vmatmul.mubr.f32.gmra.mrb[26].mxu0 %v7287_v6  ;;  %v7473_v39 = vld [vmem:[#allocation8 + $0x10e8] sm:$0xff]  ;;  %v7472_v6 = vld [vmem:[#allocation8 + $0x10e0] sm:$0xff] }
 0xf02   : > { %14907 = vmatpush3.bf16.msra.mxu1 %v20434_v40  ;;  %7220 = vmatprep.mubr.f32.mxu1 %v7113_v2  ;;  %v7294_v40 = vld [vmem:[#allocation8 + $0xec8] sm:$0xff] }
 0xf03   : > { %14909 = vmatprep.subr.bf16.mxu1 %v20504_v63  ;;  %7397 = vmatprep.mubr.f32.mxu0 %v7290_v59  ;;  %v7306_v63 = vld [vmem:[#allocation8 + $0xf88] sm:$0xff]  ;;  %v7474_v59 = vld [vmem:[#allocation8 + $0x1100] sm:$0xff] }
 0xf04   : > { %v7475_v2 = vld [vmem:[#allocation8 + $0x1108] sm:$0xff] }
 0xf05   : > { %7221 = vmatmul.mubr.f32.gmra.mrb[236].mxu1 %v7112_v48  ;;  %7398 = vmatmul.mubr.f32.gmra.mrb[28].mxu0 %v7289_v22  ;;  %v7477_v48 = vld [vmem:[#allocation8 + $0x1128] sm:$0xff]  ;;  %v7476_v22 = vld [vmem:[#allocation8 + $0x1120] sm:$0xff] }
 0xf06   : > { %14911 = vmatpush3.bf16.msra.mxu1 %v20445_v34  ;;  %7225 = vmatprep.mubr.f32.mxu1 %v7115_v43  ;;  %v7296_v34 = vld [vmem:[#allocation8 + $0xee8] sm:$0xff] }
 0xf07   : > { %14913 = vmatprep.subr.bf16.mxu1 %v20507_v24  ;;  %7402 = vmatprep.mubr.f32.mxu0 %v7292_v45  ;;  %v7130_v24 = vld [vmem:[#allocation8 + $0xda0] sm:$0xff]  ;;  %v7479_v43 = vld [vmem:[#allocation8 + $0x1148] sm:$0xff] }
 0xf08   : > { %v7478_v45 = vld [vmem:[#allocation8 + $0x1140] sm:$0xff] }
 0xf09   : > { %7226 = vmatmul.mubr.f32.gmra.mrb[238].mxu1 %v7114_v18  ;;  %7403 = vmatmul.mubr.f32.gmra.mrb[30].mxu0 %v7291_v19  ;;  %v7481_v18 = vld [vmem:[#allocation8 + $0x1168] sm:$0xff]  ;;  %v7480_v19 = vld [vmem:[#allocation8 + $0x1160] sm:$0xff] }
 0xf0a   : > { %14915 = vmatpush3.bf16.msra.mxu1 %v20451_v37  ;;  %7230 = vmatprep.mubr.f32.mxu1 %v7117_v55  ;;  %v7298_v37 = vld [vmem:[#allocation8 + $0xf08] sm:$0xff] }
 0xf0b   : > { %14917 = vmatprep.subr.bf16.mxu1 %v20513_v33  ;;  %7407 = vmatprep.mubr.f32.mxu0 %v7294_v40  ;;  %v7133_v33 = vld [vmem:[#allocation8 + $0xdc8] sm:$0xff]  ;;  %v7482_v40 = vld [vmem:[#allocation8 + $0x1180] sm:$0xff] }
 0xf0c   : > { %v7483_v55 = vld [vmem:[#allocation8 + $0x1188] sm:$0xff] }
 0xf0d   : > { %7231 = vmatmul.mubr.f32.gmra.mrb[240].mxu1 %v7116_v21  ;;  %7408 = vmatmul.mubr.f32.gmra.mrb[32].mxu0 %v7293_v3  ;;  %v7485_v21 = vld [vmem:[#allocation8 + $0x11a8] sm:$0xff]  ;;  %v7484_v3 = vld [vmem:[#allocation8 + $0x11a0] sm:$0xff] }
 0xf0e   : > { %14919 = vmatpush3.bf16.msra.mxu1 %v20462_v41  ;;  %7235 = vmatprep.mubr.f32.mxu1 %v7119_v44  ;;  %v7122_v41 = vld [vmem:[#allocation8 + $0xd20] sm:$0xff]  ;;  %v7487_v44 = vld [vmem:[#allocation8 + $0x11c8] sm:$0xff] }
 0xf0f   : > { %14921 = vmatprep.subr.bf16.mxu1 %v20523_v49  ;;  %7412 = vmatprep.mubr.f32.mxu0 %v7296_v34  ;;  %v7458_v49 = vld [vmem:[#allocation8 + $0x1000] sm:$0xff] }
 0xf10   : > { %v7486_v34 = vld [vmem:[#allocation8 + $0x11c0] sm:$0xff] }
 0xf11   : > { %7236 = vmatmul.mubr.f32.gmra.mrb[242].mxu1 %v7118_v51  ;;  %7413 = vmatmul.mubr.f32.gmra.mrb[34].mxu0 %v7295_v1  ;;  %v7489_v51 = vld [vmem:[#allocation8 + $0x11e8] sm:$0xff]  ;;  %v7488_v1 = vld [vmem:[#allocation8 + $0x11e0] sm:$0xff] }
 0xf12   : > { %14923 = vmatpush3.bf16.msra.mxu1 %v20467_v46  ;;  %7240 = vmatprep.mubr.f32.mxu1 %v7121_v60  ;;  %v7301_v46 = vld [vmem:[#allocation8 + $0xf40] sm:$0xff] }
 0xf13   : > { %7417 = vmatprep.mubr.f32.mxu0 %v7298_v37 }
 0xf15   : > { %7241 = vmatmul.mubr.f32.gmra.mrb[244].mxu1 %v7120_v31  ;;  %7418 = vmatmul.mubr.f32.gmra.mrb[36].mxu0 %v7297_v38 }
 0xf16   : > { %7245 = vmatprep.mubr.f32.mxu1 %v7123_v8  ;;  %7422 = vmatprep.mubr.f32.mxu0 %v7300_v17 }
 0xf19   : > { %7246 = vmatmul.mubr.f32.gmra.mrb[246].mxu1 %v7122_v41  ;;  %7423 = vmatmul.mubr.f32.gmra.mrb[38].mxu0 %v7299_v10 }
 0xf1a   : > { %7250 = vmatprep.mubr.f32.mxu1 %v7125_v30  ;;  %7427 = vmatprep.mubr.f32.mxu0 %v7302_v28 }
 0xf1d   : > { %7251 = vmatmul.mubr.f32.gmra.mrb[248].mxu1 %v7124_v56  ;;  %7428 = vmatmul.mubr.f32.gmra.mrb[40].mxu0 %v7301_v46 }
 0xf1e   : > { %7255 = vmatprep.mubr.f32.mxu1 %v7127_v53  ;;  %7432 = vmatprep.mubr.f32.mxu0 %v7304_v12  ;;  %v15840_v53 = vld [vmem:[#allocation2 + $0x70] ss:$8 sps:$4 sm:$0xff]   ;;  %v15841_v12 = vld [vmem:[#allocation2 + $0x80] ss:$8 sps:$4 sm:$0xff]  }
 0xf1f   : > { %13910 = vmatprep.subr.bf16.mxu0 %v15840_v53 }
 0xf20   : > { %13911 = vmatpush3.bf16.msra.mxu0 %v15840_v53 }
 0xf21   : > { %7256 = vmatmul.mubr.f32.gmra.mrb[250].mxu1 %v7126_v32  ;;  %7433 = vmatmul.mubr.f32.gmra.mrb[42].mxu0 %v7303_v36 }
 0xf22   : > { %7260 = vmatprep.mubr.f32.mxu1 %v7129_v14  ;;  %7437 = vmatprep.mubr.f32.mxu0 %v7306_v63 }
 0xf23   : > { %13912 = vmatprep.subr.bf16.mxu0 %v15841_v12 }
 0xf24   : > { %13913 = vmatpush3.bf16.msra.mxu0 %v15841_v12 }
 0xf25   : > { %7261 = vmatmul.mubr.f32.gmra.mrb[252].mxu1 %v7128_v27  ;;  %7438 = vmatmul.mubr.f32.gmra.mrb[44].mxu0 %v7305_v62 }
 0xf26   : > { %7265 = vmatprep.mubr.f32.mxu1 %v7131_v4  ;;  %7442 = vmatprep.mubr.f32.mxu0 %v7308_v25  ;;  %v15842_v25 = vld [vmem:[#allocation2 + $0x90] ss:$8 sps:$4 sm:$0xff]  }
 0xf27   : > { %13914 = vmatprep.subr.bf16.mxu0 %v15842_v25 }
 0xf28   : > { %13915 = vmatpush3.bf16.msra.mxu0 %v15842_v25 }
 0xf29   : > { %7266 = vmatmul.mubr.f32.gmra.mrb[254].mxu1 %v7130_v24  ;;  %7443 = vmatmul.mubr.f32.gmra.mrb[46].mxu0 %v7307_v54 }
 0xf2a   : > { %7270 = vmatprep.mubr.f32.mxu1 %v7133_v33  ;;  %7447 = vmatprep.mubr.f32.mxu0 %v7310_v52 }
 0xf2d   : > { %7271 = vmatmul.mubr.f32.gmra.mrb[0].mxu1 %v7132_v29  ;;  %7448 = vmatmul.mubr.f32.gmra.mrb[48].mxu0 %v7309_v57 }
 0xf2e   : > { %7275 = vmatprep.mubr.f32.mxu1 %v7135_v15  ;;  %7452 = vmatprep.mubr.f32.mxu0 %v7312_v26 }
 0xf31   : > { %7276 = vmatmul.mubr.f32.gmra.mrb[2].mxu1 %v7134_v9  ;;  %7453 = vmatmul.mubr.f32.gmra.mrb[50].mxu0 %v7311_v61 }
 0xf32   : > { %7554 = vmatprep.mubr.f32.mxu1 %v7459_v58 }
 0xf35   : > { %7555 = vmatmul.mubr.f32.vlgmr.msra.gmra.mrb[4].mxu1 %v7458_v49 }
 0xf36   : > { %7559 = vmatprep.mubr.f32.mxu1 %v7461_v35 }
 0xf39   : > { %7560 = vmatmul.mubr.f32.gmra.mrb[6].mxu1 %v7460_v20 }
 0xf3a   : > { %7564 = vmatprep.mubr.f32.mxu1 %v7463_v42 }
 0xf3d   : > { %7565 = vmatmul.mubr.f32.gmra.mrb[8].mxu1 %v7462_v50 }
 0xf3e   : > { %7569 = vmatprep.mubr.f32.mxu1 %v7465_v0 }
 0xf41   : > { %7570 = vmatmul.mubr.f32.gmra.mrb[10].mxu1 %v7464_v47 }
 0xf42   : > { %7574 = vmatprep.mubr.f32.mxu1 %v7467_v11 }
 0xf45   : > { %7575 = vmatmul.mubr.f32.gmra.mrb[12].mxu1 %v7466_v23 }
 0xf46   : > { %7579 = vmatprep.mubr.f32.mxu1 %v7469_v5 }
 0xf49   : > { %7580 = vmatmul.mubr.f32.gmra.mrb[14].mxu1 %v7468_v16 }
 0xf4a   : > { %7584 = vmatprep.mubr.f32.mxu1 %v7471_v7 }
 0xf4d   : > { %7585 = vmatmul.mubr.f32.gmra.mrb[16].mxu1 %v7470_v13 }
 0xf4e   : > { %7589 = vmatprep.mubr.f32.mxu1 %v7473_v39 }
 0xf51   : > { %7590 = vmatmul.mubr.f32.gmra.mrb[18].mxu1 %v7472_v6 }
 0xf52   : > { %7594 = vmatprep.mubr.f32.mxu1 %v7475_v2 }
 0xf55   : > { %7595 = vmatmul.mubr.f32.gmra.mrb[20].mxu1 %v7474_v59 }
 0xf56   : > { %7599 = vmatprep.mubr.f32.mxu1 %v7477_v48 }
 0xf59   : > { %7600 = vmatmul.mubr.f32.gmra.mrb[22].mxu1 %v7476_v22 }
 0xf5a   : > { %7604 = vmatprep.mubr.f32.mxu1 %v7479_v43 }
 0xf5d   : > { %7605 = vmatmul.mubr.f32.gmra.mrb[24].mxu1 %v7478_v45 }
 0xf5e   : > { %7609 = vmatprep.mubr.f32.mxu1 %v7481_v18 }
 0xf61   : > { %7610 = vmatmul.mubr.f32.gmra.mrb[26].mxu1 %v7480_v19 }
 0xf62   : > { %7614 = vmatprep.mubr.f32.mxu1 %v7483_v55 }
 0xf65   : > { %7615 = vmatmul.mubr.f32.gmra.mrb[28].mxu1 %v7482_v40 }
 0xf66   : > { %7619 = vmatprep.mubr.f32.mxu1 %v7485_v21 }
 0xf69   : > { %7620 = vmatmul.mubr.f32.gmra.mrb[30].mxu1 %v7484_v3 }
 0xf6a   : > { %7624 = vmatprep.mubr.f32.mxu1 %v7487_v44 }
 0xf6d   : > { %7625 = vmatmul.mubr.f32.gmra.mrb[32].mxu1 %v7486_v34 }
 0xf6e   : > { %7629 = vmatprep.mubr.f32.mxu1 %v7489_v51 }
 0xf71   : > { %7630 = vmatmul.mubr.f32.gmra.mrb[34].mxu1 %v7488_v1 }
 0xfc8   : > { %v13134_v60 = vpop.f32.mrb[20].mxu0  ;;  %v13054_v37 = vpop.f32.mrb[228].mxu1 }
 0xfc9   : > { %v13135_v31 = vpop.f32.mrb[21].mxu0  ;;  %v13055_v38 = vpop.f32.mrb[229].mxu1 }
 0xfca   : > { %v13136_v8 = vadd.f32 %v13135_v31, %v13134_v60  ;;  %v20549_v17 = vadd.f32 %v13055_v38, %v13054_v37 }
 0xfcc   : > { %v13137_v41 = vpop.f32.mrb[22].mxu0  ;;  %v13057_v10 = vpop.f32.mrb[230].mxu1 }
 0xfcd   : > { %v13138_v30 = vpop.f32.mrb[23].mxu0  ;;  %v13058_v28 = vpop.f32.mrb[231].mxu1 }
 0xfce   : > { %v13139_v56 = vadd.f32 %v13138_v30, %v13137_v41  ;;  %v20551_v46 = vadd.f32 %v13058_v28, %v13057_v10 }
 0xfd0   : > { %v15701_v32 = vpack.i.bf16 %v13139_v56, %v13136_v8  ;;  %v13140_v36 = vpop.f32.mrb[24].mxu0  ;;  %v13060_v14 = vpop.f32.mrb[232].mxu1 }
 0xfd1   : > { %v13141_v63 = vpop.f32.mrb[25].mxu0  ;;  %v13061_v27 = vpop.f32.mrb[233].mxu1 }
 0xfd2   : > { %15702 = vrot.lane.b32.xlu0 %v15701_v32, %s17025_s10  ;;  %v13142_v62 = vadd.f32 %v13141_v63, %v13140_v36  ;;  %v20554_v4 = vadd.f32 %v13061_v27, %v13060_v14 }
 0xfd4   : > { %v13143_v24 = vpop.f32.mrb[26].mxu0  ;;  %v13063_v54 = vpop.f32.mrb[234].mxu1 }
 0xfd5   : > { %v13144_v33 = vpop.f32.mrb[27].mxu0  ;;  %v13064_v52 = vpop.f32.mrb[235].mxu1 }
 0xfd6   : > { %v13145_v29 = vadd.f32 %v13144_v33, %v13143_v24  ;;  %v20556_v57 = vadd.f32 %v13064_v52, %v13063_v54 }
 0xfd8   : > { %v15706_v15 = vpack.i.bf16 %v13145_v29, %v13142_v62  ;;  %v13066_v26 = vpop.f32.mrb[236].mxu1  ;;  %v13146_v9 = vpop.f32.mrb[28].mxu0 }
 0xfd9   : > { %v13067_v61 = vpop.f32.mrb[237].mxu1  ;;  %v13147_v58 = vpop.f32.mrb[29].mxu0 }
 0xfda   : > { %15707 = vrot.lane.b32.xlu1 %v15706_v15, %s17025_s10  ;;  %v20559_v49 = vadd.f32 %v13067_v61, %v13066_v26  ;;  %v20561_v35 = vadd.f32 %v13147_v58, %v13146_v9 }
 0xfdc   : > { %v13069_v20 = vpop.f32.mrb[238].mxu1  ;;  %v13149_v42 = vpop.f32.mrb[30].mxu0 }
 0xfdd   : > { %v13070_v50 = vpop.f32.mrb[239].mxu1  ;;  %v13150_v0 = vpop.f32.mrb[31].mxu0 }
 0xfde   : > { %v20563_v47 = vadd.f32 %v13070_v50, %v13069_v20  ;;  %v20565_v11 = vadd.f32 %v13150_v0, %v13149_v42 }
 0xfe0   : > { %v13072_v23 = vpop.f32.mrb[240].mxu1  ;;  %v15716_v5 = vpack.i.bf16 %v20565_v11, %v20561_v35  ;;  %v13152_v16 = vpop.f32.mrb[32].mxu0 }
 0xfe1   : > { %v13073_v7 = vpop.f32.mrb[241].mxu1  ;;  %v13153_v13 = vpop.f32.mrb[33].mxu0 }
 0xfe2   : > { %v20569_v39 = vadd.f32 %v13073_v7, %v13072_v23  ;;  %v20571_v6 = vadd.f32 %v13153_v13, %v13152_v16 }
 0xfe4   : > { %v13075_v2 = vpop.f32.mrb[242].mxu1  ;;  %v13155_v59 = vpop.f32.mrb[34].mxu0 }
 0xfe5   : > { %v13076_v48 = vpop.f32.mrb[243].mxu1  ;;  %v13156_v22 = vpop.f32.mrb[35].mxu0 }
 0xfe6   : > { %v20573_v43 = vadd.f32 %v13076_v48, %v13075_v2  ;;  %v20575_v45 = vadd.f32 %v13156_v22, %v13155_v59  ;;  %v15843_v22 = vld [vmem:[#allocation2 + $0xa0] ss:$8 sps:$4 sm:$0xff]  }
 0xfe7   : > { %13916 = vmatprep.subr.bf16.mxu0 %v15843_v22 }
 0xfe8   : > { %v13078_v18 = vpop.f32.mrb[244].mxu1  ;;  %v15726_v19 = vpack.i.bf16 %v20575_v45, %v20571_v6  ;;  %v13158_v55 = vpop.f32.mrb[36].mxu0  ;;  %13917 = vmatpush3.bf16.msra.mxu0 %v15843_v22 }
 0xfe9   : > { %v13079_v40 = vpop.f32.mrb[245].mxu1  ;;  %v13159_v21 = vpop.f32.mrb[37].mxu0 }
 0xfea   : > { %v20579_v3 = vadd.f32 %v13079_v40, %v13078_v18  ;;  %v20581_v44 = vadd.f32 %v13159_v21, %v13158_v55 }
 0xfec   : > { %v13081_v34 = vpop.f32.mrb[246].mxu1  ;;  %v13161_v51 = vpop.f32.mrb[38].mxu0 }
 0xfed   : > { %v13082_v1 = vpop.f32.mrb[247].mxu1  ;;  %v13162_v60 = vpop.f32.mrb[39].mxu0 }
 0xfee   : > { %v20583_v37 = vadd.f32 %v13082_v1, %v13081_v34  ;;  %v20585_v31 = vadd.f32 %v13162_v60, %v13161_v51  ;;  %v15844_v51 = vld [vmem:[#allocation2 + $0xb0] ss:$8 sps:$4 sm:$0xff]  }
 0xfef   : > { %13918 = vmatprep.subr.bf16.mxu0 %v15844_v51 }
 0xff0   : > { %v13084_v38 = vpop.f32.mrb[248].mxu1  ;;  %v15736_v8 = vpack.i.bf16 %v20585_v31, %v20581_v44  ;;  %v13164_v41 = vpop.f32.mrb[40].mxu0  ;;  %13919 = vmatpush3.bf16.msra.mxu0 %v15844_v51 }
 0xff1   : > { %v13085_v10 = vpop.f32.mrb[249].mxu1  ;;  %v13165_v30 = vpop.f32.mrb[41].mxu0 }
 0xff2   : > { %v20589_v28 = vadd.f32 %v13085_v10, %v13084_v38  ;;  %v20591_v56 = vadd.f32 %v13165_v30, %v13164_v41  ;;  %v15845_v41 = vld [vmem:[#allocation2 + $0xc0] ss:$8 sps:$4 sm:$0xff]  }
 0xff3   : > { %13920 = vmatprep.subr.bf16.mxu0 %v15845_v41 }
 0xff4   : > { %v13087_v53 = vpop.f32.mrb[250].mxu1  ;;  %v13167_v12 = vpop.f32.mrb[42].mxu0  ;;  %13921 = vmatpush3.bf16.msra.mxu0 %v15845_v41 }
 0xff5   : > { %v13088_v32 = vpop.f32.mrb[251].mxu1  ;;  %v13168_v36 = vpop.f32.mrb[43].mxu0 }
 0xff6   : > { %v20593_v14 = vadd.f32 %v13088_v32, %v13087_v53  ;;  %v20595_v63 = vadd.f32 %v13168_v36, %v13167_v12 }
 0xff8   : > { %v13090_v27 = vpop.f32.mrb[252].mxu1  ;;  %v15746_v62 = vpack.i.bf16 %v20595_v63, %v20591_v56  ;;  %v13170_v25 = vpop.f32.mrb[44].mxu0 }
 0xff9   : > { %v13091_v24 = vpop.f32.mrb[253].mxu1  ;;  %v13171_v54 = vpop.f32.mrb[45].mxu0 }
 0xffa   : > { %v20599_v33 = vadd.f32 %v13091_v24, %v13090_v27  ;;  %v20601_v52 = vadd.f32 %v13171_v54, %v13170_v25 }
 0xffc   : > { %v13093_v29 = vpop.f32.mrb[254].mxu1  ;;  %v13173_v15 = vpop.f32.mrb[46].mxu0 }
 0xffd   : > { %v13094_v26 = vpop.f32.mrb[255].mxu1  ;;  %v13174_v9 = vpop.f32.mrb[47].mxu0 }
 0xffe   : > { %v20603_v61 = vadd.f32 %v13094_v26, %v13093_v29  ;;  %v20605_v58 = vadd.f32 %v13174_v9, %v13173_v15 }
0x1000   : > { %v13096_v20 = vpop.f32.mrb[0].mxu1  ;;  %v15756_v42 = vpack.i.bf16 %v20605_v58, %v20601_v52  ;;  %v13176_v50 = vpop.f32.mrb[48].mxu0 }
0x1001   : > { %v13097_v0 = vpop.f32.mrb[1].mxu1  ;;  %v13177_v23 = vpop.f32.mrb[49].mxu0 }
0x1002   : > { %v20609_v16 = vadd.f32 %v13097_v0, %v13096_v20  ;;  %v20611_v7 = vadd.f32 %v13177_v23, %v13176_v50 }
0x1004   : > { %v13099_v13 = vpop.f32.mrb[2].mxu1  ;;  %v13179_v2 = vpop.f32.mrb[50].mxu0 }
0x1005   : > { %v13100_v59 = vpop.f32.mrb[3].mxu1  ;;  %v13180_v48 = vpop.f32.mrb[51].mxu0 }
0x1006   : > { %v20613_v18 = vadd.f32 %v13100_v59, %v13099_v13  ;;  %v20615_v55 = vadd.f32 %v13180_v48, %v13179_v2 }
0x1008   : > { %v13214_v40 = vpop.f32.mrb[4].mxu1  ;;  %v15766_v21 = vpack.i.bf16 %v20615_v55, %v20611_v7 }
0x1009   : > { %v13215_v34 = vpop.f32.mrb[5].mxu1 }
0x100a   : > { %v13216_v1 = vadd.f32 %v13215_v34, %v13214_v40 }
0x100c   : > { %v13217_v60 = vpop.f32.mrb[6].mxu1 }
0x100d   : > { %v13218_v38 = vpop.f32.mrb[7].mxu1 }
0x100e   : > { %v13219_v10 = vadd.f32 %v13218_v38, %v13217_v60 }
0x1010   : > { %v15711_v30 = vpack.i.bf16 %v13219_v10, %v13216_v1  ;;  %v13220_v53 = vpop.f32.mrb[8].mxu1 }
0x1011   : > { %v13221_v12 = vpop.f32.mrb[9].mxu1 }
0x1012   : > { %15712 = vrot.lane.b32.xlu0 %v15711_v30, %s17026_s19  ;;  %v13222_v32 = vadd.f32 %v13221_v12, %v13220_v53 }
0x1014   : > { %v13223_v36 = vpop.f32.mrb[10].mxu1 }
0x1015   : > { %v13224_v27 = vpop.f32.mrb[11].mxu1 }
0x1016   : > { %v13225_v25 = vadd.f32 %v13224_v27, %v13223_v36  ;;  %15717 = vrot.lane.b32.xlu0 %v15716_v5, %s17025_s10 }
0x1018   : > { %v15721_v24 = vpack.i.bf16 %v13225_v25, %v13222_v32  ;;  %v13226_v54 = vpop.f32.mrb[12].mxu1 }
0x1019   : > { %v13227_v29 = vpop.f32.mrb[13].mxu1 }
0x101a   : > { %15722 = vrot.lane.b32.xlu1 %v15721_v24, %s17026_s19  ;;  %v13228_v15 = vadd.f32 %v13227_v29, %v13226_v54 }
0x101c   : > { %v13229_v26 = vpop.f32.mrb[14].mxu1 }
0x101d   : > { %v13230_v9 = vpop.f32.mrb[15].mxu1 }
0x101e   : > { %v13231_v20 = vadd.f32 %v13230_v9, %v13229_v26  ;;  %15727 = vrot.lane.b32.xlu1 %v15726_v19, %s17025_s10 }
0x1020   : > { %v15731_v50 = vpack.i.bf16 %v13231_v20, %v13228_v15  ;;  %v13232_v0 = vpop.f32.mrb[16].mxu1 }
0x1021   : > { %v13233_v23 = vpop.f32.mrb[17].mxu1 }
0x1022   : > { %15732 = vrot.lane.b32.xlu0 %v15731_v50, %s17026_s19  ;;  %v13234_v35 = vadd.f32 %v13233_v23, %v13232_v0 }
0x1024   : > { %v13235_v11 = vpop.f32.mrb[18].mxu1 }
0x1025   : > { %v13236_v5 = vpop.f32.mrb[19].mxu1 }
0x1026   : > { %v13237_v13 = vadd.f32 %v13236_v5, %v13235_v11  ;;  %15737 = vrot.lane.b32.xlu0 %v15736_v8, %s17025_s10 }
0x1028   : > { %v15741_v2 = vpack.i.bf16 %v13237_v13, %v13234_v35  ;;  %v13238_v59 = vpop.f32.mrb[20].mxu1 }
0x1029   : > { %v13239_v48 = vpop.f32.mrb[21].mxu1 }
0x102a   : > { %15742 = vrot.lane.b32.xlu1 %v15741_v2, %s17026_s19  ;;  %v13240_v6 = vadd.f32 %v13239_v48, %v13238_v59 }
0x102c   : > { %v13241_v45 = vpop.f32.mrb[22].mxu1 }
0x102d   : > { %v13242_v19 = vpop.f32.mrb[23].mxu1 }
0x102e   : > { %v13243_v22 = vadd.f32 %v13242_v19, %v13241_v45  ;;  %15747 = vrot.lane.b32.xlu1 %v15746_v62, %s17025_s10 }
0x1030   : > { %v15751_v40 = vpack.i.bf16 %v13243_v22, %v13240_v6  ;;  %v13244_v34 = vpop.f32.mrb[24].mxu1 }
0x1031   : > { %v13245_v51 = vpop.f32.mrb[25].mxu1 }
0x1032   : > { %15752 = vrot.lane.b32.xlu0 %v15751_v40, %s17026_s19  ;;  %v13246_v44 = vadd.f32 %v13245_v51, %v13244_v34 }
0x1034   : > { %v13247_v31 = vpop.f32.mrb[26].mxu1 }
0x1035   : > { %v13248_v8 = vpop.f32.mrb[27].mxu1 }
0x1036   : > { %v13249_v1 = vadd.f32 %v13248_v8, %v13247_v31  ;;  %15757 = vrot.lane.b32.xlu0 %v15756_v42, %s17025_s10 }
0x1038   : > { %v15761_v60 = vpack.i.bf16 %v13249_v1, %v13246_v44  ;;  %v13250_v38 = vpop.f32.mrb[28].mxu1 }
0x1039   : > { %v13251_v41 = vpop.f32.mrb[29].mxu1 }
0x103a   : > { %15762 = vrot.lane.b32.xlu1 %v15761_v60, %s17026_s19  ;;  %v13252_v56 = vadd.f32 %v13251_v41, %v13250_v38 }
0x103c   : > { %v13253_v63 = vpop.f32.mrb[30].mxu1 }
0x103d   : > { %v13254_v62 = vpop.f32.mrb[31].mxu1 }
0x103e   : > { %v13255_v10 = vadd.f32 %v13254_v62, %v13253_v63  ;;  %15767 = vrot.lane.b32.xlu1 %v15766_v21, %s17025_s10 }
0x1040   : > { %v15771_v30 = vpack.i.bf16 %v13255_v10, %v13252_v56  ;;  %v13256_v53 = vpop.f32.mrb[32].mxu1 }
0x1041   : > { %v13257_v12 = vpop.f32.mrb[33].mxu1 }
0x1042   : > { %15772 = vrot.lane.b32.xlu0 %v15771_v30, %s17026_s19  ;;  %v13258_v52 = vadd.f32 %v13257_v12, %v13256_v53 }
0x1044   : > { %v13259_v58 = vpop.f32.mrb[34].mxu1  ;;  %v15703_v27 = vpop.permute.xlu0 %15702 }
0x1045   : > { %v13260_v42 = vpop.f32.mrb[35].mxu1  ;;  %v15705_v25 = vunpack.i.h.bf16 %v15703_v27  ;;  %v15704_v24 = vunpack.i.l.bf16 %v15703_v27 }
0x1046   : > { %v13261_v32 = vadd.f32 %v13260_v42, %v13259_v58 }
0x1047   : > { %v7763_v7 = vsel %vm5509_vm2, %v20549_v17, %v15704_v24  ;;  %v7764_v55 = vsel %vm5509_vm2, %v20551_v46, %v15705_v25 }
0x1048   : > { %v15776_v36 = vpack.i.bf16 %v13261_v32, %v13258_v52 }
0x104a   : > { %15777 = vrot.lane.b32.xlu1 %v15776_v36, %s17026_s19 }
0x104c   : > { %v15708_v21 = vpop.permute.xlu1 %15707 }
0x104d   : > { %v15710_v50 = vunpack.i.h.bf16 %v15708_v21  ;;  %v15709_v0 = vunpack.i.l.bf16 %v15708_v21 }
0x104f   : > { %v7765_v17 = vsel %vm5509_vm2, %v20554_v4, %v15709_v0  ;;  %v7766_v46 = vsel %vm5509_vm2, %v20556_v57, %v15710_v50 }
0x1084   : > { %v15713_v54 = vpop.permute.xlu0 %15712 }
0x1085   : > { %v15715_v29 = vunpack.i.h.bf16 %v15713_v54  ;;  %v15714_v15 = vunpack.i.l.bf16 %v15713_v54 }
0x1087   : > { %v7779_v26 = vsel %vm610_vm0, %v7763_v7, %v15714_v15  ;;  %v7780_v9 = vsel %vm610_vm0, %v7764_v55, %v15715_v29 }
0x1088   : > { %v7795_v20 = vpack.c.bf16 %v7780_v9, %v7779_v26  ;;  %v15718_v5 = vpop.permute.xlu0 %15717 }
0x1089   : > { %v15720_v48 = vunpack.i.h.bf16 %v15718_v5  ;;  %v15719_v6 = vunpack.i.l.bf16 %v15718_v5 }
0x108a   : > { %13922 = vmatprep.mubr.msk.bf16.mxu0 %vm7851_vm4, %v7795_v20 }
0x108b   : > { %v7767_v40 = vsel %vm5509_vm2, %v20559_v49, %v15719_v6  ;;  %v7768_v4 = vsel %vm5509_vm2, %v20563_v47, %v15720_v48 }
0x108c   : > { %v15723_v23 = vpop.permute.xlu1 %15722 }
0x108d   : > { %v15725_v35 = vunpack.i.h.bf16 %v15723_v23  ;;  %v15724_v11 = vunpack.i.l.bf16 %v15723_v23 }
0x108f   : > { %v7781_v13 = vsel %vm610_vm0, %v7765_v17, %v15724_v11  ;;  %v7782_v2 = vsel %vm610_vm0, %v7766_v46, %v15725_v35 }
0x1090   : > { %v7796_v59 = vpack.c.bf16 %v7782_v2, %v7781_v13  ;;  %v15728_v57 = vpop.permute.xlu1 %15727 }
0x1091   : > { %v15730_v31 = vunpack.i.h.bf16 %v15728_v57  ;;  %v15729_v8 = vunpack.i.l.bf16 %v15728_v57 }
0x1092   : > { %13923 = vmatmul.mubr.msk.bf16.vlgmr.msra.gmra.mrb[52].mxu0 %vm7851_vm4, %v7796_v59 }
0x1093   : > { %v7769_v41 = vsel %vm5509_vm2, %v20569_v39, %v15729_v8  ;;  %v7770_v49 = vsel %vm5509_vm2, %v20573_v43, %v15730_v31 }
0x1094   : > { %v15733_v45 = vpop.permute.xlu0 %15732 }
0x1095   : > { %v15735_v19 = vunpack.i.h.bf16 %v15733_v45  ;;  %v15734_v22 = vunpack.i.l.bf16 %v15733_v45 }
0x1097   : > { %v7783_v34 = vsel %vm610_vm0, %v7767_v40, %v15734_v22  ;;  %v7784_v51 = vsel %vm610_vm0, %v7768_v4, %v15735_v19  ;;  %v8007_v19 = vld [vmem:[#allocation7 + $0x30] sm:$0xff]  ;;  %v20707_v22 = vld [vmem:[#allocation5 + $0x4] ss:$0 sm:$0xff] }
0x1098   : > { %v7797_v44 = vpack.c.bf16 %v7784_v51, %v7783_v34  ;;  %v15738_v47 = vpop.permute.xlu0 %15737  ;;  %13970 = vmatprep.mubr.f32.mxu1 %v8007_v19  ;;  %v7990_v34 = vld [vmem:[#allocation5 + $0x5] ss:$0 sm:$0xff] }
0x1099   : > { %v15740_v10 = vunpack.i.h.bf16 %v15738_v47  ;;  %v15739_v30 = vunpack.i.l.bf16 %v15738_v47 }
0x109a   : > { %13926 = vmatprep.mubr.msk.bf16.mxu0 %vm7851_vm4, %v7797_v44 }
0x109b   : > { %v7771_v58 = vsel %vm5509_vm2, %v20579_v3, %v15739_v30  ;;  %v7772_v39 = vsel %vm5509_vm2, %v20583_v37, %v15740_v10 }
0x109c   : > { %v15743_v1 = vpop.permute.xlu1 %15742 }
0x109d   : > { %v15745_v60 = vunpack.i.h.bf16 %v15743_v1  ;;  %v15744_v38 = vunpack.i.l.bf16 %v15743_v1 }
0x109f   : > { %v7785_v56 = vsel %vm610_vm0, %v7769_v41, %v15744_v38  ;;  %v7786_v63 = vsel %vm610_vm0, %v7770_v49, %v15745_v60 }
0x10a0   : > { %v7798_v62 = vpack.c.bf16 %v7786_v63, %v7785_v56  ;;  %v15748_v43 = vpop.permute.xlu1 %15747 }
0x10a1   : > { %v15750_v27 = vunpack.i.h.bf16 %v15748_v43  ;;  %v15749_v25 = vunpack.i.l.bf16 %v15748_v43 }
0x10a2   : > { %13927 = vmatmul.mubr.msk.bf16.gmra.mrb[56].mxu0 %vm7851_vm4, %v7798_v62 }
0x10a3   : > { %v7773_v15 = vsel %vm5509_vm2, %v20589_v28, %v15749_v25  ;;  %v7774_v3 = vsel %vm5509_vm2, %v20593_v14, %v15750_v27 }
0x10a4   : > { %v15753_v53 = vpop.permute.xlu0 %15752 }
0x10a5   : > { %v15755_v12 = vunpack.i.h.bf16 %v15753_v53  ;;  %v15754_v52 = vunpack.i.l.bf16 %v15753_v53 }
0x10a7   : > { %v7787_v42 = vsel %vm610_vm0, %v7771_v58, %v15754_v52  ;;  %v7788_v32 = vsel %vm610_vm0, %v7772_v39, %v15755_v12 }
0x10a8   : > { %v7799_v36 = vpack.c.bf16 %v7788_v32, %v7787_v42  ;;  %v15758_v37 = vpop.permute.xlu0 %15757 }
0x10a9   : > { %v15760_v26 = vunpack.i.h.bf16 %v15758_v37  ;;  %v15759_v9 = vunpack.i.l.bf16 %v15758_v37 }
0x10aa   : > { %13930 = vmatprep.mubr.msk.bf16.mxu0 %vm7851_vm4, %v7799_v36 }
0x10ab   : > { %v7775_v23 = vsel %vm5509_vm2, %v20599_v33, %v15759_v9  ;;  %v7776_v28 = vsel %vm5509_vm2, %v20603_v61, %v15760_v26 }
0x10ac   : > { %v15763_v24 = vpop.permute.xlu1 %15762 }
0x10ad   : > { %v15765_v54 = vunpack.i.h.bf16 %v15763_v24  ;;  %v15764_v29 = vunpack.i.l.bf16 %v15763_v24 }
0x10af   : > { %v7789_v7 = vsel %vm610_vm0, %v7773_v15, %v15764_v29  ;;  %v7790_v55 = vsel %vm610_vm0, %v7774_v3, %v15765_v54 }
0x10b0   : > { %v7800_v21 = vpack.c.bf16 %v7790_v55, %v7789_v7  ;;  %v15768_v14 = vpop.permute.xlu1 %15767 }
0x10b1   : > { %v15770_v46 = vunpack.i.h.bf16 %v15768_v14  ;;  %v15769_v5 = vunpack.i.l.bf16 %v15768_v14 }
0x10b2   : > { %13931 = vmatmul.mubr.msk.bf16.gmra.mrb[60].mxu0 %vm7851_vm4, %v7800_v21 }
0x10b3   : > { %v7777_v48 = vsel %vm5509_vm2, %v20609_v16, %v15769_v5  ;;  %v7778_v33 = vsel %vm5509_vm2, %v20613_v18, %v15770_v46 }
0x10b4   : > { %v15773_v20 = vpop.permute.xlu0 %15772 }
0x10b5   : > { %v15775_v50 = vunpack.i.h.bf16 %v15773_v20  ;;  %v15774_v0 = vunpack.i.l.bf16 %v15773_v20 }
0x10b7   : > { %v7791_v35 = vsel %vm610_vm0, %v7775_v23, %v15774_v0  ;;  %v7792_v11 = vsel %vm610_vm0, %v7776_v28, %v15775_v50 }
0x10b8   : > { %v7801_v17 = vpack.c.bf16 %v7792_v11, %v7791_v35 }
0x10ba   : > { %13934 = vmatprep.mubr.msk.bf16.mxu0 %vm7851_vm4, %v7801_v17 }
0x10bc   : > { %v15778_v13 = vpop.permute.xlu1 %15777 }
0x10bd   : > { %v15780_v2 = vunpack.i.h.bf16 %v15778_v13  ;;  %v15779_v59 = vunpack.i.l.bf16 %v15778_v13 }
0x10bf   : > { %v7793_v61 = vsel %vm610_vm0, %v7777_v48, %v15779_v59  ;;  %v7794_v6 = vsel %vm610_vm0, %v7778_v33, %v15780_v2  ;;  %v20773_v48 = vld [vmem:[#allocation7 + $0x78] sm:$0xff]  ;;  %v20779_v33 = vld [vmem:[%s21411_s4 + $0x300] sm:$0xff] }
0x10c0   : > { %v7802_v45 = vpack.c.bf16 %v7794_v6, %v7793_v61 }
0x10c2   : > { %13935 = vmatmul.mubr.msk.bf16.gmra.mrb[64].mxu0 %vm7851_vm4, %v7802_v45 }
0x10c3   : > { %14033 = vmatprep.mubr.f32.mxu0 %v8007_v19 }
0x1165   : > { %v13924_v40 = vpop.f32.mrb[52].mxu0 }
0x1166   : > { %v7910_v4 = vpop.f32.mrb[53].mxu0  ;;  %v7976_v44 = vmul.f32 %v13924_v40, %v20707_v22  ;;  %v20786_v40 = vld [vmem:[%s21411_s4 + $0x308] sm:$0xff] }
0x1167   : > { %v7974_v57 = vmul.f32 %v20707_v22, %v7910_v4  ;;  %v13925_v16 = vpop.f32.mrb[54].mxu0  ;;  %v20791_v4 = vld [vmem:[%s21411_s4 + $0x310] sm:$0xff] }
0x1168   : > { %v7977_v18 = vmul.f32 %v13925_v16, %v20707_v22  ;;  %v7913_v51 = vpop.f32.mrb[55].mxu0  ;;  %v20719_v38 = vadd.f32 %v7990_v34, %v7976_v44  ;;  %v20805_v16 = vld [vmem:[%s21411_s4 + $0x320] sm:$0xff] }
0x1169   : > { %v7975_v31 = vmul.f32 %v20707_v22, %v7913_v51  ;;  %v20713_v8 = vadd.f32 %v7990_v34, %v7974_v57  ;;  %v20800_v57 = vld [vmem:[%s21411_s4 + $0x318] sm:$0xff]  ;;  %v20833_v44 = vld [vmem:[%s21411_s4 + $0x340] sm:$0xff] }
0x116a   : > { %v20715_v1 = vadd.f32 %v7990_v34, %v7977_v18  ;;  %v20819_v18 = vld [vmem:[%s21411_s4 + $0x330] sm:$0xff]  ;;  %v20828_v51 = vld [vmem:[%s21411_s4 + $0x338] sm:$0xff] }
0x116b   : > { %v20717_v60 = vadd.f32 %v7990_v34, %v7975_v31  ;;  %v20842_v31 = vld [vmem:[%s21411_s4 + $0x348] sm:$0xff] }
0x116c   : > { %v14928_v49 = vpack.c.bf16 %v20715_v1, %v20719_v38 }
0x116d   : > { %v14924_v41 = vpack.c.bf16 %v20717_v60, %v20713_v8 }
0x116f   : > { %14925 = vmatprep.subr.bf16.mxu1 %v14924_v41 }
0x1170   : > { %14927 = vmatpush3.bf16.msra.mxu1 %v14924_v41  ;;  %v20847_v41 = vld [vmem:[%s21411_s4 + $0x350] sm:$0xff] }
0x1171   : > { %14929 = vmatprep.subr.bf16.mxu1 %v14928_v49 }
0x1174   : > { %14931 = vmatpush3.bf16.msra.mxu1 %v14928_v49  ;;  %v20856_v49 = vld [vmem:[%s21411_s4 + $0x358] sm:$0xff] }
0x1175   : > { %v13928_v47 = vpop.f32.mrb[56].mxu0 }
0x1176   : > { %v7926_v56 = vpop.f32.mrb[57].mxu0  ;;  %v7980_v53 = vmul.f32 %v13928_v47, %v20707_v22  ;;  %v20861_v47 = vld [vmem:[%s21411_s4 + $0x360] sm:$0xff] }
0x1177   : > { %v7978_v63 = vmul.f32 %v20707_v22, %v7926_v56  ;;  %v13929_v62 = vpop.f32.mrb[58].mxu0  ;;  %v20870_v56 = vld [vmem:[%s21411_s4 + $0x368] sm:$0xff] }
0x1178   : > { %v7981_v10 = vmul.f32 %v13929_v62, %v20707_v22  ;;  %v7929_v30 = vpop.f32.mrb[59].mxu0  ;;  %v20735_v43 = vadd.f32 %v7990_v34, %v7980_v53  ;;  %v20884_v62 = vld [vmem:[%s21411_s4 + $0x378] sm:$0xff] }
0x1179   : > { %v7979_v12 = vmul.f32 %v20707_v22, %v7929_v30  ;;  %v20729_v52 = vadd.f32 %v7990_v34, %v7978_v63  ;;  %v20875_v63 = vld [vmem:[%s21411_s4 + $0x370] sm:$0xff] }
0x117a   : > { %v20731_v58 = vadd.f32 %v7990_v34, %v7981_v10 }
0x117b   : > { %v20733_v39 = vadd.f32 %v7990_v34, %v7979_v12 }
0x117c   : > { %v14936_v32 = vpack.c.bf16 %v20731_v58, %v20735_v43 }
0x117d   : > { %v14932_v42 = vpack.c.bf16 %v20733_v39, %v20729_v52 }
0x117f   : > { %14933 = vmatprep.subr.bf16.mxu1 %v14932_v42 }
0x1180   : > { %14935 = vmatpush3.bf16.msra.mxu1 %v14932_v42 }
0x1181   : > { %14937 = vmatprep.subr.bf16.mxu1 %v14936_v32 }
0x1184   : > { %14939 = vmatpush3.bf16.msra.mxu1 %v14936_v32 }
0x1185   : > { %v13932_v36 = vpop.f32.mrb[60].mxu0 }
0x1186   : > { %v7942_v27 = vpop.f32.mrb[61].mxu0  ;;  %v7984_v15 = vmul.f32 %v13932_v36, %v20707_v22 }
0x1187   : > { %v7982_v25 = vmul.f32 %v20707_v22, %v7942_v27  ;;  %v13933_v24 = vpop.f32.mrb[62].mxu0 }
0x1188   : > { %v7985_v54 = vmul.f32 %v13933_v24, %v20707_v22  ;;  %v7945_v29 = vpop.f32.mrb[63].mxu0  ;;  %v20751_v21 = vadd.f32 %v7990_v34, %v7984_v15 }
0x1189   : > { %v7983_v3 = vmul.f32 %v20707_v22, %v7945_v29  ;;  %v20745_v37 = vadd.f32 %v7990_v34, %v7982_v25 }
0x118a   : > { %v20747_v7 = vadd.f32 %v7990_v34, %v7985_v54 }
0x118b   : > { %v20749_v55 = vadd.f32 %v7990_v34, %v7983_v3 }
0x118c   : > { %v14944_v9 = vpack.c.bf16 %v20747_v7, %v20751_v21 }
0x118d   : > { %v14940_v26 = vpack.c.bf16 %v20749_v55, %v20745_v37 }
0x118f   : > { %14941 = vmatprep.subr.bf16.mxu1 %v14940_v26 }
0x1190   : > { %14943 = vmatpush3.bf16.msra.mxu1 %v14940_v26 }
0x1191   : > { %14945 = vmatprep.subr.bf16.mxu1 %v14944_v9 }
0x1194   : > { %14947 = vmatpush3.bf16.msra.mxu1 %v14944_v9 }
0x1195   : > { %v13936_v20 = vpop.f32.mrb[64].mxu0 }
0x1196   : > { %v7958_v50 = vpop.f32.mrb[65].mxu0  ;;  %v7988_v35 = vmul.f32 %v13936_v20, %v20707_v22 }
0x1197   : > { %v7986_v0 = vmul.f32 %v20707_v22, %v7958_v50  ;;  %v13937_v23 = vpop.f32.mrb[66].mxu0 }
0x1198   : > { %v7989_v28 = vmul.f32 %v13937_v23, %v20707_v22  ;;  %v7961_v14 = vpop.f32.mrb[67].mxu0  ;;  %v20767_v13 = vadd.f32 %v7990_v34, %v7988_v35 }
0x1199   : > { %v7987_v11 = vmul.f32 %v20707_v22, %v7961_v14  ;;  %v20761_v17 = vadd.f32 %v7990_v34, %v7986_v0 }
0x119a   : > { %v20763_v46 = vadd.f32 %v7990_v34, %v7989_v28 }
0x119b   : > { %v20765_v5 = vadd.f32 %v7990_v34, %v7987_v11  ;;  %v20814_v34 = vld [vmem:[%s21411_s4 + $0x328] sm:$0xff] }
0x119c   : > { %v14952_v59 = vpack.c.bf16 %v20763_v46, %v20767_v13 }
0x119d   : > { %v14948_v2 = vpack.c.bf16 %v20765_v5, %v20761_v17 }
0x119f   : > { %14949 = vmatprep.subr.bf16.mxu1 %v14948_v2 }
0x11a0   : > { %14951 = vmatpush3.bf16.msra.mxu1 %v14948_v2 }
0x11a1   : > { %14953 = vmatprep.subr.bf16.mxu1 %v14952_v59 }
0x11a4   : > { %14955 = vmatpush3.bf16.msra.mxu1 %v14952_v59 }
0x11a7   : > { %13971 = vmatmul.mubr.f32.vlgmr.msra.gmra.mrb[36].mxu1 %v20773_v48 }
0x11a8   : > { %13977 = vmatprep.mubr.msk.f32.mxu1 %vm1350_vm1, %v20779_v33 }
0x127a   : > { %v13972_v61 = vpop.f32.mrb[36].mxu1 }
0x127b   : > { %v8101_v6 = vmul.f32 0.125, %v13972_v61  ;;  %v8091_v45 = vpop.f32.mrb[37].mxu1 }
0x127c   : > { %v8100_v19 = vmul.f32 0.125, %v8091_v45 }
0x127e   : > { %v14956_v22 = vpack.c.bf16 %v8101_v6, %v8100_v19 }
0x1280   : > { %14957 = vmatprep.subr.bf16.mxu1 %v14956_v22 }
0x1281   : > { %14959 = vmatpush3.bf16.msra.mxu1 %v14956_v22 }
0x1284   : > { %13978 = vmatmul.mubr.msk.f32.vlgmr.msra.gmra.mrb[38].mxu1 %vm1350_vm1, %v20786_v40 }
0x1285   : > { %13980 = vmatprep.mubr.msk.f32.mxu1 %vm1350_vm1, %v20791_v4 }
0x1288   : > { %13981 = vmatmul.mubr.msk.f32.gmra.mrb[40].mxu1 %vm1350_vm1, %v20800_v57 }
0x1289   : > { %13983 = vmatprep.mubr.msk.f32.mxu1 %vm1350_vm1, %v20805_v16 }
0x128c   : > { %13984 = vmatmul.mubr.msk.f32.gmra.mrb[42].mxu1 %vm1350_vm1, %v20814_v34 }
0x128d   : > { %13986 = vmatprep.mubr.msk.f32.mxu1 %vm1350_vm1, %v20819_v18 }
0x1290   : > { %13987 = vmatmul.mubr.msk.f32.gmra.mrb[44].mxu1 %vm1350_vm1, %v20828_v51 }
0x1291   : > { %13989 = vmatprep.mubr.msk.f32.mxu1 %vm1350_vm1, %v20833_v44 }
0x1294   : > { %13990 = vmatmul.mubr.msk.f32.gmra.mrb[46].mxu1 %vm1350_vm1, %v20842_v31 }
0x1295   : > { %13992 = vmatprep.mubr.msk.f32.mxu1 %vm1350_vm1, %v20847_v41 }
0x1298   : > { %13993 = vmatmul.mubr.msk.f32.gmra.mrb[48].mxu1 %vm1350_vm1, %v20856_v49 }
0x1299   : > { %13995 = vmatprep.mubr.msk.f32.mxu1 %vm1350_vm1, %v20861_v47 }
0x129c   : > { %13996 = vmatmul.mubr.msk.f32.gmra.mrb[50].mxu1 %vm1350_vm1, %v20870_v56 }
0x129d   : > { %13998 = vmatprep.mubr.msk.f32.mxu1 %vm1350_vm1, %v20875_v63 }
0x12a0   : > { %13999 = vmatmul.mubr.msk.f32.gmra.mrb[52].mxu1 %vm1350_vm1, %v20884_v62 }
0x1357   : > { %v13979_v10 = vpop.f32.mrb[38].mxu1 }
0x1358   : > { %v8296_v30 = vsub.f32 %v20717_v60, %v13979_v10  ;;  %v8216_v53 = vpop.f32.mrb[39].mxu1 }
0x1359   : > { %v8295_v12 = vsub.f32 %v20713_v8, %v8216_v53 }
0x135a   : > { %v20890_v42 = vmul.f32 %v8296_v30, %v8296_v30 }
0x135b   : > { %v20892_v32 = vmul.f32 %v8295_v12, %v8295_v12  ;;  %v13982_v36 = vpop.f32.mrb[40].mxu1 }
0x135c   : > { %v8298_v27 = vsub.f32 %v20715_v1, %v13982_v36  ;;  %v8226_v25 = vpop.f32.mrb[41].mxu1 }
0x135d   : > { %v14960_v24 = vpack.c.bf16 %v20890_v42, %v20892_v32  ;;  %v8297_v54 = vsub.f32 %v20719_v38, %v8226_v25 }
0x135e   : > { %v20898_v29 = vmul.f32 %v8298_v27, %v8298_v27 }
0x135f   : > { %v20900_v15 = vmul.f32 %v8297_v54, %v8297_v54  ;;  %v13985_v3 = vpop.f32.mrb[42].mxu1  ;;  %14961 = vmatprep.subr.bf16.mxu0 %v14960_v24 }
0x1360   : > { %v8300_v26 = vsub.f32 %v20733_v39, %v13985_v3  ;;  %v8236_v9 = vpop.f32.mrb[43].mxu1  ;;  %14963 = vmatpush3.bf16.msra.mxu0 %v14960_v24 }
0x1361   : > { %v14964_v20 = vpack.c.bf16 %v20898_v29, %v20900_v15  ;;  %v8299_v50 = vsub.f32 %v20729_v52, %v8236_v9 }
0x1362   : > { %v20906_v0 = vmul.f32 %v8300_v26, %v8300_v26 }
0x1363   : > { %v20908_v23 = vmul.f32 %v8299_v50, %v8299_v50  ;;  %v13988_v28 = vpop.f32.mrb[44].mxu1  ;;  %14965 = vmatprep.subr.bf16.mxu0 %v14964_v20 }
0x1364   : > { %v8302_v14 = vsub.f32 %v20731_v58, %v13988_v28  ;;  %v8246_v35 = vpop.f32.mrb[45].mxu1  ;;  %14967 = vmatpush3.bf16.msra.mxu0 %v14964_v20 }
0x1365   : > { %v14968_v11 = vpack.c.bf16 %v20906_v0, %v20908_v23  ;;  %v8301_v2 = vsub.f32 %v20735_v43, %v8246_v35 }
0x1366   : > { %v20914_v59 = vmul.f32 %v8302_v14, %v8302_v14 }
0x1367   : > { %v20916_v61 = vmul.f32 %v8301_v2, %v8301_v2  ;;  %v13991_v6 = vpop.f32.mrb[46].mxu1  ;;  %14969 = vmatprep.subr.bf16.mxu0 %v14968_v11 }
0x1368   : > { %v8304_v45 = vsub.f32 %v20749_v55, %v13991_v6  ;;  %v8256_v19 = vpop.f32.mrb[47].mxu1  ;;  %14971 = vmatpush3.bf16.msra.mxu0 %v14968_v11 }
0x1369   : > { %v14972_v22 = vpack.c.bf16 %v20914_v59, %v20916_v61  ;;  %v8303_v10 = vsub.f32 %v20745_v37, %v8256_v19 }
0x136a   : > { %v20922_v30 = vmul.f32 %v8304_v45, %v8304_v45 }
0x136b   : > { %v20924_v53 = vmul.f32 %v8303_v10, %v8303_v10  ;;  %v13994_v12 = vpop.f32.mrb[48].mxu1  ;;  %14973 = vmatprep.subr.bf16.mxu0 %v14972_v22 }
0x136c   : > { %v8306_v36 = vsub.f32 %v20747_v7, %v13994_v12  ;;  %v8266_v27 = vpop.f32.mrb[49].mxu1  ;;  %14975 = vmatpush3.bf16.msra.mxu0 %v14972_v22 }
0x136d   : > { %v14976_v25 = vpack.c.bf16 %v20922_v30, %v20924_v53  ;;  %v8305_v24 = vsub.f32 %v20751_v21, %v8266_v27 }
0x136e   : > { %v20930_v54 = vmul.f32 %v8306_v36, %v8306_v36 }
0x136f   : > { %v20932_v3 = vmul.f32 %v8305_v24, %v8305_v24  ;;  %v13997_v26 = vpop.f32.mrb[50].mxu1  ;;  %14977 = vmatprep.subr.bf16.mxu0 %v14976_v25 }
0x1370   : > { %v8308_v9 = vsub.f32 %v20765_v5, %v13997_v26  ;;  %v8276_v20 = vpop.f32.mrb[51].mxu1  ;;  %14979 = vmatpush3.bf16.msra.mxu0 %v14976_v25 }
0x1371   : > { %v14980_v50 = vpack.c.bf16 %v20930_v54, %v20932_v3  ;;  %v8307_v28 = vsub.f32 %v20761_v17, %v8276_v20 }
0x1372   : > { %v20938_v14 = vmul.f32 %v8308_v9, %v8308_v9 }
0x1373   : > { %v20940_v35 = vmul.f32 %v8307_v28, %v8307_v28  ;;  %v14000_v11 = vpop.f32.mrb[52].mxu1  ;;  %14981 = vmatprep.subr.bf16.mxu0 %v14980_v50 }
0x1374   : > { %v8310_v2 = vsub.f32 %v20763_v46, %v14000_v11  ;;  %v8286_v6 = vpop.f32.mrb[53].mxu1  ;;  %14983 = vmatpush3.bf16.msra.mxu0 %v14980_v50 }
0x1375   : > { %v14984_v45 = vpack.c.bf16 %v20938_v14, %v20940_v35  ;;  %v8309_v19 = vsub.f32 %v20767_v13, %v8286_v6 }
0x1376   : > { %v20946_v22 = vmul.f32 %v8310_v2, %v8310_v2 }
0x1377   : > { %v20948_v10 = vmul.f32 %v8309_v19, %v8309_v19  ;;  %14985 = vmatprep.subr.bf16.mxu0 %v14984_v45 }
0x1378   : > { %14987 = vmatpush3.bf16.msra.mxu0 %v14984_v45 }
0x1379   : > { %v14988_v12 = vpack.c.bf16 %v20946_v22, %v20948_v10 }
0x137b   : > { %14989 = vmatprep.subr.bf16.mxu0 %v14988_v12 }
0x137c   : > { %14991 = vmatpush3.bf16.msra.mxu0 %v14988_v12 }
0x137f   : > { %14034 = vmatmul.mubr.f32.vlgmr.msra.gmra.mrb[68].mxu0 %v20773_v48  ;;  %v8884_v48 = vld [vmem:[#allocation8 + $0x1300] sm:$0xff] }
0x1380   : > { %14040 = vmatprep.mubr.msk.f32.mxu0 %vm1350_vm1, %v20779_v33  ;;  %v8771_v33 = vld [vmem:[#allocation8 + $0x1200] sm:$0xff] }
0x1381   : > { %14096 = vmatprep.mubr.f32.mxu1 %v8771_v33 }
0x1452   : > { %v14035_v36 = vpop.f32.mrb[68].mxu0 }
0x1453   : > { %v8393_v27 = vpop.f32.mrb[69].mxu0 }
0x1454   : > { %v14992_v25 = vpack.c.bf16 %v14035_v36, %v8393_v27 }
0x1456   : > { %14993 = vmatprep.subr.bf16.mxu0 %v14992_v25 }
0x1457   : > { %14995 = vmatpush3.bf16.msra.mxu0 %v14992_v25 }
0x145a   : > { %14041 = vmatmul.mubr.msk.f32.vlgmr.msra.gmra.mrb[70].mxu0 %vm1350_vm1, %v20786_v40 }
0x145b   : > { %14043 = vmatprep.mubr.msk.f32.mxu0 %vm1350_vm1, %v20791_v4 }
0x145e   : > { %14044 = vmatmul.mubr.msk.f32.gmra.mrb[72].mxu0 %vm1350_vm1, %v20800_v57 }
0x145f   : > { %14046 = vmatprep.mubr.msk.f32.mxu0 %vm1350_vm1, %v20805_v16 }
0x1462   : > { %14047 = vmatmul.mubr.msk.f32.gmra.mrb[74].mxu0 %vm1350_vm1, %v20814_v34 }
0x1463   : > { %14049 = vmatprep.mubr.msk.f32.mxu0 %vm1350_vm1, %v20819_v18 }
0x1466   : > { %14050 = vmatmul.mubr.msk.f32.gmra.mrb[76].mxu0 %vm1350_vm1, %v20828_v51 }
0x1467   : > { %14052 = vmatprep.mubr.msk.f32.mxu0 %vm1350_vm1, %v20833_v44 }
0x146a   : > { %14053 = vmatmul.mubr.msk.f32.gmra.mrb[78].mxu0 %vm1350_vm1, %v20842_v31 }
0x146b   : > { %14055 = vmatprep.mubr.msk.f32.mxu0 %vm1350_vm1, %v20847_v41 }
0x146e   : > { %14056 = vmatmul.mubr.msk.f32.gmra.mrb[80].mxu0 %vm1350_vm1, %v20856_v49 }
0x146f   : > { %14058 = vmatprep.mubr.msk.f32.mxu0 %vm1350_vm1, %v20861_v47 }
0x1472   : > { %14059 = vmatmul.mubr.msk.f32.gmra.mrb[82].mxu0 %vm1350_vm1, %v20870_v56 }
0x1473   : > { %14061 = vmatprep.mubr.msk.f32.mxu0 %vm1350_vm1, %v20875_v63 }
0x1476   : > { %14062 = vmatmul.mubr.msk.f32.gmra.mrb[84].mxu0 %vm1350_vm1, %v20884_v62 }
0x1477   : > { %14140 = vmatprep.mubr.f32.mxu0 %v8884_v48 }
0x152d   : > { %v14042_v40 = vpop.f32.mrb[70].mxu0 }
0x152e   : > { %v8548_v4 = vmul.f32 0.14285715, %v14042_v40  ;;  %v8468_v57 = vpop.f32.mrb[71].mxu0 }
0x152f   : > { %v8547_v16 = vmul.f32 0.14285715, %v8468_v57 }
0x1530   : > { %v8564_v34 = vadd.f32 0.0001, %v8548_v4 }
0x1531   : > { %v8563_v18 = vadd.f32 0.0001, %v8547_v16  ;;  %v14045_v51 = vpop.f32.mrb[72].mxu0 }
0x1532   : > { %v8580_v44 = vmul.f32 4.0, %v8564_v34  ;;  %v8550_v31 = vmul.f32 0.14285715, %v14045_v51  ;;  %v8478_v41 = vpop.f32.mrb[73].mxu0 }
0x1533   : > { %v8579_v49 = vmul.f32 4.0, %v8563_v18  ;;  %v8549_v47 = vmul.f32 0.14285715, %v8478_v41 }
0x1534   : > { %16602 = vrcp.f32 %v8580_v44  ;;  %v8566_v56 = vadd.f32 0.0001, %v8550_v31 }
0x1535   : > { %16604 = vrcp.f32 %v8579_v49  ;;  %v8565_v63 = vadd.f32 0.0001, %v8549_v47  ;;  %v14048_v62 = vpop.f32.mrb[74].mxu0 }
0x1536   : > { %v8582_v24 = vmul.f32 4.0, %v8566_v56  ;;  %v8552_v26 = vmul.f32 0.14285715, %v14048_v62  ;;  %v8488_v9 = vpop.f32.mrb[75].mxu0 }
0x1537   : > { %v8581_v20 = vmul.f32 4.0, %v8565_v63  ;;  %v8551_v50 = vmul.f32 0.14285715, %v8488_v9 }
0x1538   : > { %16606 = vrcp.f32 %v8582_v24  ;;  %v8568_v28 = vadd.f32 0.0001, %v8552_v26 }
0x1539   : > { %16608 = vrcp.f32 %v8581_v20  ;;  %v8567_v11 = vadd.f32 0.0001, %v8551_v50  ;;  %v14051_v2 = vpop.f32.mrb[76].mxu0 }
0x153a   : > { %v8584_v6 = vmul.f32 4.0, %v8568_v28  ;;  %v8554_v45 = vmul.f32 0.14285715, %v14051_v2  ;;  %v8498_v19 = vpop.f32.mrb[77].mxu0 }
0x153b   : > { %v8583_v12 = vmul.f32 4.0, %v8567_v11  ;;  %v8553_v36 = vmul.f32 0.14285715, %v8498_v19 }
0x153c   : > { %16610 = vrcp.f32 %v8584_v6  ;;  %v8570_v27 = vadd.f32 0.0001, %v8554_v45 }
0x153d   : > { %16612 = vrcp.f32 %v8583_v12  ;;  %v8569_v25 = vadd.f32 0.0001, %v8553_v36  ;;  %v14054_v48 = vpop.f32.mrb[78].mxu0 }
0x153e   : > { %v16603_v33 = vpop.eup %16602  ;;  %v8586_v40 = vmul.f32 4.0, %v8570_v27  ;;  %v8556_v4 = vmul.f32 0.14285715, %v14054_v48  ;;  %v8508_v57 = vpop.f32.mrb[79].mxu0 }
0x153f   : > { %v16605_v16 = vpop.eup %16604  ;;  %v8598_v34 = vmul.f32 %v16603_v33, %v20890_v42  ;;  %v8585_v18 = vmul.f32 4.0, %v8569_v25  ;;  %v8555_v51 = vmul.f32 0.14285715, %v8508_v57 }
0x1540   : > { %v8596_v44 = vmul.f32 %v16605_v16, %v20892_v32  ;;  %16614 = vrcp.f32 %v8586_v40  ;;  %v8572_v31 = vadd.f32 0.0001, %v8556_v4 }
0x1541   : > { %v8628_v41 = vadd.f32 0.5, %v8598_v34  ;;  %16616 = vrcp.f32 %v8585_v18  ;;  %v8571_v49 = vadd.f32 0.0001, %v8555_v51  ;;  %v14057_v47 = vpop.f32.mrb[80].mxu0 }
0x1542   : > { %v16607_v56 = vpop.eup %16606  ;;  %v8627_v63 = vadd.f32 0.5, %v8596_v44  ;;  %v8588_v62 = vmul.f32 4.0, %v8572_v31  ;;  %v8558_v24 = vmul.f32 0.14285715, %v14057_v47  ;;  %v8518_v26 = vpop.f32.mrb[81].mxu0 }
0x1543   : > { %v16609_v9 = vpop.eup %16608  ;;  %v12324_v20 = vmul.f32 -1.442695, %v8628_v41  ;;  %v8602_v50 = vmul.f32 %v16607_v56, %v20898_v29  ;;  %v8587_v42 = vmul.f32 4.0, %v8571_v49  ;;  %v8557_v28 = vmul.f32 0.14285715, %v8518_v26 }
0x1544   : > { %v12323_v11 = vmul.f32 -1.442695, %v8627_v63  ;;  %v8600_v32 = vmul.f32 %v16609_v9, %v20900_v15  ;;  %16618 = vrcp.f32 %v8588_v62  ;;  %v8574_v2 = vadd.f32 0.0001, %v8558_v24 }
0x1545   : > { %16620 = vpow2.f32 %v12324_v20  ;;  %v8630_v6 = vadd.f32 0.5, %v8602_v50  ;;  %v8573_v45 = vadd.f32 0.0001, %v8557_v28  ;;  %v14060_v19 = vpop.f32.mrb[82].mxu0 }
0x1546   : > { %v16611_v12 = vpop.eup %16610  ;;  %16622 = vpow2.f32 %v12323_v11  ;;  %v8629_v36 = vadd.f32 0.5, %v8600_v32  ;;  %v8590_v27 = vmul.f32 4.0, %v8574_v2  ;;  %v8560_v25 = vmul.f32 0.14285715, %v14060_v19  ;;  %v8528_v48 = vpop.f32.mrb[83].mxu0 }
0x1547   : > { %v16613_v33 = vpop.eup %16612  ;;  %v12326_v40 = vmul.f32 -1.442695, %v8630_v6  ;;  %v8606_v29 = vmul.f32 %v16611_v12, %v20906_v0  ;;  %16624 = vrcp.f32 %v8587_v42  ;;  %v8589_v4 = vmul.f32 4.0, %v8573_v45 }
0x1548   : > { %v12325_v57 = vmul.f32 -1.442695, %v8629_v36  ;;  %v8604_v15 = vmul.f32 %v16613_v33, %v20908_v23  ;;  %16626 = vrcp.f32 %v8590_v27  ;;  %v8576_v16 = vadd.f32 0.0001, %v8560_v25 }
0x1549   : > { %16628 = vpow2.f32 %v12326_v40  ;;  %v8632_v34 = vadd.f32 0.5, %v8606_v29  ;;  %v8559_v18 = vmul.f32 0.14285715, %v8528_v48  ;;  %v14063_v51 = vpop.f32.mrb[84].mxu0 }
0x154a   : > { %v16615_v44 = vpop.eup %16614  ;;  %16630 = vpow2.f32 %v12325_v57  ;;  %v8631_v31 = vadd.f32 0.5, %v8604_v15  ;;  %v8592_v41 = vmul.f32 4.0, %v8576_v16  ;;  %v8562_v49 = vmul.f32 0.14285715, %v14063_v51  ;;  %v8538_v47 = vpop.f32.mrb[85].mxu0 }
0x154b   : > { %v16617_v56 = vpop.eup %16616  ;;  %v12328_v63 = vmul.f32 -1.442695, %v8632_v34  ;;  %v8610_v0 = vmul.f32 %v16615_v44, %v20914_v59  ;;  %16632 = vrcp.f32 %v8589_v4  ;;  %v8575_v62 = vadd.f32 0.0001, %v8559_v18 }
0x154c   : > { %v12327_v24 = vmul.f32 -1.442695, %v8631_v31  ;;  %v8608_v23 = vmul.f32 %v16617_v56, %v20916_v61  ;;  %16634 = vrcp.f32 %v8592_v41  ;;  %v8578_v26 = vadd.f32 0.0001, %v8562_v49 }
0x154d   : > { %16636 = vpow2.f32 %v12328_v63  ;;  %v8634_v9 = vadd.f32 0.5, %v8610_v0  ;;  %v8591_v20 = vmul.f32 4.0, %v8575_v62  ;;  %v8561_v40 = vmul.f32 0.14285715, %v8538_v47 }
0x154e   : > { %v16619_v50 = vpop.eup %16618  ;;  %16638 = vpow2.f32 %v12327_v24  ;;  %v8633_v42 = vadd.f32 0.5, %v8608_v23  ;;  %v8594_v28 = vmul.f32 4.0, %v8578_v26 }
0x154f   : > { %v16621_v11 = vpop.eup %16620  ;;  %v12330_v32 = vmul.f32 -1.442695, %v8634_v9  ;;  %v8614_v2 = vmul.f32 %v16619_v50, %v20922_v30  ;;  %16640 = vrcp.f32 %v8591_v20 }
0x1550   : > { %v16623_v59 = vpop.eup %16622  ;;  %v8692_v6 = vadd.f32 1.0, %v16621_v11  ;;  %v12329_v45 = vmul.f32 -1.442695, %v8633_v42  ;;  %16642 = vrcp.f32 %v8594_v28 }
0x1551   : > { %v16625_v19 = vpop.eup %16624  ;;  %v8691_v61 = vadd.f32 1.0, %v16623_v59  ;;  %16644 = vpow2.f32 %v12330_v32  ;;  %v8636_v12 = vadd.f32 0.5, %v8614_v2 }
0x1552   : > { %v16627_v36 = vpop.eup %16626  ;;  %16646 = vrcp.f32 %v8692_v6  ;;  %v8612_v27 = vmul.f32 %v16625_v19, %v20924_v53 }
0x1553   : > { %v16629_v25 = vpop.eup %16628  ;;  %16648 = vrcp.f32 %v8691_v61  ;;  %v12332_v48 = vmul.f32 -1.442695, %v8636_v12  ;;  %v8618_v33 = vmul.f32 %v16627_v36, %v20930_v54  ;;  %v8577_v54 = vadd.f32 0.0001, %v8561_v40 }
0x1554   : > { %v16631_v30 = vpop.eup %16630  ;;  %v8694_v29 = vadd.f32 1.0, %v16629_v25  ;;  %16650 = vpow2.f32 %v12329_v45  ;;  %v8635_v4 = vadd.f32 0.5, %v8612_v27 }
0x1555   : > { %v16633_v57 = vpop.eup %16632  ;;  %v8693_v15 = vadd.f32 1.0, %v16631_v30  ;;  %16652 = vpow2.f32 %v12332_v48  ;;  %v8638_v16 = vadd.f32 0.5, %v8618_v33 }
0x1556   : > { %v16635_v34 = vpop.eup %16634  ;;  %16654 = vrcp.f32 %v8694_v29  ;;  %v12331_v18 = vmul.f32 -1.442695, %v8635_v4  ;;  %v8616_v51 = vmul.f32 %v16633_v57, %v20932_v3 }
0x1557   : > { %v16637_v53 = vpop.eup %16636  ;;  %16656 = vrcp.f32 %v8693_v15  ;;  %v12334_v44 = vmul.f32 -1.442695, %v8638_v16  ;;  %v8622_v31 = vmul.f32 %v16635_v34, %v20938_v14  ;;  %v8593_v14 = vmul.f32 4.0, %v8577_v54 }
0x1558   : > { %v16639_v41 = vpop.eup %16638  ;;  %v8696_v49 = vadd.f32 1.0, %v16637_v53  ;;  %16658 = vpow2.f32 %v12331_v18  ;;  %v8637_v47 = vadd.f32 0.5, %v8616_v51 }
0x1559   : > { %v16641_v56 = vpop.eup %16640  ;;  %v8695_v63 = vadd.f32 1.0, %v16639_v41  ;;  %16660 = vpow2.f32 %v12334_v44  ;;  %v8640_v0 = vadd.f32 0.5, %v8622_v31 }
0x155a   : > { %v16643_v62 = vpop.eup %16642  ;;  %16662 = vrcp.f32 %v8696_v49  ;;  %v12333_v24 = vmul.f32 -1.442695, %v8637_v47  ;;  %v8620_v23 = vmul.f32 %v16641_v56, %v20940_v35 }
0x155b   : > { %v16645_v3 = vpop.eup %16644  ;;  %16664 = vrcp.f32 %v8695_v63  ;;  %v12336_v26 = vmul.f32 -1.442695, %v8640_v0  ;;  %v8626_v9 = vmul.f32 %v16643_v62, %v20946_v22 }
0x155c   : > { %v16647_v20 = vpop.eup %16646  ;;  %v8698_v50 = vadd.f32 1.0, %v16645_v3  ;;  %16666 = vpow2.f32 %v12333_v24  ;;  %v8639_v42 = vadd.f32 0.5, %v8620_v23 }
0x155d   : > { %v16649_v28 = vpop.eup %16648  ;;  %16668 = vpow2.f32 %v12336_v26  ;;  %v8740_v11 = vmul.f32 %v16647_v20, %v20717_v60  ;;  %v8642_v45 = vadd.f32 0.5, %v8626_v9 }
0x155e   : > { %v16651_v32 = vpop.eup %16650  ;;  %16670 = vrcp.f32 %v8698_v50  ;;  %v12335_v2 = vmul.f32 -1.442695, %v8639_v42  ;;  %v8739_v59 = vmul.f32 %v16649_v28, %v20713_v8 }
0x155f   : > { %v16653_v35 = vpop.eup %16652  ;;  %v8697_v6 = vadd.f32 1.0, %v16651_v32  ;;  %16672 = vrcp.f32 %v8593_v14  ;;  %v8756_v19 = vmax.f32 %v8740_v11, 0.0  ;;  %v12338_v40 = vmul.f32 -1.442695, %v8642_v45 }
0x1560   : > { %v16655_v22 = vpop.eup %16654  ;;  %v8700_v61 = vadd.f32 1.0, %v16653_v35  ;;  %16674 = vpow2.f32 %v12335_v2  ;;  %v8755_v12 = vmax.f32 %v8739_v59, 0.0 }
0x1561   : > { %v16657_v36 = vpop.eup %16656  ;;  %16676 = vrcp.f32 %v8697_v6  ;;  %v8742_v27 = vmul.f32 %v16655_v22, %v20715_v1 }
0x1562   : > { %v16659_v25 = vpop.eup %16658  ;;  %16678 = vrcp.f32 %v8700_v61  ;;  %v21003_v60 = vpack.c.bf16 %v8756_v19, %v8755_v12  ;;  %v8741_v48 = vmul.f32 %v16657_v36, %v20719_v38 }
0x1563   : > { %v16661_v8 = vpop.eup %16660  ;;  %v8699_v33 = vadd.f32 1.0, %v16659_v25  ;;  %v8758_v30 = vmax.f32 %v8742_v27, 0.0 }
0x1564   : > { %v16663_v29 = vpop.eup %16662  ;;  %v8702_v4 = vadd.f32 1.0, %v16661_v8  ;;  %14997 = vmatprep.subr.bf16.mxu1 %v21003_v60  ;;  %15029 = vmatprep.subr.bf16.mxu0 %v21003_v60  ;;  %v8757_v57 = vmax.f32 %v8741_v48, 0.0 }
0x1565   : > { %v16665_v15 = vpop.eup %16664  ;;  %16680 = vrcp.f32 %v8699_v33  ;;  %14999 = vmatpush3.bf16.msra.mxu1 %v21003_v60  ;;  %15031 = vmatpush3.bf16.msra.mxu0 %v21003_v60  ;;  %v8744_v1 = vmul.f32 %v16663_v29, %v20733_v39  ;;  %v8886_v29 = vld [vmem:[#allocation8 + $0x1340] sm:$0xff] }
0x1566   : > { %v16667_v38 = vpop.eup %16666  ;;  %16682 = vrcp.f32 %v8702_v4  ;;  %v21011_v16 = vpack.c.bf16 %v8758_v30, %v8757_v57  ;;  %v8743_v34 = vmul.f32 %v16665_v15, %v20729_v52  ;;  %v8772_v30 = vld [vmem:[#allocation8 + $0x1220] sm:$0xff] }
0x1567   : > { %v16669_v18 = vpop.eup %16668  ;;  %v8701_v51 = vadd.f32 1.0, %v16667_v38  ;;  %16684 = vpow2.f32 %v12338_v40  ;;  %v8760_v53 = vmax.f32 %v8744_v1, 0.0  ;;  %v8885_v40 = vld [vmem:[#allocation8 + $0x1320] sm:$0xff] }
0x1568   : > { %v16671_v44 = vpop.eup %16670  ;;  %v8704_v31 = vadd.f32 1.0, %v16669_v18  ;;  %15001 = vmatprep.subr.bf16.mxu1 %v21011_v16  ;;  %15033 = vmatprep.subr.bf16.mxu0 %v21011_v16  ;;  %v8759_v54 = vmax.f32 %v8743_v34, 0.0  ;;  %v8773_v4 = vld [vmem:[#allocation8 + $0x1240] sm:$0xff] }
0x1569   : > { %v16673_v41 = vpop.eup %16672  ;;  %16686 = vrcp.f32 %v8701_v51  ;;  %15003 = vmatpush3.bf16.msra.mxu1 %v21011_v16  ;;  %15035 = vmatpush3.bf16.msra.mxu0 %v21011_v16  ;;  %v8746_v39 = vmul.f32 %v16671_v44, %v20731_v58  ;;  %v8888_v57 = vld [vmem:[#allocation8 + $0x1380] sm:$0xff] }
0x156a   : > { %v16675_v52 = vpop.eup %16674  ;;  %16688 = vrcp.f32 %v8704_v31  ;;  %v8624_v49 = vmul.f32 %v16673_v41, %v20948_v10  ;;  %v21020_v47 = vpack.c.bf16 %v8760_v53, %v8759_v54  ;;  %v8775_v15 = vld [vmem:[#allocation8 + $0x1280] sm:$0xff] }
0x156b   : > { %v16677_v56 = vpop.eup %16676  ;;  %v8703_v63 = vadd.f32 1.0, %v16675_v52  ;;  %v8762_v23 = vmax.f32 %v8746_v39, 0.0  ;;  %v8889_v1 = vld [vmem:[#allocation8 + $0x13a0] sm:$0xff] }
0x156c   : > { %v16679_v0 = vpop.eup %16678  ;;  %v8641_v62 = vadd.f32 0.5, %v8624_v49  ;;  %15005 = vmatprep.subr.bf16.mxu1 %v21020_v47  ;;  %15037 = vmatprep.subr.bf16.mxu0 %v21020_v47  ;;  %v8745_v24 = vmul.f32 %v16677_v56, %v20735_v43  ;;  %v8776_v38 = vld [vmem:[#allocation8 + $0x12a0] sm:$0xff]  ;;  %v15846_v49 = vld [vmem:[#allocation2 + $0xd0] ss:$8 sps:$4 sm:$0xff]  }
0x156d   : > { %16690 = vrcp.f32 %v8703_v63  ;;  %15007 = vmatpush3.bf16.msra.mxu1 %v21020_v47  ;;  %15039 = vmatpush3.bf16.msra.mxu0 %v21020_v47  ;;  %v8748_v58 = vmul.f32 %v16679_v0, %v20749_v55  ;;  %v8890_v34 = vld [vmem:[#allocation8 + $0x13c0] sm:$0xff]  ;;  %v15848_v63 = vld [vmem:[#allocation2 + $0xf0] ss:$8 sps:$4 sm:$0xff]  }
0x156e   : > { %v12337_v10 = vmul.f32 -1.442695, %v8641_v62  ;;  %v8761_v3 = vmax.f32 %v8745_v24, 0.0  ;;  %v8891_v18 = vld [vmem:[#allocation8 + $0x13e0] sm:$0xff]  ;;  %v15850_v62 = vld [vmem:[#allocation2 + $0x110] ss:$8 sps:$4 sm:$0xff]  }
0x156f   : > { %v16681_v26 = vpop.eup %16680  ;;  %v8764_v50 = vmax.f32 %v8748_v58, 0.0  ;;  %v8778_v51 = vld [vmem:[#allocation8 + $0x12e0] sm:$0xff] }
0x1570   : > { %v16683_v9 = vpop.eup %16682  ;;  %v21028_v14 = vpack.c.bf16 %v8762_v23, %v8761_v3  ;;  %v8747_v20 = vmul.f32 %v16681_v26, %v20745_v37  ;;  %16692 = vpow2.f32 %v12337_v10  ;;  %v8997_v53 = vld [vmem:[#allocation8 + $0x1400] sm:$0xff]  ;;  %v15852_v23 = vld [vmem:[#allocation2 + $0x130] ss:$8 sps:$4 sm:$0xff]  }
0x1571   : > { %v16685_v42 = vpop.eup %16684  ;;  %v8750_v43 = vmul.f32 %v16683_v9, %v20747_v7  ;;  %v8999_v44 = vld [vmem:[#allocation8 + $0x1440] sm:$0xff]  ;;  %v15854_v10 = vld [vmem:[#allocation2 + $0x150] ss:$8 sps:$4 sm:$0xff]  }
0x1572   : > { %15009 = vmatprep.subr.bf16.mxu1 %v21028_v14  ;;  %15041 = vmatprep.subr.bf16.mxu0 %v21028_v14  ;;  %v8763_v28 = vmax.f32 %v8747_v20, 0.0  ;;  %v8706_v32 = vadd.f32 1.0, %v16685_v42  ;;  %v9000_v31 = vld [vmem:[#allocation8 + $0x1460] sm:$0xff]  ;;  %v15856_v26 = vld [vmem:[#allocation2 + $0x170] ss:$8 sps:$4 sm:$0xff]  }
0x1573   : > { %v16687_v11 = vpop.eup %16686  ;;  %15011 = vmatpush3.bf16.msra.mxu1 %v21028_v14  ;;  %15043 = vmatpush3.bf16.msra.mxu0 %v21028_v14  ;;  %v8766_v59 = vmax.f32 %v8750_v43, 0.0  ;;  %v9001_v54 = vld [vmem:[#allocation8 + $0x1480] sm:$0xff] }
0x1574   : > { %v16689_v55 = vpop.eup %16688  ;;  %v21036_v2 = vpack.c.bf16 %v8764_v50, %v8763_v28  ;;  %v8749_v37 = vmul.f32 %v16687_v11, %v20751_v21  ;;  %16694 = vrcp.f32 %v8706_v32  ;;  %v9002_v41 = vld [vmem:[#allocation8 + $0x14a0] sm:$0xff] }
0x1575   : > { %v8752_v35 = vmul.f32 %v16689_v55, %v20765_v5  ;;  %v9003_v39 = vld [vmem:[#allocation8 + $0x14c0] sm:$0xff] }
0x1576   : > { %15013 = vmatprep.subr.bf16.mxu1 %v21036_v2  ;;  %15045 = vmatprep.subr.bf16.mxu0 %v21036_v2  ;;  %v8765_v7 = vmax.f32 %v8749_v37, 0.0  ;;  %v9004_v52 = vld [vmem:[#allocation8 + $0x14e0] sm:$0xff] }
0x1577   : > { %v16691_v6 = vpop.eup %16690  ;;  %15015 = vmatpush3.bf16.msra.mxu1 %v21036_v2  ;;  %15047 = vmatpush3.bf16.msra.mxu0 %v21036_v2  ;;  %v8768_v22 = vmax.f32 %v8752_v35, 0.0  ;;  %v15847_v56 = vld [vmem:[#allocation2 + $0xe0] ss:$8 sps:$4 sm:$0xff]  }
0x1578   : > { %v21044_v45 = vpack.c.bf16 %v8766_v59, %v8765_v7  ;;  %v8751_v19 = vmul.f32 %v16691_v6, %v20761_v17  ;;  %v15849_v0 = vld [vmem:[#allocation2 + $0x100] ss:$8 sps:$4 sm:$0xff]  }
0x1579   : > { %v15851_v24 = vld [vmem:[#allocation2 + $0x120] ss:$8 sps:$4 sm:$0xff]  }
0x157a   : > { %15017 = vmatprep.subr.bf16.mxu1 %v21044_v45  ;;  %15049 = vmatprep.subr.bf16.mxu0 %v21044_v45  ;;  %v8767_v21 = vmax.f32 %v8751_v19, 0.0  ;;  %v16693_v5 = vpop.eup %16692  ;;  %v15853_v58 = vld [vmem:[#allocation2 + $0x140] ss:$8 sps:$4 sm:$0xff]  }
0x157b   : > { %15019 = vmatpush3.bf16.msra.mxu1 %v21044_v45  ;;  %15051 = vmatpush3.bf16.msra.mxu0 %v21044_v45  ;;  %v8705_v61 = vadd.f32 1.0, %v16693_v5  ;;  %v15855_v3 = vld [vmem:[#allocation2 + $0x160] ss:$8 sps:$4 sm:$0xff]  }
0x157c   : > { %v15020_v12 = vpack.c.bf16 %v8768_v22, %v8767_v21  ;;  %v15857_v9 = vld [vmem:[#allocation2 + $0x180] ss:$8 sps:$4 sm:$0xff]  }
0x157d   : > { %16696 = vrcp.f32 %v8705_v61 }
0x157e   : > { %15021 = vmatprep.subr.bf16.mxu1 %v15020_v12  ;;  %15053 = vmatprep.subr.bf16.mxu0 %v15020_v12  ;;  %v16695_v36 = vpop.eup %16694 }
0x157f   : > { %15023 = vmatpush3.bf16.msra.mxu1 %v15020_v12  ;;  %15055 = vmatpush3.bf16.msra.mxu0 %v15020_v12  ;;  %v8754_v17 = vmul.f32 %v16695_v36, %v20763_v46  ;;  %v8887_v46 = vld [vmem:[#allocation8 + $0x1360] sm:$0xff] }
0x1581   : > { %v8770_v48 = vmax.f32 %v8754_v17, 0.0 }
0x1587   : > { %v16697_v27 = vpop.eup %16696 }
0x1588   : > { %v8753_v25 = vmul.f32 %v16697_v27, %v20767_v13  ;;  %v8774_v13 = vld [vmem:[#allocation8 + $0x1260] sm:$0xff] }
0x158a   : > { %v8769_v8 = vmax.f32 %v8753_v25, 0.0 }
0x158c   : > { %v15024_v33 = vpack.c.bf16 %v8770_v48, %v8769_v8 }
0x158e   : > { %15025 = vmatprep.subr.bf16.mxu1 %v15024_v33  ;;  %15057 = vmatprep.subr.bf16.mxu0 %v15024_v33 }
0x158f   : > { %15027 = vmatpush3.bf16.msra.mxu1 %v15024_v33  ;;  %15059 = vmatpush3.bf16.msra.mxu0 %v15024_v33 }
0x1590   : > { %15061 = vmatprep.subr.bf16.mxu1 %v21003_v60 }
0x1592   : > { %14141 = vmatmul.mubr.f32.vlgmr.msra.gmra.mrb[86].mxu0 %v8885_v40  ;;  %14097 = vmatmul.mubr.f32.vlgmr.msra.gmra.mrb[54].mxu1 %v8772_v30 }
0x1593   : > { %15063 = vmatpush3.bf16.msra.mxu1 %v21003_v60  ;;  %14143 = vmatprep.mubr.f32.mxu0 %v8886_v29  ;;  %v8777_v60 = vld [vmem:[#allocation8 + $0x12c0] sm:$0xff] }
0x1594   : > { %15065 = vmatprep.subr.bf16.mxu1 %v21011_v16  ;;  %14099 = vmatprep.mubr.f32.mxu1 %v8773_v4 }
0x1596   : > { %14144 = vmatmul.mubr.f32.gmra.mrb[88].mxu0 %v8887_v46  ;;  %14100 = vmatmul.mubr.f32.gmra.mrb[56].mxu1 %v8774_v13 }
0x1597   : > { %15067 = vmatpush3.bf16.msra.mxu1 %v21011_v16  ;;  %14146 = vmatprep.mubr.f32.mxu0 %v8888_v57  ;;  %v8998_v16 = vld [vmem:[#allocation8 + $0x1420] sm:$0xff] }
0x1598   : > { %15069 = vmatprep.subr.bf16.mxu1 %v21020_v47  ;;  %14102 = vmatprep.mubr.f32.mxu1 %v8775_v15 }
0x159a   : > { %14147 = vmatmul.mubr.f32.gmra.mrb[90].mxu0 %v8889_v1  ;;  %14103 = vmatmul.mubr.f32.gmra.mrb[58].mxu1 %v8776_v38 }
0x159b   : > { %15071 = vmatpush3.bf16.msra.mxu1 %v21020_v47  ;;  %14149 = vmatprep.mubr.f32.mxu0 %v8890_v34  ;;  %v17027_v47 = vmov 0  }
0x159c   : > { %15073 = vmatprep.subr.bf16.mxu1 %v21028_v14  ;;  %14105 = vmatprep.mubr.f32.mxu1 %v8777_v60 }
0x159d   : > { %9266 = vmatprep.subr.bf16.mxu0 %v17027_v47 }
0x159e   : > { %14150 = vmatmul.mubr.f32.gmra.mrb[92].mxu0 %v8891_v18  ;;  %14106 = vmatmul.mubr.f32.gmra.mrb[60].mxu1 %v8778_v51 }
0x159f   : > { %15075 = vmatpush3.bf16.msra.mxu1 %v21028_v14  ;;  %14184 = vmatprep.mubr.f32.mxu1 %v8997_v53 }
0x15a0   : > { %15077 = vmatprep.subr.bf16.mxu1 %v21036_v2  ;;  %9267 = vmatpush1.bf16.msra.mxu0 %v15846_v49 }
0x15a1   : > { %9268 = vmatprep.subr.bf16.mxu0 %v17027_v47 }
0x15a3   : > { %15079 = vmatpush3.bf16.msra.mxu1 %v21036_v2 }
0x15a4   : > { %15081 = vmatprep.subr.bf16.mxu1 %v21044_v45  ;;  %9269 = vmatpush1.bf16.msra.mxu0 %v15847_v56 }
0x15a5   : > { %9270 = vmatprep.subr.bf16.mxu0 %v17027_v47 }
0x15a7   : > { %15083 = vmatpush3.bf16.msra.mxu1 %v21044_v45 }
0x15a8   : > { %15085 = vmatprep.subr.bf16.mxu1 %v15020_v12  ;;  %9271 = vmatpush1.bf16.msra.mxu0 %v15848_v63 }
0x15a9   : > { %9272 = vmatprep.subr.bf16.mxu0 %v17027_v47 }
0x15ab   : > { %15087 = vmatpush3.bf16.msra.mxu1 %v15020_v12 }
0x15ac   : > { %15089 = vmatprep.subr.bf16.mxu1 %v15024_v33  ;;  %9273 = vmatpush1.bf16.msra.mxu0 %v15849_v0 }
0x15ad   : > { %9274 = vmatprep.subr.bf16.mxu0 %v17027_v47 }
0x15af   : > { %15091 = vmatpush3.bf16.msra.mxu1 %v15024_v33 }
0x15b0   : > { %9275 = vmatpush1.bf16.msra.mxu0 %v15850_v62 }
0x15b1   : > { %9276 = vmatprep.subr.bf16.mxu0 %v17027_v47 }
0x15b2   : > { %14185 = vmatmul.mubr.f32.vlgmr.msra.gmra.mrb[62].mxu1 %v8998_v16 }
0x15b3   : > { %14187 = vmatprep.mubr.f32.mxu1 %v8999_v44 }
0x15b4   : > { %9277 = vmatpush1.bf16.msra.mxu0 %v15851_v24  ;;  %v21093_v24 = vld [vmem:[#allocation7 + $0x38] sm:$0xff] }
0x15b5   : > { %9278 = vmatprep.subr.bf16.mxu0 %v17027_v47 }
0x15b6   : > { %14188 = vmatmul.mubr.f32.gmra.mrb[64].mxu1 %v9000_v31 }
0x15b7   : > { %14190 = vmatprep.mubr.f32.mxu1 %v9001_v54 }
0x15b8   : > { %9279 = vmatpush1.bf16.msra.mxu0 %v15852_v23  ;;  %v9331_v23 = vld [vmem:[#allocation5 + $0x6] ss:$0 sm:$0xff] }
0x15b9   : > { %9280 = vmatprep.subr.bf16.mxu0 %v17027_v47 }
0x15ba   : > { %14191 = vmatmul.mubr.f32.gmra.mrb[66].mxu1 %v9002_v41 }
0x15bb   : > { %14193 = vmatprep.mubr.f32.mxu1 %v9003_v39 }
0x15bc   : > { %9281 = vmatpush1.bf16.msra.mxu0 %v15853_v58 }
0x15bd   : > { %9282 = vmatprep.subr.bf16.mxu0 %v17027_v47 }
0x15be   : > { %14194 = vmatmul.mubr.f32.gmra.mrb[68].mxu1 %v9004_v52 }
0x15bf   : > { %14212 = vmatprep.mubr.msk.f32.mxu1 %vm610_vm0, %v21093_v24 }
0x15c0   : > { %9283 = vmatpush1.bf16.msra.mxu0 %v15854_v10 }
0x15c1   : > { %9284 = vmatprep.subr.bf16.mxu0 %v17027_v47 }
0x15c4   : > { %9285 = vmatpush1.bf16.msra.mxu0 %v15855_v3 }
0x15c5   : > { %9286 = vmatprep.subr.bf16.mxu0 %v17027_v47 }
0x15c8   : > { %9287 = vmatpush1.bf16.msra.mxu0 %v15856_v26  ;;  %v9340_v26 = vld [vmem:[#allocation5 + $0x7] ss:$0 sm:$0xff] }
0x15c9   : > { %9288 = vmatprep.subr.bf16.mxu0 %v17027_v47 }
0x15cc   : > { %9289 = vmatpush1.bf16.msra.mxu0 %v15857_v9 }
0x1665   : > { %v14142_v14 = vpop.f32.mrb[86].mxu0  ;;  %v14098_v20 = vpop.f32.mrb[54].mxu1 }
0x1666   : > { %v8958_v50 = vpop.f32.mrb[87].mxu0  ;;  %v8845_v42 = vpop.f32.mrb[55].mxu1 }
0x1667   : > { %v15781_v43 = vpack.i.bf16 %v14142_v14, %v8958_v50 }
0x1669   : > { %15782 = vrot.lane.b32.xlu0 %v15781_v43, %s17026_s19  ;;  %v14145_v28 = vpop.f32.mrb[88].mxu0  ;;  %v14101_v11 = vpop.f32.mrb[56].mxu1 }
0x166a   : > { %v8968_v55 = vpop.f32.mrb[89].mxu0  ;;  %v8855_v32 = vpop.f32.mrb[57].mxu1 }
0x166b   : > { %v15786_v2 = vpack.i.bf16 %v14145_v28, %v8968_v55 }
0x166d   : > { %15787 = vrot.lane.b32.xlu1 %v15786_v2, %s17026_s19  ;;  %v14148_v37 = vpop.f32.mrb[90].mxu0  ;;  %v14104_v59 = vpop.f32.mrb[58].mxu1 }
0x166e   : > { %v8978_v35 = vpop.f32.mrb[91].mxu0  ;;  %v8865_v7 = vpop.f32.mrb[59].mxu1 }
0x166f   : > { %v15791_v6 = vpack.i.bf16 %v14148_v37, %v8978_v35 }
0x1671   : > { %15792 = vrot.lane.b32.xlu0 %v15791_v6, %s17026_s19  ;;  %v14151_v45 = vpop.f32.mrb[92].mxu0  ;;  %v14107_v19 = vpop.f32.mrb[60].mxu1 }
0x1672   : > { %v8988_v22 = vpop.f32.mrb[93].mxu0  ;;  %v8875_v21 = vpop.f32.mrb[61].mxu1 }
0x1673   : > { %v15796_v5 = vpack.i.bf16 %v14151_v45, %v8988_v22 }
0x1675   : > { %15797 = vrot.lane.b32.xlu1 %v15796_v5, %s17026_s19  ;;  %s16934_s19 = scalar_lea.vmem %s21358_s13, 512 }
0x1676   : > { %p16935_p2 = scmp.ne.s32.totalorder %s21358_s13, %s16934_s19  ;;  %p16942_p11 = scmp.lt.s32.totalorder %s16940_s9, %s16934_s19 }
0x1678   : > { %p16936_p4 = pnand %p16935_p2, %p22169_p3  ;;  %p16943_p13 = por %p16942_p11, %p16941_p8 }
0x167a   : > { %p16937_p7 = pneg %p16936_p4 }
0x167c   : > { %p16944_p0 = pnand %p16943_p13, %p16937_p7 }
0x1685   : > { %v14186_v61 = vpop.f32.mrb[62].mxu1 }
0x1686   : > { %v9071_v12 = vpop.f32.mrb[63].mxu1 }
0x1687   : > { %v9151_v36 = vpack.c.bf16 %v14186_v61, %v9071_v12 }
0x1689   : > { %12351 = vmatprep.mubr.msk.bf16.mxu0 %vm610_vm0, %v9151_v36  ;;  %v14189_v17 = vpop.f32.mrb[64].mxu1 }
0x168a   : > { %v9081_v27 = vpop.f32.mrb[65].mxu1 }
0x168b   : > { %v9153_v25 = vpack.c.bf16 %v14189_v17, %v9081_v27 }
0x168d   : > { %v14192_v48 = vpop.f32.mrb[66].mxu1 }
0x168e   : > { %v9091_v8 = vpop.f32.mrb[67].mxu1 }
0x168f   : > { %v9155_v33 = vpack.c.bf16 %v14192_v48, %v9091_v8 }
0x1691   : > { %v14195_v40 = vpop.f32.mrb[68].mxu1 }
0x1692   : > { %v9101_v30 = vpop.f32.mrb[69].mxu1 }
0x1693   : > { %v9157_v29 = vpack.c.bf16 %v14195_v40, %v9101_v30 }
0x16db   : > { %v15783_v4 = vpop.permute.xlu0 %15782 }
0x16dc   : > { %v15785_v46 = vunpack.i.h.bf16 %v15783_v4  ;;  %v15784_v13 = vunpack.i.l.bf16 %v15783_v4  ;;  %v9350_v4 = vld [vmem:[#allocation7 + $0x80] sm:$0xff] }
0x16de   : > { %v9142_v57 = vsel %vm610_vm0, %v8845_v42, %v15784_v13  ;;  %v9143_v15 = vsel %vm610_vm0, %v14098_v20, %v15785_v46  ;;  %v9351_v46 = vld [vmem:[%s21411_s4 + $0x380] sm:$0xff] }
0x16df   : > { %v9150_v1 = vpack.c.bf16 %v9143_v15, %v9142_v57  ;;  %v15788_v38 = vpop.permute.xlu1 %15787 }
0x16e0   : > { %v15790_v34 = vunpack.i.h.bf16 %v15788_v38  ;;  %v15789_v60 = vunpack.i.l.bf16 %v15788_v38 }
0x16e1   : > { %9299 = vmatmul.mubr.bf16.vlgmr.msra.gmra.mrb[96].mxu0 %v9150_v1 }
0x16e2   : > { %v9144_v18 = vsel %vm610_vm0, %v8855_v32, %v15789_v60  ;;  %v9145_v51 = vsel %vm610_vm0, %v14101_v11, %v15790_v34  ;;  %12352 = vmatprep.mubr.msk.bf16.mxu0 %vm610_vm0, %v9153_v25  ;;  %v9352_v34 = vld [vmem:[%s21411_s4 + $0x388] sm:$0xff]  ;;  %v9353_v60 = vld [vmem:[%s21411_s4 + $0x390] sm:$0xff] }
0x16e3   : > { %v9152_v53 = vpack.c.bf16 %v9145_v51, %v9144_v18  ;;  %v15793_v16 = vpop.permute.xlu0 %15792  ;;  %v9354_v18 = vld [vmem:[%s21411_s4 + $0x398] sm:$0xff]  ;;  %v9355_v51 = vld [vmem:[%s21411_s4 + $0x3a0] sm:$0xff] }
0x16e4   : > { %v15795_v44 = vunpack.i.h.bf16 %v15793_v16  ;;  %v15794_v31 = vunpack.i.l.bf16 %v15793_v16  ;;  %v9357_v16 = vld [vmem:[%s21411_s4 + $0x3b0] sm:$0xff] }
0x16e6   : > { %v9146_v54 = vsel %vm610_vm0, %v8865_v7, %v15794_v31  ;;  %v9147_v41 = vsel %vm610_vm0, %v14104_v59, %v15795_v44  ;;  %v9358_v44 = vld [vmem:[%s21411_s4 + $0x3b8] sm:$0xff] }
0x16e7   : > { %v9154_v39 = vpack.c.bf16 %v9147_v41, %v9146_v54  ;;  %v15798_v52 = vpop.permute.xlu1 %15797 }
0x16e8   : > { %v15800_v49 = vunpack.i.h.bf16 %v15798_v52  ;;  %v15799_v56 = vunpack.i.l.bf16 %v15798_v52 }
0x16e9   : > { %9307 = vmatmul.mubr.bf16.gmra.mrb[100].mxu0 %v9152_v53  ;;  %v9356_v53 = vld [vmem:[%s21411_s4 + $0x3a8] sm:$0xff] }
0x16ea   : > { %12353 = vmatprep.mubr.msk.bf16.mxu0 %vm610_vm0, %v9155_v33  ;;  %v9148_v63 = vsel %vm610_vm0, %v8875_v21, %v15799_v56  ;;  %v9149_v0 = vsel %vm610_vm0, %v14107_v19, %v15800_v49 }
0x16eb   : > { %v9156_v62 = vpack.c.bf16 %v9149_v0, %v9148_v63 }
0x16f1   : > { %9315 = vmatmul.mubr.bf16.gmra.mrb[104].mxu0 %v9154_v39 }
0x16f2   : > { %12354 = vmatprep.mubr.msk.bf16.mxu0 %vm610_vm0, %v9157_v29 }
0x16f9   : > { %9323 = vmatmul.mubr.bf16.gmra.mrb[108].mxu0 %v9156_v62 }
0x17b4   : > { %v9300_v58 = vpop.f32.mrb[96].mxu0 }
0x17b5   : > { %v9332_v10 = vmul.f32 %v9331_v23, %v9300_v58  ;;  %v9302_v3 = vpop.f32.mrb[97].mxu0 }
0x17b6   : > { %v9303_v9 = vpop.f32.mrb[98].mxu0 }
0x17b7   : > { %v9333_v14 = vmul.f32 %v9331_v23, %v9303_v9  ;;  %v9305_v20 = vpop.f32.mrb[99].mxu0  ;;  %v21097_v50 = vadd.f32 %v9340_v26, %v9332_v10 }
0x17b9   : > { %v21099_v42 = vadd.f32 %v9340_v26, %v9333_v14 }
0x17bb   : > { %v15092_v43 = vpack.c.bf16 %v21099_v42, %v21097_v50 }
0x17bc   : > { %v9308_v28 = vpop.f32.mrb[100].mxu0 }
0x17bd   : > { %v9334_v11 = vmul.f32 %v9331_v23, %v9308_v28  ;;  %v9310_v55 = vpop.f32.mrb[101].mxu0  ;;  %15093 = vmatprep.subr.bf16.mxu1 %v15092_v43 }
0x17be   : > { %v9311_v32 = vpop.f32.mrb[102].mxu0  ;;  %15095 = vmatpush3.bf16.msra.mxu1 %v15092_v43 }
0x17bf   : > { %v9335_v2 = vmul.f32 %v9331_v23, %v9311_v32  ;;  %v9313_v37 = vpop.f32.mrb[103].mxu0  ;;  %v21103_v59 = vadd.f32 %v9340_v26, %v9334_v11 }
0x17c1   : > { %v21105_v35 = vadd.f32 %v9340_v26, %v9335_v2 }
0x17c3   : > { %v15096_v7 = vpack.c.bf16 %v21105_v35, %v21103_v59 }
0x17c4   : > { %v9316_v6 = vpop.f32.mrb[104].mxu0 }
0x17c5   : > { %v9336_v45 = vmul.f32 %v9331_v23, %v9316_v6  ;;  %v9318_v19 = vpop.f32.mrb[105].mxu0  ;;  %15097 = vmatprep.subr.bf16.mxu1 %v15096_v7 }
0x17c6   : > { %v9319_v22 = vpop.f32.mrb[106].mxu0  ;;  %15099 = vmatpush3.bf16.msra.mxu1 %v15096_v7 }
0x17c7   : > { %v9337_v21 = vmul.f32 %v9331_v23, %v9319_v22  ;;  %v9321_v5 = vpop.f32.mrb[107].mxu0  ;;  %v21109_v61 = vadd.f32 %v9340_v26, %v9336_v45 }
0x17c8   : > { %v10081_v5 = vld [vmem:[#allocation8 + $0x1600] sm:$0xff] }
0x17c9   : > { %v21111_v12 = vadd.f32 %v9340_v26, %v9337_v21  ;;  %v9879_v21 = vld [vmem:[#allocation8 + $0x1500] sm:$0xff]  ;;  %14326 = vmatprep.mubr.msk.f32.mxu0 %vm610_vm0, %v10081_v5 }
0x17cb   : > { %v15100_v36 = vpack.c.bf16 %v21111_v12, %v21109_v61 }
0x17cc   : > { %v9324_v17 = vpop.f32.mrb[108].mxu0 }
0x17cd   : > { %v9338_v27 = vmul.f32 %v9331_v23, %v9324_v17  ;;  %v9326_v25 = vpop.f32.mrb[109].mxu0  ;;  %15101 = vmatprep.subr.bf16.mxu1 %v15100_v36 }
0x17ce   : > { %v9327_v48 = vpop.f32.mrb[110].mxu0  ;;  %15103 = vmatpush3.bf16.msra.mxu1 %v15100_v36 }
0x17cf   : > { %v9339_v8 = vmul.f32 %v9331_v23, %v9327_v48  ;;  %v9329_v33 = vpop.f32.mrb[111].mxu0  ;;  %v21115_v40 = vadd.f32 %v9340_v26, %v9338_v27 }
0x17d1   : > { %v21117_v30 = vadd.f32 %v9340_v26, %v9339_v8 }
0x17d3   : > { %v15104_v29 = vpack.c.bf16 %v21117_v30, %v21115_v40 }
0x17d5   : > { %15105 = vmatprep.subr.bf16.mxu1 %v15104_v29 }
0x17d6   : > { %15107 = vmatpush3.bf16.msra.mxu1 %v15104_v29 }
0x17d9   : > { %14213 = vmatmul.mubr.msk.f32.vlgmr.msra.gmra.mrb[70].mxu1 %vm610_vm0, %v9350_v4 }
0x17da   : > { %14219 = vmatprep.mubr.msk.f32.mxu1 %vm1350_vm1, %v9351_v46 }
0x18ac   : > { %v14214_v13 = vpop.f32.mrb[70].mxu1 }
0x18ad   : > { %v9441_v57 = vmul.f32 0.25, %v14214_v13  ;;  %v9431_v15 = vpop.f32.mrb[71].mxu1 }
0x18ae   : > { %v9440_v1 = vmul.f32 0.25, %v9431_v15 }
0x18b0   : > { %v15108_v38 = vpack.c.bf16 %v9441_v57, %v9440_v1 }
0x18b2   : > { %15109 = vmatprep.subr.bf16.mxu1 %v15108_v38 }
0x18b3   : > { %15111 = vmatpush3.bf16.msra.mxu1 %v15108_v38 }
0x18b6   : > { %14220 = vmatmul.mubr.msk.f32.vlgmr.msra.gmra.mrb[72].mxu1 %vm1350_vm1, %v9352_v34 }
0x18b7   : > { %14222 = vmatprep.mubr.msk.f32.mxu1 %vm1350_vm1, %v9353_v60 }
0x18ba   : > { %14223 = vmatmul.mubr.msk.f32.gmra.mrb[74].mxu1 %vm1350_vm1, %v9354_v18 }
0x18bb   : > { %14225 = vmatprep.mubr.msk.f32.mxu1 %vm1350_vm1, %v9355_v51 }
0x18be   : > { %14226 = vmatmul.mubr.msk.f32.gmra.mrb[76].mxu1 %vm1350_vm1, %v9356_v53 }
0x18bf   : > { %14228 = vmatprep.mubr.msk.f32.mxu1 %vm1350_vm1, %v9357_v16 }
0x18c2   : > { %14229 = vmatmul.mubr.msk.f32.gmra.mrb[78].mxu1 %vm1350_vm1, %v9358_v44 }
0x18c3   : > { %14247 = vmatprep.mubr.msk.f32.mxu1 %vm610_vm0, %v21093_v24 }
0x1989   : > { %v14221_v31 = vpop.f32.mrb[72].mxu1 }
0x198a   : > { %v9572_v54 = vsub.f32 %v21099_v42, %v14221_v31  ;;  %v9532_v41 = vpop.f32.mrb[73].mxu1 }
0x198b   : > { %v9571_v39 = vsub.f32 %v21097_v50, %v9532_v41 }
0x198c   : > { %v21158_v52 = vmul.f32 %v9572_v54, %v9572_v54 }
0x198d   : > { %v21160_v49 = vmul.f32 %v9571_v39, %v9571_v39  ;;  %v14224_v56 = vpop.f32.mrb[74].mxu1 }
0x198e   : > { %v9574_v63 = vsub.f32 %v21105_v35, %v14224_v56  ;;  %v9542_v0 = vpop.f32.mrb[75].mxu1 }
0x198f   : > { %v15112_v62 = vpack.c.bf16 %v21158_v52, %v21160_v49  ;;  %v9573_v23 = vsub.f32 %v21103_v59, %v9542_v0 }
0x1990   : > { %v21166_v24 = vmul.f32 %v9574_v63, %v9574_v63 }
0x1991   : > { %v21168_v58 = vmul.f32 %v9573_v23, %v9573_v23  ;;  %v14227_v10 = vpop.f32.mrb[76].mxu1  ;;  %15113 = vmatprep.subr.bf16.mxu1 %v15112_v62 }
0x1992   : > { %v9576_v3 = vsub.f32 %v21111_v12, %v14227_v10  ;;  %v9552_v26 = vpop.f32.mrb[77].mxu1  ;;  %15115 = vmatpush3.bf16.msra.mxu1 %v15112_v62 }
0x1993   : > { %v15116_v9 = vpack.c.bf16 %v21166_v24, %v21168_v58  ;;  %v9575_v14 = vsub.f32 %v21109_v61, %v9552_v26 }
0x1994   : > { %v21174_v20 = vmul.f32 %v9576_v3, %v9576_v3 }
0x1995   : > { %v21176_v43 = vmul.f32 %v9575_v14, %v9575_v14  ;;  %v14230_v28 = vpop.f32.mrb[78].mxu1  ;;  %15117 = vmatprep.subr.bf16.mxu1 %v15116_v9 }
0x1996   : > { %v9578_v11 = vsub.f32 %v21117_v30, %v14230_v28  ;;  %v9562_v55 = vpop.f32.mrb[79].mxu1  ;;  %15119 = vmatpush3.bf16.msra.mxu1 %v15116_v9 }
0x1997   : > { %v15120_v32 = vpack.c.bf16 %v21174_v20, %v21176_v43  ;;  %v9577_v2 = vsub.f32 %v21115_v40, %v9562_v55 }
0x1998   : > { %v21182_v37 = vmul.f32 %v9578_v11, %v9578_v11 }
0x1999   : > { %v21184_v7 = vmul.f32 %v9577_v2, %v9577_v2  ;;  %15121 = vmatprep.subr.bf16.mxu1 %v15120_v32 }
0x199a   : > { %15123 = vmatpush3.bf16.msra.mxu1 %v15120_v32 }
0x199b   : > { %v15124_v6 = vpack.c.bf16 %v21182_v37, %v21184_v7 }
0x199d   : > { %15125 = vmatprep.subr.bf16.mxu1 %v15124_v6 }
0x199e   : > { %15127 = vmatpush3.bf16.msra.mxu1 %v15124_v6 }
0x19a1   : > { %14248 = vmatmul.mubr.msk.f32.vlgmr.msra.gmra.mrb[80].mxu1 %vm610_vm0, %v9350_v4 }
0x19a2   : > { %14254 = vmatprep.mubr.msk.f32.mxu1 %vm1350_vm1, %v9351_v46 }
0x1a74   : > { %v14249_v45 = vpop.f32.mrb[80].mxu1 }
0x1a75   : > { %v9653_v19 = vpop.f32.mrb[81].mxu1 }
0x1a76   : > { %v15128_v22 = vpack.c.bf16 %v14249_v45, %v9653_v19 }
0x1a78   : > { %15129 = vmatprep.subr.bf16.mxu1 %v15128_v22 }
0x1a79   : > { %15131 = vmatpush3.bf16.msra.mxu1 %v15128_v22 }
0x1a7c   : > { %14255 = vmatmul.mubr.msk.f32.vlgmr.msra.gmra.mrb[82].mxu1 %vm1350_vm1, %v9352_v34 }
0x1a7d   : > { %14257 = vmatprep.mubr.msk.f32.mxu1 %vm1350_vm1, %v9353_v60 }
0x1a80   : > { %14258 = vmatmul.mubr.msk.f32.gmra.mrb[84].mxu1 %vm1350_vm1, %v9354_v18 }
0x1a81   : > { %14260 = vmatprep.mubr.msk.f32.mxu1 %vm1350_vm1, %v9355_v51 }
0x1a84   : > { %14261 = vmatmul.mubr.msk.f32.gmra.mrb[86].mxu1 %vm1350_vm1, %v9356_v53 }
0x1a85   : > { %14263 = vmatprep.mubr.msk.f32.mxu1 %vm1350_vm1, %v9357_v16 }
0x1a88   : > { %14264 = vmatmul.mubr.msk.f32.gmra.mrb[88].mxu1 %vm1350_vm1, %v9358_v44 }
0x1a89   : > { %14282 = vmatprep.mubr.msk.f32.mxu1 %vm610_vm0, %v9879_v21 }
0x1b4f   : > { %v14256_v36 = vpop.f32.mrb[82].mxu1 }
0x1b50   : > { %v9768_v17 = vmul.f32 0.33333334, %v14256_v36  ;;  %v9728_v27 = vpop.f32.mrb[83].mxu1 }
0x1b51   : > { %v9767_v25 = vmul.f32 0.33333334, %v9728_v27 }
0x1b52   : > { %v9776_v48 = vadd.f32 0.0001, %v9768_v17 }
0x1b53   : > { %v9775_v8 = vadd.f32 0.0001, %v9767_v25  ;;  %v14259_v33 = vpop.f32.mrb[84].mxu1 }
0x1b54   : > { %v9784_v29 = vmul.f32 4.0, %v9776_v48  ;;  %v9770_v4 = vmul.f32 0.33333334, %v14259_v33  ;;  %v9738_v46 = vpop.f32.mrb[85].mxu1 }
0x1b55   : > { %v9783_v13 = vmul.f32 4.0, %v9775_v8  ;;  %v9769_v57 = vmul.f32 0.33333334, %v9738_v46 }
0x1b56   : > { %16698 = vrcp.f32 %v9784_v29  ;;  %v9778_v15 = vadd.f32 0.0001, %v9770_v4 }
0x1b57   : > { %16700 = vrcp.f32 %v9783_v13  ;;  %v9777_v1 = vadd.f32 0.0001, %v9769_v57  ;;  %v14262_v38 = vpop.f32.mrb[86].mxu1 }
0x1b58   : > { %v9786_v34 = vmul.f32 4.0, %v9778_v15  ;;  %v9772_v60 = vmul.f32 0.33333334, %v14262_v38  ;;  %v9748_v18 = vpop.f32.mrb[87].mxu1 }
0x1b59   : > { %v9785_v51 = vmul.f32 4.0, %v9777_v1  ;;  %v9771_v53 = vmul.f32 0.33333334, %v9748_v18 }
0x1b5a   : > { %16702 = vrcp.f32 %v9786_v34  ;;  %v9780_v16 = vadd.f32 0.0001, %v9772_v60 }
0x1b5b   : > { %16704 = vrcp.f32 %v9785_v51  ;;  %v9779_v44 = vadd.f32 0.0001, %v9771_v53  ;;  %v14265_v31 = vpop.f32.mrb[88].mxu1 }
0x1b5c   : > { %v9788_v54 = vmul.f32 4.0, %v9780_v16  ;;  %v9774_v41 = vmul.f32 0.33333334, %v14265_v31  ;;  %v9758_v39 = vpop.f32.mrb[89].mxu1 }
0x1b5d   : > { %v9787_v56 = vmul.f32 4.0, %v9779_v44  ;;  %v9773_v63 = vmul.f32 0.33333334, %v9758_v39 }
0x1b5e   : > { %16706 = vrcp.f32 %v9788_v54  ;;  %v9782_v0 = vadd.f32 0.0001, %v9774_v41 }
0x1b5f   : > { %16708 = vrcp.f32 %v9787_v56  ;;  %v9781_v62 = vadd.f32 0.0001, %v9773_v63 }
0x1b60   : > { %v16699_v23 = vpop.eup %16698  ;;  %v9790_v10 = vmul.f32 4.0, %v9782_v0 }
0x1b61   : > { %v16701_v3 = vpop.eup %16700  ;;  %v9794_v26 = vmul.f32 %v16699_v23, %v21158_v52  ;;  %v9789_v9 = vmul.f32 4.0, %v9781_v62 }
0x1b62   : > { %v9792_v14 = vmul.f32 %v16701_v3, %v21160_v49  ;;  %16710 = vrcp.f32 %v9790_v10 }
0x1b63   : > { %v9808_v28 = vadd.f32 0.5, %v9794_v26  ;;  %16712 = vrcp.f32 %v9789_v9 }
0x1b64   : > { %v16703_v11 = vpop.eup %16702  ;;  %v9807_v55 = vadd.f32 0.5, %v9792_v14 }
0x1b65   : > { %v16705_v32 = vpop.eup %16704  ;;  %v12376_v2 = vmul.f32 -1.442695, %v9808_v28  ;;  %v9798_v6 = vmul.f32 %v16703_v11, %v21166_v24 }
0x1b66   : > { %v12375_v45 = vmul.f32 -1.442695, %v9807_v55  ;;  %v9796_v19 = vmul.f32 %v16705_v32, %v21168_v58 }
0x1b67   : > { %16714 = vpow2.f32 %v12376_v2  ;;  %v9810_v22 = vadd.f32 0.5, %v9798_v6 }
0x1b68   : > { %v16707_v21 = vpop.eup %16706  ;;  %16716 = vpow2.f32 %v12375_v45  ;;  %v9809_v52 = vadd.f32 0.5, %v9796_v19 }
0x1b69   : > { %v16709_v5 = vpop.eup %16708  ;;  %v12378_v36 = vmul.f32 -1.442695, %v9810_v22  ;;  %v9802_v49 = vmul.f32 %v16707_v21, %v21174_v20 }
0x1b6a   : > { %v12377_v17 = vmul.f32 -1.442695, %v9809_v52  ;;  %v9800_v27 = vmul.f32 %v16709_v5, %v21176_v43  ;;  %v9880_v5 = vld [vmem:[#allocation8 + $0x1520] sm:$0xff] }
0x1b6b   : > { %16718 = vpow2.f32 %v12378_v36  ;;  %v9812_v25 = vadd.f32 0.5, %v9802_v49  ;;  %v10082_v36 = vld [vmem:[#allocation8 + $0x1620] sm:$0xff] }
0x1b6c   : > { %v16711_v48 = vpop.eup %16710  ;;  %16720 = vpow2.f32 %v12377_v17  ;;  %v9811_v24 = vadd.f32 0.5, %v9800_v27  ;;  %v9881_v49 = vld [vmem:[#allocation8 + $0x1540] sm:$0xff] }
0x1b6d   : > { %v16713_v8 = vpop.eup %16712  ;;  %v12380_v33 = vmul.f32 -1.442695, %v9812_v25  ;;  %v9806_v58 = vmul.f32 %v16711_v48, %v21182_v37  ;;  %v10084_v17 = vld [vmem:[#allocation8 + $0x1660] sm:$0xff]  ;;  %v15860_v25 = vld [vmem:[#allocation2 + $0x194] ss:$8 sps:$4 sm:$0xff]  }
0x1b6e   : > { %v12379_v29 = vmul.f32 -1.442695, %v9811_v24  ;;  %v9804_v4 = vmul.f32 %v16713_v8, %v21184_v7  ;;  %v9980_v27 = vld [vmem:[#allocation8 + $0x1580] sm:$0xff]  ;;  %v15858_v24 = vld [vmem:[#allocation2 + $0x190] ss:$8 sps:$4 sm:$0xff]  }
0x1b6f   : > { %16722 = vpow2.f32 %v12380_v33  ;;  %v9814_v46 = vadd.f32 0.5, %v9806_v58  ;;  %v9981_v48 = vld [vmem:[#allocation8 + $0x15a0] sm:$0xff] }
0x1b70   : > { %16724 = vpow2.f32 %v12379_v29  ;;  %v9813_v13 = vadd.f32 0.5, %v9804_v4  ;;  %v9982_v8 = vld [vmem:[#allocation8 + $0x15c0] sm:$0xff]  ;;  %v15866_v4 = vld [vmem:[#allocation2 + $0x1b4] ss:$8 sps:$4 sm:$0xff]  }
0x1b71   : > { %v16715_v20 = vpop.eup %16714  ;;  %v12382_v57 = vmul.f32 -1.442695, %v9814_v46  ;;  %v15863_v33 = vld [vmem:[#allocation2 + $0x1a4] ss:$8 sps:$4 sm:$0xff]   ;;  %v15861_v29 = vld [vmem:[#allocation2 + $0x1a0] ss:$8 sps:$4 sm:$0xff]  }
0x1b72   : > { %v16717_v15 = vpop.eup %16716  ;;  %v9840_v43 = vadd.f32 1.0, %v16715_v20  ;;  %v12381_v1 = vmul.f32 -1.442695, %v9813_v13  ;;  %v9983_v58 = vld [vmem:[#allocation8 + $0x15e0] sm:$0xff]  ;;  %v15864_v46 = vld [vmem:[#allocation2 + $0x1b0] ss:$8 sps:$4 sm:$0xff]  }
0x1b73   : > { %v9839_v38 = vadd.f32 1.0, %v16717_v15  ;;  %16726 = vpow2.f32 %v12382_v57  ;;  %v15869_v13 = vld [vmem:[#allocation2 + $0x1c4] ss:$8 sps:$4 sm:$0xff]   ;;  %v15867_v20 = vld [vmem:[#allocation2 + $0x1c0] ss:$8 sps:$4 sm:$0xff]  }
0x1b74   : > { %16728 = vrcp.f32 %v9840_v43  ;;  %v15872_v57 = vld [vmem:[#allocation2 + $0x1d4] ss:$8 sps:$4 sm:$0xff]   ;;  %v15870_v15 = vld [vmem:[#allocation2 + $0x1d0] ss:$8 sps:$4 sm:$0xff]   ;;  %v15875_v43 = vld [vmem:[#allocation2 + $0x1e4] ss:$8 sps:$4 sm:$0xff]  }
0x1b75   : > { %v16719_v34 = vpop.eup %16718  ;;  %16730 = vrcp.f32 %v9839_v38  ;;  %v15878_v38 = vld [vmem:[#allocation2 + $0x1f4] ss:$8 sps:$4 sm:$0xff]  }
0x1b76   : > { %v16721_v60 = vpop.eup %16720  ;;  %v9842_v18 = vadd.f32 1.0, %v16719_v34  ;;  %16732 = vpow2.f32 %v12381_v1  ;;  %v15873_v1 = vld [vmem:[#allocation2 + $0x1e0] ss:$8 sps:$4 sm:$0xff]   ;;  %v15876_v34 = vld [vmem:[#allocation2 + $0x1f0] ss:$8 sps:$4 sm:$0xff]  }
0x1b77   : > { %v9841_v37 = vadd.f32 1.0, %v16721_v60  ;;  %v15881_v60 = vld [vmem:[#allocation2 + $0x204] ss:$8 sps:$4 sm:$0xff]  }
0x1b78   : > { %16734 = vrcp.f32 %v9842_v18  ;;  %v15879_v18 = vld [vmem:[#allocation2 + $0x200] ss:$8 sps:$4 sm:$0xff]  }
0x1b79   : > { %v16723_v7 = vpop.eup %16722  ;;  %16736 = vrcp.f32 %v9841_v37  ;;  %v15884_v37 = vld [vmem:[#allocation2 + $0x214] ss:$8 sps:$4 sm:$0xff]  }
0x1b7a   : > { %v16725_v51 = vpop.eup %16724  ;;  %v9844_v53 = vadd.f32 1.0, %v16723_v7  ;;  %v15882_v7 = vld [vmem:[#allocation2 + $0x210] ss:$8 sps:$4 sm:$0xff]  }
0x1b7b   : > { %v9843_v16 = vadd.f32 1.0, %v16725_v51  ;;  %v15887_v51 = vld [vmem:[#allocation2 + $0x224] ss:$8 sps:$4 sm:$0xff]  }
0x1b7c   : > { %16738 = vrcp.f32 %v9844_v53  ;;  %v15885_v53 = vld [vmem:[#allocation2 + $0x220] ss:$8 sps:$4 sm:$0xff]  }
0x1b7d   : > { %v16727_v44 = vpop.eup %16726  ;;  %16740 = vrcp.f32 %v9843_v16  ;;  %v15890_v16 = vld [vmem:[#allocation2 + $0x234] ss:$8 sps:$4 sm:$0xff]  }
0x1b7e   : > { %v16729_v31 = vpop.eup %16728  ;;  %v9846_v54 = vadd.f32 1.0, %v16727_v44  ;;  %v15888_v44 = vld [vmem:[#allocation2 + $0x230] ss:$8 sps:$4 sm:$0xff]  }
0x1b7f   : > { %v16731_v41 = vpop.eup %16730  ;;  %v9864_v39 = vmul.f32 %v16729_v31, %v21099_v42  ;;  %v15893_v31 = vld [vmem:[#allocation2 + $0x244] ss:$8 sps:$4 sm:$0xff]  }
0x1b80   : > { %v16733_v56 = vpop.eup %16732  ;;  %16742 = vrcp.f32 %v9846_v54  ;;  %v9863_v63 = vmul.f32 %v16731_v41, %v21097_v50  ;;  %v15891_v54 = vld [vmem:[#allocation2 + $0x240] ss:$8 sps:$4 sm:$0xff]   ;;  %v15896_v41 = vld [vmem:[#allocation2 + $0x254] ss:$8 sps:$4 sm:$0xff]  }
0x1b81   : > { %v9845_v0 = vadd.f32 1.0, %v16733_v56  ;;  %v9872_v62 = vmax.f32 %v9864_v39, 0.0  ;;  %v15894_v39 = vld [vmem:[#allocation2 + $0x250] ss:$8 sps:$4 sm:$0xff]   ;;  %v15899_v56 = vld [vmem:[#allocation2 + $0x264] ss:$8 sps:$4 sm:$0xff]  }
0x1b82   : > { %v16735_v23 = vpop.eup %16734  ;;  %v9871_v10 = vmax.f32 %v9863_v63, 0.0  ;;  %v15897_v63 = vld [vmem:[#allocation2 + $0x260] ss:$8 sps:$4 sm:$0xff]  }
0x1b83   : > { %v16737_v3 = vpop.eup %16736  ;;  %16744 = vrcp.f32 %v9845_v0  ;;  %v9866_v26 = vmul.f32 %v16735_v23, %v21105_v35  ;;  %v15900_v0 = vld [vmem:[#allocation2 + $0x270] ss:$8 sps:$4 sm:$0xff]   ;;  %v15905_v23 = vld [vmem:[#allocation2 + $0x284] ss:$8 sps:$4 sm:$0xff]  }
0x1b84   : > { %v15132_v9 = vpack.c.bf16 %v9872_v62, %v9871_v10  ;;  %v9865_v14 = vmul.f32 %v16737_v3, %v21103_v59  ;;  %v15902_v62 = vld [vmem:[#allocation2 + $0x274] ss:$8 sps:$4 sm:$0xff]   ;;  %v15903_v10 = vld [vmem:[#allocation2 + $0x280] ss:$8 sps:$4 sm:$0xff]  }
0x1b85   : > { %v9874_v28 = vmax.f32 %v9866_v26, 0.0  ;;  %v15908_v3 = vld [vmem:[#allocation2 + $0x294] ss:$8 sps:$4 sm:$0xff]  }
0x1b86   : > { %v16739_v11 = vpop.eup %16738  ;;  %15133 = vmatprep.subr.bf16.mxu1 %v15132_v9  ;;  %15165 = vmatprep.subr.bf16.mxu0 %v15132_v9  ;;  %v9873_v42 = vmax.f32 %v9865_v14, 0.0 }
0x1b87   : > { %v16741_v55 = vpop.eup %16740  ;;  %15135 = vmatpush3.bf16.msra.mxu1 %v15132_v9  ;;  %15167 = vmatpush3.bf16.msra.mxu0 %v15132_v9  ;;  %v9868_v50 = vmul.f32 %v16739_v11, %v21111_v12 }
0x1b88   : > { %v15136_v32 = vpack.c.bf16 %v9874_v28, %v9873_v42  ;;  %v9867_v2 = vmul.f32 %v16741_v55, %v21109_v61 }
0x1b89   : > { %v9876_v6 = vmax.f32 %v9868_v50, 0.0 }
0x1b8a   : > { %v16743_v45 = vpop.eup %16742  ;;  %15137 = vmatprep.subr.bf16.mxu1 %v15136_v32  ;;  %15169 = vmatprep.subr.bf16.mxu0 %v15136_v32  ;;  %v9875_v35 = vmax.f32 %v9867_v2, 0.0 }
0x1b8b   : > { %15139 = vmatpush3.bf16.msra.mxu1 %v15136_v32  ;;  %15171 = vmatpush3.bf16.msra.mxu0 %v15136_v32  ;;  %v9870_v59 = vmul.f32 %v16743_v45, %v21117_v30  ;;  %v10083_v30 = vld [vmem:[#allocation8 + $0x1640] sm:$0xff] }
0x1b8c   : > { %v15140_v19 = vpack.c.bf16 %v9876_v6, %v9875_v35 }
0x1b8d   : > { %v16745_v22 = vpop.eup %16744  ;;  %v9878_v52 = vmax.f32 %v9870_v59, 0.0 }
0x1b8e   : > { %15141 = vmatprep.subr.bf16.mxu1 %v15140_v19  ;;  %15173 = vmatprep.subr.bf16.mxu0 %v15140_v19  ;;  %v9869_v21 = vmul.f32 %v16745_v22, %v21115_v40  ;;  %v9882_v40 = vld [vmem:[#allocation8 + $0x1560] sm:$0xff]  ;;  %v15906_v22 = vld [vmem:[#allocation2 + $0x290] ss:$8 sps:$4 sm:$0xff]  }
0x1b8f   : > { %15143 = vmatpush3.bf16.msra.mxu1 %v15140_v19  ;;  %15175 = vmatpush3.bf16.msra.mxu0 %v15140_v19 }
0x1b90   : > { %v9877_v12 = vmax.f32 %v9869_v21, 0.0  ;;  %v15911_v21 = vld [vmem:[#allocation2 + $0x2a4] ss:$8 sps:$4 sm:$0xff]  }
0x1b92   : > { %v15144_v61 = vpack.c.bf16 %v9878_v52, %v9877_v12 }
0x1b94   : > { %15145 = vmatprep.subr.bf16.mxu1 %v15144_v61  ;;  %15177 = vmatprep.subr.bf16.mxu0 %v15144_v61 }
0x1b95   : > { %15147 = vmatpush3.bf16.msra.mxu1 %v15144_v61  ;;  %15179 = vmatpush3.bf16.msra.mxu0 %v15144_v61 }
0x1b96   : > { %15149 = vmatprep.subr.bf16.mxu1 %v15132_v9 }
0x1b98   : > { %14283 = vmatmul.mubr.msk.f32.vlgmr.msra.gmra.mrb[90].mxu1 %vm610_vm0, %v9880_v5  ;;  %14327 = vmatmul.mubr.msk.f32.vlgmr.msra.gmra.mrb[94].mxu0 %vm610_vm0, %v10082_v36  ;;  %v15914_v36 = vld [vmem:[#allocation2 + $0x2b4] ss:$8 sps:$4 sm:$0xff]  }
0x1b99   : > { %15151 = vmatpush3.bf16.msra.mxu1 %v15132_v9  ;;  %14285 = vmatprep.mubr.msk.f32.mxu1 %vm610_vm0, %v9881_v49  ;;  %v15912_v49 = vld [vmem:[#allocation2 + $0x2b0] ss:$8 sps:$4 sm:$0xff]  }
0x1b9a   : > { %15153 = vmatprep.subr.bf16.mxu1 %v15136_v32  ;;  %14329 = vmatprep.mubr.msk.f32.mxu0 %vm610_vm0, %v10083_v30  ;;  %v15917_v30 = vld [vmem:[#allocation2 + $0x2c4] ss:$8 sps:$4 sm:$0xff]  }
0x1b9c   : > { %14286 = vmatmul.mubr.msk.f32.gmra.mrb[92].mxu1 %vm610_vm0, %v9882_v40  ;;  %14330 = vmatmul.mubr.msk.f32.gmra.mrb[112].mxu0 %vm610_vm0, %v10084_v17  ;;  %v15915_v40 = vld [vmem:[#allocation2 + $0x2c0] ss:$8 sps:$4 sm:$0xff]   ;;  %v15920_v17 = vld [vmem:[#allocation2 + $0x2d4] ss:$8 sps:$4 sm:$0xff]  }
0x1b9d   : > { %15155 = vmatpush3.bf16.msra.mxu1 %v15136_v32  ;;  %14304 = vmatprep.mubr.msk.f32.mxu1 %vm610_vm0, %v9980_v27  ;;  %v15918_v27 = vld [vmem:[#allocation2 + $0x2d0] ss:$8 sps:$4 sm:$0xff]  }
0x1b9e   : > { %15157 = vmatprep.subr.bf16.mxu1 %v15140_v19 }
0x1ba1   : > { %15159 = vmatpush3.bf16.msra.mxu1 %v15140_v19 }
0x1ba2   : > { %15161 = vmatprep.subr.bf16.mxu1 %v15144_v61 }
0x1ba5   : > { %15163 = vmatpush3.bf16.msra.mxu1 %v15144_v61  ;;  %v15909_v61 = vld [vmem:[#allocation2 + $0x2a0] ss:$8 sps:$4 sm:$0xff]  }
0x1ba6   : > { %10476 = vmatprep.subr.bf16.mxu1 %v15860_v25  ;;  %v15923_v25 = vld [vmem:[#allocation2 + $0x2e4] ss:$8 sps:$4 sm:$0xff]  }
0x1ba8   : > { %14305 = vmatmul.mubr.msk.f32.vlgmr.msra.gmra.mrb[94].mxu1 %vm610_vm0, %v9981_v48  ;;  %v15921_v48 = vld [vmem:[#allocation2 + $0x2e0] ss:$8 sps:$4 sm:$0xff]  }
0x1ba9   : > { %14307 = vmatprep.mubr.msk.f32.mxu1 %vm610_vm0, %v9982_v8  ;;  %10477 = vmatpush1.bf16.msra.mxu1 %v15858_v24  ;;  %v15926_v24 = vld [vmem:[#allocation2 + $0x2f4] ss:$8 sps:$4 sm:$0xff]   ;;  %v15924_v8 = vld [vmem:[#allocation2 + $0x2f0] ss:$8 sps:$4 sm:$0xff]  }
0x1baa   : > { %10478 = vmatprep.subr.bf16.mxu1 %v15863_v33  ;;  %v15929_v33 = vld [vmem:[#allocation2 + $0x304] ss:$8 sps:$4 sm:$0xff]  }
0x1bac   : > { %14308 = vmatmul.mubr.msk.f32.gmra.mrb[96].mxu1 %vm610_vm0, %v9983_v58  ;;  %v15927_v58 = vld [vmem:[#allocation2 + $0x300] ss:$8 sps:$4 sm:$0xff]  }
0x1bad   : > { %10479 = vmatpush1.bf16.msra.mxu1 %v15861_v29  ;;  %v17028_v29 = vmov 0.0  }
0x1bae   : > { %10480 = vmatprep.subr.bf16.mxu1 %v15866_v4  ;;  %10700 = vmatprep.mubr.f32.mxu0 %v17028_v29  ;;  %v10585_v4 = vlaneseq }
0x1bb1   : > { %10481 = vmatpush1.bf16.msra.mxu1 %v15864_v46  ;;  %v10586_v46 = vshrl.u32 %v10585_v4, 7 }
0x1bb2   : > { %10482 = vmatprep.subr.bf16.mxu1 %v15869_v13 }
0x1bb3   : > { %v21228_v13 = vsub.s32 1, %v10586_v46 }
0x1bb5   : > { %10483 = vmatpush1.bf16.msra.mxu1 %v15867_v20  ;;  %v10583_v20 = vld [vmem:[#allocation5 + $0x10] ss:$8 sm:$0x3] }
0x1bb6   : > { %10484 = vmatprep.subr.bf16.mxu1 %v15872_v57  ;;  %v21230_v57 = vsub.s32 0, %v10586_v46 }
0x1bb9   : > { %10485 = vmatpush1.bf16.msra.mxu1 %v15870_v15  ;;  %v10592_v15 = vrot.slane %v10583_v20, %v21228_v13 }
0x1bba   : > { %10486 = vmatprep.subr.bf16.mxu1 %v15875_v43  ;;  %v10588_v43 = vrot.slane %v10583_v20, %v21230_v57 }
0x1bbd   : > { %10487 = vmatpush1.bf16.msra.mxu1 %v15873_v1  ;;  %v10604_v1 = vld [vmem:[#allocation5 + $0x11] ss:$8 sm:$0x3] }
0x1bbe   : > { %10488 = vmatprep.subr.bf16.mxu1 %v15878_v38 }
0x1bc1   : > { %10489 = vmatpush1.bf16.msra.mxu1 %v15876_v34 }
0x1bc2   : > { %10490 = vmatprep.subr.bf16.mxu1 %v15881_v60 }
0x1bc5   : > { %10491 = vmatpush1.bf16.msra.mxu1 %v15879_v18 }
0x1bc6   : > { %10492 = vmatprep.subr.bf16.mxu1 %v15884_v37 }
0x1bc9   : > { %10493 = vmatpush1.bf16.msra.mxu1 %v15882_v7  ;;  %v10609_v7 = vrot.slane %v10604_v1, %v21230_v57 }
0x1bca   : > { %10494 = vmatprep.subr.bf16.mxu1 %v15887_v51 }
0x1bcd   : > { %10495 = vmatpush1.bf16.msra.mxu1 %v15885_v53 }
0x1bce   : > { %10496 = vmatprep.subr.bf16.mxu1 %v15890_v16 }
0x1bd1   : > { %10497 = vmatpush1.bf16.msra.mxu1 %v15888_v44 }
0x1bd2   : > { %10498 = vmatprep.subr.bf16.mxu1 %v15893_v31 }
0x1bd5   : > { %10499 = vmatpush1.bf16.msra.mxu1 %v15891_v54 }
0x1bd6   : > { %10500 = vmatprep.subr.bf16.mxu1 %v15896_v41 }
0x1bd9   : > { %10501 = vmatpush1.bf16.msra.mxu1 %v15894_v39 }
0x1bda   : > { %10502 = vmatprep.subr.bf16.mxu1 %v15899_v56 }
0x1bdd   : > { %10503 = vmatpush1.bf16.msra.mxu1 %v15897_v63 }
0x1bde   : > { %10504 = vmatprep.subr.bf16.mxu1 %v15902_v62 }
0x1be1   : > { %10505 = vmatpush1.bf16.msra.mxu1 %v15900_v0 }
0x1be2   : > { %10506 = vmatprep.subr.bf16.mxu1 %v15905_v23 }
0x1be5   : > { %10507 = vmatpush1.bf16.msra.mxu1 %v15903_v10 }
0x1be6   : > { %10529 = vmatprep.subr.bf16.mxu1 %v15908_v3 }
0x1c6b   : > { %v14284_v26 = vpop.f32.mrb[90].mxu1  ;;  %v14328_v9 = vpop.f32.mrb[94].mxu0 }
0x1c6c   : > { %v9961_v14 = vpop.f32.mrb[91].mxu1  ;;  %v10163_v28 = vpop.f32.mrb[95].mxu0 }
0x1c6d   : > { %v10182_v11 = vpack.c.bf16 %v14284_v26, %v9961_v14  ;;  %v10184_v42 = vpack.c.bf16 %v14328_v9, %v10163_v28 }
0x1c6f   : > { %v14287_v55 = vpop.f32.mrb[92].mxu1  ;;  %v14331_v50 = vpop.f32.mrb[112].mxu0 }
0x1c70   : > { %v9971_v32 = vpop.f32.mrb[93].mxu1  ;;  %v10173_v2 = vpop.f32.mrb[113].mxu0 }
0x1c71   : > { %v10185_v6 = vpack.c.bf16 %v14287_v55, %v9971_v32  ;;  %v10187_v45 = vpack.c.bf16 %v14331_v50, %v10173_v2  ;;  %v10624_v32 = vld [vmem:[#allocation7 + $0x40] sm:$0xff]  ;;  %v10625_v2 = vld [vmem:[#allocation7 + $0x88] sm:$0xff] }
0x1c7b   : > { %v14306_v35 = vpop.f32.mrb[94].mxu1 }
0x1c7c   : > { %v10062_v59 = vpop.f32.mrb[95].mxu1 }
0x1c7d   : > { %v10183_v19 = vpack.c.bf16 %v14306_v35, %v10062_v59 }
0x1c7f   : > { %10508 = vmatprep.mubr.bf16.mxu1 %v10183_v19  ;;  %v14309_v52 = vpop.f32.mrb[96].mxu1 }
0x1c80   : > { %10509 = vmatmul.mubr.bf16.vlgmr.msra.gmra.mrb[100].mxu1 %v10182_v11  ;;  %v10072_v12 = vpop.f32.mrb[97].mxu1 }
0x1c81   : > { %10530 = vmatpush1.bf16.msra.mxu1 %v15906_v22  ;;  %v10186_v5 = vpack.c.bf16 %v14309_v52, %v10072_v12 }
0x1c82   : > { %10531 = vmatprep.subr.bf16.mxu1 %v15911_v21 }
0x1c83   : > { %10518 = vmatprep.mubr.bf16.mxu1 %v10186_v5  ;;  %v10626_v5 = vld [vmem:[%s21411_s4 + $0x400] sm:$0xff] }
0x1c85   : > { %10532 = vmatpush1.bf16.msra.mxu1 %v15909_v61 }
0x1c86   : > { %10533 = vmatprep.subr.bf16.mxu1 %v15914_v36  ;;  %v10627_v36 = vld [vmem:[%s21411_s4 + $0x408] sm:$0xff] }
0x1c88   : > { %10519 = vmatmul.mubr.bf16.gmra.mrb[104].mxu1 %v10185_v6 }
0x1c89   : > { %10534 = vmatpush1.bf16.msra.mxu1 %v15912_v49  ;;  %10561 = vmatprep.mubr.bf16.mxu1 %v17027_v47  ;;  %v10628_v49 = vld [vmem:[%s21411_s4 + $0x410] sm:$0xff] }
0x1c8a   : > { %10535 = vmatprep.subr.bf16.mxu1 %v15917_v30  ;;  %v10629_v30 = vld [vmem:[%s21411_s4 + $0x418] sm:$0xff] }
0x1c8d   : > { %10536 = vmatpush1.bf16.msra.mxu1 %v15915_v40 }
0x1c8e   : > { %10537 = vmatprep.subr.bf16.mxu1 %v15920_v17 }
0x1c91   : > { %10538 = vmatpush1.bf16.msra.mxu1 %v15918_v27 }
0x1c92   : > { %10539 = vmatprep.subr.bf16.mxu1 %v15923_v25 }
0x1c95   : > { %10540 = vmatpush1.bf16.msra.mxu1 %v15921_v48 }
0x1c96   : > { %10541 = vmatprep.subr.bf16.mxu1 %v15926_v24 }
0x1c99   : > { %10542 = vmatpush1.bf16.msra.mxu1 %v15924_v8 }
0x1c9a   : > { %10543 = vmatprep.subr.bf16.mxu1 %v15929_v33 }
0x1c9d   : > { %10544 = vmatpush1.bf16.msra.mxu1 %v15927_v58 }
0x1ca0   : > { %10562 = vmatmul.mubr.bf16.vlgmr.msra.gmra.mrb[100].mxu1 %v10184_v42 }
0x1ca1   : > { %10571 = vmatprep.mubr.bf16.mxu1 %v17027_v47  ;;  %v10613_v47 = vrot.slane %v10604_v1, %v21228_v13 }
0x1ca8   : > { %10572 = vmatmul.mubr.bf16.gmra.mrb[104].mxu1 %v10187_v45 }
0x1d73   : > { %v10563_v38 = vpop.f32.mrb[100].mxu1 }
0x1d74   : > { %v10565_v34 = vpop.f32.mrb[101].mxu1  ;;  %v10595_v37 = vmul.f32 %v10588_v43, %v10563_v38 }
0x1d75   : > { %v10596_v60 = vmul.f32 %v10592_v15, %v10565_v34  ;;  %v10567_v18 = vpop.f32.mrb[102].mxu1 }
0x1d76   : > { %v10597_v51 = vmul.f32 %v10588_v43, %v10567_v18  ;;  %v10569_v53 = vpop.f32.mrb[103].mxu1  ;;  %v21242_v41 = vadd.f32 %v10609_v7, %v10595_v37 }
0x1d77   : > { %v10598_v16 = vmul.f32 %v10592_v15, %v10569_v53  ;;  %v21238_v31 = vadd.f32 %v10613_v47, %v10596_v60 }
0x1d78   : > { %v21236_v44 = vadd.f32 %v10609_v7, %v10597_v51 }
0x1d79   : > { %v21240_v54 = vadd.f32 %v10613_v47, %v10598_v16 }
0x1d7a   : > { %v15182_v63 = vpack.c.bf16 %v21236_v44, %v21242_v41 }
0x1d7b   : > { %v10573_v39 = vpop.f32.mrb[104].mxu1  ;;  %v15180_v56 = vpack.c.bf16 %v21240_v54, %v21238_v31 }
0x1d7c   : > { %v10575_v0 = vpop.f32.mrb[105].mxu1  ;;  %v10599_v10 = vmul.f32 %v10588_v43, %v10573_v39 }
0x1d7d   : > { %v10600_v62 = vmul.f32 %v10592_v15, %v10575_v0  ;;  %v10577_v23 = vpop.f32.mrb[106].mxu1  ;;  %15181 = vmatprep.subr.bf16.mxu0 %v15180_v56 }
0x1d7e   : > { %v10601_v3 = vmul.f32 %v10588_v43, %v10577_v23  ;;  %v10579_v26 = vpop.f32.mrb[107].mxu1  ;;  %15183 = vmatpush1.bf16.msra.mxu0 %v15182_v63  ;;  %v21254_v42 = vadd.f32 %v10609_v7, %v10599_v10 }
0x1d7f   : > { %v10602_v9 = vmul.f32 %v10592_v15, %v10579_v26  ;;  %v21250_v28 = vadd.f32 %v10613_v47, %v10600_v62 }
0x1d80   : > { %v21248_v14 = vadd.f32 %v10609_v7, %v10601_v3 }
0x1d81   : > { %v21252_v11 = vadd.f32 %v10613_v47, %v10602_v9 }
0x1d82   : > { %v15186_v50 = vpack.c.bf16 %v21248_v14, %v21254_v42 }
0x1d83   : > { %v15184_v55 = vpack.c.bf16 %v21252_v11, %v21250_v28 }
0x1d85   : > { %15185 = vmatprep.subr.bf16.mxu0 %v15184_v55 }
0x1d86   : > { %15187 = vmatpush1.bf16.msra.mxu0 %v15186_v50 }
0x1d89   : > { %12443 = vmatmul.mubr.msk.f32.vlgmr.msra.gmra.mrb[114].mxu0 %vm5509_vm2, %v10624_v32 }
0x1d8a   : > { %10706 = vmatprep.mubr.f32.mxu0 %v17028_v29 }
0x1d8d   : > { %12444 = vmatmul.mubr.msk.f32.gmra.mrb[116].mxu0 %vm5509_vm2, %v10625_v2 }
0x1d8e   : > { %10793 = vmatprep.mubr.f32.mxu0 %v17028_v29 }
0x1e5c   : > { %v10702_v6 = vpop.f32.mrb[114].mxu0 }
0x1e5d   : > { %v10704_v45 = vpop.f32.mrb[115].mxu0  ;;  %v10713_v59 = vmul.f32 0.5, %v10702_v6 }
0x1e5e   : > { %v10714_v21 = vmul.f32 0.5, %v10704_v45 }
0x1e60   : > { %v10708_v35 = vpop.f32.mrb[116].mxu0 }
0x1e61   : > { %v10715_v19 = vmul.f32 0.5, %v10708_v35  ;;  %v10710_v22 = vpop.f32.mrb[117].mxu0 }
0x1e62   : > { %v10716_v52 = vmul.f32 0.5, %v10710_v22 }
0x1e63   : > { %v15190_v12 = vpack.c.bf16 %v10715_v19, %v10713_v59 }
0x1e64   : > { %v15188_v61 = vpack.c.bf16 %v10716_v52, %v10714_v21 }
0x1e66   : > { %15189 = vmatprep.subr.bf16.mxu0 %v15188_v61 }
0x1e67   : > { %15191 = vmatpush1.bf16.msra.mxu0 %v15190_v12 }
0x1e6a   : > { %12445 = vmatmul.mubr.msk.f32.vlgmr.msra.gmra.mrb[118].mxu0 %vm1350_vm1, %v10626_v5 }
0x1e6b   : > { %10799 = vmatprep.mubr.f32.mxu0 %v17028_v29 }
0x1e6e   : > { %12446 = vmatmul.mubr.msk.f32.gmra.mrb[120].mxu0 %vm1350_vm1, %v10627_v36 }
0x1e6f   : > { %10805 = vmatprep.mubr.f32.mxu0 %v17028_v29 }
0x1e72   : > { %12447 = vmatmul.mubr.msk.f32.gmra.mrb[122].mxu0 %vm1350_vm1, %v10628_v49 }
0x1e73   : > { %10811 = vmatprep.mubr.f32.mxu0 %v17028_v29 }
0x1e76   : > { %12448 = vmatmul.mubr.msk.f32.gmra.mrb[124].mxu0 %vm1350_vm1, %v10629_v30 }
0x1e77   : > { %10898 = vmatprep.mubr.f32.mxu0 %v17028_v29 }
0x1f3d   : > { %v10795_v40 = vpop.f32.mrb[118].mxu0 }
0x1f3e   : > { %v10797_v17 = vpop.f32.mrb[119].mxu0  ;;  %v10818_v48 = vsub.f32 %v21242_v41, %v10795_v40 }
0x1f3f   : > { %v10819_v27 = vsub.f32 %v21238_v31, %v10797_v17 }
0x1f40   : > { %v21294_v15 = vmul.f32 %v10818_v48, %v10818_v48 }
0x1f41   : > { %v10801_v25 = vpop.f32.mrb[120].mxu0  ;;  %v21290_v4 = vmul.f32 %v10819_v27, %v10819_v27 }
0x1f42   : > { %v10820_v24 = vsub.f32 %v21236_v44, %v10801_v25  ;;  %v10803_v8 = vpop.f32.mrb[121].mxu0 }
0x1f43   : > { %v10821_v33 = vsub.f32 %v21240_v54, %v10803_v8 }
0x1f44   : > { %v21288_v58 = vmul.f32 %v10820_v24, %v10820_v24 }
0x1f45   : > { %v21292_v46 = vmul.f32 %v10821_v33, %v10821_v33  ;;  %v10807_v20 = vpop.f32.mrb[122].mxu0 }
0x1f46   : > { %v10809_v43 = vpop.f32.mrb[123].mxu0  ;;  %v15194_v38 = vpack.c.bf16 %v21288_v58, %v21294_v15  ;;  %v10822_v47 = vsub.f32 %v21254_v42, %v10807_v20 }
0x1f47   : > { %v15192_v1 = vpack.c.bf16 %v21292_v46, %v21290_v4  ;;  %v10823_v34 = vsub.f32 %v21250_v28, %v10809_v43 }
0x1f48   : > { %v21310_v39 = vmul.f32 %v10822_v47, %v10822_v47 }
0x1f49   : > { %v10813_v60 = vpop.f32.mrb[124].mxu0  ;;  %15193 = vmatprep.subr.bf16.mxu0 %v15192_v1  ;;  %v21306_v53 = vmul.f32 %v10823_v34, %v10823_v34 }
0x1f4a   : > { %v10824_v18 = vsub.f32 %v21248_v14, %v10813_v60  ;;  %v10815_v37 = vpop.f32.mrb[125].mxu0  ;;  %15195 = vmatpush1.bf16.msra.mxu0 %v15194_v38 }
0x1f4b   : > { %v10825_v7 = vsub.f32 %v21252_v11, %v10815_v37 }
0x1f4c   : > { %v21304_v51 = vmul.f32 %v10824_v18, %v10824_v18 }
0x1f4d   : > { %v21308_v16 = vmul.f32 %v10825_v7, %v10825_v7 }
0x1f4e   : > { %v15198_v63 = vpack.c.bf16 %v21304_v51, %v21310_v39 }
0x1f4f   : > { %v15196_v56 = vpack.c.bf16 %v21308_v16, %v21306_v53 }
0x1f51   : > { %15197 = vmatprep.subr.bf16.mxu0 %v15196_v56 }
0x1f52   : > { %15199 = vmatpush1.bf16.msra.mxu0 %v15198_v63 }
0x1f55   : > { %12449 = vmatmul.mubr.msk.f32.vlgmr.msra.gmra.mrb[126].mxu0 %vm5509_vm2, %v10624_v32 }
0x1f56   : > { %10904 = vmatprep.mubr.f32.mxu0 %v17028_v29 }
0x1f59   : > { %12450 = vmatmul.mubr.msk.f32.gmra.mrb[128].mxu0 %vm5509_vm2, %v10625_v2 }
0x1f5a   : > { %10975 = vmatprep.mubr.f32.mxu0 %v17028_v29 }
0x2028   : > { %v10900_v0 = vpop.f32.mrb[126].mxu0 }
0x2029   : > { %v10902_v62 = vpop.f32.mrb[127].mxu0 }
0x202c   : > { %v10906_v23 = vpop.f32.mrb[128].mxu0 }
0x202d   : > { %v15202_v10 = vpack.c.bf16 %v10906_v23, %v10900_v0  ;;  %v10908_v3 = vpop.f32.mrb[129].mxu0 }
0x202e   : > { %v15200_v26 = vpack.c.bf16 %v10908_v3, %v10902_v62 }
0x2030   : > { %15201 = vmatprep.subr.bf16.mxu0 %v15200_v26 }
0x2031   : > { %15203 = vmatpush1.bf16.msra.mxu0 %v15202_v10 }
0x2034   : > { %12451 = vmatmul.mubr.msk.f32.vlgmr.msra.gmra.mrb[130].mxu0 %vm1350_vm1, %v10626_v5 }
0x2035   : > { %10981 = vmatprep.mubr.f32.mxu0 %v17028_v29 }
0x2038   : > { %12452 = vmatmul.mubr.msk.f32.gmra.mrb[132].mxu0 %vm1350_vm1, %v10627_v36 }
0x2039   : > { %10987 = vmatprep.mubr.f32.mxu0 %v17028_v29 }
0x203c   : > { %12453 = vmatmul.mubr.msk.f32.gmra.mrb[134].mxu0 %vm1350_vm1, %v10628_v49 }
0x203d   : > { %10993 = vmatprep.mubr.f32.mxu0 %v17028_v29 }
0x2040   : > { %12454 = vmatmul.mubr.msk.f32.gmra.mrb[136].mxu0 %vm1350_vm1, %v10629_v30 }
0x2041   : > { %11168 = vmatprep.mubr.f32.mxu0 %v17028_v29 }
0x2107   : > { %v10977_v9 = vpop.f32.mrb[130].mxu0 }
0x2108   : > { %v10978_v55 = vadd.f32 0.0001, %v10977_v9  ;;  %v10979_v50 = vpop.f32.mrb[131].mxu0 }
0x2109   : > { %v10980_v32 = vadd.f32 0.0001, %v10979_v50 }
0x210a   : > { %v11000_v2 = vmul.f32 4.0, %v10978_v55 }
0x210b   : > { %v11001_v6 = vmul.f32 4.0, %v10980_v32  ;;  %v10983_v45 = vpop.f32.mrb[132].mxu0 }
0x210c   : > { %16746 = vrcp.f32 %v11000_v2  ;;  %v10984_v35 = vadd.f32 0.0001, %v10983_v45  ;;  %v10985_v59 = vpop.f32.mrb[133].mxu0 }
0x210d   : > { %16748 = vrcp.f32 %v11001_v6  ;;  %v10986_v19 = vadd.f32 0.0001, %v10985_v59 }
0x210e   : > { %v11002_v22 = vmul.f32 4.0, %v10984_v35 }
0x210f   : > { %v11003_v21 = vmul.f32 4.0, %v10986_v19  ;;  %v10989_v52 = vpop.f32.mrb[134].mxu0 }
0x2110   : > { %16750 = vrcp.f32 %v11002_v22  ;;  %v10990_v12 = vadd.f32 0.0001, %v10989_v52  ;;  %v10991_v61 = vpop.f32.mrb[135].mxu0 }
0x2111   : > { %16752 = vrcp.f32 %v11003_v21  ;;  %v10992_v5 = vadd.f32 0.0001, %v10991_v61 }
0x2112   : > { %v11004_v36 = vmul.f32 4.0, %v10990_v12 }
0x2113   : > { %v11005_v49 = vmul.f32 4.0, %v10992_v5  ;;  %v10995_v30 = vpop.f32.mrb[136].mxu0 }
0x2114   : > { %16754 = vrcp.f32 %v11004_v36  ;;  %v10996_v40 = vadd.f32 0.0001, %v10995_v30  ;;  %v10997_v17 = vpop.f32.mrb[137].mxu0 }
0x2115   : > { %16756 = vrcp.f32 %v11005_v49  ;;  %v10998_v27 = vadd.f32 0.0001, %v10997_v17 }
0x2116   : > { %v16747_v25 = vpop.eup %16746  ;;  %v11006_v48 = vmul.f32 4.0, %v10996_v40 }
0x2117   : > { %v16749_v24 = vpop.eup %16748  ;;  %v11009_v8 = vmul.f32 %v16747_v25, %v21294_v15  ;;  %v11007_v33 = vmul.f32 4.0, %v10998_v27 }
0x2118   : > { %v11011_v20 = vmul.f32 %v16749_v24, %v21290_v4  ;;  %16758 = vrcp.f32 %v11006_v48 }
0x2119   : > { %v11024_v43 = vadd.f32 0.5, %v11009_v8  ;;  %16760 = vrcp.f32 %v11007_v33 }
0x211a   : > { %v16751_v1 = vpop.eup %16750  ;;  %v11025_v38 = vadd.f32 0.5, %v11011_v20 }
0x211b   : > { %v16753_v34 = vpop.eup %16752  ;;  %v12455_v60 = vmul.f32 -1.442695, %v11024_v43  ;;  %v11013_v47 = vmul.f32 %v16751_v1, %v21288_v58 }
0x211c   : > { %v12456_v18 = vmul.f32 -1.442695, %v11025_v38  ;;  %v11015_v37 = vmul.f32 %v16753_v34, %v21292_v46 }
0x211d   : > { %16762 = vpow2.f32 %v12455_v60  ;;  %v11026_v7 = vadd.f32 0.5, %v11013_v47 }
0x211e   : > { %v16755_v56 = vpop.eup %16754  ;;  %16764 = vpow2.f32 %v12456_v18  ;;  %v11027_v15 = vadd.f32 0.5, %v11015_v37 }
0x211f   : > { %v16757_v63 = vpop.eup %16756  ;;  %v12457_v0 = vmul.f32 -1.442695, %v11026_v7  ;;  %v11017_v4 = vmul.f32 %v16755_v56, %v21310_v39 }
0x2120   : > { %v12458_v62 = vmul.f32 -1.442695, %v11027_v15  ;;  %v11019_v23 = vmul.f32 %v16757_v63, %v21306_v53 }
0x2121   : > { %16766 = vpow2.f32 %v12457_v0  ;;  %v11028_v10 = vadd.f32 0.5, %v11017_v4 }
0x2122   : > { %v16759_v3 = vpop.eup %16758  ;;  %16768 = vpow2.f32 %v12458_v62  ;;  %v11029_v58 = vadd.f32 0.5, %v11019_v23  ;;  %v11096_v23 = vld [vmem:[#allocation10] sm:$0xff] }
0x2123   : > { %v16761_v26 = vpop.eup %16760  ;;  %v12459_v9 = vmul.f32 -1.442695, %v11028_v10  ;;  %v11021_v46 = vmul.f32 %v16759_v3, %v21304_v51  ;;  %v15935_v10 = vld [vmem:[#allocation2 + $0x324] ss:$8 sps:$4 sm:$0xff]   ;;  %v11183_v3 = vld [vmem:[#allocation10 + $0x18] sm:$0xff] }
0x2124   : > { %v12460_v55 = vmul.f32 -1.442695, %v11029_v58  ;;  %v11023_v50 = vmul.f32 %v16761_v26, %v21308_v16  ;;  %v15933_v58 = vld [vmem:[#allocation2 + $0x320] ss:$8 sps:$4 sm:$0xff]   ;;  %v15938_v26 = vld [vmem:[#allocation2 + $0x334] ss:$8 sps:$4 sm:$0xff]  }
0x2125   : > { %16770 = vpow2.f32 %v12459_v9  ;;  %v11030_v32 = vadd.f32 0.5, %v11021_v46  ;;  %v15936_v9 = vld [vmem:[#allocation2 + $0x330] ss:$8 sps:$4 sm:$0xff]   ;;  %v15941_v46 = vld [vmem:[#allocation2 + $0x344] ss:$8 sps:$4 sm:$0xff]  }
0x2126   : > { %16772 = vpow2.f32 %v12460_v55  ;;  %v11031_v2 = vadd.f32 0.5, %v11023_v50  ;;  %v15939_v55 = vld [vmem:[#allocation2 + $0x340] ss:$8 sps:$4 sm:$0xff]   ;;  %v15944_v50 = vld [vmem:[#allocation2 + $0x354] ss:$8 sps:$4 sm:$0xff]  }
0x2127   : > { %v16763_v39 = vpop.eup %16762  ;;  %v12461_v6 = vmul.f32 -1.442695, %v11030_v32  ;;  %v15942_v32 = vld [vmem:[#allocation2 + $0x350] ss:$8 sps:$4 sm:$0xff]  }
0x2128   : > { %v16765_v45 = vpop.eup %16764  ;;  %v11056_v53 = vadd.f32 1.0, %v16763_v39  ;;  %v12462_v35 = vmul.f32 -1.442695, %v11031_v2  ;;  %v15947_v2 = vld [vmem:[#allocation2 + $0x364] ss:$8 sps:$4 sm:$0xff]  }
0x2129   : > { %v11057_v59 = vadd.f32 1.0, %v16765_v45  ;;  %16774 = vpow2.f32 %v12461_v6  ;;  %v15950_v39 = vld [vmem:[#allocation2 + $0x374] ss:$8 sps:$4 sm:$0xff]   ;;  %v15948_v6 = vld [vmem:[#allocation2 + $0x370] ss:$8 sps:$4 sm:$0xff]  }
0x212a   : > { %16776 = vrcp.f32 %v11056_v53  ;;  %v15953_v45 = vld [vmem:[#allocation2 + $0x384] ss:$8 sps:$4 sm:$0xff]   ;;  %v15951_v53 = vld [vmem:[#allocation2 + $0x380] ss:$8 sps:$4 sm:$0xff]  }
0x212b   : > { %v16767_v19 = vpop.eup %16766  ;;  %16778 = vrcp.f32 %v11057_v59  ;;  %v15954_v59 = vld [vmem:[#allocation2 + $0x390] ss:$8 sps:$4 sm:$0xff]  }
0x212c   : > { %v16769_v22 = vpop.eup %16768  ;;  %v11058_v21 = vadd.f32 1.0, %v16767_v19  ;;  %16780 = vpow2.f32 %v12462_v35  ;;  %v15956_v35 = vld [vmem:[#allocation2 + $0x394] ss:$8 sps:$4 sm:$0xff]   ;;  %v15959_v19 = vld [vmem:[#allocation2 + $0x3a4] ss:$8 sps:$4 sm:$0xff]  }
0x212d   : > { %v11059_v51 = vadd.f32 1.0, %v16769_v22  ;;  %v15957_v22 = vld [vmem:[#allocation2 + $0x3a0] ss:$8 sps:$4 sm:$0xff]  }
0x212e   : > { %16782 = vrcp.f32 %v11058_v21  ;;  %v15962_v21 = vld [vmem:[#allocation2 + $0x3b4] ss:$8 sps:$4 sm:$0xff]  }
0x212f   : > { %v16771_v16 = vpop.eup %16770  ;;  %16784 = vrcp.f32 %v11059_v51  ;;  %v15960_v51 = vld [vmem:[#allocation2 + $0x3b0] ss:$8 sps:$4 sm:$0xff]  }
0x2130   : > { %v16773_v52 = vpop.eup %16772  ;;  %v11060_v12 = vadd.f32 1.0, %v16771_v16  ;;  %v15965_v16 = vld [vmem:[#allocation2 + $0x3c4] ss:$8 sps:$4 sm:$0xff]  }
0x2131   : > { %v11061_v61 = vadd.f32 1.0, %v16773_v52  ;;  %v15963_v52 = vld [vmem:[#allocation2 + $0x3c0] ss:$8 sps:$4 sm:$0xff]  }
0x2132   : > { %16786 = vrcp.f32 %v11060_v12  ;;  %v15968_v12 = vld [vmem:[#allocation2 + $0x3d4] ss:$8 sps:$4 sm:$0xff]  }
0x2133   : > { %v16775_v5 = vpop.eup %16774  ;;  %16788 = vrcp.f32 %v11061_v61  ;;  %v15966_v61 = vld [vmem:[#allocation2 + $0x3d0] ss:$8 sps:$4 sm:$0xff]  }
0x2134   : > { %v16777_v36 = vpop.eup %16776  ;;  %v11062_v49 = vadd.f32 1.0, %v16775_v5  ;;  %v15971_v5 = vld [vmem:[#allocation2 + $0x3e4] ss:$8 sps:$4 sm:$0xff]  }
0x2135   : > { %v16779_v30 = vpop.eup %16778  ;;  %v11080_v27 = vmul.f32 %v16777_v36, %v21242_v41  ;;  %v15969_v36 = vld [vmem:[#allocation2 + $0x3e0] ss:$8 sps:$4 sm:$0xff]  }
0x2136   : > { %v16781_v40 = vpop.eup %16780  ;;  %16790 = vrcp.f32 %v11062_v49  ;;  %v11081_v48 = vmul.f32 %v16779_v30, %v21238_v31  ;;  %v15974_v49 = vld [vmem:[#allocation2 + $0x3f4] ss:$8 sps:$4 sm:$0xff]   ;;  %v15972_v30 = vld [vmem:[#allocation2 + $0x3f0] ss:$8 sps:$4 sm:$0xff]  }
0x2137   : > { %v11063_v17 = vadd.f32 1.0, %v16781_v40  ;;  %v11088_v20 = vmax.f32 %v11080_v27, 0.0  ;;  %v15977_v40 = vld [vmem:[#allocation2 + $0x404] ss:$8 sps:$4 sm:$0xff]   ;;  %v15980_v27 = vld [vmem:[#allocation2 + $0x414] ss:$8 sps:$4 sm:$0xff]  }
0x2138   : > { %v16783_v25 = vpop.eup %16782  ;;  %v11089_v38 = vmax.f32 %v11081_v48, 0.0 }
0x2139   : > { %v16785_v24 = vpop.eup %16784  ;;  %16792 = vrcp.f32 %v11063_v17  ;;  %v11082_v8 = vmul.f32 %v16783_v25, %v21236_v44  ;;  %v15975_v17 = vld [vmem:[#allocation2 + $0x400] ss:$8 sps:$4 sm:$0xff]  }
0x213a   : > { %v11083_v33 = vmul.f32 %v16785_v24, %v21240_v54 }
0x213b   : > { %v11090_v43 = vmax.f32 %v11082_v8, 0.0 }
0x213c   : > { %v16787_v1 = vpop.eup %16786  ;;  %v11091_v34 = vmax.f32 %v11083_v33, 0.0 }
0x213d   : > { %v15206_v60 = vpack.c.bf16 %v11090_v43, %v11088_v20  ;;  %v16789_v18 = vpop.eup %16788  ;;  %v11084_v37 = vmul.f32 %v16787_v1, %v21254_v42  ;;  %v15930_v42 = vld [vmem:[#allocation2 + $0x310] ss:$8 sps:$4 sm:$0xff]   ;;  %v15983_v1 = vld [vmem:[#allocation2 + $0x424] ss:$8 sps:$4 sm:$0xff]  }
0x213e   : > { %v15204_v47 = vpack.c.bf16 %v11091_v34, %v11089_v38  ;;  %v11085_v7 = vmul.f32 %v16789_v18, %v21250_v28  ;;  %v15932_v28 = vld [vmem:[#allocation2 + $0x314] ss:$8 sps:$4 sm:$0xff]   ;;  %v15978_v43 = vld [vmem:[#allocation2 + $0x410] ss:$8 sps:$4 sm:$0xff]  }
0x213f   : > { %v11092_v56 = vmax.f32 %v11084_v37, 0.0 }
0x2140   : > { %v16791_v41 = vpop.eup %16790  ;;  %15205 = vmatprep.subr.bf16.mxu0 %v15204_v47  ;;  %v11093_v0 = vmax.f32 %v11085_v7, 0.0 }
0x2141   : > { %15207 = vmatpush1.bf16.msra.mxu0 %v15206_v60  ;;  %v11086_v31 = vmul.f32 %v16791_v41, %v21248_v14  ;;  %v11097_v14 = vld [vmem:[#allocation10 + $0x8] sm:$0xff] }
0x2143   : > { %v16793_v44 = vpop.eup %16792  ;;  %v11094_v54 = vmax.f32 %v11086_v31, 0.0  ;;  %v15984_v31 = vld [vmem:[#allocation2 + $0x430] ss:$8 sps:$4 sm:$0xff]  }
0x2144   : > { %v11087_v15 = vmul.f32 %v16793_v44, %v21252_v11  ;;  %v11182_v11 = vld [vmem:[#allocation10 + $0x10] sm:$0xff]  ;;  %v15989_v44 = vld [vmem:[#allocation2 + $0x444] ss:$8 sps:$4 sm:$0xff]  }
0x2145   : > { %v15210_v63 = vpack.c.bf16 %v11094_v54, %v11092_v56  ;;  %v15987_v56 = vld [vmem:[#allocation2 + $0x440] ss:$8 sps:$4 sm:$0xff]   ;;  %v15992_v54 = vld [vmem:[#allocation2 + $0x454] ss:$8 sps:$4 sm:$0xff]  }
0x2146   : > { %v11095_v4 = vmax.f32 %v11087_v15, 0.0  ;;  %v15990_v15 = vld [vmem:[#allocation2 + $0x450] ss:$8 sps:$4 sm:$0xff]  }
0x2148   : > { %v15208_v62 = vpack.c.bf16 %v11095_v4, %v11093_v0  ;;  %v15993_v0 = vld [vmem:[#allocation2 + $0x460] ss:$8 sps:$4 sm:$0xff]   ;;  %v15998_v4 = vld [vmem:[#allocation2 + $0x474] ss:$8 sps:$4 sm:$0xff]  }
0x214a   : > { %15209 = vmatprep.subr.bf16.mxu0 %v15208_v62 }
0x214b   : > { %15211 = vmatpush1.bf16.msra.mxu0 %v15210_v63 }
0x214c   : > { %15213 = vmatprep.subr.bf16.mxu0 %v15204_v47  ;;  %v15986_v47 = vld [vmem:[#allocation2 + $0x434] ss:$8 sps:$4 sm:$0xff]  }
0x214e   : > { %12463 = vmatmul.mubr.msk.f32.vlgmr.msra.gmra.mrb[138].mxu0 %vm5509_vm2, %v11096_v23  ;;  %v16001_v23 = vld [vmem:[#allocation2 + $0x484] ss:$8 sps:$4 sm:$0xff]  }
0x214f   : > { %15215 = vmatpush1.bf16.msra.mxu0 %v15206_v60  ;;  %11174 = vmatprep.mubr.f32.mxu0 %v17028_v29  ;;  %v15981_v60 = vld [vmem:[#allocation2 + $0x420] ss:$8 sps:$4 sm:$0xff]  }
0x2150   : > { %15217 = vmatprep.subr.bf16.mxu0 %v15208_v62  ;;  %v15996_v62 = vld [vmem:[#allocation2 + $0x470] ss:$8 sps:$4 sm:$0xff]  }
0x2152   : > { %12464 = vmatmul.mubr.msk.f32.gmra.mrb[140].mxu0 %vm5509_vm2, %v11097_v14  ;;  %v15999_v14 = vld [vmem:[#allocation2 + $0x480] ss:$8 sps:$4 sm:$0xff]  }
0x2153   : > { %15219 = vmatpush1.bf16.msra.mxu0 %v15210_v63  ;;  %11254 = vmatprep.mubr.f32.mxu0 %v17028_v29  ;;  %v15995_v63 = vld [vmem:[#allocation2 + $0x464] ss:$8 sps:$4 sm:$0xff]  }
0x2154   : > { %11668 = vmatprep.subr.bf16.mxu0 %v15932_v28  ;;  %v16004_v28 = vld [vmem:[#allocation2 + $0x494] ss:$8 sps:$4 sm:$0xff]  }
0x2156   : > { %12465 = vmatmul.mubr.msk.f32.vlgmr.msra.gmra.mrb[142].mxu0 %vm5509_vm2, %v11182_v11  ;;  %v16002_v11 = vld [vmem:[#allocation2 + $0x490] ss:$8 sps:$4 sm:$0xff]  }
0x2157   : > { %11260 = vmatprep.mubr.f32.mxu0 %v17028_v29  ;;  %11669 = vmatpush1.bf16.msra.mxu0 %v15930_v42  ;;  %v15945_v29 = vld [vmem:[#allocation2 + $0x360] ss:$8 sps:$4 sm:$0xff]   ;;  %v16007_v42 = vld [vmem:[#allocation2 + $0x4a4] ss:$8 sps:$4 sm:$0xff]  }
0x2158   : > { %11670 = vmatprep.subr.bf16.mxu0 %v15935_v10  ;;  %v16005_v10 = vld [vmem:[#allocation2 + $0x4a0] ss:$8 sps:$4 sm:$0xff]  }
0x215a   : > { %12466 = vmatmul.mubr.msk.f32.gmra.mrb[144].mxu0 %vm5509_vm2, %v11183_v3  ;;  %v16010_v3 = vld [vmem:[#allocation2 + $0x4b4] ss:$8 sps:$4 sm:$0xff]  }
0x215b   : > { %11671 = vmatpush1.bf16.msra.mxu0 %v15933_v58  ;;  %v16008_v58 = vld [vmem:[#allocation2 + $0x4b0] ss:$8 sps:$4 sm:$0xff]  }
0x215c   : > { %11672 = vmatprep.subr.bf16.mxu0 %v15938_v26  ;;  %v16013_v26 = vld [vmem:[#allocation2 + $0x4c4] ss:$8 sps:$4 sm:$0xff]  }
0x215f   : > { %11673 = vmatpush1.bf16.msra.mxu0 %v15936_v9  ;;  %v16011_v9 = vld [vmem:[#allocation2 + $0x4c0] ss:$8 sps:$4 sm:$0xff]  }
0x2160   : > { %11674 = vmatprep.subr.bf16.mxu0 %v15941_v46  ;;  %v16016_v46 = vld [vmem:[#allocation2 + $0x4d4] ss:$8 sps:$4 sm:$0xff]  }
0x2163   : > { %11675 = vmatpush1.bf16.msra.mxu0 %v15939_v55  ;;  %v16014_v55 = vld [vmem:[#allocation2 + $0x4d0] ss:$8 sps:$4 sm:$0xff]  }
0x2164   : > { %11676 = vmatprep.subr.bf16.mxu0 %v15944_v50  ;;  %v16019_v50 = vld [vmem:[#allocation2 + $0x4e4] ss:$8 sps:$4 sm:$0xff]  }
0x2167   : > { %11677 = vmatpush1.bf16.msra.mxu0 %v15942_v32  ;;  %v16017_v32 = vld [vmem:[#allocation2 + $0x4e0] ss:$8 sps:$4 sm:$0xff]  }
0x2168   : > { %11678 = vmatprep.subr.bf16.mxu0 %v15947_v2  ;;  %v16022_v2 = vld [vmem:[#allocation2 + $0x4f4] ss:$8 sps:$4 sm:$0xff]  }
0x216b   : > { %11679 = vmatpush1.bf16.msra.mxu0 %v15945_v29  ;;  %v16020_v29 = vld [vmem:[#allocation2 + $0x4f0] ss:$8 sps:$4 sm:$0xff]  }
0x216c   : > { %11680 = vmatprep.subr.bf16.mxu0 %v15950_v39  ;;  %v16025_v39 = vld [vmem:[#allocation2 + $0x504] ss:$8 sps:$4 sm:$0xff]  }
0x216f   : > { %11681 = vmatpush1.bf16.msra.mxu0 %v15948_v6  ;;  %v16023_v6 = vld [vmem:[#allocation2 + $0x500] ss:$8 sps:$4 sm:$0xff]  }
0x2170   : > { %11682 = vmatprep.subr.bf16.mxu0 %v15953_v45  ;;  %v11336_v45 = vld [vmem:[#allocation5 + $0x12] ss:$8 sm:$0x3] }
0x2173   : > { %11683 = vmatpush1.bf16.msra.mxu0 %v15951_v53  ;;  %v11341_v53 = vrot.slane %v11336_v45, %v21230_v57 }
0x2174   : > { %11684 = vmatprep.subr.bf16.mxu0 %v15956_v35  ;;  %v11345_v35 = vrot.slane %v11336_v45, %v21228_v13 }
0x2177   : > { %11685 = vmatpush1.bf16.msra.mxu0 %v15954_v59 }
0x2178   : > { %11686 = vmatprep.subr.bf16.mxu0 %v15959_v19 }
0x217b   : > { %11687 = vmatpush1.bf16.msra.mxu0 %v15957_v22 }
0x217c   : > { %11688 = vmatprep.subr.bf16.mxu0 %v15962_v21 }
0x217f   : > { %11689 = vmatpush1.bf16.msra.mxu0 %v15960_v51 }
0x2180   : > { %11690 = vmatprep.subr.bf16.mxu0 %v15965_v16 }
0x2183   : > { %11691 = vmatpush1.bf16.msra.mxu0 %v15963_v52 }
0x2184   : > { %11692 = vmatprep.subr.bf16.mxu0 %v15968_v12 }
0x2187   : > { %11693 = vmatpush1.bf16.msra.mxu0 %v15966_v61 }
0x2188   : > { %11694 = vmatprep.subr.bf16.mxu0 %v15971_v5 }
0x218b   : > { %11695 = vmatpush1.bf16.msra.mxu0 %v15969_v36 }
0x218c   : > { %11696 = vmatprep.subr.bf16.mxu0 %v15974_v49 }
0x218f   : > { %11697 = vmatpush1.bf16.msra.mxu0 %v15972_v30 }
0x2190   : > { %11698 = vmatprep.subr.bf16.mxu0 %v15977_v40 }
0x2193   : > { %11699 = vmatpush1.bf16.msra.mxu0 %v15975_v17 }
0x2194   : > { %11711 = vmatprep.subr.bf16.mxu0 %v15980_v27 }
0x2221   : > { %v11170_v25 = vpop.f32.mrb[138].mxu0 }
0x2222   : > { %v11172_v48 = vpop.f32.mrb[139].mxu0 }
0x2225   : > { %v11176_v24 = vpop.f32.mrb[140].mxu0 }
0x2226   : > { %v11267_v8 = vpack.c.bf16 %v11176_v24, %v11170_v25  ;;  %v11178_v33 = vpop.f32.mrb[141].mxu0 }
0x2227   : > { %v11268_v20 = vpack.c.bf16 %v11178_v33, %v11172_v48 }
0x2229   : > { %11700 = vmatprep.mubr.bf16.mxu0 %v11268_v20  ;;  %v21351_v38 = vpop.f32.mrb[142].mxu0 }
0x222a   : > { %11701 = vmatmul.mubr.bf16.vlgmr.msra.gmra.mrb[148].mxu0 %v11267_v8  ;;  %v11258_v34 = vpop.f32.mrb[143].mxu0 }
0x222b   : > { %11712 = vmatpush1.bf16.msra.mxu0 %v15978_v43 }
0x222c   : > { %11713 = vmatprep.subr.bf16.mxu0 %v15983_v1 }
0x222d   : > { %v11262_v18 = vpop.f32.mrb[144].mxu0 }
0x222e   : > { %v11269_v37 = vpack.c.bf16 %v11262_v18, %v21351_v38  ;;  %v11264_v41 = vpop.f32.mrb[145].mxu0 }
0x222f   : > { %11714 = vmatpush1.bf16.msra.mxu0 %v15981_v60  ;;  %v11270_v7 = vpack.c.bf16 %v11264_v41, %v11258_v34 }
0x2230   : > { %11715 = vmatprep.subr.bf16.mxu0 %v15986_v47 }
0x2231   : > { %11743 = vmatprep.mubr.bf16.mxu0 %v11270_v7 }
0x2233   : > { %11716 = vmatpush1.bf16.msra.mxu0 %v15984_v31 }
0x2234   : > { %11717 = vmatprep.subr.bf16.mxu0 %v15989_v44 }
0x2237   : > { %11718 = vmatpush1.bf16.msra.mxu0 %v15987_v56 }
0x2238   : > { %11719 = vmatprep.subr.bf16.mxu0 %v15992_v54 }
0x223b   : > { %11720 = vmatpush1.bf16.msra.mxu0 %v15990_v15 }
0x223c   : > { %11721 = vmatprep.subr.bf16.mxu0 %v15995_v63 }
0x223f   : > { %11722 = vmatpush1.bf16.msra.mxu0 %v15993_v0 }
0x2240   : > { %11723 = vmatprep.subr.bf16.mxu0 %v15998_v4 }
0x2243   : > { %11724 = vmatpush1.bf16.msra.mxu0 %v15996_v62 }
0x2244   : > { %11725 = vmatprep.subr.bf16.mxu0 %v16001_v23 }
0x2247   : > { %11726 = vmatpush1.bf16.msra.mxu0 %v15999_v14 }
0x2248   : > { %11727 = vmatprep.subr.bf16.mxu0 %v16004_v28 }
0x224b   : > { %11728 = vmatpush1.bf16.msra.mxu0 %v16002_v11 }
0x224c   : > { %11729 = vmatprep.subr.bf16.mxu0 %v16007_v42 }
0x224f   : > { %11730 = vmatpush1.bf16.msra.mxu0 %v16005_v10 }
0x2250   : > { %11731 = vmatprep.subr.bf16.mxu0 %v16010_v3 }
0x2253   : > { %11732 = vmatpush1.bf16.msra.mxu0 %v16008_v58 }
0x2254   : > { %11733 = vmatprep.subr.bf16.mxu0 %v16013_v26 }
0x2257   : > { %11734 = vmatpush1.bf16.msra.mxu0 %v16011_v9 }
0x2258   : > { %11735 = vmatprep.subr.bf16.mxu0 %v16016_v46 }
0x225b   : > { %11736 = vmatpush1.bf16.msra.mxu0 %v16014_v55 }
0x225c   : > { %11737 = vmatprep.subr.bf16.mxu0 %v16019_v50 }
0x225f   : > { %11738 = vmatpush1.bf16.msra.mxu0 %v16017_v32 }
0x2260   : > { %11739 = vmatprep.subr.bf16.mxu0 %v16022_v2 }
0x2263   : > { %11740 = vmatpush1.bf16.msra.mxu0 %v16020_v29 }
0x2264   : > { %11741 = vmatprep.subr.bf16.mxu0 %v16025_v39 }
0x2267   : > { %11742 = vmatpush1.bf16.msra.mxu0 %v16023_v6 }
0x226a   : > { %11744 = vmatmul.mubr.bf16.vlgmr.msra.gmra.mrb[148].mxu0 %v11269_v37 }
0x233d   : > { %v11745_v59 = vpop.f32.mrb[148].mxu0 }
0x233e   : > { %v15228_v19 = vadd.f32 %v11745_v59, %v11341_v53  ;;  %v11747_v22 = vpop.f32.mrb[149].mxu0 }
0x233f   : > { %v15229_v21 = vadd.f32 %v11747_v22, %v11345_v35  ;;  %v11749_v51 = vpop.f32.mrb[150].mxu0 }
0x2340   : > { %11754 = vst [vmem:[%s345_s26] sm:$0xff] %v15228_v19  ;;  %v15230_v16 = vadd.f32 %v11749_v51, %v11341_v53  ;;  %v11751_v52 = vpop.f32.mrb[151].mxu0 }
0x2341   : > { %11755 = vst [vmem:[%s345_s26 + $0x8] sm:$0xff] %v15229_v21  ;;  %v15231_v57 = vadd.f32 %v11751_v52, %v11345_v35 }
0x2342   : > { %11756 = vst [vmem:[%s345_s26 + $0x10] sm:$0xff] %v15230_v16 }
0x2343   : > { %11757 = vst [vmem:[%s345_s26 + $0x18] sm:$0xff] %v15231_v57 }
0x2344   : > { %16947 = shalt.err (!%p16944_p0)
}
0x2345   : > { %s16948_s14 = scalar_lea.hbm %s21363_s22, 512  ;;  %s16952_s21 = scalar_lea.hbm %s21414_s7, 1024 }
0x2346   : > { %p16949_p5 = scmp.ne.s32.totalorder %s21363_s22, %s16948_s14  ;;  %p16953_p10 = scmp.lt.u32.totalorder %s21363_s22, %s21414_s7 }
0x2347   : > { %p16954_p12 = scmp.lt.u32.totalorder %s16952_s21, %s16948_s14  ;;  %p16956_p2 = scmp.lt.u32.totalorder %s16948_s14, %s21363_s22 }
0x2348   : > { %p16950_p6 = pnand %p16949_p5, %p22169_p3 }
0x2349   : > { %p16955_p1 = por %p16954_p12, %p16953_p10 }
0x234a   : > { %p16951_p9 = pneg %p16950_p6 }
0x234b   : > { %p16957_p4 = por %p16956_p2, %p16955_p1 }
0x234d   : > { %p16958_p7 = pnand %p16957_p4, %p16951_p9 }
0x234f   : > { %16961 = shalt.err (!%p16958_p7)
}
0x2350   : > { %s17030_s26 = smov 256  }
0x2351   : > { %15456 = dma.vmem_to_hbm [thread:$0]  (%p22169_p3), %s21358_s13, 512, %s21363_s22, %s21365_s28, %s17030_s26, %s17030_s26, %s17024_s17  }
0x2352 PF: > { %p15488_p8 = scmp.ge.s32.totalorder %s17008_s27, 2  ;;  %s11788_s16 = sand.u32 1, %s16996_s24  }
0x2353   : > { %p22170_p11 = scmp.ne.s32.totalorder %s21671_s12, 0  ;;  %s11789_s29 = scalar_lea.sflag [#allocation4], %s11788_s16 }
0x2355   : > { %p15475_p13 = pnand %p15488_p8, %p22170_p11 }
0x2357   : > { %16991 = dma.done.wait (!%p15475_p13), %s11789_s29, 512  }
0x2358   : > { %16993 = vsyncadd (!%p15475_p13), %s11789_s29, 4294966784  ;;  %s22171_s10 = sld [smem:[#allocation16_spill]]  ;;  %s22172_s26 = sld [smem:[#allocation17_spill]] }
0x2359   : > { %p20_p0 = scmp.ge.s32.totalorder %s17096_s30, 4   ;;  %s22173_s24 = smov %s17000_s25 }
0x235a   : > { %s22175_s27 = smov %s17096_s30 }
0x235b   :  { %22 = sbr.rel (!%p20_p0) target bundleno = 8 (0x8), region = 108 }
0x235e   : > { %s22174_s25 = smov %s22171_s10 }
0x2362   :  { %11794 = vsyncpa [#allocation3], 1 }
0x2363   :  { %11796 = vsyncpa [#allocation3 + $0x1], 1 }
0x2364   :  { %11797 = vsyncpa [#allocation6], 1 }
0x2365   :  { %11798 = vsyncpa [#allocation9], 1 }
0x2366   :  { %11799 = vsyncpa [#allocation4], 1 }
0x2367   :  { %11801 = vsyncpa [#allocation4 + $0x1], 1 }

</bundles_post_ra>
